<compile_context>
chip_gen: v7x
topology: tpu7x:2x2x1
jax: 0.10.0
libtpu: 0.0.40
codegen_flags: <defaults>
</compile_context>

<pallas_src>
import functools

import jax
import jax.numpy as jnp
from jax.experimental import pallas as pl
from jax.experimental.pallas import tpu as pltpu


# ---------------------------------------------------------------------------
# In-kernel helpers
# ---------------------------------------------------------------------------
def _conv3x3_from_pad(pad_ref, w_ref, b_ref, H, W, C):
    """3x3 conv (stride 1) reading the zero-padded (H+2, W+2, C) scratch.

    Decomposed into 9 accumulating MXU matmuls (H*W, C) @ (C, C).
    Returns an (H*W, C) float32 value (bias already added).
    """
    acc = jnp.zeros((H * W, C), jnp.float32)
    for t in range(9):
        dy, dx = t // 3, t % 3
        patch = pad_ref[pl.ds(dy, H), pl.ds(dx, W), :].reshape(H * W, C)
        acc = acc + jnp.dot(patch, w_ref[t], preferred_element_type=jnp.float32)
    return acc + b_ref[...]


def rca_group_kernel(x_ref,
                     w1_ref, b1_ref, w2_ref, b2_ref,
                     wd_ref, bd_ref, wu_ref, bu_ref,
                     wl_ref, bl_ref,
                     o_ref,
                     state_ref, pad_ref, *, H, W, C, nb):
    """Grid point (n, j): RCABlock j of batch element n.

    The residual activation is kept in `state_ref` (VMEM) across the block
    axis.  At j == nb-1 the tail conv + outer skip are fused in and the
    result is written to o_ref (flushed to HBM once per batch element).
    """
    j = pl.program_id(1)

    @pl.when(j == 0)
    def _init():
        # Zero the padded staging buffer once per batch element; its border
        # stays zero for every conv in the chain.
        pad_ref[...] = jnp.zeros((H + 2, W + 2, C), jnp.float32)
        state_ref[...] = x_ref[...]

    # ---------------- RCABlock j: conv3x3 -> ReLU -> conv3x3 ---------------
    x_in = state_ref[...]                                        # (H, W, C)
    pad_ref[pl.ds(1, H), pl.ds(1, W), :] = x_in
    h1 = jnp.maximum(_conv3x3_from_pad(pad_ref, w1_ref, b1_ref, H, W, C), 0.0)
    pad_ref[pl.ds(1, H), pl.ds(1, W), :] = h1.reshape(H, W, C)
    res = _conv3x3_from_pad(pad_ref, w2_ref, b2_ref, H, W, C)    # (H*W, C)

    # Channel attention: avgpool -> FC(C->Cr) -> ReLU -> FC(Cr->C) -> sigmoid
    y = jnp.mean(res, axis=0, keepdims=True)                     # (1, C)
    z = jnp.dot(y, wd_ref[...], preferred_element_type=jnp.float32) + bd_ref[...]
    z = jnp.maximum(z, 0.0)                                      # (1, Cr)
    s = jnp.dot(z, wu_ref[...], preferred_element_type=jnp.float32) + bu_ref[...]
    s = jax.nn.sigmoid(s)                                        # (1, C)

    out = res * s + x_in.reshape(H * W, C)                       # CA scale + skip
    state_ref[...] = out.reshape(H, W, C)

    # ------------- tail conv3x3 + RCAGroup outer residual ------------------
    @pl.when(j == nb - 1)
    def _tail():
        pad_ref[pl.ds(1, H), pl.ds(1, W), :] = out.reshape(H, W, C)
        tail = _conv3x3_from_pad(pad_ref, wl_ref, bl_ref, H, W, C)
        o_ref[...] = (tail + x_ref[...].reshape(H * W, C)).reshape(H, W, C)


# ---------------------------------------------------------------------------
# Wrapper
# ---------------------------------------------------------------------------
def rca_group_forward(x, params):
    """Pallas forward pass of RCAGroup.

    x: (N, C, H, W) float32 (PyTorch NCHW layout).
    params: {"blocks": [ {w1,b1,w2,b2,wd,bd,wu,bu} ... ], "w_last", "b_last"}
            in torch Conv2d weight layouts.
    """
    N, C, H, W = x.shape
    blocks = params["blocks"]
    nb = len(blocks)
    Cr = blocks[0]["wd"].shape[0]
    f32 = jnp.float32

    x_nhwc = jnp.transpose(x, (0, 2, 3, 1)).astype(f32)

    def conv_w(w):  # torch (Cout, Cin, 3, 3) -> (9, Cin, Cout) for patch @ W
        return jnp.transpose(w, (2, 3, 1, 0)).reshape(9, C, C).astype(f32)

    # Stack per-block parameters along a leading block axis (streamed by grid).
    w1 = jnp.stack([conv_w(b["w1"]) for b in blocks])                         # (nb,9,C,C)
    b1 = jnp.stack([b["b1"].reshape(1, C) for b in blocks]).astype(f32)       # (nb,1,C)
    w2 = jnp.stack([conv_w(b["w2"]) for b in blocks])                         # (nb,9,C,C)
    b2 = jnp.stack([b["b2"].reshape(1, C) for b in blocks]).astype(f32)       # (nb,1,C)
    wd = jnp.stack([b["wd"].reshape(Cr, C).T for b in blocks]).astype(f32)    # (nb,C,Cr)
    bd = jnp.stack([b["bd"].reshape(1, Cr) for b in blocks]).astype(f32)      # (nb,1,Cr)
    wu = jnp.stack([b["wu"].reshape(C, Cr).T for b in blocks]).astype(f32)    # (nb,Cr,C)
    bu = jnp.stack([b["bu"].reshape(1, C) for b in blocks]).astype(f32)       # (nb,1,C)
    wl = conv_w(params["w_last"])                                             # (9,C,C)
    bl = params["b_last"].reshape(1, C).astype(f32)                           # (1,C)

    plane = pl.BlockSpec((None, H, W, C), lambda n, j: (n, 0, 0, 0))

    def per_block(shape):  # stacked weight, indexed by block id j
        nd = len(shape)
        return pl.BlockSpec((None,) + shape,
                            lambda n, j, _nd=nd: (j,) + (0,) * _nd)

    def const(shape):      # single weight, resident across the whole grid
        nd = len(shape)
        return pl.BlockSpec(shape, lambda n, j, _nd=nd: (0,) * _nd)

    out_nhwc = pl.pallas_call(
        functools.partial(rca_group_kernel, H=H, W=W, C=C, nb=nb),
        out_shape=jax.ShapeDtypeStruct((N, H, W, C), f32),
        grid=(N, nb),
        in_specs=[
            plane,
            per_block((9, C, C)), per_block((1, C)),
            per_block((9, C, C)), per_block((1, C)),
            per_block((C, Cr)), per_block((1, Cr)),
            per_block((Cr, C)), per_block((1, C)),
            const((9, C, C)), const((1, C)),
        ],
        out_specs=plane,
        scratch_shapes=[
            pltpu.VMEM((H, W, C), f32),          # residual activation (state)
            pltpu.VMEM((H + 2, W + 2, C), f32),  # zero-padded conv staging
        ],
        compiler_params=pltpu.CompilerParams(
            dimension_semantics=("parallel", "arbitrary")),
    )(x_nhwc, w1, b1, w2, b2, wd, bd, wu, bu, wl, bl)

    return jnp.transpose(out_nhwc, (0, 3, 1, 2))


# ---------------------------------------------------------------------------
# Pure-JAX reference (mirrors the PyTorch forward semantics)
# ---------------------------------------------------------------------------
def reference_forward(x, params):
    P = jax.lax.Precision.HIGHEST

    def conv3x3(v, w, b):
        y = jax.lax.conv_general_dilated(
            v, w, window_strides=(1, 1), padding=((1, 1), (1, 1)),
            dimension_numbers=("NCHW", "OIHW", "NCHW"), precision=P)
        return y + b.reshape(1, -1, 1, 1)

    res = x
    for blk in params["blocks"]:
        Cr = blk["wd"].shape[0]
        h = jnp.maximum(conv3x3(res, blk["w1"], blk["b1"]), 0.0)
        r = conv3x3(h, blk["w2"], blk["b2"])
        y = jnp.mean(r, axis=(2, 3), keepdims=True)                    # (N,C,1,1)
        z = jnp.einsum("nchw,dc->ndhw", y, blk["wd"].reshape(Cr, -1),
                       precision=P) + blk["bd"].reshape(1, -1, 1, 1)
        z = jnp.maximum(z, 0.0)
        s = jnp.einsum("ndhw,cd->nchw", z, blk["wu"].reshape(-1, Cr),
                       precision=P) + blk["bu"].reshape(1, -1, 1, 1)
        s = jax.nn.sigmoid(s)
        res = r * s + res
    out = conv3x3(res, params["w_last"], params["b_last"]) + x
    return out


if __name__ == "__main__":
    # Small shapes consistent with the module defaults (channel=64, reduction=16);
    # nb reduced to 2 blocks to keep the demo small.
    N, C, H, W = 2, 64, 16, 16
    reduction = 16
    Cr = C // reduction
    nb = 2

    key = jax.random.PRNGKey(0)
    keys = jax.random.split(key, 1 + nb * 8 + 2)

    def normal(k, shape, scale):
        return jax.random.normal(k, shape, jnp.float32) * scale

    x = jax.random.normal(keys[0], (N, C, H, W), jnp.float32)

    blocks = []
    ki = 1
    for _ in range(nb):
        blocks.append(dict(
            w1=normal(keys[ki + 0], (C, C, 3, 3), 0.05),
            b1=normal(keys[ki + 1], (C,), 0.02),
            w2=normal(keys[ki + 2], (C, C, 3, 3), 0.05),
            b2=normal(keys[ki + 3], (C,), 0.02),
            wd=normal(keys[ki + 4], (Cr, C, 1, 1), 0.1),   # Conv2d(C, C/r, 1)
            bd=normal(keys[ki + 5], (Cr,), 0.02),
            wu=normal(keys[ki + 6], (C, Cr, 1, 1), 0.1),   # Conv2d(C/r, C, 1)
            bu=normal(keys[ki + 7], (C,), 0.02),
        ))
        ki += 8
    params = dict(
        blocks=blocks,
        w_last=normal(keys[ki], (C, C, 3, 3), 0.05),
        b_last=normal(keys[ki + 1], (C,), 0.02),
    )

    out = jax.block_until_ready(rca_group_forward(x, params))
    ref = jax.block_until_ready(reference_forward(x, params))

    max_err = float(jnp.max(jnp.abs(out - ref)))
    assert out.shape == (N, C, H, W), out.shape
    assert max_err < 3e-2, f"mismatch vs reference: {max_err}"
    print("KERNEL_OK")
</pallas_src>

<mosaic_0001>
module attributes {stable_mosaic.version = 11 : i64} {
  func.func @rca_group_kernel(%arg0: i32, %arg1: i32, %arg2: memref<1x16x16x64xf32, #tpu.memory_space<vmem>>, %arg3: memref<1x9x64x64xf32, #tpu.memory_space<vmem>>, %arg4: memref<1x1x64xf32, #tpu.memory_space<vmem>>, %arg5: memref<1x9x64x64xf32, #tpu.memory_space<vmem>>, %arg6: memref<1x1x64xf32, #tpu.memory_space<vmem>>, %arg7: memref<1x64x4xf32, #tpu.memory_space<vmem>>, %arg8: memref<1x1x4xf32, #tpu.memory_space<vmem>>, %arg9: memref<1x4x64xf32, #tpu.memory_space<vmem>>, %arg10: memref<1x1x64xf32, #tpu.memory_space<vmem>>, %arg11: memref<9x64x64xf32, #tpu.memory_space<vmem>>, %arg12: memref<1x64xf32, #tpu.memory_space<vmem>>, %arg13: memref<1x16x16x64xf32, #tpu.memory_space<vmem>>, %arg14: memref<16x16x64xf32, #tpu.memory_space<vmem>>, %arg15: memref<18x18x64xf32, #tpu.memory_space<vmem>>) attributes {dimension_semantics = [#tpu.dimension_semantics<parallel>, #tpu.dimension_semantics<arbitrary>], iteration_bounds = array<i64: 2, 2>, scalar_prefetch = 0 : i64, scratch_operands = 2 : i64, tpu.core_type = #tpu.core_type<tc>, window_params = [{transform_indices = @transform_0, window_bounds = array<i64: 1, 16, 16, 64>}, {transform_indices = @transform_1, window_bounds = array<i64: 1, 9, 64, 64>}, {transform_indices = @transform_2, window_bounds = array<i64: 1, 1, 64>}, {transform_indices = @transform_3, window_bounds = array<i64: 1, 9, 64, 64>}, {transform_indices = @transform_4, window_bounds = array<i64: 1, 1, 64>}, {transform_indices = @transform_5, window_bounds = array<i64: 1, 64, 4>}, {transform_indices = @transform_6, window_bounds = array<i64: 1, 1, 4>}, {transform_indices = @transform_7, window_bounds = array<i64: 1, 4, 64>}, {transform_indices = @transform_8, window_bounds = array<i64: 1, 1, 64>}, {pipeline_mode = #tpu.pipeline_mode<synchronous>, transform_indices = @transform_9, window_bounds = array<i64: 9, 64, 64>}, {pipeline_mode = #tpu.pipeline_mode<synchronous>, transform_indices = @transform_10, window_bounds = array<i64: 1, 64>}, {transform_indices = @transform_11, window_bounds = array<i64: 1, 16, 16, 64>}]} {
    %c0_i32 = arith.constant 0 : i32
    %0 = arith.cmpi eq, %arg1, %c0_i32 : i32
    %1 = arith.extui %0 : i1 to i32
    %c0_i32_0 = arith.constant 0 : i32
    %2 = arith.cmpi ne, %1, %c0_i32_0 : i32
    scf.if %2 {
      %cst_175 = arith.constant 0.000000e+00 : f32
      %159 = vector.broadcast %cst_175 : f32 to vector<18x18x64xf32>
      %c0_176 = arith.constant 0 : index
      %c0_177 = arith.constant 0 : index
      %c0_178 = arith.constant 0 : index
      %160 = vector.load %arg15[%c0_176, %c0_177, %c0_178] : memref<18x18x64xf32, #tpu.memory_space<vmem>>, vector<18x18x64xf32>
      tpu.vector_store %arg15[%c0_176, %c0_177, %c0_178], %159 {strides = array<i32>} : memref<18x18x64xf32, #tpu.memory_space<vmem>>, vector<18x18x64xf32>,
      %c0_179 = arith.constant 0 : index
      %c0_180 = arith.constant 0 : index
      %c0_181 = arith.constant 0 : index
      %c0_182 = arith.constant 0 : index
      %161 = vector.load %arg2[%c0_179, %c0_180, %c0_181, %c0_182] : memref<1x16x16x64xf32, #tpu.memory_space<vmem>>, vector<1x16x16x64xf32>
      %162 = vector.shape_cast %161 : vector<1x16x16x64xf32> to vector<16x16x64xf32>
      %c0_183 = arith.constant 0 : index
      %c0_184 = arith.constant 0 : index
      %c0_185 = arith.constant 0 : index
      %163 = vector.load %arg14[%c0_183, %c0_184, %c0_185] : memref<16x16x64xf32, #tpu.memory_space<vmem>>, vector<16x16x64xf32>
      tpu.vector_store %arg14[%c0_183, %c0_184, %c0_185], %162 {strides = array<i32>} : memref<16x16x64xf32, #tpu.memory_space<vmem>>, vector<16x16x64xf32>,
    } else {
    }
    %c0 = arith.constant 0 : index
    %c0_1 = arith.constant 0 : index
    %c0_2 = arith.constant 0 : index
    %3 = vector.load %arg14[%c0, %c0_1, %c0_2] : memref<16x16x64xf32, #tpu.memory_space<vmem>>, vector<16x16x64xf32>
    %c1 = arith.constant 1 : index
    %c1_3 = arith.constant 1 : index
    %c0_4 = arith.constant 0 : index
    %4 = vector.load %arg15[%c1, %c1_3, %c0_4] : memref<18x18x64xf32, #tpu.memory_space<vmem>>, vector<16x16x64xf32>
    tpu.vector_store %arg15[%c1, %c1_3, %c0_4], %3 {strides = array<i32>} : memref<18x18x64xf32, #tpu.memory_space<vmem>>, vector<16x16x64xf32>,
    %cst = arith.constant 0.000000e+00 : f32
    %5 = vector.broadcast %cst : f32 to vector<256x64xf32>
    %c0_5 = arith.constant 0 : index
    %c0_6 = arith.constant 0 : index
    %c0_7 = arith.constant 0 : index
    %6 = vector.load %arg15[%c0_5, %c0_6, %c0_7] : memref<18x18x64xf32, #tpu.memory_space<vmem>>, vector<16x16x64xf32>
    %7 = vector.shape_cast %6 : vector<16x16x64xf32> to vector<256x64xf32>
    %c0_8 = arith.constant 0 : index
    %c0_9 = arith.constant 0 : index
    %c0_10 = arith.constant 0 : index
    %c0_11 = arith.constant 0 : index
    %8 = vector.load %arg3[%c0_8, %c0_9, %c0_10, %c0_11] : memref<1x9x64x64xf32, #tpu.memory_space<vmem>>, vector<1x1x64x64xf32>
    %9 = vector.shape_cast %8 : vector<1x1x64x64xf32> to vector<64x64xf32>
    %cst_12 = arith.constant dense<0.000000e+00> : vector<256x64xf32>
    %10 = tpu.matmul %7, %9, %cst_12 {dimension_numbers = #tpu.dot_dimension_numbers<[1], [0], [0], [1], [0, 0, 1, 1], [], []>} : vector<256x64xf32>, vector<64x64xf32>, vector<256x64xf32> -> vector<256x64xf32>
    %11 = arith.addf %5, %10 : vector<256x64xf32>
    %c0_13 = arith.constant 0 : index
    %c1_14 = arith.constant 1 : index
    %c0_15 = arith.constant 0 : index
    %12 = vector.load %arg15[%c0_13, %c1_14, %c0_15] : memref<18x18x64xf32, #tpu.memory_space<vmem>>, vector<16x16x64xf32>
    %13 = vector.shape_cast %12 : vector<16x16x64xf32> to vector<256x64xf32>
    %c0_16 = arith.constant 0 : index
    %c1_17 = arith.constant 1 : index
    %c0_18 = arith.constant 0 : index
    %c0_19 = arith.constant 0 : index
    %14 = vector.load %arg3[%c0_16, %c1_17, %c0_18, %c0_19] : memref<1x9x64x64xf32, #tpu.memory_space<vmem>>, vector<1x1x64x64xf32>
    %15 = vector.shape_cast %14 : vector<1x1x64x64xf32> to vector<64x64xf32>
    %cst_20 = arith.constant dense<0.000000e+00> : vector<256x64xf32>
    %16 = tpu.matmul %13, %15, %cst_20 {dimension_numbers = #tpu.dot_dimension_numbers<[1], [0], [0], [1], [0, 0, 1, 1], [], []>} : vector<256x64xf32>, vector<64x64xf32>, vector<256x64xf32> -> vector<256x64xf32>
    %17 = arith.addf %11, %16 : vector<256x64xf32>
    %c0_21 = arith.constant 0 : index
    %c2 = arith.constant 2 : index
    %c0_22 = arith.constant 0 : index
    %18 = vector.load %arg15[%c0_21, %c2, %c0_22] : memref<18x18x64xf32, #tpu.memory_space<vmem>>, vector<16x16x64xf32>
    %19 = vector.shape_cast %18 : vector<16x16x64xf32> to vector<256x64xf32>
    %c0_23 = arith.constant 0 : index
    %c2_24 = arith.constant 2 : index
    %c0_25 = arith.constant 0 : index
    %c0_26 = arith.constant 0 : index
    %20 = vector.load %arg3[%c0_23, %c2_24, %c0_25, %c0_26] : memref<1x9x64x64xf32, #tpu.memory_space<vmem>>, vector<1x1x64x64xf32>
    %21 = vector.shape_cast %20 : vector<1x1x64x64xf32> to vector<64x64xf32>
    %cst_27 = arith.constant dense<0.000000e+00> : vector<256x64xf32>
    %22 = tpu.matmul %19, %21, %cst_27 {dimension_numbers = #tpu.dot_dimension_numbers<[1], [0], [0], [1], [0, 0, 1, 1], [], []>} : vector<256x64xf32>, vector<64x64xf32>, vector<256x64xf32> -> vector<256x64xf32>
    %23 = arith.addf %17, %22 : vector<256x64xf32>
    %c1_28 = arith.constant 1 : index
    %c0_29 = arith.constant 0 : index
    %c0_30 = arith.constant 0 : index
    %24 = vector.load %arg15[%c1_28, %c0_29, %c0_30] : memref<18x18x64xf32, #tpu.memory_space<vmem>>, vector<16x16x64xf32>
    %25 = vector.shape_cast %24 : vector<16x16x64xf32> to vector<256x64xf32>
    %c0_31 = arith.constant 0 : index
    %c3 = arith.constant 3 : index
    %c0_32 = arith.constant 0 : index
    %c0_33 = arith.constant 0 : index
    %26 = vector.load %arg3[%c0_31, %c3, %c0_32, %c0_33] : memref<1x9x64x64xf32, #tpu.memory_space<vmem>>, vector<1x1x64x64xf32>
    %27 = vector.shape_cast %26 : vector<1x1x64x64xf32> to vector<64x64xf32>
    %cst_34 = arith.constant dense<0.000000e+00> : vector<256x64xf32>
    %28 = tpu.matmul %25, %27, %cst_34 {dimension_numbers = #tpu.dot_dimension_numbers<[1], [0], [0], [1], [0, 0, 1, 1], [], []>} : vector<256x64xf32>, vector<64x64xf32>, vector<256x64xf32> -> vector<256x64xf32>
    %29 = arith.addf %23, %28 : vector<256x64xf32>
    %c1_35 = arith.constant 1 : index
    %c1_36 = arith.constant 1 : index
    %c0_37 = arith.constant 0 : index
    %30 = vector.load %arg15[%c1_35, %c1_36, %c0_37] : memref<18x18x64xf32, #tpu.memory_space<vmem>>, vector<16x16x64xf32>
    %31 = vector.shape_cast %30 : vector<16x16x64xf32> to vector<256x64xf32>
    %c0_38 = arith.constant 0 : index
    %c4 = arith.constant 4 : index
    %c0_39 = arith.constant 0 : index
    %c0_40 = arith.constant 0 : index
    %32 = vector.load %arg3[%c0_38, %c4, %c0_39, %c0_40] : memref<1x9x64x64xf32, #tpu.memory_space<vmem>>, vector<1x1x64x64xf32>
    %33 = vector.shape_cast %32 : vector<1x1x64x64xf32> to vector<64x64xf32>
    %cst_41 = arith.constant dense<0.000000e+00> : vector<256x64xf32>
    %34 = tpu.matmul %31, %33, %cst_41 {dimension_numbers = #tpu.dot_dimension_numbers<[1], [0], [0], [1], [0, 0, 1, 1], [], []>} : vector<256x64xf32>, vector<64x64xf32>, vector<256x64xf32> -> vector<256x64xf32>
    %35 = arith.addf %29, %34 : vector<256x64xf32>
    %c1_42 = arith.constant 1 : index
    %c2_43 = arith.constant 2 : index
    %c0_44 = arith.constant 0 : index
    %36 = vector.load %arg15[%c1_42, %c2_43, %c0_44] : memref<18x18x64xf32, #tpu.memory_space<vmem>>, vector<16x16x64xf32>
    %37 = vector.shape_cast %36 : vector<16x16x64xf32> to vector<256x64xf32>
    %c0_45 = arith.constant 0 : index
    %c5 = arith.constant 5 : index
    %c0_46 = arith.constant 0 : index
    %c0_47 = arith.constant 0 : index
    %38 = vector.load %arg3[%c0_45, %c5, %c0_46, %c0_47] : memref<1x9x64x64xf32, #tpu.memory_space<vmem>>, vector<1x1x64x64xf32>
    %39 = vector.shape_cast %38 : vector<1x1x64x64xf32> to vector<64x64xf32>
    %cst_48 = arith.constant dense<0.000000e+00> : vector<256x64xf32>
    %40 = tpu.matmul %37, %39, %cst_48 {dimension_numbers = #tpu.dot_dimension_numbers<[1], [0], [0], [1], [0, 0, 1, 1], [], []>} : vector<256x64xf32>, vector<64x64xf32>, vector<256x64xf32> -> vector<256x64xf32>
    %41 = arith.addf %35, %40 : vector<256x64xf32>
    %c2_49 = arith.constant 2 : index
    %c0_50 = arith.constant 0 : index
    %c0_51 = arith.constant 0 : index
    %42 = vector.load %arg15[%c2_49, %c0_50, %c0_51] : memref<18x18x64xf32, #tpu.memory_space<vmem>>, vector<16x16x64xf32>
    %43 = vector.shape_cast %42 : vector<16x16x64xf32> to vector<256x64xf32>
    %c0_52 = arith.constant 0 : index
    %c6 = arith.constant 6 : index
    %c0_53 = arith.constant 0 : index
    %c0_54 = arith.constant 0 : index
    %44 = vector.load %arg3[%c0_52, %c6, %c0_53, %c0_54] : memref<1x9x64x64xf32, #tpu.memory_space<vmem>>, vector<1x1x64x64xf32>
    %45 = vector.shape_cast %44 : vector<1x1x64x64xf32> to vector<64x64xf32>
    %cst_55 = arith.constant dense<0.000000e+00> : vector<256x64xf32>
    %46 = tpu.matmul %43, %45, %cst_55 {dimension_numbers = #tpu.dot_dimension_numbers<[1], [0], [0], [1], [0, 0, 1, 1], [], []>} : vector<256x64xf32>, vector<64x64xf32>, vector<256x64xf32> -> vector<256x64xf32>
    %47 = arith.addf %41, %46 : vector<256x64xf32>
    %c2_56 = arith.constant 2 : index
    %c1_57 = arith.constant 1 : index
    %c0_58 = arith.constant 0 : index
    %48 = vector.load %arg15[%c2_56, %c1_57, %c0_58] : memref<18x18x64xf32, #tpu.memory_space<vmem>>, vector<16x16x64xf32>
    %49 = vector.shape_cast %48 : vector<16x16x64xf32> to vector<256x64xf32>
    %c0_59 = arith.constant 0 : index
    %c7 = arith.constant 7 : index
    %c0_60 = arith.constant 0 : index
    %c0_61 = arith.constant 0 : index
    %50 = vector.load %arg3[%c0_59, %c7, %c0_60, %c0_61] : memref<1x9x64x64xf32, #tpu.memory_space<vmem>>, vector<1x1x64x64xf32>
    %51 = vector.shape_cast %50 : vector<1x1x64x64xf32> to vector<64x64xf32>
    %cst_62 = arith.constant dense<0.000000e+00> : vector<256x64xf32>
    %52 = tpu.matmul %49, %51, %cst_62 {dimension_numbers = #tpu.dot_dimension_numbers<[1], [0], [0], [1], [0, 0, 1, 1], [], []>} : vector<256x64xf32>, vector<64x64xf32>, vector<256x64xf32> -> vector<256x64xf32>
    %53 = arith.addf %47, %52 : vector<256x64xf32>
    %c2_63 = arith.constant 2 : index
    %c2_64 = arith.constant 2 : index
    %c0_65 = arith.constant 0 : index
    %54 = vector.load %arg15[%c2_63, %c2_64, %c0_65] : memref<18x18x64xf32, #tpu.memory_space<vmem>>, vector<16x16x64xf32>
    %55 = vector.shape_cast %54 : vector<16x16x64xf32> to vector<256x64xf32>
    %c0_66 = arith.constant 0 : index
    %c8 = arith.constant 8 : index
    %c0_67 = arith.constant 0 : index
    %c0_68 = arith.constant 0 : index
    %56 = vector.load %arg3[%c0_66, %c8, %c0_67, %c0_68] : memref<1x9x64x64xf32, #tpu.memory_space<vmem>>, vector<1x1x64x64xf32>
    %57 = vector.shape_cast %56 : vector<1x1x64x64xf32> to vector<64x64xf32>
    %cst_69 = arith.constant dense<0.000000e+00> : vector<256x64xf32>
    %58 = tpu.matmul %55, %57, %cst_69 {dimension_numbers = #tpu.dot_dimension_numbers<[1], [0], [0], [1], [0, 0, 1, 1], [], []>} : vector<256x64xf32>, vector<64x64xf32>, vector<256x64xf32> -> vector<256x64xf32>
    %59 = arith.addf %53, %58 : vector<256x64xf32>
    %c0_70 = arith.constant 0 : index
    %c0_71 = arith.constant 0 : index
    %c0_72 = arith.constant 0 : index
    %60 = vector.load %arg4[%c0_70, %c0_71, %c0_72] : memref<1x1x64xf32, #tpu.memory_space<vmem>>, vector<1x1x64xf32>
    %61 = vector.shape_cast %60 : vector<1x1x64xf32> to vector<1x64xf32>
    %62 = vector.broadcast %61 : vector<1x64xf32> to vector<256x64xf32>
    %63 = arith.addf %59, %62 : vector<256x64xf32>
    %cst_73 = arith.constant 0.000000e+00 : f32
    %64 = vector.broadcast %cst_73 : f32 to vector<256x64xf32>
    %65 = arith.maximumf %63, %64 : vector<256x64xf32>
    %66 = vector.shape_cast %65 : vector<256x64xf32> to vector<16x16x64xf32>
    %c1_74 = arith.constant 1 : index
    %c1_75 = arith.constant 1 : index
    %c0_76 = arith.constant 0 : index
    %67 = vector.load %arg15[%c1_74, %c1_75, %c0_76] : memref<18x18x64xf32, #tpu.memory_space<vmem>>, vector<16x16x64xf32>
    tpu.vector_store %arg15[%c1_74, %c1_75, %c0_76], %66 {strides = array<i32>} : memref<18x18x64xf32, #tpu.memory_space<vmem>>, vector<16x16x64xf32>,
    %cst_77 = arith.constant 0.000000e+00 : f32
    %68 = vector.broadcast %cst_77 : f32 to vector<256x64xf32>
    %c0_78 = arith.constant 0 : index
    %c0_79 = arith.constant 0 : index
    %c0_80 = arith.constant 0 : index
    %69 = vector.load %arg15[%c0_78, %c0_79, %c0_80] : memref<18x18x64xf32, #tpu.memory_space<vmem>>, vector<16x16x64xf32>
    %70 = vector.shape_cast %69 : vector<16x16x64xf32> to vector<256x64xf32>
    %c0_81 = arith.constant 0 : index
    %c0_82 = arith.constant 0 : index
    %c0_83 = arith.constant 0 : index
    %c0_84 = arith.constant 0 : index
    %71 = vector.load %arg5[%c0_81, %c0_82, %c0_83, %c0_84] : memref<1x9x64x64xf32, #tpu.memory_space<vmem>>, vector<1x1x64x64xf32>
    %72 = vector.shape_cast %71 : vector<1x1x64x64xf32> to vector<64x64xf32>
    %cst_85 = arith.constant dense<0.000000e+00> : vector<256x64xf32>
    %73 = tpu.matmul %70, %72, %cst_85 {dimension_numbers = #tpu.dot_dimension_numbers<[1], [0], [0], [1], [0, 0, 1, 1], [], []>} : vector<256x64xf32>, vector<64x64xf32>, vector<256x64xf32> -> vector<256x64xf32>
    %74 = arith.addf %68, %73 : vector<256x64xf32>
    %c0_86 = arith.constant 0 : index
    %c1_87 = arith.constant 1 : index
    %c0_88 = arith.constant 0 : index
    %75 = vector.load %arg15[%c0_86, %c1_87, %c0_88] : memref<18x18x64xf32, #tpu.memory_space<vmem>>, vector<16x16x64xf32>
    %76 = vector.shape_cast %75 : vector<16x16x64xf32> to vector<256x64xf32>
    %c0_89 = arith.constant 0 : index
    %c1_90 = arith.constant 1 : index
    %c0_91 = arith.constant 0 : index
    %c0_92 = arith.constant 0 : index
    %77 = vector.load %arg5[%c0_89, %c1_90, %c0_91, %c0_92] : memref<1x9x64x64xf32, #tpu.memory_space<vmem>>, vector<1x1x64x64xf32>
    %78 = vector.shape_cast %77 : vector<1x1x64x64xf32> to vector<64x64xf32>
    %cst_93 = arith.constant dense<0.000000e+00> : vector<256x64xf32>
    %79 = tpu.matmul %76, %78, %cst_93 {dimension_numbers = #tpu.dot_dimension_numbers<[1], [0], [0], [1], [0, 0, 1, 1], [], []>} : vector<256x64xf32>, vector<64x64xf32>, vector<256x64xf32> -> vector<256x64xf32>
    %80 = arith.addf %74, %79 : vector<256x64xf32>
    %c0_94 = arith.constant 0 : index
    %c2_95 = arith.constant 2 : index
    %c0_96 = arith.constant 0 : index
    %81 = vector.load %arg15[%c0_94, %c2_95, %c0_96] : memref<18x18x64xf32, #tpu.memory_space<vmem>>, vector<16x16x64xf32>
    %82 = vector.shape_cast %81 : vector<16x16x64xf32> to vector<256x64xf32>
    %c0_97 = arith.constant 0 : index
    %c2_98 = arith.constant 2 : index
    %c0_99 = arith.constant 0 : index
    %c0_100 = arith.constant 0 : index
    %83 = vector.load %arg5[%c0_97, %c2_98, %c0_99, %c0_100] : memref<1x9x64x64xf32, #tpu.memory_space<vmem>>, vector<1x1x64x64xf32>
    %84 = vector.shape_cast %83 : vector<1x1x64x64xf32> to vector<64x64xf32>
    %cst_101 = arith.constant dense<0.000000e+00> : vector<256x64xf32>
    %85 = tpu.matmul %82, %84, %cst_101 {dimension_numbers = #tpu.dot_dimension_numbers<[1], [0], [0], [1], [0, 0, 1, 1], [], []>} : vector<256x64xf32>, vector<64x64xf32>, vector<256x64xf32> -> vector<256x64xf32>
    %86 = arith.addf %80, %85 : vector<256x64xf32>
    %c1_102 = arith.constant 1 : index
    %c0_103 = arith.constant 0 : index
    %c0_104 = arith.constant 0 : index
    %87 = vector.load %arg15[%c1_102, %c0_103, %c0_104] : memref<18x18x64xf32, #tpu.memory_space<vmem>>, vector<16x16x64xf32>
    %88 = vector.shape_cast %87 : vector<16x16x64xf32> to vector<256x64xf32>
    %c0_105 = arith.constant 0 : index
    %c3_106 = arith.constant 3 : index
    %c0_107 = arith.constant 0 : index
    %c0_108 = arith.constant 0 : index
    %89 = vector.load %arg5[%c0_105, %c3_106, %c0_107, %c0_108] : memref<1x9x64x64xf32, #tpu.memory_space<vmem>>, vector<1x1x64x64xf32>
    %90 = vector.shape_cast %89 : vector<1x1x64x64xf32> to vector<64x64xf32>
    %cst_109 = arith.constant dense<0.000000e+00> : vector<256x64xf32>
    %91 = tpu.matmul %88, %90, %cst_109 {dimension_numbers = #tpu.dot_dimension_numbers<[1], [0], [0], [1], [0, 0, 1, 1], [], []>} : vector<256x64xf32>, vector<64x64xf32>, vector<256x64xf32> -> vector<256x64xf32>
    %92 = arith.addf %86, %91 : vector<256x64xf32>
    %c1_110 = arith.constant 1 : index
    %c1_111 = arith.constant 1 : index
    %c0_112 = arith.constant 0 : index
    %93 = vector.load %arg15[%c1_110, %c1_111, %c0_112] : memref<18x18x64xf32, #tpu.memory_space<vmem>>, vector<16x16x64xf32>
    %94 = vector.shape_cast %93 : vector<16x16x64xf32> to vector<256x64xf32>
    %c0_113 = arith.constant 0 : index
    %c4_114 = arith.constant 4 : index
    %c0_115 = arith.constant 0 : index
    %c0_116 = arith.constant 0 : index
    %95 = vector.load %arg5[%c0_113, %c4_114, %c0_115, %c0_116] : memref<1x9x64x64xf32, #tpu.memory_space<vmem>>, vector<1x1x64x64xf32>
    %96 = vector.shape_cast %95 : vector<1x1x64x64xf32> to vector<64x64xf32>
    %cst_117 = arith.constant dense<0.000000e+00> : vector<256x64xf32>
    %97 = tpu.matmul %94, %96, %cst_117 {dimension_numbers = #tpu.dot_dimension_numbers<[1], [0], [0], [1], [0, 0, 1, 1], [], []>} : vector<256x64xf32>, vector<64x64xf32>, vector<256x64xf32> -> vector<256x64xf32>
    %98 = arith.addf %92, %97 : vector<256x64xf32>
    %c1_118 = arith.constant 1 : index
    %c2_119 = arith.constant 2 : index
    %c0_120 = arith.constant 0 : index
    %99 = vector.load %arg15[%c1_118, %c2_119, %c0_120] : memref<18x18x64xf32, #tpu.memory_space<vmem>>, vector<16x16x64xf32>
    %100 = vector.shape_cast %99 : vector<16x16x64xf32> to vector<256x64xf32>
    %c0_121 = arith.constant 0 : index
    %c5_122 = arith.constant 5 : index
    %c0_123 = arith.constant 0 : index
    %c0_124 = arith.constant 0 : index
    %101 = vector.load %arg5[%c0_121, %c5_122, %c0_123, %c0_124] : memref<1x9x64x64xf32, #tpu.memory_space<vmem>>, vector<1x1x64x64xf32>
    %102 = vector.shape_cast %101 : vector<1x1x64x64xf32> to vector<64x64xf32>
    %cst_125 = arith.constant dense<0.000000e+00> : vector<256x64xf32>
    %103 = tpu.matmul %100, %102, %cst_125 {dimension_numbers = #tpu.dot_dimension_numbers<[1], [0], [0], [1], [0, 0, 1, 1], [], []>} : vector<256x64xf32>, vector<64x64xf32>, vector<256x64xf32> -> vector<256x64xf32>
    %104 = arith.addf %98, %103 : vector<256x64xf32>
    %c2_126 = arith.constant 2 : index
    %c0_127 = arith.constant 0 : index
    %c0_128 = arith.constant 0 : index
    %105 = vector.load %arg15[%c2_126, %c0_127, %c0_128] : memref<18x18x64xf32, #tpu.memory_space<vmem>>, vector<16x16x64xf32>
    %106 = vector.shape_cast %105 : vector<16x16x64xf32> to vector<256x64xf32>
    %c0_129 = arith.constant 0 : index
    %c6_130 = arith.constant 6 : index
    %c0_131 = arith.constant 0 : index
    %c0_132 = arith.constant 0 : index
    %107 = vector.load %arg5[%c0_129, %c6_130, %c0_131, %c0_132] : memref<1x9x64x64xf32, #tpu.memory_space<vmem>>, vector<1x1x64x64xf32>
    %108 = vector.shape_cast %107 : vector<1x1x64x64xf32> to vector<64x64xf32>
    %cst_133 = arith.constant dense<0.000000e+00> : vector<256x64xf32>
    %109 = tpu.matmul %106, %108, %cst_133 {dimension_numbers = #tpu.dot_dimension_numbers<[1], [0], [0], [1], [0, 0, 1, 1], [], []>} : vector<256x64xf32>, vector<64x64xf32>, vector<256x64xf32> -> vector<256x64xf32>
    %110 = arith.addf %104, %109 : vector<256x64xf32>
    %c2_134 = arith.constant 2 : index
    %c1_135 = arith.constant 1 : index
    %c0_136 = arith.constant 0 : index
    %111 = vector.load %arg15[%c2_134, %c1_135, %c0_136] : memref<18x18x64xf32, #tpu.memory_space<vmem>>, vector<16x16x64xf32>
    %112 = vector.shape_cast %111 : vector<16x16x64xf32> to vector<256x64xf32>
    %c0_137 = arith.constant 0 : index
    %c7_138 = arith.constant 7 : index
    %c0_139 = arith.constant 0 : index
    %c0_140 = arith.constant 0 : index
    %113 = vector.load %arg5[%c0_137, %c7_138, %c0_139, %c0_140] : memref<1x9x64x64xf32, #tpu.memory_space<vmem>>, vector<1x1x64x64xf32>
    %114 = vector.shape_cast %113 : vector<1x1x64x64xf32> to vector<64x64xf32>
    %cst_141 = arith.constant dense<0.000000e+00> : vector<256x64xf32>
    %115 = tpu.matmul %112, %114, %cst_141 {dimension_numbers = #tpu.dot_dimension_numbers<[1], [0], [0], [1], [0, 0, 1, 1], [], []>} : vector<256x64xf32>, vector<64x64xf32>, vector<256x64xf32> -> vector<256x64xf32>
    %116 = arith.addf %110, %115 : vector<256x64xf32>
    %c2_142 = arith.constant 2 : index
    %c2_143 = arith.constant 2 : index
    %c0_144 = arith.constant 0 : index
    %117 = vector.load %arg15[%c2_142, %c2_143, %c0_144] : memref<18x18x64xf32, #tpu.memory_space<vmem>>, vector<16x16x64xf32>
    %118 = vector.shape_cast %117 : vector<16x16x64xf32> to vector<256x64xf32>
    %c0_145 = arith.constant 0 : index
    %c8_146 = arith.constant 8 : index
    %c0_147 = arith.constant 0 : index
    %c0_148 = arith.constant 0 : index
    %119 = vector.load %arg5[%c0_145, %c8_146, %c0_147, %c0_148] : memref<1x9x64x64xf32, #tpu.memory_space<vmem>>, vector<1x1x64x64xf32>
    %120 = vector.shape_cast %119 : vector<1x1x64x64xf32> to vector<64x64xf32>
    %cst_149 = arith.constant dense<0.000000e+00> : vector<256x64xf32>
    %121 = tpu.matmul %118, %120, %cst_149 {dimension_numbers = #tpu.dot_dimension_numbers<[1], [0], [0], [1], [0, 0, 1, 1], [], []>} : vector<256x64xf32>, vector<64x64xf32>, vector<256x64xf32> -> vector<256x64xf32>
    %122 = arith.addf %116, %121 : vector<256x64xf32>
    %c0_150 = arith.constant 0 : index
    %c0_151 = arith.constant 0 : index
    %c0_152 = arith.constant 0 : index
    %123 = vector.load %arg6[%c0_150, %c0_151, %c0_152] : memref<1x1x64xf32, #tpu.memory_space<vmem>>, vector<1x1x64xf32>
    %124 = vector.shape_cast %123 : vector<1x1x64xf32> to vector<1x64xf32>
    %125 = vector.broadcast %124 : vector<1x64xf32> to vector<256x64xf32>
    %126 = arith.addf %122, %125 : vector<256x64xf32>
    %cst_153 = arith.constant dense<0.000000e+00> : vector<64xf32>
    %127 = vector.multi_reduction <add>, %126, %cst_153 [0] : vector<256x64xf32> to vector<64xf32>
    %128 = vector.shape_cast %127 : vector<64xf32> to vector<1x64xf32>
    %cst_154 = arith.constant 2.560000e+02 : f32
    %129 = vector.broadcast %cst_154 : f32 to vector<1x64xf32>
    %130 = arith.divf %128, %129 : vector<1x64xf32>
    %c0_155 = arith.constant 0 : index
    %c0_156 = arith.constant 0 : index
    %c0_157 = arith.constant 0 : index
    %131 = vector.load %arg7[%c0_155, %c0_156, %c0_157] : memref<1x64x4xf32, #tpu.memory_space<vmem>>, vector<1x64x4xf32>
    %132 = vector.shape_cast %131 : vector<1x64x4xf32> to vector<64x4xf32>
    %cst_158 = arith.constant dense<0.000000e+00> : vector<1x4xf32>
    %133 = tpu.matmul %130, %132, %cst_158 {dimension_numbers = #tpu.dot_dimension_numbers<[1], [0], [0], [1], [0, 0, 1, 1], [], []>} : vector<1x64xf32>, vector<64x4xf32>, vector<1x4xf32> -> vector<1x4xf32>
    %c0_159 = arith.constant 0 : index
    %c0_160 = arith.constant 0 : index
    %c0_161 = arith.constant 0 : index
    %134 = vector.load %arg8[%c0_159, %c0_160, %c0_161] : memref<1x1x4xf32, #tpu.memory_space<vmem>>, vector<1x1x4xf32>
    %135 = vector.shape_cast %134 : vector<1x1x4xf32> to vector<1x4xf32>
    %136 = arith.addf %133, %135 : vector<1x4xf32>
    %cst_162 = arith.constant 0.000000e+00 : f32
    %137 = vector.broadcast %cst_162 : f32 to vector<1x4xf32>
    %138 = arith.maximumf %136, %137 : vector<1x4xf32>
    %c0_163 = arith.constant 0 : index
    %c0_164 = arith.constant 0 : index
    %c0_165 = arith.constant 0 : index
    %139 = vector.load %arg9[%c0_163, %c0_164, %c0_165] : memref<1x4x64xf32, #tpu.memory_space<vmem>>, vector<1x4x64xf32>
    %140 = vector.shape_cast %139 : vector<1x4x64xf32> to vector<4x64xf32>
    %cst_166 = arith.constant dense<0.000000e+00> : vector<1x64xf32>
    %141 = tpu.matmul %138, %140, %cst_166 {dimension_numbers = #tpu.dot_dimension_numbers<[1], [0], [0], [1], [0, 0, 1, 1], [], []>} : vector<1x4xf32>, vector<4x64xf32>, vector<1x64xf32> -> vector<1x64xf32>
    %c0_167 = arith.constant 0 : index
    %c0_168 = arith.constant 0 : index
    %c0_169 = arith.constant 0 : index
    %142 = vector.load %arg10[%c0_167, %c0_168, %c0_169] : memref<1x1x64xf32, #tpu.memory_space<vmem>>, vector<1x1x64xf32>
    %143 = vector.shape_cast %142 : vector<1x1x64xf32> to vector<1x64xf32>
    %144 = arith.addf %141, %143 : vector<1x64xf32>
    %145 = arith.negf %144 : vector<1x64xf32>
    %146 = math.exp %145 : vector<1x64xf32>
    %cst_170 = arith.constant 1.000000e+00 : f32
    %147 = vector.broadcast %cst_170 : f32 to vector<1x64xf32>
    %148 = arith.addf %147, %146 : vector<1x64xf32>
    %149 = arith.divf %147, %148 : vector<1x64xf32>
    %150 = vector.broadcast %149 : vector<1x64xf32> to vector<256x64xf32>
    %151 = arith.mulf %126, %150 : vector<256x64xf32>
    %152 = vector.shape_cast %3 : vector<16x16x64xf32> to vector<256x64xf32>
    %153 = arith.addf %151, %152 : vector<256x64xf32>
    %154 = vector.shape_cast %153 : vector<256x64xf32> to vector<16x16x64xf32>
    %c0_171 = arith.constant 0 : index
    %c0_172 = arith.constant 0 : index
    %c0_173 = arith.constant 0 : index
    %155 = vector.load %arg14[%c0_171, %c0_172, %c0_173] : memref<16x16x64xf32, #tpu.memory_space<vmem>>, vector<16x16x64xf32>
    tpu.vector_store %arg14[%c0_171, %c0_172, %c0_173], %154 {strides = array<i32>} : memref<16x16x64xf32, #tpu.memory_space<vmem>>, vector<16x16x64xf32>,
    %c1_i32 = arith.constant 1 : i32
    %156 = arith.cmpi eq, %arg1, %c1_i32 : i32
    %157 = arith.extui %156 : i1 to i32
    %c0_i32_174 = arith.constant 0 : i32
    %158 = arith.cmpi ne, %157, %c0_i32_174 : i32
    scf.if %158 {
      %159 = vector.shape_cast %153 : vector<256x64xf32> to vector<16x16x64xf32>
      %c1_175 = arith.constant 1 : index
      %c1_176 = arith.constant 1 : index
      %c0_177 = arith.constant 0 : index
      %160 = vector.load %arg15[%c1_175, %c1_176, %c0_177] : memref<18x18x64xf32, #tpu.memory_space<vmem>>, vector<16x16x64xf32>
      tpu.vector_store %arg15[%c1_175, %c1_176, %c0_177], %159 {strides = array<i32>} : memref<18x18x64xf32, #tpu.memory_space<vmem>>, vector<16x16x64xf32>,
      %cst_178 = arith.constant 0.000000e+00 : f32
      %161 = vector.broadcast %cst_178 : f32 to vector<256x64xf32>
      %c0_179 = arith.constant 0 : index
      %c0_180 = arith.constant 0 : index
      %c0_181 = arith.constant 0 : index
      %162 = vector.load %arg15[%c0_179, %c0_180, %c0_181] : memref<18x18x64xf32, #tpu.memory_space<vmem>>, vector<16x16x64xf32>
      %163 = vector.shape_cast %162 : vector<16x16x64xf32> to vector<256x64xf32>
      %c0_182 = arith.constant 0 : index
      %c0_183 = arith.constant 0 : index
      %c0_184 = arith.constant 0 : index
      %164 = vector.load %arg11[%c0_182, %c0_183, %c0_184] : memref<9x64x64xf32, #tpu.memory_space<vmem>>, vector<1x64x64xf32>
      %165 = vector.shape_cast %164 : vector<1x64x64xf32> to vector<64x64xf32>
      %cst_185 = arith.constant dense<0.000000e+00> : vector<256x64xf32>
      %166 = tpu.matmul %163, %165, %cst_185 {dimension_numbers = #tpu.dot_dimension_numbers<[1], [0], [0], [1], [0, 0, 1, 1], [], []>} : vector<256x64xf32>, vector<64x64xf32>, vector<256x64xf32> -> vector<256x64xf32>
      %167 = arith.addf %161, %166 : vector<256x64xf32>
      %c0_186 = arith.constant 0 : index
      %c1_187 = arith.constant 1 : index
      %c0_188 = arith.constant 0 : index
      %168 = vector.load %arg15[%c0_186, %c1_187, %c0_188] : memref<18x18x64xf32, #tpu.memory_space<vmem>>, vector<16x16x64xf32>
      %169 = vector.shape_cast %168 : vector<16x16x64xf32> to vector<256x64xf32>
      %c1_189 = arith.constant 1 : index
      %c0_190 = arith.constant 0 : index
      %c0_191 = arith.constant 0 : index
      %170 = vector.load %arg11[%c1_189, %c0_190, %c0_191] : memref<9x64x64xf32, #tpu.memory_space<vmem>>, vector<1x64x64xf32>
      %171 = vector.shape_cast %170 : vector<1x64x64xf32> to vector<64x64xf32>
      %cst_192 = arith.constant dense<0.000000e+00> : vector<256x64xf32>
      %172 = tpu.matmul %169, %171, %cst_192 {dimension_numbers = #tpu.dot_dimension_numbers<[1], [0], [0], [1], [0, 0, 1, 1], [], []>} : vector<256x64xf32>, vector<64x64xf32>, vector<256x64xf32> -> vector<256x64xf32>
      %173 = arith.addf %167, %172 : vector<256x64xf32>
      %c0_193 = arith.constant 0 : index
      %c2_194 = arith.constant 2 : index
      %c0_195 = arith.constant 0 : index
      %174 = vector.load %arg15[%c0_193, %c2_194, %c0_195] : memref<18x18x64xf32, #tpu.memory_space<vmem>>, vector<16x16x64xf32>
      %175 = vector.shape_cast %174 : vector<16x16x64xf32> to vector<256x64xf32>
      %c2_196 = arith.constant 2 : index
      %c0_197 = arith.constant 0 : index
      %c0_198 = arith.constant 0 : index
      %176 = vector.load %arg11[%c2_196, %c0_197, %c0_198] : memref<9x64x64xf32, #tpu.memory_space<vmem>>, vector<1x64x64xf32>
      %177 = vector.shape_cast %176 : vector<1x64x64xf32> to vector<64x64xf32>
      %cst_199 = arith.constant dense<0.000000e+00> : vector<256x64xf32>
      %178 = tpu.matmul %175, %177, %cst_199 {dimension_numbers = #tpu.dot_dimension_numbers<[1], [0], [0], [1], [0, 0, 1, 1], [], []>} : vector<256x64xf32>, vector<64x64xf32>, vector<256x64xf32> -> vector<256x64xf32>
      %179 = arith.addf %173, %178 : vector<256x64xf32>
      %c1_200 = arith.constant 1 : index
      %c0_201 = arith.constant 0 : index
      %c0_202 = arith.constant 0 : index
      %180 = vector.load %arg15[%c1_200, %c0_201, %c0_202] : memref<18x18x64xf32, #tpu.memory_space<vmem>>, vector<16x16x64xf32>
      %181 = vector.shape_cast %180 : vector<16x16x64xf32> to vector<256x64xf32>
      %c3_203 = arith.constant 3 : index
      %c0_204 = arith.constant 0 : index
      %c0_205 = arith.constant 0 : index
      %182 = vector.load %arg11[%c3_203, %c0_204, %c0_205] : memref<9x64x64xf32, #tpu.memory_space<vmem>>, vector<1x64x64xf32>
      %183 = vector.shape_cast %182 : vector<1x64x64xf32> to vector<64x64xf32>
      %cst_206 = arith.constant dense<0.000000e+00> : vector<256x64xf32>
      %184 = tpu.matmul %181, %183, %cst_206 {dimension_numbers = #tpu.dot_dimension_numbers<[1], [0], [0], [1], [0, 0, 1, 1], [], []>} : vector<256x64xf32>, vector<64x64xf32>, vector<256x64xf32> -> vector<256x64xf32>
      %185 = arith.addf %179, %184 : vector<256x64xf32>
      %c1_207 = arith.constant 1 : index
      %c1_208 = arith.constant 1 : index
      %c0_209 = arith.constant 0 : index
      %186 = vector.load %arg15[%c1_207, %c1_208, %c0_209] : memref<18x18x64xf32, #tpu.memory_space<vmem>>, vector<16x16x64xf32>
      %187 = vector.shape_cast %186 : vector<16x16x64xf32> to vector<256x64xf32>
      %c4_210 = arith.constant 4 : index
      %c0_211 = arith.constant 0 : index
      %c0_212 = arith.constant 0 : index
      %188 = vector.load %arg11[%c4_210, %c0_211, %c0_212] : memref<9x64x64xf32, #tpu.memory_space<vmem>>, vector<1x64x64xf32>
      %189 = vector.shape_cast %188 : vector<1x64x64xf32> to vector<64x64xf32>
      %cst_213 = arith.constant dense<0.000000e+00> : vector<256x64xf32>
      %190 = tpu.matmul %187, %189, %cst_213 {dimension_numbers = #tpu.dot_dimension_numbers<[1], [0], [0], [1], [0, 0, 1, 1], [], []>} : vector<256x64xf32>, vector<64x64xf32>, vector<256x64xf32> -> vector<256x64xf32>
      %191 = arith.addf %185, %190 : vector<256x64xf32>
      %c1_214 = arith.constant 1 : index
      %c2_215 = arith.constant 2 : index
      %c0_216 = arith.constant 0 : index
      %192 = vector.load %arg15[%c1_214, %c2_215, %c0_216] : memref<18x18x64xf32, #tpu.memory_space<vmem>>, vector<16x16x64xf32>
      %193 = vector.shape_cast %192 : vector<16x16x64xf32> to vector<256x64xf32>
      %c5_217 = arith.constant 5 : index
      %c0_218 = arith.constant 0 : index
      %c0_219 = arith.constant 0 : index
      %194 = vector.load %arg11[%c5_217, %c0_218, %c0_219] : memref<9x64x64xf32, #tpu.memory_space<vmem>>, vector<1x64x64xf32>
      %195 = vector.shape_cast %194 : vector<1x64x64xf32> to vector<64x64xf32>
      %cst_220 = arith.constant dense<0.000000e+00> : vector<256x64xf32>
      %196 = tpu.matmul %193, %195, %cst_220 {dimension_numbers = #tpu.dot_dimension_numbers<[1], [0], [0], [1], [0, 0, 1, 1], [], []>} : vector<256x64xf32>, vector<64x64xf32>, vector<256x64xf32> -> vector<256x64xf32>
      %197 = arith.addf %191, %196 : vector<256x64xf32>
      %c2_221 = arith.constant 2 : index
      %c0_222 = arith.constant 0 : index
      %c0_223 = arith.constant 0 : index
      %198 = vector.load %arg15[%c2_221, %c0_222, %c0_223] : memref<18x18x64xf32, #tpu.memory_space<vmem>>, vector<16x16x64xf32>
      %199 = vector.shape_cast %198 : vector<16x16x64xf32> to vector<256x64xf32>
      %c6_224 = arith.constant 6 : index
      %c0_225 = arith.constant 0 : index
      %c0_226 = arith.constant 0 : index
      %200 = vector.load %arg11[%c6_224, %c0_225, %c0_226] : memref<9x64x64xf32, #tpu.memory_space<vmem>>, vector<1x64x64xf32>
      %201 = vector.shape_cast %200 : vector<1x64x64xf32> to vector<64x64xf32>
      %cst_227 = arith.constant dense<0.000000e+00> : vector<256x64xf32>
      %202 = tpu.matmul %199, %201, %cst_227 {dimension_numbers = #tpu.dot_dimension_numbers<[1], [0], [0], [1], [0, 0, 1, 1], [], []>} : vector<256x64xf32>, vector<64x64xf32>, vector<256x64xf32> -> vector<256x64xf32>
      %203 = arith.addf %197, %202 : vector<256x64xf32>
      %c2_228 = arith.constant 2 : index
      %c1_229 = arith.constant 1 : index
      %c0_230 = arith.constant 0 : index
      %204 = vector.load %arg15[%c2_228, %c1_229, %c0_230] : memref<18x18x64xf32, #tpu.memory_space<vmem>>, vector<16x16x64xf32>
      %205 = vector.shape_cast %204 : vector<16x16x64xf32> to vector<256x64xf32>
      %c7_231 = arith.constant 7 : index
      %c0_232 = arith.constant 0 : index
      %c0_233 = arith.constant 0 : index
      %206 = vector.load %arg11[%c7_231, %c0_232, %c0_233] : memref<9x64x64xf32, #tpu.memory_space<vmem>>, vector<1x64x64xf32>
      %207 = vector.shape_cast %206 : vector<1x64x64xf32> to vector<64x64xf32>
      %cst_234 = arith.constant dense<0.000000e+00> : vector<256x64xf32>
      %208 = tpu.matmul %205, %207, %cst_234 {dimension_numbers = #tpu.dot_dimension_numbers<[1], [0], [0], [1], [0, 0, 1, 1], [], []>} : vector<256x64xf32>, vector<64x64xf32>, vector<256x64xf32> -> vector<256x64xf32>
      %209 = arith.addf %203, %208 : vector<256x64xf32>
      %c2_235 = arith.constant 2 : index
      %c2_236 = arith.constant 2 : index
      %c0_237 = arith.constant 0 : index
      %210 = vector.load %arg15[%c2_235, %c2_236, %c0_237] : memref<18x18x64xf32, #tpu.memory_space<vmem>>, vector<16x16x64xf32>
      %211 = vector.shape_cast %210 : vector<16x16x64xf32> to vector<256x64xf32>
      %c8_238 = arith.constant 8 : index
      %c0_239 = arith.constant 0 : index
      %c0_240 = arith.constant 0 : index
      %212 = vector.load %arg11[%c8_238, %c0_239, %c0_240] : memref<9x64x64xf32, #tpu.memory_space<vmem>>, vector<1x64x64xf32>
      %213 = vector.shape_cast %212 : vector<1x64x64xf32> to vector<64x64xf32>
      %cst_241 = arith.constant dense<0.000000e+00> : vector<256x64xf32>
      %214 = tpu.matmul %211, %213, %cst_241 {dimension_numbers = #tpu.dot_dimension_numbers<[1], [0], [0], [1], [0, 0, 1, 1], [], []>} : vector<256x64xf32>, vector<64x64xf32>, vector<256x64xf32> -> vector<256x64xf32>
      %215 = arith.addf %209, %214 : vector<256x64xf32>
      %c0_242 = arith.constant 0 : index
      %c0_243 = arith.constant 0 : index
      %216 = vector.load %arg12[%c0_242, %c0_243] : memref<1x64xf32, #tpu.memory_space<vmem>>, vector<1x64xf32>
      %217 = vector.broadcast %216 : vector<1x64xf32> to vector<256x64xf32>
      %218 = arith.addf %215, %217 : vector<256x64xf32>
      %c0_244 = arith.constant 0 : index
      %c0_245 = arith.constant 0 : index
      %c0_246 = arith.constant 0 : index
      %c0_247 = arith.constant 0 : index
      %219 = vector.load %arg2[%c0_244, %c0_245, %c0_246, %c0_247] : memref<1x16x16x64xf32, #tpu.memory_space<vmem>>, vector<1x16x16x64xf32>
      %220 = vector.shape_cast %219 : vector<1x16x16x64xf32> to vector<16x16x64xf32>
      %221 = vector.shape_cast %220 : vector<16x16x64xf32> to vector<256x64xf32>
      %222 = arith.addf %218, %221 : vector<256x64xf32>
      %223 = vector.shape_cast %222 : vector<256x64xf32> to vector<16x16x64xf32>
      %c0_248 = arith.constant 0 : index
      %c0_249 = arith.constant 0 : index
      %c0_250 = arith.constant 0 : index
      %c0_251 = arith.constant 0 : index
      %224 = vector.load %arg13[%c0_248, %c0_249, %c0_250, %c0_251] : memref<1x16x16x64xf32, #tpu.memory_space<vmem>>, vector<1x16x16x64xf32>
      %225 = vector.shape_cast %224 : vector<1x16x16x64xf32> to vector<16x16x64xf32>
      %226 = vector.shape_cast %223 : vector<16x16x64xf32> to vector<1x16x16x64xf32>
      tpu.vector_store %arg13[%c0_248, %c0_249, %c0_250, %c0_251], %226 {strides = array<i32>} : memref<1x16x16x64xf32, #tpu.memory_space<vmem>>, vector<1x16x16x64xf32>,
    } else {
    }
    return
  }
  func.func @transform_0(%arg0: i32, %arg1: i32) -> (i32, i32, i32, i32) {
    %c0_i32 = arith.constant 0 : i32
    %c0_i32_0 = arith.constant 0 : i32
    %c0_i32_1 = arith.constant 0 : i32
    %c0_i32_2 = arith.constant 0 : i32
    return %arg0, %c0_i32, %c0_i32_0, %c0_i32_1 : i32, i32, i32, i32
  }
  func.func @transform_1(%arg0: i32, %arg1: i32) -> (i32, i32, i32, i32) {
    %c0_i32 = arith.constant 0 : i32
    %c0_i32_0 = arith.constant 0 : i32
    %c0_i32_1 = arith.constant 0 : i32
    %c0_i32_2 = arith.constant 0 : i32
    return %arg1, %c0_i32, %c0_i32_0, %c0_i32_1 : i32, i32, i32, i32
  }
  func.func @transform_2(%arg0: i32, %arg1: i32) -> (i32, i32, i32) {
    %c0_i32 = arith.constant 0 : i32
    %c0_i32_0 = arith.constant 0 : i32
    %c0_i32_1 = arith.constant 0 : i32
    return %arg1, %c0_i32, %c0_i32_0 : i32, i32, i32
  }
  func.func @transform_3(%arg0: i32, %arg1: i32) -> (i32, i32, i32, i32) {
    %c0_i32 = arith.constant 0 : i32
    %c0_i32_0 = arith.constant 0 : i32
    %c0_i32_1 = arith.constant 0 : i32
    %c0_i32_2 = arith.constant 0 : i32
    return %arg1, %c0_i32, %c0_i32_0, %c0_i32_1 : i32, i32, i32, i32
  }
  func.func @transform_4(%arg0: i32, %arg1: i32) -> (i32, i32, i32) {
    %c0_i32 = arith.constant 0 : i32
    %c0_i32_0 = arith.constant 0 : i32
    %c0_i32_1 = arith.constant 0 : i32
    return %arg1, %c0_i32, %c0_i32_0 : i32, i32, i32
  }
  func.func @transform_5(%arg0: i32, %arg1: i32) -> (i32, i32, i32) {
    %c0_i32 = arith.constant 0 : i32
    %c0_i32_0 = arith.constant 0 : i32
    %c0_i32_1 = arith.constant 0 : i32
    return %arg1, %c0_i32, %c0_i32_0 : i32, i32, i32
  }
  func.func @transform_6(%arg0: i32, %arg1: i32) -> (i32, i32, i32) {
    %c0_i32 = arith.constant 0 : i32
    %c0_i32_0 = arith.constant 0 : i32
    %c0_i32_1 = arith.constant 0 : i32
    return %arg1, %c0_i32, %c0_i32_0 : i32, i32, i32
  }
  func.func @transform_7(%arg0: i32, %arg1: i32) -> (i32, i32, i32) {
    %c0_i32 = arith.constant 0 : i32
    %c0_i32_0 = arith.constant 0 : i32
    %c0_i32_1 = arith.constant 0 : i32
    return %arg1, %c0_i32, %c0_i32_0 : i32, i32, i32
  }
  func.func @transform_8(%arg0: i32, %arg1: i32) -> (i32, i32, i32) {
    %c0_i32 = arith.constant 0 : i32
    %c0_i32_0 = arith.constant 0 : i32
    %c0_i32_1 = arith.constant 0 : i32
    return %arg1, %c0_i32, %c0_i32_0 : i32, i32, i32
  }
  func.func @transform_9(%arg0: i32, %arg1: i32) -> (i32, i32, i32) {
    %c0_i32 = arith.constant 0 : i32
    %c0_i32_0 = arith.constant 0 : i32
    %c0_i32_1 = arith.constant 0 : i32
    %c0_i32_2 = arith.constant 0 : i32
    return %c0_i32, %c0_i32_0, %c0_i32_1 : i32, i32, i32
  }
  func.func @transform_10(%arg0: i32, %arg1: i32) -> (i32, i32) {
    %c0_i32 = arith.constant 0 : i32
    %c0_i32_0 = arith.constant 0 : i32
    %c0_i32_1 = arith.constant 0 : i32
    return %c0_i32, %c0_i32_0 : i32, i32
  }
  func.func @transform_11(%arg0: i32, %arg1: i32) -> (i32, i32, i32, i32) {
    %c0_i32 = arith.constant 0 : i32
    %c0_i32_0 = arith.constant 0 : i32
    %c0_i32_1 = arith.constant 0 : i32
    %c0_i32_2 = arith.constant 0 : i32
    return %arg0, %c0_i32, %c0_i32_0, %c0_i32_1 : i32, i32, i32, i32
  }
}

</mosaic_0001>

<bundles_post_ra>
// kernel: tpu_custom_call.1
= control target key start
LH: loop header
LB: loop body
LE: loop exit
PB: predicated region body
PF: predicated region fallthrough
CT: control target
= control target key end

     0   :  { %s21327_s0 = inlined_call_operand.hbm [shape: f32[2,16,16,64], index: 0, kind: input, shape index: {}]   ;;  %s21328_s1 = inlined_call_operand.hbm [shape: f32[2,9,64,64], index: 1, kind: input, shape index: {}]   ;;  %s21329_s2 = inlined_call_operand.vmem [shape: f32[2,1,64], index: 2, kind: input, shape index: {}]   ;;  %s21330_s3 = inlined_call_operand.hbm [shape: f32[2,9,64,64], index: 3, kind: input, shape index: {}]   ;;  %s21331_s4 = inlined_call_operand.vmem [shape: f32[2,1,64], index: 4, kind: input, shape index: {}]   ;;  %s21332_s5 = inlined_call_operand.vmem [shape: f32[2,64,4], index: 5, kind: input, shape index: {}]   ;;  %s21333_s6 = inlined_call_operand.vmem [shape: f32[2,1,4], index: 6, kind: input, shape index: {}]   ;;  %s21334_s7 = inlined_call_operand.vmem [shape: f32[2,4,64], index: 7, kind: input, shape index: {}]   ;;  %s21335_s8 = inlined_call_operand.vmem [shape: f32[2,1,64], index: 8, kind: input, shape index: {}]   ;;  %s21336_s9 = inlined_call_operand.hbm [shape: f32[9,64,64], index: 9, kind: input, shape index: {}]   ;;  %s21337_s10 = inlined_call_operand.vmem [shape: f32[1,64], index: 10, kind: input, shape index: {}]   ;;  %s21338_s11 = inlined_call_operand.hbm [shape: f32[2,16,16,64], index: 11, kind: output, shape index: {}]  }
   0x1   :  { %21564 = sst [smem:[#allocation135_spill]] %s21327_s0 }
   0x2   :  { %21565 = sst [smem:[#allocation136_spill]] %s21328_s1 }
   0x3   :  { %21566 = sst [smem:[#allocation137_spill]] %s21329_s2 }
   0x4   :  { %21567 = sst [smem:[#allocation138_spill]] %s21330_s3 }
   0x5   :  { %21568 = sst [smem:[#allocation139_spill]] %s21331_s4 }
   0x6   :  { %21569 = sst [smem:[#allocation140_spill]] %s21332_s5 }
   0x7   :  { %21570 = sst [smem:[#allocation141_spill]] %s21333_s6 }
   0x8   :  { %21571 = sst [smem:[#allocation142_spill]] %s21334_s7 }
   0x9   :  { %21572 = sst [smem:[#allocation143_spill]] %s21335_s8 }
   0xa   :  { %21573 = sst [smem:[#allocation144_spill]] %s21336_s9 }
   0xb   :  { %21574 = sst [smem:[#allocation145_spill]] %s21337_s10 }
   0xc   :  { %21575 = sst [smem:[#allocation146_spill]] %s21338_s11 }
   0xd   :  { %16 = vsyncpa [#allocation5], 0 }
   0xe   :  { %18 = vsyncpa [#allocation5 + $0x1], 0 }
   0xf   :  { %19 = vsyncpa [#allocation8], 0 }
  0x10   :  { %21 = vsyncpa [#allocation8 + $0x1], 0 }
  0x11   :  { %22 = vsyncpa [#allocation11], 0 }
  0x12   :  { %23 = vsyncpa [#allocation6], 0 }
  0x13   :  { %25 = vsyncpa [#allocation6 + $0x1], 0  ;;  %s17652_s17 = smov 0   ;;  %s17654_s18 = smov 0  }
  0x14   :  { %s17656_s19 = smov 0   ;;  %s17658_s20 = smov 0  }
  0x15   :  { %s17660_s21 = smov 0   ;;  %s17662_s22 = smov 0  }
  0x16   :  { %s17664_s23 = smov 0   ;;  %s17666_s24 = smov 0  }
  0x17   :  { %s17668_s25 = smov 0   ;;  %s17670_s26 = smov 0  }
  0x18   :  { %s17672_s27 = smov 0  }
  0x19 LB: > { %21576 = sst [smem:[#allocation17_spill]] %s17545_s19  ;;  %s40_s28 = sadd.s32 1, %s17569_s25  ;;  %s17577_s27 = sphi %s17672_s27, %s31_s27   ;;  %s17573_s26 = sphi %s17670_s26, %s21942_s26   ;;  %s17569_s25 = sphi %s17668_s25, %s21948_s25   ;;  %s17565_s24 = sphi %s17666_s24, %s21940_s24   ;;  %s17561_s23 = sphi %s17664_s23, %s21939_s23   ;;  %s17557_s22 = sphi %s17662_s22, %s21947_s22   ;;  %s17553_s21 = sphi %s17660_s21, %s21946_s21   ;;  %s17549_s20 = sphi %s17658_s20, %s21945_s20   ;;  %s17545_s19 = sphi %s17656_s19, %s21937_s19   ;;  %s17541_s18 = sphi %s17654_s18, %s21944_s18   ;;  %s17537_s17 = sphi %s17652_s17, %s21943_s17  }
  0x1a   : > { %21577 = sst [smem:[#allocation18_spill]] %s17549_s20  ;;  %p21344_p0 = scmp.eq.s32.totalorder %s17577_s27, 0 }
  0x1b   : > { %21578 = sst [smem:[#allocation19_spill]] %s17565_s24  ;;  %p17709_p1 = scmp.ge.s32.totalorder %s40_s28, 2 }
  0x1c   : > { %21579 = sst [smem:[#allocation20_spill]] %s17569_s25  ;;  %s76_s30 = sadd.s32 1, %s17545_s19 }
  0x1d   : > { %21580 = sst [smem:[#allocation21_spill]] %s17573_s26  ;;  %p83_p2 = scmp.ne.s32.totalorder %s17545_s19, %s17541_s18 }
  0x1e   : > { %s21950_s28 = smov (%p17709_p1, %s40_s28), 0  ;;  %p21343_p5 = scmp.lt.s32.totalorder %s17577_s27, 4 }
  0x1f   : > { %21582 = sst [smem:[#allocation22_spill]] %s21950_s28  ;;  %p85_p3 = por %p83_p2, %p21344_p0 }
  0x20   : > { %s73_s12 = ssub.s32 %s17569_s25, %s21950_s28  ;;  %s400_s13 = sand.u32 1, %s17577_s27  }
  0x21   : > { %p74_p4 = scmp.eq.s32.totalorder %s73_s12, 0  ;;  %s402_s14 = sand.u32 1, %s17545_s19  }
  0x22   : > { %s17730_s16 = smul.u32 576, %s402_s14  ;;  %p17735_p6 = pnand %p21343_p5, %p85_p3 }
  0x23   : > { %s17728_s15 = scalar_select %p74_p4, %s17545_s19, %s76_s30  }
  0x24   : > { %s21341_s11 = smul.u32 9216, %s17569_s25  ;;  %s21585_s1 = sld [smem:[#allocation136_spill]] }
  0x25   : > { %21583 = sst [smem:[#allocation23_spill]] %s17728_s15  ;;  %s404_s30 = scalar_lea.vmem [#allocation7], %s17730_s16 }
  0x26   : > { %s21584_s24 = scalar_select %p17735_p6, 1, 0 }
  0x27   : > { %s411_s14 = sshll.u32 %s404_s30, 4  ;;  %s17749_s28 = scalar_lea.sflag [#allocation8], %s400_s13  ;;  %s17747_s14 = int_to_ptr.vmem [resolvable:$true] %s411_s14 }
  0x28   : > { %p21345_p8 = pneg %p17735_p6 }
  0x2a   : > { %s17744_s12 = scalar_lea.hbm %s21585_s1, %s21341_s11  ;;  %s17334_s11 = scalar_lea.hbm %s21585_s1, 18432 }
  0x2b   : > { %s17329_s15 = scalar_lea.hbm %s17744_s12, 9216  ;;  %p17335_p11 = scmp.lt.u32.totalorder %s17744_s12, %s21585_s1 }
  0x2c   : > { %p17330_p7 = scmp.ne.s32.totalorder %s17744_s12, %s17329_s15  ;;  %p17336_p12 = scmp.lt.u32.totalorder %s17334_s11, %s17329_s15 }
  0x2d   : > { %p17338_p2 = scmp.lt.u32.totalorder %s17329_s15, %s17744_s12 }
  0x2e   : > { %p17332_p9 = pnand %p21345_p8, %p17330_p7  ;;  %p17337_p13 = por %p17336_p12, %p17335_p11 }
  0x30   : > { %p17333_p10 = pneg %p17332_p9  ;;  %p17339_p3 = por %p17338_p2, %p17337_p13 }
  0x32   : > { %p17340_p4 = pnand %p17339_p3, %p17333_p10 }
  0x34   : > { %17343 = shalt.err (!%p17340_p4)
}
  0x35   : > { %s17344_s13 = scalar_lea.vmem %s17747_s14, 9216  ;;  %s17579_s30 = smov [#allocation7]  }
  0x36   : > { %p17345_p7 = scmp.ne.s32.totalorder %s17747_s14, %s17344_s13  ;;  %s17349_s8 = sshll.u32 %s17579_s30, 4  ;;  %s17350_s8 = int_to_ptr.vmem [resolvable:$false] %s17349_s8 }
  0x37   : > { %s17351_s7 = scalar_lea.vmem %s17350_s8, 18432  ;;  %p17352_p0 = scmp.lt.s32.totalorder %s17747_s14, %s17350_s8 }
  0x38   : > { %p17347_p9 = pnand %p17345_p7, %p21345_p8  ;;  %p17353_p11 = scmp.lt.s32.totalorder %s17351_s7, %s17344_s13 }
  0x3a   : > { %p17348_p5 = pneg %p17347_p9  ;;  %p17354_p12 = por %p17353_p11, %p17352_p0 }
  0x3c   : > { %p17355_p13 = pnand %p17354_p12, %p17348_p5 }
  0x3e   : > { %17358 = shalt.err (!%p17355_p13)
}
  0x3f   : > { %s21346_s11 = smov 128   ;;  %s21348_s19 = smov 8  }
  0x40   : > { %17216 = dma.hbm_to_vmem [thread:$0]  (!%p17735_p6), %s17744_s12, 9216, %s17747_s14, %s17749_s28, %s21346_s11, %s21346_s11, %s21348_s19  }
  0x41   : > { %s17781_s15 = sadd.s32 4294967295, %s17577_s27   ;;  %s12101_s10 = sadd.s32 4294967294, %s17577_s27  }
  0x42   : > { %p63_p0 = scmp.ne.s32.totalorder %s17553_s21, %s17549_s20  ;;  %p21352_p5 = scmp.eq.s32.totalorder %s17781_s15, 0 }
  0x43   : > { %p89_p10 = scmp.ne.s32.totalorder %s17541_s18, %s17537_s17  ;;  %p343_p3 = scmp.eq.s32.totalorder %s12101_s10, 3 }
  0x44   : > { %p17792_p4 = por %p21352_p5, %p63_p0  ;;  %p12102_p11 = scmp.ge.s32.totalorder %s17577_s27, 1 }
  0x45   : > { %p17798_p7 = por %p89_p10, %p21352_p5  ;;  %p17802_p9 = por %p343_p3, %p63_p0 }
  0x46   : > { %s21586_s12 = scalar_select %p17792_p4, 1, 0 }
  0x47   : > { %s21587_s14 = scalar_select %p17798_p7, 1, 0 }
  0x48   : > { %s21588_s13 = scalar_select %p17802_p9, 1, 0 }
  0x49   : > { %p350_p12 = scmp.lt.s32.totalorder %s17577_s27, 5  ;;  %s17582_s30 = smov [#allocation10]  }
  0x4a   : > { %21589 = sst [smem:[#allocation24_spill]] %s21588_s13  ;;  %s362_s8 = sshll.u32 %s17582_s30, 4  ;;  %s363_s8 = int_to_ptr.vmem [resolvable:$true] %s362_s8 }
  0x4b   : > { %p17808_p13 = pnand %p12102_p11, %p350_p12  ;;  %s43_s7 = sadd.s32 1, %s17573_s26 }
  0x4c   : > { %s21952_s7 = smov (!%p17709_p1, %s43_s7), %s17573_s26  ;;  %s21592_s9 = sld [smem:[#allocation144_spill]] }
  0x4d   : > { %s21590_s17 = scalar_select %p17808_p13, 1, 0 }
  0x4e   : > { %p17206_p8 = pneg %p17808_p13 }
  0x50   : > { %p17817_p10 = pnand %p17206_p8, %p21352_p5 }
  0x52   : > { %s17359_s13 = scalar_lea.hbm %s21592_s9, 9216  ;;  %p17361_p11 = pneg %p17817_p10 }
  0x53   : > { %p17360_p3 = scmp.ne.s32.totalorder %s21592_s9, %s17359_s13  ;;  %p17366_p5 = scmp.lt.u32.totalorder %s17359_s13, %s21592_s9 }
  0x55   : > { %p17362_p12 = pnand %p17361_p11, %p17360_p3 }
  0x57   : > { %p17363_p8 = pneg %p17362_p12 }
  0x59   : > { %p17368_p2 = pnand %p17366_p5, %p17363_p8 }
  0x5b   : > { %17371 = shalt.err (!%p17368_p2)
}
  0x5c   : > { %s17372_s29 = scalar_lea.vmem %s363_s8, 9216  ;;  %p17380_p7 = scmp.lt.s32.totalorder %s363_s8, %s363_s8 }
  0x5d   : > { %p17373_p1 = scmp.ne.s32.totalorder %s363_s8, %s17372_s29  ;;  %p17381_p4 = scmp.lt.s32.totalorder %s17372_s29, %s17372_s29 }
  0x5f   : > { %p17375_p0 = pnand %p17373_p1, %p17361_p11  ;;  %p17382_p13 = por %p17381_p4, %p17380_p7 }
  0x61   : > { %p17376_p9 = pneg %p17375_p0 }
  0x63   : > { %p17383_p6 = pnand %p17382_p13, %p17376_p9 }
  0x65   : > { %17386 = shalt.err (!%p17383_p6)
}
  0x66   : > { %s21593_s1 = smov 8   ;;  %s21594_s20 = smov 128  }
  0x67   : > { %17209 = dma.hbm_to_vmem [thread:$0]  (!%p17817_p10), %s21592_s9, 9216, %s363_s8, [#allocation11], %s21594_s20, %s21594_s20, %s21593_s1  }
  0x68   : > { %p45_p6 = scmp.ge.s32.totalorder %s21952_s7, 2  ;;  %p21595_p5 = scmp.ne.s32.totalorder %s17557_s22, %s17553_s21 }
  0x69   : > { %p21596_p2 = scmp.eq.s32.totalorder %s17577_s27, 0  ;;  %p21599_p9 = scmp.eq.s32.totalorder %s17781_s15, 3 }
  0x6a   : > { %p21598_p7 = pmov %p21595_p5  ;;  %s379_s13 = sand.u32 1, %s17557_s22  }
  0x6b   : > { %p17851_p4 = por %p21596_p2, %p21595_p5  ;;  %s21954_s7 = smov (%p45_p6, %s21952_s7), 0 }
  0x6c   : > { %p17860_p13 = por %p21599_p9, %p21598_p7  ;;  %21602 = sst [smem:[#allocation26_spill]] %s21954_s7 }
  0x6d   : > { %s12105_s8 = sshll.u32 %s379_s13, 8  ;;  %s47_s10 = ssub.s32 %s17573_s26, %s21954_s7 }
  0x6e   : > { %s21600_s6 = scalar_select %p17860_p13, 1, 0 }
  0x6f   : > { %p48_p10 = scmp.eq.s32.totalorder %s47_s10, 0  ;;  %s13123_s29 = sshll.u32 %s17573_s26, 12 }
  0x70   : > { %21601 = sst [smem:[#allocation25_spill]] %s21600_s6  ;;  %s21603_s0 = sld [smem:[#allocation135_spill]] }
  0x71   : > { %s383_s9 = scalar_lea.vmem [#allocation4], %s12105_s8  ;;  %s21604_s2 = sadd.s32 1, %s17557_s22 }
  0x72   : > { %s390_s4 = sshll.u32 %s383_s9, 4  ;;  %p21606_p0 = scmp.lt.s32.totalorder %s17577_s27, 4  ;;  %s17880_s4 = int_to_ptr.vmem [resolvable:$true] %s390_s4 }
  0x73   : > { %s17878_s6 = scalar_select %p48_p10, %s17557_s22, %s21604_s2  }
  0x74   : > { %p17886_p3 = pnand %p21606_p0, %p17851_p4  ;;  %s21608_s19 = smul.u32 9216, %s17569_s25 }
  0x75   : > { %21605 = sst [smem:[#allocation27_spill]] %s17878_s6  ;;  %s21609_s3 = sld [smem:[#allocation138_spill]] }
  0x76   : > { %s17873_s11 = scalar_lea.hbm %s21603_s0, %s13123_s29  ;;  %s431_s9 = scalar_lea.vmem [#allocation9], %s17730_s16 }
  0x77   : > { %s17898_s2 = sshll.u32 %s431_s9, 4  ;;  %s17900_s7 = scalar_lea.sflag [#allocation5], %s379_s13  ;;  %s17932_s2 = int_to_ptr.vmem [resolvable:$true] %s17898_s2 }
  0x78   : > { %s17387_s26 = scalar_lea.hbm %s17873_s11, 4096  ;;  %p17389_p12 = pneg %p17886_p3 }
  0x79   : > { %p17388_p11 = scmp.ne.s32.totalorder %s17873_s11, %s17387_s26  ;;  %s17392_s29 = scalar_lea.hbm %s21603_s0, 8192 }
  0x7a   : > { %p17393_p6 = scmp.lt.u32.totalorder %s17873_s11, %s21603_s0  ;;  %p17394_p5 = scmp.lt.u32.totalorder %s17392_s29, %s17387_s26 }
  0x7b   : > { %s17895_s8 = scalar_lea.hbm %s21609_s3, %s21608_s19  ;;  %p17390_p8 = pnand %p17389_p12, %p17388_p11 }
  0x7c   : > { %p17395_p2 = por %p17394_p5, %p17393_p6  ;;  %p17396_p4 = scmp.lt.u32.totalorder %s17387_s26, %s17873_s11 }
  0x7d   : > { %p17391_p1 = pneg %p17390_p8 }
  0x7e   : > { %p17397_p7 = por %p17396_p4, %p17395_p2 }
  0x80   : > { %p17398_p9 = pnand %p17397_p7, %p17391_p1 }
  0x82   : > { %17401 = shalt.err (!%p17398_p9)
}
  0x83   : > { %s17402_s16 = scalar_lea.vmem %s17880_s4, 4096  ;;  %s17583_s25 = smov [#allocation4]  }
  0x84   : > { %p17403_p10 = scmp.ne.s32.totalorder %s17880_s4, %s17402_s16  ;;  %s17407_s13 = sshll.u32 %s17583_s25, 4  ;;  %s17408_s13 = int_to_ptr.vmem [resolvable:$false] %s17407_s13 }
  0x85   : > { %s17409_s9 = scalar_lea.vmem %s17408_s13, 8192  ;;  %p17410_p8 = scmp.lt.s32.totalorder %s17880_s4, %s17408_s13 }
  0x86   : > { %p17405_p0 = pnand %p17403_p10, %p17389_p12  ;;  %p17411_p6 = scmp.lt.s32.totalorder %s17409_s9, %s17402_s16 }
  0x88   : > { %p17406_p11 = pneg %p17405_p0  ;;  %p17412_p5 = por %p17411_p6, %p17410_p8 }
  0x8a   : > { %p17413_p2 = pnand %p17412_p5, %p17406_p11 }
  0x8c   : > { %17416 = shalt.err (!%p17413_p2)
}
  0x8d   : > { %17213 = dma.hbm_to_vmem [thread:$0]  (!%p17886_p3), %s17873_s11, 4096, %s17880_s4, %s17900_s7, %s21594_s20, %s21594_s20, %s21593_s1  }
  0x8e   : > { %s17417_s26 = scalar_lea.hbm %s17895_s8, 9216  ;;  %p21610_p1 = scmp.ne.s32.totalorder %s21584_s24, 0 }
  0x8f   : > { %p17418_p12 = scmp.ne.s32.totalorder %s17895_s8, %s17417_s26  ;;  %s17422_s29 = scalar_lea.hbm %s21609_s3, 18432 }
  0x90   : > { %p21611_p4 = pneg %p21610_p1  ;;  %p17423_p10 = scmp.lt.u32.totalorder %s17895_s8, %s21609_s3 }
  0x91   : > { %p17424_p0 = scmp.lt.u32.totalorder %s17422_s29, %s17417_s26  ;;  %p17426_p8 = scmp.lt.u32.totalorder %s17417_s26, %s17895_s8 }
  0x92   : > { %p17420_p7 = pnand %p17418_p12, %p21611_p4 }
  0x93   : > { %p17425_p11 = por %p17424_p0, %p17423_p10 }
  0x94   : > { %p17421_p9 = pneg %p17420_p7 }
  0x95   : > { %p17427_p3 = por %p17426_p8, %p17425_p11 }
  0x97   : > { %p17428_p6 = pnand %p17427_p3, %p17421_p9 }
  0x99   : > { %17431 = shalt.err (!%p17428_p6)
}
  0x9a   : > { %s17432_s4 = scalar_lea.vmem %s17932_s2, 9216  ;;  %p21612_p2 = pmov %p21611_p4 }
  0x9b   : > { %p17433_p5 = scmp.ne.s32.totalorder %s17932_s2, %s17432_s4  ;;  %s17584_s11 = smov [#allocation9]  }
  0x9c   : > { %s17437_s7 = sshll.u32 %s17584_s11, 4  ;;  %s17438_s7 = int_to_ptr.vmem [resolvable:$false] %s17437_s7 }
  0x9d   : > { %p17435_p12 = pnand %p17433_p5, %p21612_p2  ;;  %s17439_s16 = scalar_lea.vmem %s17438_s7, 18432 }
  0x9e   : > { %p17440_p7 = scmp.lt.s32.totalorder %s17932_s2, %s17438_s7  ;;  %p17441_p10 = scmp.lt.s32.totalorder %s17439_s16, %s17432_s4 }
  0x9f   : > { %p17436_p4 = pneg %p17435_p12 }
  0xa0   : > { %p17442_p0 = por %p17441_p10, %p17440_p7 }
  0xa2   : > { %p17443_p11 = pnand %p17442_p0, %p17436_p4 }
  0xa4   : > { %17446 = shalt.err (!%p17443_p11)
}
  0xa5   : > { %17219 = dma.hbm_to_vmem [thread:$0]  (!%p21610_p1), %s17895_s8, 9216, %s17932_s2, %s17749_s28, %s21594_s20, %s21594_s20, %s21593_s1  }
  0xa6   : > { %p21613_p9 = scmp.ne.s32.totalorder %s21590_s17, 0 }
  0xa8   : > { %483 = sbr.rel (%p21613_p9) target bundleno = 2831 (0xb0f), region = 64 }
  0xaf   : > { %s17964_s25 = sand.u32 1, %s17553_s21   ;;  %p21614_p8 = scmp.ne.s32.totalorder %s21586_s12, 0 }
  0xb0   : > { %s12111_s13 = sshll.u32 %s17964_s25, 8  ;;  %s486_s9 = scalar_lea.sflag [#allocation5], %s17964_s25 }
  0xb1   : > { %s17968_s26 = scalar_lea.vmem [#allocation4], %s12111_s13 }
  0xb2   : > { %17520 = dma.done.wait (%p21614_p8), %s486_s9, 4096  }
  0xb3   : > { %17522 = vsyncadd (%p21614_p8), %s486_s9, 4294963200  ;;  %s494_s24 = sand.u32 1, %s17781_s15   ;;  %s496_s28 = sand.u32 1, %s17541_s18  }
  0xb4   : > { %s17193_s17 = smul.u32 576, %s496_s28  ;;  %s495_s1 = scalar_lea.sflag [#allocation8], %s494_s24 }
  0xb5   : > { %p21615_p1 = scmp.ne.s32.totalorder %s21587_s14, 0 }
  0xb6   : > { %s17976_s20 = scalar_lea.vmem [#allocation7], %s17193_s17 }
  0xb7   : > { %17524 = dma.done.wait (%p21615_p1), %s495_s1, 18432  }
  0xb8   : > { %17526 = vsyncadd (%p21615_p1), %s495_s1, 4294948864  ;;  %s17982_s8 = scalar_lea.vmem [#allocation9], %s17193_s17  ;;  %p21616_p3 = scmp.eq.s32.totalorder %s17781_s15, 0 }
  0xba   : > { %17528 = dma.done.wait (%p21616_p3), [#allocation11], 9216   ;;  %p21617_p6 = pmov %p21616_p3 }
  0xbb   : > { %p581_p5 = scmp.lt.s32.totalorder %s17561_s23, 1  ;;  %s21619_s19 = sld [smem:[#allocation139_spill]] }
  0xbc   : > { %17530 = vsyncadd (%p21617_p6), [#allocation11], 4294958080  ;;  %s21620_s16 = sld [smem:[#allocation141_spill]]  ;;  %s21621_s17 = sld [smem:[#allocation140_spill]] }
  0xbd   : > { %s17990_s12 = scalar_select %p581_p5, %s17561_s23, 1 }
  0xbe   : > { %s21622_s3 = sld [smem:[#allocation142_spill]]  ;;  %s21623_s29 = sld [smem:[#allocation143_spill]] }
  0xbf   : > { %s13124_s4 = sshll.u32 %s17990_s12, 6  ;;  %s12116_s2 = sshll.u32 %s17990_s12, 2 }
  0xc0   : > { %p12117_p2 = scmp.ne.s32.totalorder %s17561_s23, 0 }
  0xc1   : > { %s586_s15 = scalar_lea.vmem %s21619_s19, %s17990_s12  ;;  %s18020_s19 = scalar_lea.vmem [#allocation12], %s12111_s13  ;;  %vm606_vm0 = vcmask (!%p12117_p2), 523264   ;;  %vm609_vm1 = vcmask (!%p12117_p2), 517120   ;;  %v662_v0 = vld [vmem:[%s17968_s26] sm:$0xff] (!%p12117_p2)  ;;  %v663_v1 = vld [vmem:[%s17968_s26 + $0x8] sm:$0xff] (!%p12117_p2)  ;;  %v664_v2 = vld [vmem:[%s17968_s26 + $0x10] sm:$0xff] (!%p12117_p2) }
  0xc2   : > { %s594_s9 = scalar_lea.vmem %s21620_s16, %s17990_s12  ;;  %s18008_s1 = scalar_lea.vmem %s21621_s17, %s13124_s4  ;;  %v17585_v3 = vmov (!%p12117_p2), 0.0   ;;  %694 = vst.msk [vmem:[#allocation2] sm:$0xff] (!%p12117_p2), %vm606_vm0, %v662_v0  ;;  %695 = vst.msk [vmem:[#allocation2 + $0x8] sm:$0xff] (!%p12117_p2), %vm606_vm0, %v663_v1  ;;  %v665_v4 = vld [vmem:[%s17968_s26 + $0x18] sm:$0xff] (!%p12117_p2)  ;;  %v666_v5 = vld [vmem:[%s17968_s26 + $0x20] sm:$0xff] (!%p12117_p2) }
  0xc3   : > { %605 = sbr.rel (%p12117_p2) target bundleno = 237 (0xed), region = 84  ;;  %607 = vst.msk [vmem:[#allocation3] sm:$0xff] (!%p12117_p2), %vm606_vm0, %v17585_v3  ;;  %608 = vst.msk [vmem:[#allocation3 + $0x8] sm:$0xff] (!%p12117_p2), %vm606_vm0, %v17585_v3  ;;  %v667_v6 = vld [vmem:[%s17968_s26 + $0x28] sm:$0xff] (!%p12117_p2)  ;;  %v668_v7 = vld [vmem:[%s17968_s26 + $0x30] sm:$0xff] (!%p12117_p2) }
  0xc4   : > { %s18014_s6 = scalar_lea.vmem %s21622_s3, %s12116_s2  ;;  %s601_s30 = scalar_lea.vmem %s21623_s29, %s17990_s12  ;;  %611 = vst.msk [vmem:[#allocation3 + $0x18] sm:$0xff] (!%p12117_p2), %vm606_vm0, %v17585_v3  ;;  %612 = vst.msk [vmem:[#allocation3 + $0x20] sm:$0xff] (!%p12117_p2), %vm606_vm0, %v17585_v3  ;;  %v669_v8 = vld [vmem:[%s17968_s26 + $0x38] sm:$0xff] (!%p12117_p2)  ;;  %v670_v9 = vld [vmem:[%s17968_s26 + $0x40] sm:$0xff] (!%p12117_p2) }
  0xc5   : > { %614 = vst.msk [vmem:[#allocation3 + $0x30] sm:$0xff] (!%p12117_p2), %vm606_vm0, %v17585_v3  ;;  %615 = vst.msk [vmem:[#allocation3 + $0x38] sm:$0xff] (!%p12117_p2), %vm606_vm0, %v17585_v3  ;;  %v671_v10 = vld [vmem:[%s17968_s26 + $0x48] sm:$0xff] (!%p12117_p2)  ;;  %v672_v11 = vld [vmem:[%s17968_s26 + $0x50] sm:$0xff] (!%p12117_p2) }
  0xc6   : > { %617 = vst.msk [vmem:[#allocation3 + $0x48] sm:$0xff] (!%p12117_p2), %vm606_vm0, %v17585_v3  ;;  %618 = vst.msk [vmem:[#allocation3 + $0x50] sm:$0xff] (!%p12117_p2), %vm606_vm0, %v17585_v3  ;;  %v673_v12 = vld [vmem:[%s17968_s26 + $0x58] sm:$0xff] (!%p12117_p2)  ;;  %v674_v13 = vld [vmem:[%s17968_s26 + $0x60] sm:$0xff] (!%p12117_p2) }
  0xc7   : > { %620 = vst.msk [vmem:[#allocation3 + $0x60] sm:$0xff] (!%p12117_p2), %vm606_vm0, %v17585_v3  ;;  %621 = vst.msk [vmem:[#allocation3 + $0x68] sm:$0xff] (!%p12117_p2), %vm606_vm0, %v17585_v3  ;;  %v675_v14 = vld [vmem:[%s17968_s26 + $0x68] sm:$0xff] (!%p12117_p2)  ;;  %v676_v15 = vld [vmem:[%s17968_s26 + $0x70] sm:$0xff] (!%p12117_p2) }
  0xc8   : > { %623 = vst.msk [vmem:[#allocation3 + $0x78] sm:$0xff] (!%p12117_p2), %vm606_vm0, %v17585_v3  ;;  %624 = vst.msk [vmem:[#allocation3 + $0x80] sm:$0xff] (!%p12117_p2), %vm606_vm0, %v17585_v3  ;;  %v677_v16 = vld [vmem:[%s17968_s26 + $0x78] sm:$0xff] (!%p12117_p2)  ;;  %v678_v17 = vld [vmem:[%s17968_s26 + $0x80] sm:$0xff] (!%p12117_p2) }
  0xc9   : > { %626 = vst.msk [vmem:[#allocation3 + $0x90] sm:$0xff] (!%p12117_p2), %vm606_vm0, %v17585_v3  ;;  %627 = vst.msk [vmem:[#allocation3 + $0x98] sm:$0xff] (!%p12117_p2), %vm606_vm0, %v17585_v3  ;;  %v679_v18 = vld [vmem:[%s17968_s26 + $0x88] sm:$0xff] (!%p12117_p2)  ;;  %v680_v19 = vld [vmem:[%s17968_s26 + $0x90] sm:$0xff] (!%p12117_p2) }
  0xca   : > { %629 = vst.msk [vmem:[#allocation3 + $0xa8] sm:$0xff] %vm606_vm0, %v17585_v3  ;;  %630 = vst.msk [vmem:[#allocation3 + $0xb0] sm:$0xff] %vm606_vm0, %v17585_v3  ;;  %v681_v20 = vld [vmem:[%s17968_s26 + $0x98] sm:$0xff]  ;;  %v682_v21 = vld [vmem:[%s17968_s26 + $0xa0] sm:$0xff] }
  0xcb   : > { %632 = vst.msk [vmem:[#allocation3 + $0xc0] sm:$0xff] %vm606_vm0, %v17585_v3  ;;  %633 = vst.msk [vmem:[#allocation3 + $0xc8] sm:$0xff] %vm606_vm0, %v17585_v3  ;;  %v683_v22 = vld [vmem:[%s17968_s26 + $0xa8] sm:$0xff]  ;;  %v684_v23 = vld [vmem:[%s17968_s26 + $0xb0] sm:$0xff] }
  0xcc   : > { %635 = vst.msk [vmem:[#allocation3 + $0xd8] sm:$0xff] %vm606_vm0, %v17585_v3  ;;  %636 = vst.msk [vmem:[#allocation3 + $0xe0] sm:$0xff] %vm606_vm0, %v17585_v3  ;;  %v685_v24 = vld [vmem:[%s17968_s26 + $0xb8] sm:$0xff]  ;;  %v686_v25 = vld [vmem:[%s17968_s26 + $0xc0] sm:$0xff] }
  0xcd   : > { %638 = vst.msk [vmem:[#allocation3 + $0xf0] sm:$0xff] %vm606_vm0, %v17585_v3  ;;  %639 = vst.msk [vmem:[#allocation3 + $0xf8] sm:$0xff] %vm606_vm0, %v17585_v3  ;;  %v687_v26 = vld [vmem:[%s17968_s26 + $0xc8] sm:$0xff]  ;;  %v688_v27 = vld [vmem:[%s17968_s26 + $0xd0] sm:$0xff] }
  0xce   : > { %641 = vst.msk [vmem:[#allocation3 + $0x108] sm:$0xff] %vm606_vm0, %v17585_v3  ;;  %642 = vst.msk [vmem:[#allocation3 + $0x110] sm:$0xff] %vm606_vm0, %v17585_v3  ;;  %v689_v28 = vld [vmem:[%s17968_s26 + $0xd8] sm:$0xff]  ;;  %v690_v29 = vld [vmem:[%s17968_s26 + $0xe0] sm:$0xff] }
  0xcf   : > { %644 = vst.msk [vmem:[#allocation3 + $0x120] sm:$0xff] %vm606_vm0, %v17585_v3  ;;  %645 = vst.msk [vmem:[#allocation3 + $0x128] sm:$0xff] %vm606_vm0, %v17585_v3  ;;  %v691_v30 = vld [vmem:[%s17968_s26 + $0xe8] sm:$0xff]  ;;  %v692_v31 = vld [vmem:[%s17968_s26 + $0xf0] sm:$0xff] }
  0xd0   : > { %647 = vst.msk [vmem:[#allocation3 + $0x138] sm:$0xff] %vm606_vm0, %v17585_v3  ;;  %648 = vst.msk [vmem:[#allocation3 + $0x140] sm:$0xff] %vm606_vm0, %v17585_v3  ;;  %v693_v32 = vld [vmem:[%s17968_s26 + $0xf8] sm:$0xff] }
  0xd1   : > { %650 = vst.msk [vmem:[#allocation3 + $0x150] sm:$0xff] %vm606_vm0, %v17585_v3  ;;  %651 = vst.msk [vmem:[#allocation3 + $0x158] sm:$0xff] %vm606_vm0, %v17585_v3 }
  0xd2   : > { %653 = vst.msk [vmem:[#allocation3 + $0x168] sm:$0xff] %vm606_vm0, %v17585_v3  ;;  %654 = vst.msk [vmem:[#allocation3 + $0x170] sm:$0xff] %vm606_vm0, %v17585_v3 }
  0xd3   : > { %656 = vst.msk [vmem:[#allocation3 + $0x180] sm:$0xff] %vm606_vm0, %v17585_v3  ;;  %657 = vst.msk [vmem:[#allocation3 + $0x188] sm:$0xff] %vm606_vm0, %v17585_v3 }
  0xd4   : > { %659 = vst.msk [vmem:[#allocation3 + $0x198] sm:$0xff] %vm606_vm0, %v17585_v3  ;;  %660 = vst.msk [vmem:[#allocation3 + $0x1a0] sm:$0xff] %vm606_vm0, %v17585_v3 }
  0xd5   : > { %610 = vst.msk [vmem:[#allocation3 + $0x10] sm:$0x3] %vm609_vm1, %v17585_v3  ;;  %613 = vst.msk [vmem:[#allocation3 + $0x28] sm:$0x3] %vm609_vm1, %v17585_v3 }
  0xd6   : > { %616 = vst.msk [vmem:[#allocation3 + $0x40] sm:$0x3] %vm609_vm1, %v17585_v3  ;;  %619 = vst.msk [vmem:[#allocation3 + $0x58] sm:$0x3] %vm609_vm1, %v17585_v3 }
  0xd7   : > { %622 = vst.msk [vmem:[#allocation3 + $0x70] sm:$0x3] %vm609_vm1, %v17585_v3  ;;  %625 = vst.msk [vmem:[#allocation3 + $0x88] sm:$0x3] %vm609_vm1, %v17585_v3 }
  0xd8   : > { %628 = vst.msk [vmem:[#allocation3 + $0xa0] sm:$0x3] %vm609_vm1, %v17585_v3  ;;  %631 = vst.msk [vmem:[#allocation3 + $0xb8] sm:$0x3] %vm609_vm1, %v17585_v3 }
  0xd9   : > { %634 = vst.msk [vmem:[#allocation3 + $0xd0] sm:$0x3] %vm609_vm1, %v17585_v3  ;;  %637 = vst.msk [vmem:[#allocation3 + $0xe8] sm:$0x3] %vm609_vm1, %v17585_v3 }
  0xda   : > { %640 = vst.msk [vmem:[#allocation3 + $0x100] sm:$0x3] %vm609_vm1, %v17585_v3  ;;  %643 = vst.msk [vmem:[#allocation3 + $0x118] sm:$0x3] %vm609_vm1, %v17585_v3 }
  0xdb   : > { %646 = vst.msk [vmem:[#allocation3 + $0x130] sm:$0x3] %vm609_vm1, %v17585_v3  ;;  %649 = vst.msk [vmem:[#allocation3 + $0x148] sm:$0x3] %vm609_vm1, %v17585_v3 }
  0xdc   : > { %652 = vst.msk [vmem:[#allocation3 + $0x160] sm:$0x3] %vm609_vm1, %v17585_v3  ;;  %655 = vst.msk [vmem:[#allocation3 + $0x178] sm:$0x3] %vm609_vm1, %v17585_v3 }
  0xdd   : > { %658 = vst.msk [vmem:[#allocation3 + $0x190] sm:$0x3] %vm609_vm1, %v17585_v3  ;;  %661 = vst.msk [vmem:[#allocation3 + $0x1a8] sm:$0x3] %vm609_vm1, %v17585_v3 }
  0xde   : > { %696 = vst.msk [vmem:[#allocation2 + $0x10] sm:$0xff] %vm606_vm0, %v664_v2  ;;  %697 = vst.msk [vmem:[#allocation2 + $0x18] sm:$0xff] %vm606_vm0, %v665_v4 }
  0xdf   : > { %698 = vst.msk [vmem:[#allocation2 + $0x20] sm:$0xff] %vm606_vm0, %v666_v5  ;;  %699 = vst.msk [vmem:[#allocation2 + $0x28] sm:$0xff] %vm606_vm0, %v667_v6 }
  0xe0   : > { %700 = vst.msk [vmem:[#allocation2 + $0x30] sm:$0xff] %vm606_vm0, %v668_v7  ;;  %701 = vst.msk [vmem:[#allocation2 + $0x38] sm:$0xff] %vm606_vm0, %v669_v8 }
  0xe1   : > { %702 = vst.msk [vmem:[#allocation2 + $0x40] sm:$0xff] %vm606_vm0, %v670_v9  ;;  %703 = vst.msk [vmem:[#allocation2 + $0x48] sm:$0xff] %vm606_vm0, %v671_v10 }
  0xe2   : > { %704 = vst.msk [vmem:[#allocation2 + $0x50] sm:$0xff] %vm606_vm0, %v672_v11  ;;  %705 = vst.msk [vmem:[#allocation2 + $0x58] sm:$0xff] %vm606_vm0, %v673_v12 }
  0xe3   : > { %706 = vst.msk [vmem:[#allocation2 + $0x60] sm:$0xff] %vm606_vm0, %v674_v13  ;;  %707 = vst.msk [vmem:[#allocation2 + $0x68] sm:$0xff] %vm606_vm0, %v675_v14 }
  0xe4   : > { %708 = vst.msk [vmem:[#allocation2 + $0x70] sm:$0xff] %vm606_vm0, %v676_v15  ;;  %709 = vst.msk [vmem:[#allocation2 + $0x78] sm:$0xff] %vm606_vm0, %v677_v16 }
  0xe5   : > { %710 = vst.msk [vmem:[#allocation2 + $0x80] sm:$0xff] %vm606_vm0, %v678_v17  ;;  %711 = vst.msk [vmem:[#allocation2 + $0x88] sm:$0xff] %vm606_vm0, %v679_v18 }
  0xe6   : > { %712 = vst.msk [vmem:[#allocation2 + $0x90] sm:$0xff] %vm606_vm0, %v680_v19  ;;  %713 = vst.msk [vmem:[#allocation2 + $0x98] sm:$0xff] %vm606_vm0, %v681_v20 }
  0xe7   : > { %714 = vst.msk [vmem:[#allocation2 + $0xa0] sm:$0xff] %vm606_vm0, %v682_v21  ;;  %715 = vst.msk [vmem:[#allocation2 + $0xa8] sm:$0xff] %vm606_vm0, %v683_v22 }
  0xe8   : > { %716 = vst.msk [vmem:[#allocation2 + $0xb0] sm:$0xff] %vm606_vm0, %v684_v23  ;;  %717 = vst.msk [vmem:[#allocation2 + $0xb8] sm:$0xff] %vm606_vm0, %v685_v24 }
  0xe9   : > { %718 = vst.msk [vmem:[#allocation2 + $0xc0] sm:$0xff] %vm606_vm0, %v686_v25  ;;  %719 = vst.msk [vmem:[#allocation2 + $0xc8] sm:$0xff] %vm606_vm0, %v687_v26 }
  0xea   : > { %720 = vst.msk [vmem:[#allocation2 + $0xd0] sm:$0xff] %vm606_vm0, %v688_v27  ;;  %721 = vst.msk [vmem:[#allocation2 + $0xd8] sm:$0xff] %vm606_vm0, %v689_v28 }
  0xeb   : > { %722 = vst.msk [vmem:[#allocation2 + $0xe0] sm:$0xff] %vm606_vm0, %v690_v29  ;;  %723 = vst.msk [vmem:[#allocation2 + $0xe8] sm:$0xff] %vm606_vm0, %v691_v30 }
  0xec   : > { %724 = vst.msk [vmem:[#allocation2 + $0xf0] sm:$0xff] %vm606_vm0, %v692_v31  ;;  %725 = vst.msk [vmem:[#allocation2 + $0xf8] sm:$0xff] %vm606_vm0, %v693_v32 }
  0xed PF: > { %v12118_v33 = vld [vmem:[%s17976_s20 + $0x40] sm:$0xff]  ;;  %v12119_v34 = vld [vmem:[%s17976_s20 + $0x48] sm:$0xff]  ;;  %v12120_v35 = vld [vmem:[%s17976_s20 + $0x50] sm:$0xff]  ;;  %vm759_vm2 = vcmask 523264   ;;  %s21735_s13 = sld [smem:[#allocation137_spill]]  ;;  %vm17587_vm3 = vmmov 0  }
  0xee   : > { %v15969_v36 = vpack.c.bf16 %v12119_v34, %v12118_v33  ;;  %v12121_v37 = vld [vmem:[%s17976_s20 + $0x58] sm:$0xff]  ;;  %v12122_v39 = vld [vmem:[%s17976_s20 + $0x60] sm:$0xff]  ;;  %v12123_v40 = vld [vmem:[%s17976_s20 + $0x68] sm:$0xff]  ;;  %vm8057_vm4 = vcmask 1043456   ;;  %vm8053_vm5 = vcmask 31744   ;;  %p12828_p12 = scmp.ne.s32.totalorder %s17561_s23, 1 }
  0xef   : > { %v15973_v38 = vpack.c.bf16 %v12121_v37, %v12120_v35  ;;  %v832_v41 = vld [vmem:[#allocation3 + $0x1] sm:$0xff]  ;;  %v18153_v45 = vld [vmem:[#allocation2 + $0x10] sm:$0xff]  ;;  %v15977_v46 = vpack.c.bf16 %v12123_v40, %v12122_v39  ;;  %v18161_v47 = vld [vmem:[#allocation2 + $0x18] sm:$0xff] }
  0xf0   : > { %15970 = vmatprep.subr.bf16.mxu0 %v15969_v36  ;;  %14233 = vmatprep.mubr.msk.f32.mxu0 %vm759_vm2, %v832_v41  ;;  %v12124_v42 = vld [vmem:[%s17976_s20 + $0x70] sm:$0xff]  ;;  %v18151_v44 = vld [vmem:[#allocation2 + $0x8] sm:$0xff]  ;;  %21626 = vst [vmem:[#allocation30_spill] sm:$0xff] %v18153_v45  ;;  %762 = vst.msk [vmem:[#allocation3 + $0x31] sm:$0xff] %vm759_vm2, %v18153_v45 }
  0xf1   : > { %15972 = vmatpush3.bf16.msra.mxu0 %v15969_v36  ;;  %v18149_v43 = vld [vmem:[#allocation2] sm:$0xff]  ;;  %21625 = vst [vmem:[#allocation29_spill] sm:$0xff] %v18151_v44  ;;  %761 = vst.msk [vmem:[#allocation3 + $0x21] sm:$0xff] %vm759_vm2, %v18151_v44  ;;  %v18165_v49 = vld [vmem:[#allocation2 + $0x28] sm:$0xff] }
  0xf2   : > { %21624 = vst [vmem:[#allocation28_spill] sm:$0xff] %v18149_v43  ;;  %15974 = vmatprep.subr.bf16.mxu0 %v15973_v38  ;;  %760 = vst.msk [vmem:[#allocation3 + $0x19] sm:$0xff] %vm759_vm2, %v18149_v43  ;;  %v18163_v48 = vld [vmem:[#allocation2 + $0x20] sm:$0xff]  ;;  %v12125_v50 = vld [vmem:[%s17976_s20 + $0x78] sm:$0xff] }
  0xf3   : > { %21627 = vst [vmem:[#allocation31_spill] sm:$0xff] %v18161_v47  ;;  %21628 = vst [vmem:[#allocation32_spill] sm:$0xff] %v18163_v48  ;;  %v18174_v51 = vld [vmem:[#allocation2 + $0x30] sm:$0xff]  ;;  %v18176_v52 = vld [vmem:[#allocation2 + $0x38] sm:$0xff]  ;;  %v15981_v58 = vpack.c.bf16 %v12125_v50, %v12124_v42 }
  0xf4   : > { %21629 = vst [vmem:[#allocation33_spill] sm:$0xff] %v18165_v49  ;;  %763 = vst.msk [vmem:[#allocation3 + $0x39] sm:$0xff] %vm759_vm2, %v18161_v47  ;;  %v18182_v53 = vld [vmem:[#allocation2 + $0x40] sm:$0xff]  ;;  %v18184_v54 = vld [vmem:[#allocation2 + $0x48] sm:$0xff] }
  0xf5   : > { %764 = vst.msk [vmem:[#allocation3 + $0x49] sm:$0xff] %vm759_vm2, %v18163_v48  ;;  %765 = vst.msk [vmem:[#allocation3 + $0x51] sm:$0xff] %vm759_vm2, %v18165_v49  ;;  %15976 = vmatpush3.bf16.msra.mxu0 %v15973_v38  ;;  %v18190_v55 = vld [vmem:[#allocation2 + $0x50] sm:$0xff]  ;;  %v18192_v56 = vld [vmem:[#allocation2 + $0x58] sm:$0xff] }
  0xf6   : > { %21630 = vst [vmem:[#allocation34_spill] sm:$0xff] %v18174_v51  ;;  %21631 = vst [vmem:[#allocation35_spill] sm:$0xff] %v18176_v52  ;;  %v18194_v57 = vld [vmem:[#allocation2 + $0x60] sm:$0xff]  ;;  %15978 = vmatprep.subr.bf16.mxu0 %v15977_v46  ;;  %v18202_v59 = vld [vmem:[#allocation2 + $0x68] sm:$0xff] }
  0xf7   : > { %766 = vst.msk [vmem:[#allocation3 + $0x61] sm:$0xff] %vm759_vm2, %v18174_v51  ;;  %767 = vst.msk [vmem:[#allocation3 + $0x69] sm:$0xff] %vm759_vm2, %v18176_v52  ;;  %v18204_v60 = vld [vmem:[#allocation2 + $0x70] sm:$0xff]  ;;  %v18206_v61 = vld [vmem:[#allocation2 + $0x78] sm:$0xff] }
  0xf8   : > { %21632 = vst [vmem:[#allocation36_spill] sm:$0xff] %v18182_v53  ;;  %21633 = vst [vmem:[#allocation37_spill] sm:$0xff] %v18184_v54  ;;  %v824_v62 = vld [vmem:[%s17976_s20] sm:$0xff]  ;;  %v825_v63 = vld [vmem:[%s17976_s20 + $0x8] sm:$0xff] }
  0xf9   : > { %768 = vst.msk [vmem:[#allocation3 + $0x79] sm:$0xff] %vm759_vm2, %v18182_v53  ;;  %769 = vst.msk [vmem:[#allocation3 + $0x81] sm:$0xff] %vm759_vm2, %v18184_v54  ;;  %v18216_v0 = vld [vmem:[#allocation2 + $0x80] sm:$0xff]  ;;  %v18220_v1 = vld [vmem:[#allocation2 + $0x88] sm:$0xff]  ;;  %15980 = vmatpush3.bf16.msra.mxu0 %v15977_v46  ;;  %v15985_v4 = vpack.c.bf16 %v825_v63, %v824_v62 }
  0xfa   : > { %21634 = vst [vmem:[#allocation38_spill] sm:$0xff] %v18190_v55  ;;  %21635 = vst [vmem:[#allocation39_spill] sm:$0xff] %v18192_v56  ;;  %v18222_v2 = vld [vmem:[#allocation2 + $0x90] sm:$0xff]  ;;  %v18224_v3 = vld [vmem:[#allocation2 + $0x98] sm:$0xff]  ;;  %15982 = vmatprep.subr.bf16.mxu0 %v15981_v58 }
  0xfb   : > { %21636 = vst [vmem:[#allocation40_spill] sm:$0xff] %v18194_v57  ;;  %770 = vst.msk [vmem:[#allocation3 + $0x91] sm:$0xff] %vm759_vm2, %v18190_v55  ;;  %v826_v5 = vld [vmem:[%s17976_s20 + $0x10] sm:$0xff]  ;;  %v827_v6 = vld [vmem:[%s17976_s20 + $0x18] sm:$0xff] }
  0xfc   : > { %771 = vst.msk [vmem:[#allocation3 + $0x99] sm:$0xff] %vm759_vm2, %v18192_v56  ;;  %772 = vst.msk [vmem:[#allocation3 + $0xa9] sm:$0xff] %vm759_vm2, %v18194_v57  ;;  %v18234_v7 = vld [vmem:[#allocation2 + $0xa0] sm:$0xff]  ;;  %v18238_v8 = vld [vmem:[#allocation2 + $0xa8] sm:$0xff]  ;;  %v15989_v11 = vpack.c.bf16 %v827_v6, %v826_v5 }
  0xfd   : > { %21637 = vst [vmem:[#allocation41_spill] sm:$0xff] %v18202_v59  ;;  %21638 = vst [vmem:[#allocation42_spill] sm:$0xff] %v18204_v60  ;;  %15984 = vmatpush3.bf16.msra.mxu0 %v15981_v58  ;;  %v833_v9 = vld [vmem:[#allocation3 + $0x9] sm:$0xff]  ;;  %v18242_v10 = vld [vmem:[#allocation3 + $0x19] sm:$0xff] }
  0xfe   : > { %21639 = vst [vmem:[#allocation43_spill] sm:$0xff] %v18206_v61  ;;  %773 = vst.msk [vmem:[#allocation3 + $0xb1] sm:$0xff] %vm759_vm2, %v18202_v59  ;;  %15986 = vmatprep.subr.bf16.mxu0 %v15985_v4  ;;  %v828_v12 = vld [vmem:[%s17976_s20 + $0x20] sm:$0xff]  ;;  %v829_v13 = vld [vmem:[%s17976_s20 + $0x28] sm:$0xff] }
  0xff   : > { %774 = vst.msk [vmem:[#allocation3 + $0xc1] sm:$0xff] %vm759_vm2, %v18204_v60  ;;  %775 = vst.msk [vmem:[#allocation3 + $0xc9] sm:$0xff] %vm759_vm2, %v18206_v61  ;;  %v18246_v14 = vld [vmem:[#allocation2 + $0xb0] sm:$0xff]  ;;  %v18248_v15 = vld [vmem:[#allocation2 + $0xb8] sm:$0xff]  ;;  %v15993_v20 = vpack.c.bf16 %v829_v13, %v828_v12 }
 0x100   : > { %21640 = vst [vmem:[#allocation44_spill] sm:$0xff] %v18216_v0  ;;  %776 = vst.msk [vmem:[#allocation3 + $0xd9] sm:$0xff] %vm759_vm2, %v18216_v0  ;;  %14234 = vmatmul.mubr.msk.f32.vlgmr.msra.gmra.mrb[0].mxu0 %vm759_vm2, %v833_v9  ;;  %v18251_v16 = vld [vmem:[#allocation3 + $0x21] sm:$0xff]  ;;  %v18259_v17 = vld [vmem:[#allocation3 + $0x31] sm:$0xff] }
 0x101   : > { %21641 = vst [vmem:[#allocation45_spill] sm:$0xff] %v18220_v1  ;;  %21642 = vst [vmem:[#allocation46_spill] sm:$0xff] %v18222_v2  ;;  %15988 = vmatpush3.bf16.msra.mxu0 %v15985_v4  ;;  %14236 = vmatprep.mubr.msk.f32.mxu0 %vm759_vm2, %v18242_v10  ;;  %v830_v18 = vld [vmem:[%s17976_s20 + $0x30] sm:$0xff]  ;;  %v18266_v21 = vld [vmem:[#allocation2 + $0xc8] sm:$0xff] }
 0x102   : > { %21643 = vst [vmem:[#allocation47_spill] sm:$0xff] %v18224_v3  ;;  %777 = vst.msk [vmem:[#allocation3 + $0xe1] sm:$0xff] %vm759_vm2, %v18220_v1  ;;  %v18262_v19 = vld [vmem:[#allocation2 + $0xc0] sm:$0xff]  ;;  %15990 = vmatprep.subr.bf16.mxu0 %v15989_v11  ;;  %v18268_v22 = vld [vmem:[#allocation2 + $0xd0] sm:$0xff] }
 0x103   : > { %778 = vst.msk [vmem:[#allocation3 + $0xf1] sm:$0xff] %vm759_vm2, %v18222_v2  ;;  %779 = vst.msk [vmem:[#allocation3 + $0xf9] sm:$0xff] %vm759_vm2, %v18224_v3  ;;  %v18270_v23 = vld [vmem:[#allocation2 + $0xd8] sm:$0xff]  ;;  %v831_v24 = vld [vmem:[%s17976_s20 + $0x38] sm:$0xff] }
 0x104   : > { %21644 = vst [vmem:[#allocation48_spill] sm:$0xff] %v18234_v7  ;;  %780 = vst.msk [vmem:[#allocation3 + $0x109] sm:$0xff] %vm759_vm2, %v18234_v7  ;;  %v18279_v25 = vld [vmem:[#allocation2 + $0xe0] sm:$0xff]  ;;  %v18281_v26 = vld [vmem:[#allocation2 + $0xe8] sm:$0xff]  ;;  %14237 = vmatmul.mubr.msk.f32.gmra.mrb[2].mxu0 %vm759_vm2, %v18251_v16  ;;  %v15997_v29 = vpack.c.bf16 %v831_v24, %v830_v18 }
 0x105   : > { %21645 = vst [vmem:[#allocation49_spill] sm:$0xff] %v18238_v8  ;;  %781 = vst.msk [vmem:[#allocation3 + $0x111] sm:$0xff] %vm759_vm2, %v18238_v8  ;;  %14239 = vmatprep.mubr.msk.f32.mxu0 %vm759_vm2, %v18259_v17  ;;  %v18291_v27 = vld [vmem:[#allocation3 + $0x39] sm:$0xff]  ;;  %15992 = vmatpush3.bf16.msra.mxu0 %v15989_v11  ;;  %v18293_v28 = vld [vmem:[#allocation3 + $0x49] sm:$0xff] }
 0x106   : > { %21646 = vst [vmem:[#allocation50_spill] sm:$0xff] %v18246_v14  ;;  %21647 = vst [vmem:[#allocation51_spill] sm:$0xff] %v18248_v15  ;;  %15994 = vmatprep.subr.bf16.mxu0 %v15993_v20  ;;  %v12190_v30 = vld [vmem:[%s17976_s20 + $0x80] sm:$0xff]  ;;  %v12191_v31 = vld [vmem:[%s17976_s20 + $0x88] sm:$0xff] }
 0x107   : > { %782 = vst.msk [vmem:[#allocation3 + $0x121] sm:$0xff] %vm759_vm2, %v18246_v14  ;;  %783 = vst.msk [vmem:[#allocation3 + $0x129] sm:$0xff] %vm759_vm2, %v18248_v15  ;;  %v18301_v32 = vld [vmem:[#allocation3 + $0x51] sm:$0xff]  ;;  %v18303_v33 = vld [vmem:[#allocation3 + $0x61] sm:$0xff]  ;;  %v16001_v34 = vpack.c.bf16 %v12191_v31, %v12190_v30 }
 0x108   : > { %21648 = vst [vmem:[#allocation52_spill] sm:$0xff] %v18262_v19  ;;  %784 = vst.msk [vmem:[#allocation3 + $0x139] sm:$0xff] %vm759_vm2, %v18262_v19  ;;  %14240 = vmatmul.mubr.msk.f32.gmra.mrb[4].mxu0 %vm759_vm2, %v18291_v27  ;;  %v18309_v35 = vld [vmem:[#allocation3 + $0x69] sm:$0xff]  ;;  %v18311_v36 = vld [vmem:[#allocation3 + $0x79] sm:$0xff] }
 0x109   : > { %21649 = vst [vmem:[#allocation53_spill] sm:$0xff] %v18266_v21  ;;  %21650 = vst [vmem:[#allocation54_spill] sm:$0xff] %v18268_v22  ;;  %14242 = vmatprep.mubr.msk.f32.mxu0 %vm759_vm2, %v18293_v28  ;;  %15996 = vmatpush3.bf16.msra.mxu0 %v15993_v20  ;;  %v18317_v37 = vld [vmem:[#allocation3 + $0x81] sm:$0xff]  ;;  %v18319_v38 = vld [vmem:[#allocation3 + $0x91] sm:$0xff] }
 0x10a   : > { %21651 = vst [vmem:[#allocation55_spill] sm:$0xff] %v18270_v23  ;;  %785 = vst.msk [vmem:[#allocation3 + $0x141] sm:$0xff] %vm759_vm2, %v18266_v21  ;;  %15998 = vmatprep.subr.bf16.mxu0 %v15997_v29  ;;  %v18325_v39 = vld [vmem:[#allocation3 + $0x99] sm:$0xff]  ;;  %v18327_v40 = vld [vmem:[#allocation3 + $0xa9] sm:$0xff] }
 0x10b   : > { %786 = vst.msk [vmem:[#allocation3 + $0x151] sm:$0xff] %vm759_vm2, %v18268_v22  ;;  %787 = vst.msk [vmem:[#allocation3 + $0x159] sm:$0xff] %vm759_vm2, %v18270_v23  ;;  %v18333_v41 = vld [vmem:[#allocation3 + $0xb1] sm:$0xff]  ;;  %v18335_v42 = vld [vmem:[#allocation3 + $0xc1] sm:$0xff] }
 0x10c   : > { %21652 = vst [vmem:[#allocation56_spill] sm:$0xff] %v18279_v25  ;;  %21653 = vst [vmem:[#allocation57_spill] sm:$0xff] %v18281_v26  ;;  %14243 = vmatmul.mubr.msk.f32.gmra.mrb[6].mxu0 %vm759_vm2, %v18301_v32  ;;  %v18341_v46 = vld [vmem:[#allocation3 + $0xc9] sm:$0xff]  ;;  %v18343_v50 = vld [vmem:[#allocation3 + $0xd9] sm:$0xff] }
 0x10d   : > { %788 = vst.msk [vmem:[#allocation3 + $0x169] sm:$0xff] %vm759_vm2, %v18279_v25  ;;  %789 = vst.msk [vmem:[#allocation3 + $0x171] sm:$0xff] %vm759_vm2, %v18281_v26  ;;  %14245 = vmatprep.mubr.msk.f32.mxu0 %vm759_vm2, %v18303_v33  ;;  %16000 = vmatpush3.bf16.msra.mxu0 %v15997_v29  ;;  %v18349_v58 = vld [vmem:[#allocation3 + $0xe1] sm:$0xff]  ;;  %v18351_v62 = vld [vmem:[#allocation3 + $0xf1] sm:$0xff] }
 0x10e   : > { %16002 = vmatprep.subr.bf16.mxu0 %v16001_v34  ;;  %v18357_v63 = vld [vmem:[#allocation3 + $0xf9] sm:$0xff]  ;;  %v18359_v4 = vld [vmem:[#allocation3 + $0x109] sm:$0xff]  ;;  %v18365_v5 = vld [vmem:[#allocation3 + $0x111] sm:$0xff] }
 0x10f   : > { %21654 = vst [vmem:[#allocation58_spill] sm:$0xff] %v18365_v5  ;;  %v18367_v6 = vld [vmem:[#allocation3 + $0x121] sm:$0xff]  ;;  %v18373_v9 = vld [vmem:[#allocation3 + $0x129] sm:$0xff]  ;;  %v18375_v11 = vld [vmem:[#allocation3 + $0x139] sm:$0xff] }
 0x110   : > { %14246 = vmatmul.mubr.msk.f32.gmra.mrb[8].mxu0 %vm759_vm2, %v18309_v35  ;;  %21655 = vst [vmem:[#allocation59_spill] sm:$0xff] %v18367_v6  ;;  %21656 = vst [vmem:[#allocation60_spill] sm:$0xff] %v18373_v9  ;;  %v792_v29 = vld [vmem:[#allocation3] sm:$0xff]  ;;  %v12193_v31 = vld [vmem:[%s17976_s20 + $0x98] sm:$0xff] }
 0x111   : > { %14248 = vmatprep.mubr.msk.f32.mxu0 %vm759_vm2, %v18311_v36  ;;  %21657 = vst [vmem:[#allocation61_spill] sm:$0xff] %v18375_v11  ;;  %v18381_v12 = vld [vmem:[#allocation3 + $0x141] sm:$0xff]  ;;  %v18404_v25 = vld [vmem:[#allocation3 + $0x18] sm:$0xff]  ;;  %v12194_v22 = vld [vmem:[%s17976_s20 + $0xa0] sm:$0xff] }
 0x112   : > { %21658 = vst [vmem:[#allocation62_spill] sm:$0xff] %v18381_v12  ;;  %v18383_v13 = vld [vmem:[#allocation3 + $0x151] sm:$0xff]  ;;  %v18389_v18 = vld [vmem:[#allocation3 + $0x159] sm:$0xff]  ;;  %v793_v26 = vld [vmem:[#allocation3 + $0x8] sm:$0xff] }
 0x113   : > { %21659 = vst [vmem:[#allocation63_spill] sm:$0xff] %v18383_v13  ;;  %21660 = vst [vmem:[#allocation64_spill] sm:$0xff] %v18389_v18  ;;  %v12192_v30 = vld [vmem:[%s17976_s20 + $0x90] sm:$0xff]  ;;  %v12195_v21 = vld [vmem:[%s17976_s20 + $0xa8] sm:$0xff] }
 0x114   : > { %14249 = vmatmul.mubr.msk.f32.gmra.mrb[10].mxu0 %vm759_vm2, %v18317_v37  ;;  %v18391_v20 = vld [vmem:[#allocation3 + $0x169] sm:$0xff]  ;;  %v18397_v24 = vld [vmem:[#allocation3 + $0x171] sm:$0xff]  ;;  %v16005_v23 = vpack.c.bf16 %v12193_v31, %v12192_v30  ;;  %v18411_v19 = vld [vmem:[#allocation3 + $0x20] sm:$0xff] }
 0x115   : > { %14251 = vmatprep.mubr.msk.f32.mxu0 %vm759_vm2, %v18319_v38  ;;  %21661 = vst [vmem:[#allocation65_spill] sm:$0xff] %v18391_v20  ;;  %21662 = vst [vmem:[#allocation66_spill] sm:$0xff] %v18397_v24  ;;  %v18413_v15 = vld [vmem:[#allocation3 + $0x30] sm:$0xff]  ;;  %v12196_v14 = vld [vmem:[%s17976_s20 + $0xb0] sm:$0xff] }
 0x116   : > { %v12197_v8 = vld [vmem:[%s17976_s20 + $0xb8] sm:$0xff]  ;;  %v12230_v31 = vld [vmem:[%s17976_s20 + $0xc0] sm:$0xff]  ;;  %v12231_v7 = vld [vmem:[%s17976_s20 + $0xc8] sm:$0xff] }
 0x117   : > { %v16013_v30 = vpack.c.bf16 %v12197_v8, %v12196_v14  ;;  %v18435_v3 = vpack.c.bf16 %v12231_v7, %v12230_v31  ;;  %v18441_v8 = vld [vmem:[#allocation3 + $0x68] sm:$0xff]  ;;  %v18443_v14 = vld [vmem:[#allocation3 + $0x78] sm:$0xff]  ;;  %v18450_v7 = vld [vmem:[#allocation3 + $0x80] sm:$0xff] }
 0x118   : > { %14252 = vmatmul.mubr.msk.f32.gmra.mrb[12].mxu0 %vm759_vm2, %v18325_v39  ;;  %v18466_v31 = vld [vmem:[#allocation3 + $0xb0] sm:$0xff]  ;;  %v18468_v2 = vld [vmem:[#allocation3 + $0xc0] sm:$0xff]  ;;  %v18474_v1 = vld [vmem:[#allocation3 + $0xc8] sm:$0xff] }
 0x119   : > { %14254 = vmatprep.mubr.msk.f32.mxu0 %vm759_vm2, %v18327_v40  ;;  %v18476_v0 = vld [vmem:[#allocation3 + $0xd8] sm:$0xff]  ;;  %v18482_v61 = vld [vmem:[#allocation3 + $0xe0] sm:$0xff]  ;;  %v18484_v60 = vld [vmem:[#allocation3 + $0xf0] sm:$0xff] }
 0x11a   : > { %v18490_v59 = vld [vmem:[#allocation3 + $0xf8] sm:$0xff]  ;;  %v18492_v57 = vld [vmem:[#allocation3 + $0x108] sm:$0xff]  ;;  %v18498_v56 = vld [vmem:[#allocation3 + $0x110] sm:$0xff] }
 0x11b   : > { %v18500_v55 = vld [vmem:[#allocation3 + $0x120] sm:$0xff]  ;;  %v18506_v54 = vld [vmem:[#allocation3 + $0x128] sm:$0xff]  ;;  %v18508_v53 = vld [vmem:[#allocation3 + $0x138] sm:$0xff] }
 0x11c   : > { %14255 = vmatmul.mubr.msk.f32.gmra.mrb[14].mxu0 %vm759_vm2, %v18333_v41  ;;  %v18514_v52 = vld [vmem:[#allocation3 + $0x140] sm:$0xff]  ;;  %v18516_v51 = vld [vmem:[#allocation3 + $0x150] sm:$0xff]  ;;  %v18522_v48 = vld [vmem:[#allocation2 + $0xf8] sm:$0xff] }
 0x11d   : > { %14257 = vmatprep.mubr.msk.f32.mxu0 %vm759_vm2, %v18335_v42  ;;  %v18518_v49 = vld [vmem:[#allocation2 + $0xf0] sm:$0xff]  ;;  %21664 = vst [vmem:[#allocation68_spill] sm:$0xff] %v18522_v48  ;;  %791 = vst.msk [vmem:[#allocation3 + $0x189] sm:$0xff] %vm759_vm2, %v18522_v48  ;;  %v18530_v47 = vld [vmem:[#allocation3 + $0x158] sm:$0xff] }
 0x11e   : > { %21663 = vst [vmem:[#allocation67_spill] sm:$0xff] %v18518_v49  ;;  %790 = vst.msk [vmem:[#allocation3 + $0x181] sm:$0xff] %vm759_vm2, %v18518_v49  ;;  %v18532_v45 = vld [vmem:[#allocation3 + $0x168] sm:$0xff]  ;;  %v18538_v49 = vld [vmem:[#allocation3 + $0x170] sm:$0xff] }
 0x11f   : > { %v1515_v44 = vld [vmem:[#allocation3 + $0x2] sm:$0xff] }
 0x120   : > { %14258 = vmatmul.mubr.msk.f32.gmra.mrb[16].mxu0 %vm759_vm2, %v18341_v46  ;;  %v12232_v43 = vld [vmem:[%s17976_s20 + $0xd0] sm:$0xff]  ;;  %v12233_v48 = vld [vmem:[%s17976_s20 + $0xd8] sm:$0xff] }
 0x121   : > { %14260 = vmatprep.mubr.msk.f32.mxu0 %vm759_vm2, %v18343_v50 }
 0x124   : > { %14261 = vmatmul.mubr.msk.f32.gmra.mrb[18].mxu0 %vm759_vm2, %v18349_v58 }
 0x125   : > { %14263 = vmatprep.mubr.msk.f32.mxu0 %vm759_vm2, %v18351_v62 }
 0x128   : > { %14264 = vmatmul.mubr.msk.f32.gmra.mrb[20].mxu0 %vm759_vm2, %v18357_v63 }
 0x129   : > { %14266 = vmatprep.mubr.msk.f32.mxu0 %vm759_vm2, %v18359_v4 }
 0x12c   : > { %14267 = vmatmul.mubr.msk.f32.gmra.mrb[22].mxu0 %vm759_vm2, %v18365_v5  ;;  %v12237_v5 = vld [vmem:[%s17976_s20 + $0xf8] sm:$0xff] }
 0x12d   : > { %14269 = vmatprep.mubr.msk.f32.mxu0 %vm759_vm2, %v18367_v6  ;;  %v12236_v6 = vld [vmem:[%s17976_s20 + $0xf0] sm:$0xff] }
 0x130   : > { %14270 = vmatmul.mubr.msk.f32.gmra.mrb[24].mxu0 %vm759_vm2, %v18373_v9  ;;  %v18555_v9 = vld [vmem:[#allocation3 + $0x32] sm:$0xff] }
 0x131   : > { %14272 = vmatprep.mubr.msk.f32.mxu0 %vm759_vm2, %v18375_v11  ;;  %v18553_v11 = vld [vmem:[#allocation3 + $0x22] sm:$0xff]  ;;  %21666 = vst [vmem:[#allocation70_spill] sm:$0xff] %v18555_v9 }
 0x134   : > { %14273 = vmatmul.mubr.msk.f32.gmra.mrb[26].mxu0 %vm759_vm2, %v18381_v12  ;;  %v12235_v12 = vld [vmem:[%s17976_s20 + $0xe8] sm:$0xff] }
 0x135   : > { %14275 = vmatprep.mubr.msk.f32.mxu0 %vm759_vm2, %v18383_v13  ;;  %v12234_v13 = vld [vmem:[%s17976_s20 + $0xe0] sm:$0xff] }
 0x138   : > { %14276 = vmatmul.mubr.msk.f32.gmra.mrb[28].mxu0 %vm759_vm2, %v18389_v18  ;;  %v16021_v18 = vpack.c.bf16 %v12233_v48, %v12232_v43  ;;  %v18563_v43 = vld [vmem:[#allocation3 + $0x3a] sm:$0xff]  ;;  %v18565_v48 = vld [vmem:[#allocation3 + $0x4a] sm:$0xff] }
 0x139   : > { %14278 = vmatprep.mubr.msk.f32.mxu0 %vm759_vm2, %v18391_v20  ;;  %v18545_v20 = vld [vmem:[#allocation3 + $0x1a] sm:$0xff] }
 0x13a   : > { %21665 = vst [vmem:[#allocation69_spill] sm:$0xff] %v18545_v20 }
 0x13c   : > { %14279 = vmatmul.mubr.msk.f32.gmra.mrb[30].mxu0 %vm759_vm2, %v18397_v24  ;;  %v1516_v24 = vld [vmem:[#allocation3 + $0xa] sm:$0xff] }
 0x13d   : > { %14297 = vmatprep.mubr.msk.f32.mxu0 %vm759_vm2, %v792_v29  ;;  %v16009_v29 = vpack.c.bf16 %v12195_v21, %v12194_v22  ;;  %v18431_v21 = vld [vmem:[#allocation3 + $0x50] sm:$0xff]  ;;  %v18433_v22 = vld [vmem:[#allocation3 + $0x60] sm:$0xff] }
 0x140   : > { %14298 = vmatmul.mubr.msk.f32.vlgmr.msra.gmra.mrb[0].mxu0 %vm759_vm2, %v793_v26  ;;  %v18421_v26 = vld [vmem:[#allocation3 + $0x38] sm:$0xff] }
 0x141   : > { %16004 = vmatpush3.bf16.msra.mxu0 %v16001_v34  ;;  %14300 = vmatprep.mubr.msk.f32.mxu0 %vm759_vm2, %v18404_v25  ;;  %v18423_v34 = vld [vmem:[#allocation3 + $0x48] sm:$0xff] }
 0x142   : > { %16006 = vmatprep.subr.bf16.mxu0 %v16005_v23 }
 0x144   : > { %14301 = vmatmul.mubr.msk.f32.gmra.mrb[2].mxu0 %vm759_vm2, %v18411_v19 }
 0x145   : > { %14303 = vmatprep.mubr.msk.f32.mxu0 %vm759_vm2, %v18413_v15  ;;  %16008 = vmatpush3.bf16.msra.mxu0 %v16005_v23  ;;  %v18452_v23 = vld [vmem:[#allocation3 + $0x90] sm:$0xff] }
 0x146   : > { %16010 = vmatprep.subr.bf16.mxu0 %v16009_v29 }
 0x148   : > { %14304 = vmatmul.mubr.msk.f32.gmra.mrb[4].mxu0 %vm759_vm2, %v18421_v26 }
 0x149   : > { %14306 = vmatprep.mubr.msk.f32.mxu0 %vm759_vm2, %v18423_v34  ;;  %16012 = vmatpush3.bf16.msra.mxu0 %v16009_v29  ;;  %v18458_v29 = vld [vmem:[#allocation3 + $0x98] sm:$0xff] }
 0x14a   : > { %16014 = vmatprep.subr.bf16.mxu0 %v16013_v30 }
 0x14c   : > { %14307 = vmatmul.mubr.msk.f32.gmra.mrb[6].mxu0 %vm759_vm2, %v18431_v21 }
 0x14d   : > { %14309 = vmatprep.mubr.msk.f32.mxu0 %vm759_vm2, %v18433_v22  ;;  %16016 = vmatpush3.bf16.msra.mxu0 %v16013_v30  ;;  %v18460_v30 = vld [vmem:[#allocation3 + $0xa8] sm:$0xff] }
 0x14e   : > { %16018 = vmatprep.subr.bf16.mxu0 %v18435_v3 }
 0x150   : > { %14310 = vmatmul.mubr.msk.f32.gmra.mrb[8].mxu0 %vm759_vm2, %v18441_v8 }
 0x151   : > { %14312 = vmatprep.mubr.msk.f32.mxu0 %vm759_vm2, %v18443_v14 }
 0x154   : > { %14313 = vmatmul.mubr.msk.f32.gmra.mrb[10].mxu0 %vm759_vm2, %v18450_v7 }
 0x155   : > { %14315 = vmatprep.mubr.msk.f32.mxu0 %vm759_vm2, %v18452_v23 }
 0x158   : > { %14316 = vmatmul.mubr.msk.f32.gmra.mrb[12].mxu0 %vm759_vm2, %v18458_v29 }
 0x159   : > { %14318 = vmatprep.mubr.msk.f32.mxu0 %vm759_vm2, %v18460_v30 }
 0x15c   : > { %14319 = vmatmul.mubr.msk.f32.gmra.mrb[14].mxu0 %vm759_vm2, %v18466_v31 }
 0x15d   : > { %14321 = vmatprep.mubr.msk.f32.mxu0 %vm759_vm2, %v18468_v2 }
 0x160   : > { %14322 = vmatmul.mubr.msk.f32.gmra.mrb[16].mxu0 %vm759_vm2, %v18474_v1 }
 0x161   : > { %14324 = vmatprep.mubr.msk.f32.mxu0 %vm759_vm2, %v18476_v0 }
 0x164   : > { %14325 = vmatmul.mubr.msk.f32.gmra.mrb[18].mxu0 %vm759_vm2, %v18482_v61 }
 0x165   : > { %14327 = vmatprep.mubr.msk.f32.mxu0 %vm759_vm2, %v18484_v60 }
 0x168   : > { %14328 = vmatmul.mubr.msk.f32.gmra.mrb[20].mxu0 %vm759_vm2, %v18490_v59 }
 0x169   : > { %14330 = vmatprep.mubr.msk.f32.mxu0 %vm759_vm2, %v18492_v57 }
 0x16c   : > { %14331 = vmatmul.mubr.msk.f32.gmra.mrb[22].mxu0 %vm759_vm2, %v18498_v56 }
 0x16d   : > { %14333 = vmatprep.mubr.msk.f32.mxu0 %vm759_vm2, %v18500_v55 }
 0x170   : > { %14334 = vmatmul.mubr.msk.f32.gmra.mrb[24].mxu0 %vm759_vm2, %v18506_v54 }
 0x171   : > { %14336 = vmatprep.mubr.msk.f32.mxu0 %vm759_vm2, %v18508_v53 }
 0x174   : > { %14337 = vmatmul.mubr.msk.f32.gmra.mrb[26].mxu0 %vm759_vm2, %v18514_v52 }
 0x175   : > { %14339 = vmatprep.mubr.msk.f32.mxu0 %vm759_vm2, %v18516_v51 }
 0x178   : > { %14340 = vmatmul.mubr.msk.f32.gmra.mrb[28].mxu0 %vm759_vm2, %v18530_v47 }
 0x179   : > { %14342 = vmatprep.mubr.msk.f32.mxu0 %vm759_vm2, %v18532_v45 }
 0x17c   : > { %14343 = vmatmul.mubr.msk.f32.gmra.mrb[30].mxu0 %vm759_vm2, %v18538_v49 }
 0x17d   : > { %14361 = vmatprep.mubr.msk.f32.mxu0 %vm759_vm2, %v1515_v44  ;;  %v16025_v44 = vpack.c.bf16 %v12235_v12, %v12234_v13  ;;  %v18573_v12 = vld [vmem:[#allocation3 + $0x52] sm:$0xff]  ;;  %v18575_v13 = vld [vmem:[#allocation3 + $0x62] sm:$0xff] }
 0x17e   : > { %21667 = vst [vmem:[#allocation71_spill] sm:$0xff] %v18573_v12  ;;  %21668 = vst [vmem:[#allocation72_spill] sm:$0xff] %v18575_v13 }
 0x180   : > { %14362 = vmatmul.mubr.msk.f32.vlgmr.msra.gmra.mrb[0].mxu0 %vm759_vm2, %v1516_v24  ;;  %v12270_v24 = vld [vmem:[%s17976_s20 + $0x100] sm:$0xff] }
 0x181   : > { %16020 = vmatpush3.bf16.msra.mxu0 %v18435_v3  ;;  %14364 = vmatprep.mubr.msk.f32.mxu0 %vm759_vm2, %v18545_v20  ;;  %v16029_v3 = vpack.c.bf16 %v12237_v5, %v12236_v6  ;;  %v12271_v20 = vld [vmem:[%s17976_s20 + $0x108] sm:$0xff]  ;;  %v18581_v5 = vld [vmem:[#allocation3 + $0x6a] sm:$0xff] }
 0x182   : > { %16022 = vmatprep.subr.bf16.mxu0 %v16021_v18  ;;  %21669 = vst [vmem:[#allocation73_spill] sm:$0xff] %v18581_v5  ;;  %v18583_v6 = vld [vmem:[#allocation3 + $0x7a] sm:$0xff] }
 0x183   : > { %21670 = vst [vmem:[#allocation74_spill] sm:$0xff] %v18583_v6 }
 0x184   : > { %14365 = vmatmul.mubr.msk.f32.gmra.mrb[2].mxu0 %vm759_vm2, %v18553_v11 }
 0x185   : > { %14367 = vmatprep.mubr.msk.f32.mxu0 %vm759_vm2, %v18555_v9  ;;  %16024 = vmatpush3.bf16.msra.mxu0 %v16021_v18  ;;  %v16033_v9 = vpack.c.bf16 %v12271_v20, %v12270_v24  ;;  %v18589_v18 = vld [vmem:[#allocation3 + $0x82] sm:$0xff]  ;;  %v18591_v20 = vld [vmem:[#allocation3 + $0x92] sm:$0xff] }
 0x186   : > { %16026 = vmatprep.subr.bf16.mxu0 %v16025_v44  ;;  %21671 = vst [vmem:[#allocation75_spill] sm:$0xff] %v18589_v18  ;;  %21672 = vst [vmem:[#allocation76_spill] sm:$0xff] %v18591_v20  ;;  %v18605_v24 = vld [vmem:[#allocation3 + $0xb2] sm:$0xff] }
 0x187   : > { %21675 = vst [vmem:[#allocation79_spill] sm:$0xff] %v18605_v24 }
 0x188   : > { %14368 = vmatmul.mubr.msk.f32.gmra.mrb[4].mxu0 %vm759_vm2, %v18563_v43 }
 0x189   : > { %14370 = vmatprep.mubr.msk.f32.mxu0 %vm759_vm2, %v18565_v48  ;;  %16028 = vmatpush3.bf16.msra.mxu0 %v16025_v44  ;;  %v18597_v44 = vld [vmem:[#allocation3 + $0x9a] sm:$0xff] }
 0x18a   : > { %16030 = vmatprep.subr.bf16.mxu0 %v16029_v3  ;;  %21673 = vst [vmem:[#allocation77_spill] sm:$0xff] %v18597_v44 }
 0x18c   : > { %14371 = vmatmul.mubr.msk.f32.gmra.mrb[6].mxu0 %vm759_vm2, %v18573_v12  ;;  %v12277_v12 = vld [vmem:[%s17976_s20 + $0x138] sm:$0xff] }
 0x18d   : > { %14373 = vmatprep.mubr.msk.f32.mxu0 %vm759_vm2, %v18575_v13  ;;  %16032 = vmatpush3.bf16.msra.mxu0 %v16029_v3  ;;  %v18599_v3 = vld [vmem:[#allocation3 + $0xaa] sm:$0xff]  ;;  %v12275_v13 = vld [vmem:[%s17976_s20 + $0x128] sm:$0xff] }
 0x18e   : > { %16034 = vmatprep.subr.bf16.mxu0 %v16033_v9  ;;  %21674 = vst [vmem:[#allocation78_spill] sm:$0xff] %v18599_v3 }
 0x190   : > { %14374 = vmatmul.mubr.msk.f32.gmra.mrb[8].mxu0 %vm759_vm2, %v18581_v5  ;;  %v12273_v5 = vld [vmem:[%s17976_s20 + $0x118] sm:$0xff] }
 0x191   : > { %14376 = vmatprep.mubr.msk.f32.mxu0 %vm759_vm2, %v18583_v6  ;;  %v18607_v6 = vld [vmem:[#allocation3 + $0xc2] sm:$0xff] }
 0x192   : > { %21676 = vst [vmem:[#allocation80_spill] sm:$0xff] %v18607_v6 }
 0x194   : > { %14377 = vmatmul.mubr.msk.f32.gmra.mrb[10].mxu0 %vm759_vm2, %v18589_v18  ;;  %v18615_v18 = vld [vmem:[#allocation3 + $0xda] sm:$0xff] }
 0x195   : > { %14379 = vmatprep.mubr.msk.f32.mxu0 %vm759_vm2, %v18591_v20  ;;  %v18613_v20 = vld [vmem:[#allocation3 + $0xca] sm:$0xff]  ;;  %21678 = vst [vmem:[#allocation82_spill] sm:$0xff] %v18615_v18 }
 0x196   : > { %21677 = vst [vmem:[#allocation81_spill] sm:$0xff] %v18613_v20 }
 0x198   : > { %14380 = vmatmul.mubr.msk.f32.gmra.mrb[12].mxu0 %vm759_vm2, %v18597_v44  ;;  %v18623_v44 = vld [vmem:[#allocation3 + $0xf2] sm:$0xff] }
 0x199   : > { %14382 = vmatprep.mubr.msk.f32.mxu0 %vm759_vm2, %v18599_v3  ;;  %v18621_v3 = vld [vmem:[#allocation3 + $0xe2] sm:$0xff]  ;;  %21680 = vst [vmem:[#allocation84_spill] sm:$0xff] %v18623_v44 }
 0x19a   : > { %21679 = vst [vmem:[#allocation83_spill] sm:$0xff] %v18621_v3 }
 0x19c   : > { %14383 = vmatmul.mubr.msk.f32.gmra.mrb[14].mxu0 %vm759_vm2, %v18605_v24  ;;  %v18631_v24 = vld [vmem:[#allocation3 + $0x10a] sm:$0xff] }
 0x19d   : > { %14385 = vmatprep.mubr.msk.f32.mxu0 %vm759_vm2, %v18607_v6  ;;  %v18629_v6 = vld [vmem:[#allocation3 + $0xfa] sm:$0xff]  ;;  %21682 = vst [vmem:[#allocation86_spill] sm:$0xff] %v18631_v24 }
 0x19e   : > { %21681 = vst [vmem:[#allocation85_spill] sm:$0xff] %v18629_v6 }
 0x1a0   : > { %14386 = vmatmul.mubr.msk.f32.gmra.mrb[16].mxu0 %vm759_vm2, %v18613_v20  ;;  %v18639_v20 = vld [vmem:[#allocation3 + $0x122] sm:$0xff] }
 0x1a1   : > { %14388 = vmatprep.mubr.msk.f32.mxu0 %vm759_vm2, %v18615_v18  ;;  %v18637_v18 = vld [vmem:[#allocation3 + $0x112] sm:$0xff]  ;;  %21684 = vst [vmem:[#allocation88_spill] sm:$0xff] %v18639_v20 }
 0x1a2   : > { %21683 = vst [vmem:[#allocation87_spill] sm:$0xff] %v18637_v18 }
 0x1a4   : > { %14389 = vmatmul.mubr.msk.f32.gmra.mrb[18].mxu0 %vm759_vm2, %v18621_v3  ;;  %v18647_v3 = vld [vmem:[#allocation3 + $0x13a] sm:$0xff] }
 0x1a5   : > { %14391 = vmatprep.mubr.msk.f32.mxu0 %vm759_vm2, %v18623_v44  ;;  %v18645_v44 = vld [vmem:[#allocation3 + $0x12a] sm:$0xff]  ;;  %21686 = vst [vmem:[#allocation90_spill] sm:$0xff] %v18647_v3 }
 0x1a6   : > { %21685 = vst [vmem:[#allocation89_spill] sm:$0xff] %v18645_v44 }
 0x1a8   : > { %14392 = vmatmul.mubr.msk.f32.gmra.mrb[20].mxu0 %vm759_vm2, %v18629_v6  ;;  %v18655_v6 = vld [vmem:[#allocation3 + $0x152] sm:$0xff] }
 0x1a9   : > { %14394 = vmatprep.mubr.msk.f32.mxu0 %vm759_vm2, %v18631_v24  ;;  %v18653_v24 = vld [vmem:[#allocation3 + $0x142] sm:$0xff]  ;;  %21688 = vst [vmem:[#allocation92_spill] sm:$0xff] %v18655_v6 }
 0x1aa   : > { %21687 = vst [vmem:[#allocation91_spill] sm:$0xff] %v18653_v24 }
 0x1ac   : > { %14395 = vmatmul.mubr.msk.f32.gmra.mrb[22].mxu0 %vm759_vm2, %v18637_v18  ;;  %v18663_v18 = vld [vmem:[#allocation3 + $0x16a] sm:$0xff] }
 0x1ad   : > { %14397 = vmatprep.mubr.msk.f32.mxu0 %vm759_vm2, %v18639_v20  ;;  %v18661_v20 = vld [vmem:[#allocation3 + $0x15a] sm:$0xff]  ;;  %21690 = vst [vmem:[#allocation94_spill] sm:$0xff] %v18663_v18 }
 0x1ae   : > { %21689 = vst [vmem:[#allocation93_spill] sm:$0xff] %v18661_v20 }
 0x1b0   : > { %14398 = vmatmul.mubr.msk.f32.gmra.mrb[24].mxu0 %vm759_vm2, %v18645_v44  ;;  %v12272_v44 = vld [vmem:[%s17976_s20 + $0x110] sm:$0xff] }
 0x1b1   : > { %14400 = vmatprep.mubr.msk.f32.mxu0 %vm759_vm2, %v18647_v3  ;;  %v18669_v3 = vld [vmem:[#allocation3 + $0x172] sm:$0xff] }
 0x1b2   : > { %21691 = vst [vmem:[#allocation95_spill] sm:$0xff] %v18669_v3 }
 0x1b4   : > { %14401 = vmatmul.mubr.msk.f32.gmra.mrb[26].mxu0 %vm759_vm2, %v18653_v24  ;;  %v12274_v24 = vld [vmem:[%s17976_s20 + $0x120] sm:$0xff] }
 0x1b5   : > { %14403 = vmatprep.mubr.msk.f32.mxu0 %vm759_vm2, %v18655_v6  ;;  %v16037_v6 = vpack.c.bf16 %v12273_v5, %v12272_v44  ;;  %v12310_v5 = vld [vmem:[%s17976_s20 + $0x140] sm:$0xff]  ;;  %v12311_v44 = vld [vmem:[%s17976_s20 + $0x148] sm:$0xff] }
 0x1b8   : > { %14404 = vmatmul.mubr.msk.f32.gmra.mrb[28].mxu0 %vm759_vm2, %v18661_v20  ;;  %v12276_v20 = vld [vmem:[%s17976_s20 + $0x130] sm:$0xff] }
 0x1b9   : > { %14406 = vmatprep.mubr.msk.f32.mxu0 %vm759_vm2, %v18663_v18  ;;  %v16041_v18 = vpack.c.bf16 %v12275_v13, %v12274_v24  ;;  %v12312_v13 = vld [vmem:[%s17976_s20 + $0x150] sm:$0xff]  ;;  %v12315_v24 = vld [vmem:[%s17976_s20 + $0x168] sm:$0xff] }
 0x1bc   : > { %14407 = vmatmul.mubr.msk.f32.gmra.mrb[30].mxu0 %vm759_vm2, %v18669_v3 }
 0x1bd   : > { %14425 = vmatprep.mubr.msk.f32.mxu0 %vm759_vm2, %v18404_v25  ;;  %v16045_v25 = vpack.c.bf16 %v12277_v12, %v12276_v20  ;;  %v18745_v12 = vld [vmem:[#allocation3 + $0x188] sm:$0xff]  ;;  %v12314_v20 = vld [vmem:[%s17976_s20 + $0x160] sm:$0xff] }
 0x1c0   : > { %14426 = vmatmul.mubr.msk.f32.vlgmr.msra.gmra.mrb[0].mxu0 %vm759_vm2, %v18411_v19  ;;  %v16049_v19 = vpack.c.bf16 %v12311_v44, %v12310_v5  ;;  %v12316_v5 = vld [vmem:[%s17976_s20 + $0x170] sm:$0xff]  ;;  %v12317_v44 = vld [vmem:[%s17976_s20 + $0x178] sm:$0xff] }
 0x1c1   : > { %16036 = vmatpush3.bf16.msra.mxu0 %v16033_v9  ;;  %14428 = vmatprep.mubr.msk.f32.mxu0 %vm759_vm2, %v18413_v15  ;;  %v18739_v9 = vld [vmem:[#allocation3 + $0x180] sm:$0xff] }
 0x1c2   : > { %16038 = vmatprep.subr.bf16.mxu0 %v16037_v6 }
 0x1c4   : > { %14429 = vmatmul.mubr.msk.f32.gmra.mrb[2].mxu0 %vm759_vm2, %v18421_v26 }
 0x1c5   : > { %14431 = vmatprep.mubr.msk.f32.mxu0 %vm759_vm2, %v18423_v34  ;;  %16040 = vmatpush3.bf16.msra.mxu0 %v16037_v6  ;;  %v12313_v6 = vld [vmem:[%s17976_s20 + $0x158] sm:$0xff] }
 0x1c6   : > { %16042 = vmatprep.subr.bf16.mxu0 %v16041_v18 }
 0x1c8   : > { %14432 = vmatmul.mubr.msk.f32.gmra.mrb[4].mxu0 %vm759_vm2, %v18431_v21 }
 0x1c9   : > { %14434 = vmatprep.mubr.msk.f32.mxu0 %vm759_vm2, %v18433_v22  ;;  %16044 = vmatpush3.bf16.msra.mxu0 %v16041_v18  ;;  %v16053_v18 = vpack.c.bf16 %v12313_v6, %v12312_v13  ;;  %v12350_v13 = vld [vmem:[%s17976_s20 + $0x180] sm:$0xff]  ;;  %v12351_v6 = vld [vmem:[%s17976_s20 + $0x188] sm:$0xff] }
 0x1ca   : > { %16046 = vmatprep.subr.bf16.mxu0 %v16045_v25 }
 0x1cc   : > { %14435 = vmatmul.mubr.msk.f32.gmra.mrb[6].mxu0 %vm759_vm2, %v18441_v8 }
 0x1cd   : > { %14437 = vmatprep.mubr.msk.f32.mxu0 %vm759_vm2, %v18443_v14  ;;  %16048 = vmatpush3.bf16.msra.mxu0 %v16045_v25  ;;  %v16057_v25 = vpack.c.bf16 %v12315_v24, %v12314_v20  ;;  %v12390_v24 = vld [vmem:[%s17976_s20 + $0x1c0] sm:$0xff] }
 0x1ce   : > { %16050 = vmatprep.subr.bf16.mxu0 %v16049_v19 }
 0x1d0   : > { %14438 = vmatmul.mubr.msk.f32.gmra.mrb[8].mxu0 %vm759_vm2, %v18450_v7 }
 0x1d1   : > { %14440 = vmatprep.mubr.msk.f32.mxu0 %vm759_vm2, %v18452_v23 }
 0x1d4   : > { %14441 = vmatmul.mubr.msk.f32.gmra.mrb[10].mxu0 %vm759_vm2, %v18458_v29 }
 0x1d5   : > { %14443 = vmatprep.mubr.msk.f32.mxu0 %vm759_vm2, %v18460_v30 }
 0x1d8   : > { %14444 = vmatmul.mubr.msk.f32.gmra.mrb[12].mxu0 %vm759_vm2, %v18466_v31 }
 0x1d9   : > { %14446 = vmatprep.mubr.msk.f32.mxu0 %vm759_vm2, %v18468_v2 }
 0x1dc   : > { %14447 = vmatmul.mubr.msk.f32.gmra.mrb[14].mxu0 %vm759_vm2, %v18474_v1 }
 0x1dd   : > { %14449 = vmatprep.mubr.msk.f32.mxu0 %vm759_vm2, %v18476_v0 }
 0x1e0   : > { %14450 = vmatmul.mubr.msk.f32.gmra.mrb[16].mxu0 %vm759_vm2, %v18482_v61 }
 0x1e1   : > { %14452 = vmatprep.mubr.msk.f32.mxu0 %vm759_vm2, %v18484_v60 }
 0x1e4   : > { %14453 = vmatmul.mubr.msk.f32.gmra.mrb[18].mxu0 %vm759_vm2, %v18490_v59 }
 0x1e5   : > { %14455 = vmatprep.mubr.msk.f32.mxu0 %vm759_vm2, %v18492_v57 }
 0x1e8   : > { %14456 = vmatmul.mubr.msk.f32.gmra.mrb[20].mxu0 %vm759_vm2, %v18498_v56 }
 0x1e9   : > { %14458 = vmatprep.mubr.msk.f32.mxu0 %vm759_vm2, %v18500_v55 }
 0x1ec   : > { %14459 = vmatmul.mubr.msk.f32.gmra.mrb[22].mxu0 %vm759_vm2, %v18506_v54 }
 0x1ed   : > { %14461 = vmatprep.mubr.msk.f32.mxu0 %vm759_vm2, %v18508_v53 }
 0x1f0   : > { %14462 = vmatmul.mubr.msk.f32.gmra.mrb[24].mxu0 %vm759_vm2, %v18514_v52 }
 0x1f1   : > { %14464 = vmatprep.mubr.msk.f32.mxu0 %vm759_vm2, %v18516_v51 }
 0x1f4   : > { %14465 = vmatmul.mubr.msk.f32.gmra.mrb[26].mxu0 %vm759_vm2, %v18530_v47 }
 0x1f5   : > { %14467 = vmatprep.mubr.msk.f32.mxu0 %vm759_vm2, %v18532_v45 }
 0x1f8   : > { %14468 = vmatmul.mubr.msk.f32.gmra.mrb[28].mxu0 %vm759_vm2, %v18538_v49 }
 0x1f9   : > { %14470 = vmatprep.mubr.msk.f32.mxu0 %vm759_vm2, %v18739_v9 }
 0x1fc   : > { %14471 = vmatmul.mubr.msk.f32.gmra.mrb[30].mxu0 %vm759_vm2, %v18745_v12 }
 0x1fd   : > { %14489 = vmatprep.mubr.msk.f32.mxu0 %vm759_vm2, %v18242_v10  ;;  %v16061_v10 = vpack.c.bf16 %v12317_v44, %v12316_v5  ;;  %v21704_v5 = vld [vmem:[#allocation72_spill] sm:$0xff] }
 0x200   : > { %14490 = vmatmul.mubr.msk.f32.vlgmr.msra.gmra.mrb[0].mxu0 %vm759_vm2, %v18251_v16  ;;  %v16065_v16 = vpack.c.bf16 %v12351_v6, %v12350_v13  ;;  %v21706_v13 = vld [vmem:[#allocation74_spill] sm:$0xff]  ;;  %v21707_v6 = vld [vmem:[#allocation75_spill] sm:$0xff] }
 0x201   : > { %16052 = vmatpush3.bf16.msra.mxu0 %v16049_v19  ;;  %14492 = vmatprep.mubr.msk.f32.mxu0 %vm759_vm2, %v18259_v17  ;;  %v21692_v17 = vld [vmem:[#allocation58_spill] sm:$0xff] }
 0x202   : > { %16054 = vmatprep.subr.bf16.mxu0 %v16053_v18  ;;  %v12356_v19 = vld [vmem:[%s17976_s20 + $0x1b0] sm:$0xff] }
 0x204   : > { %14493 = vmatmul.mubr.msk.f32.gmra.mrb[2].mxu0 %vm759_vm2, %v18291_v27  ;;  %v21693_v27 = vld [vmem:[#allocation59_spill] sm:$0xff] }
 0x205   : > { %14495 = vmatprep.mubr.msk.f32.mxu0 %vm759_vm2, %v18293_v28  ;;  %16056 = vmatpush3.bf16.msra.mxu0 %v16053_v18  ;;  %v21694_v28 = vld [vmem:[#allocation60_spill] sm:$0xff]  ;;  %v12357_v18 = vld [vmem:[%s17976_s20 + $0x1b8] sm:$0xff] }
 0x206   : > { %16058 = vmatprep.subr.bf16.mxu0 %v16057_v25  ;;  %v16077_v20 = vpack.c.bf16 %v12357_v18, %v12356_v19  ;;  %v21725_v19 = vld [vmem:[#allocation93_spill] sm:$0xff]  ;;  %v21726_v18 = vld [vmem:[#allocation94_spill] sm:$0xff] }
 0x208   : > { %14496 = vmatmul.mubr.msk.f32.gmra.mrb[4].mxu0 %vm759_vm2, %v18301_v32  ;;  %v21695_v32 = vld [vmem:[#allocation61_spill] sm:$0xff] }
 0x209   : > { %14498 = vmatprep.mubr.msk.f32.mxu0 %vm759_vm2, %v18303_v33  ;;  %16060 = vmatpush3.bf16.msra.mxu0 %v16057_v25  ;;  %v21696_v33 = vld [vmem:[#allocation62_spill] sm:$0xff]  ;;  %v12391_v25 = vld [vmem:[%s17976_s20 + $0x1c8] sm:$0xff] }
 0x20a   : > { %16062 = vmatprep.subr.bf16.mxu0 %v16061_v10  ;;  %v16081_v44 = vpack.c.bf16 %v12391_v25, %v12390_v24  ;;  %v18897_v24 = vld [vmem:[#allocation3 + $0x18a] sm:$0xff]  ;;  %v12392_v25 = vld [vmem:[%s17976_s20 + $0x1d0] sm:$0xff] }
 0x20c   : > { %14499 = vmatmul.mubr.msk.f32.gmra.mrb[6].mxu0 %vm759_vm2, %v18309_v35  ;;  %v21697_v35 = vld [vmem:[#allocation63_spill] sm:$0xff] }
 0x20d   : > { %14501 = vmatprep.mubr.msk.f32.mxu0 %vm759_vm2, %v18311_v36  ;;  %16064 = vmatpush3.bf16.msra.mxu0 %v16061_v10  ;;  %v21698_v36 = vld [vmem:[#allocation64_spill] sm:$0xff]  ;;  %v21705_v10 = vld [vmem:[#allocation73_spill] sm:$0xff] }
 0x20e   : > { %16066 = vmatprep.subr.bf16.mxu0 %v16065_v16 }
 0x210   : > { %14502 = vmatmul.mubr.msk.f32.gmra.mrb[8].mxu0 %vm759_vm2, %v18317_v37  ;;  %v21699_v37 = vld [vmem:[#allocation65_spill] sm:$0xff] }
 0x211   : > { %14504 = vmatprep.mubr.msk.f32.mxu0 %vm759_vm2, %v18319_v38  ;;  %v18815_v38 = vld [vmem:[#allocation3 + $0x181] sm:$0xff] }
 0x214   : > { %14505 = vmatmul.mubr.msk.f32.gmra.mrb[10].mxu0 %vm759_vm2, %v18325_v39  ;;  %v21700_v39 = vld [vmem:[#allocation66_spill] sm:$0xff] }
 0x215   : > { %14507 = vmatprep.mubr.msk.f32.mxu0 %vm759_vm2, %v18327_v40  ;;  %v18821_v40 = vld [vmem:[#allocation3 + $0x189] sm:$0xff] }
 0x218   : > { %14508 = vmatmul.mubr.msk.f32.gmra.mrb[12].mxu0 %vm759_vm2, %v18333_v41  ;;  %v12352_v41 = vld [vmem:[%s17976_s20 + $0x190] sm:$0xff] }
 0x219   : > { %14510 = vmatprep.mubr.msk.f32.mxu0 %vm759_vm2, %v18335_v42  ;;  %v12353_v42 = vld [vmem:[%s17976_s20 + $0x198] sm:$0xff] }
 0x21c   : > { %14511 = vmatmul.mubr.msk.f32.gmra.mrb[14].mxu0 %vm759_vm2, %v18341_v46  ;;  %v21701_v46 = vld [vmem:[#allocation69_spill] sm:$0xff] }
 0x21d   : > { %14513 = vmatprep.mubr.msk.f32.mxu0 %vm759_vm2, %v18343_v50  ;;  %v16069_v50 = vpack.c.bf16 %v12353_v42, %v12352_v41  ;;  %v21718_v41 = vld [vmem:[#allocation86_spill] sm:$0xff]  ;;  %v21719_v42 = vld [vmem:[#allocation87_spill] sm:$0xff] }
 0x220   : > { %14514 = vmatmul.mubr.msk.f32.gmra.mrb[16].mxu0 %vm759_vm2, %v18349_v58  ;;  %v12354_v58 = vld [vmem:[%s17976_s20 + $0x1a0] sm:$0xff] }
 0x221   : > { %14516 = vmatprep.mubr.msk.f32.mxu0 %vm759_vm2, %v18351_v62  ;;  %v12355_v62 = vld [vmem:[%s17976_s20 + $0x1a8] sm:$0xff] }
 0x224   : > { %14517 = vmatmul.mubr.msk.f32.gmra.mrb[18].mxu0 %vm759_vm2, %v18357_v63  ;;  %v21702_v63 = vld [vmem:[#allocation70_spill] sm:$0xff] }
 0x225   : > { %14519 = vmatprep.mubr.msk.f32.mxu0 %vm759_vm2, %v18359_v4  ;;  %v16073_v4 = vpack.c.bf16 %v12355_v62, %v12354_v58  ;;  %v21722_v58 = vld [vmem:[#allocation90_spill] sm:$0xff]  ;;  %v21723_v62 = vld [vmem:[#allocation91_spill] sm:$0xff] }
 0x228   : > { %14520 = vmatmul.mubr.msk.f32.gmra.mrb[20].mxu0 %vm759_vm2, %v21692_v17  ;;  %v21709_v17 = vld [vmem:[#allocation77_spill] sm:$0xff] }
 0x229   : > { %14522 = vmatprep.mubr.msk.f32.mxu0 %vm759_vm2, %v21693_v27  ;;  %v21710_v27 = vld [vmem:[#allocation78_spill] sm:$0xff] }
 0x22c   : > { %14523 = vmatmul.mubr.msk.f32.gmra.mrb[22].mxu0 %vm759_vm2, %v21694_v28  ;;  %v21711_v28 = vld [vmem:[#allocation79_spill] sm:$0xff] }
 0x22d   : > { %14525 = vmatprep.mubr.msk.f32.mxu0 %vm759_vm2, %v21695_v32  ;;  %v21712_v32 = vld [vmem:[#allocation80_spill] sm:$0xff] }
 0x230   : > { %14526 = vmatmul.mubr.msk.f32.gmra.mrb[24].mxu0 %vm759_vm2, %v21696_v33  ;;  %v21713_v33 = vld [vmem:[#allocation81_spill] sm:$0xff] }
 0x231   : > { %14528 = vmatprep.mubr.msk.f32.mxu0 %vm759_vm2, %v21697_v35  ;;  %v21714_v35 = vld [vmem:[#allocation82_spill] sm:$0xff] }
 0x234   : > { %14529 = vmatmul.mubr.msk.f32.gmra.mrb[26].mxu0 %vm759_vm2, %v21698_v36  ;;  %v21715_v36 = vld [vmem:[#allocation83_spill] sm:$0xff] }
 0x235   : > { %14531 = vmatprep.mubr.msk.f32.mxu0 %vm759_vm2, %v21699_v37  ;;  %v21716_v37 = vld [vmem:[#allocation84_spill] sm:$0xff] }
 0x238   : > { %14532 = vmatmul.mubr.msk.f32.gmra.mrb[28].mxu0 %vm759_vm2, %v21700_v39  ;;  %v21717_v39 = vld [vmem:[#allocation85_spill] sm:$0xff] }
 0x239   : > { %14534 = vmatprep.mubr.msk.f32.mxu0 %vm759_vm2, %v18815_v38 }
 0x23c   : > { %14535 = vmatmul.mubr.msk.f32.gmra.mrb[30].mxu0 %vm759_vm2, %v18821_v40 }
 0x23d   : > { %14553 = vmatprep.mubr.msk.f32.mxu0 %vm759_vm2, %v21701_v46  ;;  %v21720_v46 = vld [vmem:[#allocation88_spill] sm:$0xff] }
 0x240   : > { %14554 = vmatmul.mubr.msk.f32.vlgmr.msra.gmra.mrb[0].mxu0 %vm759_vm2, %v18553_v11  ;;  %v21703_v11 = vld [vmem:[#allocation71_spill] sm:$0xff] }
 0x241   : > { %16068 = vmatpush3.bf16.msra.mxu0 %v16065_v16  ;;  %14556 = vmatprep.mubr.msk.f32.mxu0 %vm759_vm2, %v21702_v63  ;;  %v21708_v16 = vld [vmem:[#allocation76_spill] sm:$0xff] }
 0x242   : > { %16070 = vmatprep.subr.bf16.mxu0 %v16069_v50 }
 0x244   : > { %14557 = vmatmul.mubr.msk.f32.gmra.mrb[2].mxu0 %vm759_vm2, %v18563_v43 }
 0x245   : > { %14559 = vmatprep.mubr.msk.f32.mxu0 %vm759_vm2, %v18565_v48  ;;  %16072 = vmatpush3.bf16.msra.mxu0 %v16069_v50  ;;  %v21721_v50 = vld [vmem:[#allocation89_spill] sm:$0xff] }
 0x246   : > { %16074 = vmatprep.subr.bf16.mxu0 %v16073_v4 }
 0x248   : > { %14560 = vmatmul.mubr.msk.f32.gmra.mrb[4].mxu0 %vm759_vm2, %v21703_v11 }
 0x249   : > { %14562 = vmatprep.mubr.msk.f32.mxu0 %vm759_vm2, %v21704_v5  ;;  %16076 = vmatpush3.bf16.msra.mxu0 %v16073_v4  ;;  %v21724_v4 = vld [vmem:[#allocation92_spill] sm:$0xff] }
 0x24a   : > { %16078 = vmatprep.subr.bf16.mxu0 %v16077_v20 }
 0x24c   : > { %14563 = vmatmul.mubr.msk.f32.gmra.mrb[6].mxu0 %vm759_vm2, %v21705_v10 }
 0x24d   : > { %14565 = vmatprep.mubr.msk.f32.mxu0 %vm759_vm2, %v21706_v13  ;;  %16080 = vmatpush3.bf16.msra.mxu0 %v16077_v20  ;;  %v18891_v20 = vld [vmem:[#allocation3 + $0x182] sm:$0xff] }
 0x24e   : > { %16082 = vmatprep.subr.bf16.mxu0 %v16081_v44  ;;  %21727 = vst [vmem:[#allocation58_spill] sm:$0xff] %v18891_v20 }
 0x250   : > { %14566 = vmatmul.mubr.msk.f32.gmra.mrb[8].mxu0 %vm759_vm2, %v21707_v6 }
 0x251   : > { %14568 = vmatprep.mubr.msk.f32.mxu0 %vm759_vm2, %v21708_v16 }
 0x254   : > { %14569 = vmatmul.mubr.msk.f32.gmra.mrb[10].mxu0 %vm759_vm2, %v21709_v17 }
 0x255   : > { %14571 = vmatprep.mubr.msk.f32.mxu0 %vm759_vm2, %v21710_v27 }
 0x258   : > { %14572 = vmatmul.mubr.msk.f32.gmra.mrb[12].mxu0 %vm759_vm2, %v21711_v28 }
 0x259   : > { %14574 = vmatprep.mubr.msk.f32.mxu0 %vm759_vm2, %v21712_v32 }
 0x25c   : > { %14575 = vmatmul.mubr.msk.f32.gmra.mrb[14].mxu0 %vm759_vm2, %v21713_v33 }
 0x25d   : > { %14577 = vmatprep.mubr.msk.f32.mxu0 %vm759_vm2, %v21714_v35 }
 0x260   : > { %14578 = vmatmul.mubr.msk.f32.gmra.mrb[16].mxu0 %vm759_vm2, %v21715_v36 }
 0x261   : > { %14580 = vmatprep.mubr.msk.f32.mxu0 %vm759_vm2, %v21716_v37 }
 0x264   : > { %14581 = vmatmul.mubr.msk.f32.gmra.mrb[18].mxu0 %vm759_vm2, %v21717_v39 }
 0x265   : > { %14583 = vmatprep.mubr.msk.f32.mxu0 %vm759_vm2, %v21718_v41 }
 0x268   : > { %14584 = vmatmul.mubr.msk.f32.gmra.mrb[20].mxu0 %vm759_vm2, %v21719_v42 }
 0x269   : > { %14586 = vmatprep.mubr.msk.f32.mxu0 %vm759_vm2, %v21720_v46 }
 0x26c   : > { %14587 = vmatmul.mubr.msk.f32.gmra.mrb[22].mxu0 %vm759_vm2, %v21721_v50 }
 0x26d   : > { %14589 = vmatprep.mubr.msk.f32.mxu0 %vm759_vm2, %v21722_v58  ;;  %v12397_v58 = vld [vmem:[%s17976_s20 + $0x1f8] sm:$0xff] }
 0x270   : > { %14590 = vmatmul.mubr.msk.f32.gmra.mrb[24].mxu0 %vm759_vm2, %v21723_v62  ;;  %v12395_v62 = vld [vmem:[%s17976_s20 + $0x1e8] sm:$0xff] }
 0x271   : > { %14592 = vmatprep.mubr.msk.f32.mxu0 %vm759_vm2, %v21724_v4  ;;  %v12393_v4 = vld [vmem:[%s17976_s20 + $0x1d8] sm:$0xff] }
 0x274   : > { %14593 = vmatmul.mubr.msk.f32.gmra.mrb[26].mxu0 %vm759_vm2, %v21725_v19  ;;  %v12394_v19 = vld [vmem:[%s17976_s20 + $0x1e0] sm:$0xff] }
 0x275   : > { %14595 = vmatprep.mubr.msk.f32.mxu0 %vm759_vm2, %v21726_v18  ;;  %v16085_v18 = vpack.c.bf16 %v12393_v4, %v12392_v25  ;;  %v12430_v4 = vld [vmem:[%s17976_s20 + $0x200] sm:$0xff]  ;;  %v12431_v25 = vld [vmem:[%s17976_s20 + $0x208] sm:$0xff] }
 0x278   : > { %14596 = vmatmul.mubr.msk.f32.gmra.mrb[28].mxu0 %vm759_vm2, %v18669_v3  ;;  %v12396_v3 = vld [vmem:[%s17976_s20 + $0x1f0] sm:$0xff] }
 0x279   : > { %14598 = vmatprep.mubr.msk.f32.mxu0 %vm759_vm2, %v18891_v20  ;;  %v16089_v20 = vpack.c.bf16 %v12395_v62, %v12394_v19  ;;  %v3500_v62 = vld [vmem:[#allocation3 + $0xd9] sm:$0xff]  ;;  %v3501_v19 = vld [vmem:[#allocation3 + $0xe1] sm:$0xff] }
 0x27c   : > { %14599 = vmatmul.mubr.msk.f32.gmra.mrb[30].mxu0 %vm759_vm2, %v18897_v24 }
 0x27d   : > { %14617 = vmatprep.mubr.msk.f32.mxu0 %vm759_vm2, %v18413_v15  ;;  %v16093_v15 = vpack.c.bf16 %v12397_v58, %v12396_v3  ;;  %v3495_v3 = vld [vmem:[#allocation3 + $0x99] sm:$0xff]  ;;  %v3499_v58 = vld [vmem:[#allocation3 + $0xc9] sm:$0xff] }
 0x280   : > { %14618 = vmatmul.mubr.msk.f32.vlgmr.msra.gmra.mrb[0].mxu0 %vm759_vm2, %v18421_v26  ;;  %v16097_v26 = vpack.c.bf16 %v12431_v25, %v12430_v4  ;;  %v3505_v4 = vld [vmem:[#allocation3 + $0x111] sm:$0xff]  ;;  %v3506_v25 = vld [vmem:[#allocation3 + $0x121] sm:$0xff] }
 0x281   : > { %16084 = vmatpush3.bf16.msra.mxu0 %v16081_v44  ;;  %14620 = vmatprep.mubr.msk.f32.mxu0 %vm759_vm2, %v18423_v34  ;;  %v3489_v34 = vld [vmem:[#allocation3 + $0x51] sm:$0xff]  ;;  %v3498_v44 = vld [vmem:[#allocation3 + $0xc1] sm:$0xff] }
 0x282   : > { %16086 = vmatprep.subr.bf16.mxu0 %v16085_v18 }
 0x284   : > { %14621 = vmatmul.mubr.msk.f32.gmra.mrb[2].mxu0 %vm759_vm2, %v18431_v21  ;;  %v3490_v21 = vld [vmem:[#allocation3 + $0x61] sm:$0xff] }
 0x285   : > { %14623 = vmatprep.mubr.msk.f32.mxu0 %vm759_vm2, %v18433_v22  ;;  %16088 = vmatpush3.bf16.msra.mxu0 %v16085_v18  ;;  %v3502_v18 = vld [vmem:[#allocation3 + $0xf1] sm:$0xff] }
 0x286   : > { %16090 = vmatprep.subr.bf16.mxu0 %v16089_v20 }
 0x288   : > { %14624 = vmatmul.mubr.msk.f32.gmra.mrb[4].mxu0 %vm759_vm2, %v18441_v8  ;;  %v12436_v8 = vld [vmem:[%s17976_s20 + $0x230] sm:$0xff] }
 0x289   : > { %14626 = vmatprep.mubr.msk.f32.mxu0 %vm759_vm2, %v18443_v14  ;;  %16092 = vmatpush3.bf16.msra.mxu0 %v16089_v20  ;;  %v12437_v14 = vld [vmem:[%s17976_s20 + $0x238] sm:$0xff]  ;;  %v3503_v20 = vld [vmem:[#allocation3 + $0xf9] sm:$0xff] }
 0x28a   : > { %16094 = vmatprep.subr.bf16.mxu0 %v16093_v15 }
 0x28c   : > { %14627 = vmatmul.mubr.msk.f32.gmra.mrb[6].mxu0 %vm759_vm2, %v18450_v7  ;;  %v3491_v7 = vld [vmem:[#allocation3 + $0x69] sm:$0xff] }
 0x28d   : > { %14629 = vmatprep.mubr.msk.f32.mxu0 %vm759_vm2, %v18452_v23  ;;  %16096 = vmatpush3.bf16.msra.mxu0 %v16093_v15  ;;  %v3492_v23 = vld [vmem:[#allocation3 + $0x79] sm:$0xff]  ;;  %v3504_v15 = vld [vmem:[#allocation3 + $0x109] sm:$0xff] }
 0x28e   : > { %16098 = vmatprep.subr.bf16.mxu0 %v16097_v26 }
 0x290   : > { %14630 = vmatmul.mubr.msk.f32.gmra.mrb[8].mxu0 %vm759_vm2, %v18458_v29  ;;  %v16109_v29 = vpack.c.bf16 %v12437_v14, %v12436_v8 }
 0x291   : > { %14632 = vmatprep.mubr.msk.f32.mxu0 %vm759_vm2, %v18460_v30  ;;  %v3493_v30 = vld [vmem:[#allocation3 + $0x81] sm:$0xff] }
 0x294   : > { %14633 = vmatmul.mubr.msk.f32.gmra.mrb[10].mxu0 %vm759_vm2, %v18466_v31  ;;  %v3494_v31 = vld [vmem:[#allocation3 + $0x91] sm:$0xff] }
 0x295   : > { %14635 = vmatprep.mubr.msk.f32.mxu0 %vm759_vm2, %v18468_v2  ;;  %v12435_v2 = vld [vmem:[%s17976_s20 + $0x228] sm:$0xff] }
 0x298   : > { %14636 = vmatmul.mubr.msk.f32.gmra.mrb[12].mxu0 %vm759_vm2, %v18474_v1  ;;  %v12434_v1 = vld [vmem:[%s17976_s20 + $0x220] sm:$0xff] }
 0x299   : > { %14638 = vmatprep.mubr.msk.f32.mxu0 %vm759_vm2, %v18476_v0  ;;  %v16105_v22 = vpack.c.bf16 %v12435_v2, %v12434_v1 }
 0x29c   : > { %14639 = vmatmul.mubr.msk.f32.gmra.mrb[14].mxu0 %vm759_vm2, %v18482_v61 }
 0x29d   : > { %14641 = vmatprep.mubr.msk.f32.mxu0 %vm759_vm2, %v18484_v60  ;;  %v3488_v60 = vld [vmem:[#allocation3 + $0x49] sm:$0xff] }
 0x2a0   : > { %14642 = vmatmul.mubr.msk.f32.gmra.mrb[16].mxu0 %vm759_vm2, %v18490_v59  ;;  %v12474_v59 = vld [vmem:[%s17982_s8 + $0x58] sm:$0xff] }
 0x2a1   : > { %14644 = vmatprep.mubr.msk.f32.mxu0 %vm759_vm2, %v18492_v57 }
 0x2a4   : > { %14645 = vmatmul.mubr.msk.f32.gmra.mrb[18].mxu0 %vm759_vm2, %v18498_v56  ;;  %v3487_v56 = vld [vmem:[#allocation3 + $0x39] sm:$0xff] }
 0x2a5   : > { %14647 = vmatprep.mubr.msk.f32.mxu0 %vm759_vm2, %v18500_v55  ;;  %v12473_v55 = vld [vmem:[%s17982_s8 + $0x50] sm:$0xff] }
 0x2a6   : > { %v16117_v0 = vpack.c.bf16 %v12474_v59, %v12473_v55  ;;  %v3517_v55 = vld [vmem:[#allocation3 + $0x1a1] sm:$0xff] }
 0x2a7   : > { %v4416_v59 = vld [vmem:[%s17982_s8 + $0x38] sm:$0xff] }
 0x2a8   : > { %14648 = vmatmul.mubr.msk.f32.gmra.mrb[20].mxu0 %vm759_vm2, %v18506_v54  ;;  %v12433_v54 = vld [vmem:[%s17976_s20 + $0x218] sm:$0xff] }
 0x2a9   : > { %14650 = vmatprep.mubr.msk.f32.mxu0 %vm759_vm2, %v18508_v53  ;;  %v3122_v53 = vld [vmem:[#allocation3 + $0x198] sm:$0xff] }
 0x2ac   : > { %14651 = vmatmul.mubr.msk.f32.gmra.mrb[22].mxu0 %vm759_vm2, %v18514_v52  ;;  %v12432_v52 = vld [vmem:[%s17976_s20 + $0x210] sm:$0xff]  ;;  %s21736_s20 = scalar_lea.vmem %s21735_s13, %s17990_s12 }
 0x2ad   : > { %14653 = vmatprep.mubr.msk.f32.mxu0 %vm759_vm2, %v18516_v51  ;;  %v3123_v51 = vld [vmem:[#allocation3 + $0x1a0] sm:$0xff]  ;;  %v16101_v61 = vpack.c.bf16 %v12433_v54, %v12432_v52  ;;  %v3512_v54 = vld [vmem:[#allocation3 + $0x169] sm:$0xff] }
 0x2ae   : > { %v3511_v52 = vld [vmem:[#allocation3 + $0x159] sm:$0xff] }
 0x2af   : > { %v19101_v2 = vld [vmem:[%s21736_s20] ss:$0 sm:$0xff] }
 0x2b0   : > { %14654 = vmatmul.mubr.msk.f32.gmra.mrb[24].mxu0 %vm759_vm2, %v18530_v47  ;;  %v3486_v47 = vld [vmem:[#allocation3 + $0x31] sm:$0xff] }
 0x2b1   : > { %14656 = vmatprep.mubr.msk.f32.mxu0 %vm759_vm2, %v18532_v45  ;;  %v12471_v45 = vld [vmem:[%s17982_s8 + $0x40] sm:$0xff] }
 0x2b4   : > { %14657 = vmatmul.mubr.msk.f32.gmra.mrb[26].mxu0 %vm759_vm2, %v18538_v49  ;;  %v12472_v49 = vld [vmem:[%s17982_s8 + $0x48] sm:$0xff] }
 0x2b5   : > { %14659 = vmatprep.mubr.msk.f32.mxu0 %vm759_vm2, %v18739_v9  ;;  %v16113_v57 = vpack.c.bf16 %v12472_v49, %v12471_v45  ;;  %v3496_v9 = vld [vmem:[#allocation3 + $0xa9] sm:$0xff]  ;;  %v3513_v45 = vld [vmem:[#allocation3 + $0x171] sm:$0xff]  ;;  %v3516_v49 = vld [vmem:[#allocation3 + $0x199] sm:$0xff] }
 0x2b7   : > { %16114 = vmatprep.subr.bf16.mxu1 %v16113_v57 }
 0x2b8   : > { %14660 = vmatmul.mubr.msk.f32.gmra.mrb[28].mxu0 %vm759_vm2, %v18745_v12  ;;  %16116 = vmatpush3.bf16.msra.mxu1 %v16113_v57  ;;  %v3497_v12 = vld [vmem:[#allocation3 + $0xb1] sm:$0xff]  ;;  %v4415_v57 = vld [vmem:[%s17982_s8 + $0x30] sm:$0xff] }
 0x2b9   : > { %14662 = vmatprep.mubr.msk.f32.mxu0 %vm759_vm2, %v3122_v53  ;;  %16118 = vmatprep.subr.bf16.mxu1 %v16117_v0  ;;  %v3508_v53 = vld [vmem:[#allocation3 + $0x139] sm:$0xff] }
 0x2bc   : > { %14663 = vmatmul.mubr.msk.f32.gmra.mrb[30].mxu0 %vm759_vm2, %v3123_v51  ;;  %16120 = vmatpush3.bf16.msra.mxu1 %v16117_v0  ;;  %v3509_v51 = vld [vmem:[#allocation3 + $0x141] sm:$0xff]  ;;  %v12544_v0 = vld [vmem:[%s17982_s8 + $0x88] sm:$0xff] }
 0x2bd   : > { %14681 = vmatprep.mubr.msk.f32.mxu0 %vm759_vm2, %v3486_v47  ;;  %v3510_v47 = vld [vmem:[#allocation3 + $0x151] sm:$0xff] }
 0x2c0   : > { %14682 = vmatmul.mubr.msk.f32.vlgmr.msra.gmra.mrb[0].mxu0 %vm759_vm2, %v3487_v56 }
 0x2c1   : > { %16100 = vmatpush3.bf16.msra.mxu0 %v16097_v26  ;;  %14684 = vmatprep.mubr.msk.f32.mxu0 %vm759_vm2, %v3488_v60  ;;  %v3507_v26 = vld [vmem:[#allocation3 + $0x129] sm:$0xff]  ;;  %v16141_v60 = vpack.c.bf16 %v4416_v59, %v4415_v57 }
 0x2c2   : > { %16102 = vmatprep.subr.bf16.mxu0 %v16101_v61 }
 0x2c4   : > { %14685 = vmatmul.mubr.msk.f32.gmra.mrb[2].mxu0 %vm759_vm2, %v3489_v34 }
 0x2c5   : > { %14687 = vmatprep.mubr.msk.f32.mxu0 %vm759_vm2, %v3490_v21  ;;  %16104 = vmatpush3.bf16.msra.mxu0 %v16101_v61  ;;  %v12543_v61 = vld [vmem:[%s17982_s8 + $0x80] sm:$0xff] }
 0x2c6   : > { %16106 = vmatprep.subr.bf16.mxu0 %v16105_v22  ;;  %v19093_v1 = vpack.c.bf16 %v12544_v0, %v12543_v61 }
 0x2c8   : > { %14688 = vmatmul.mubr.msk.f32.gmra.mrb[4].mxu0 %vm759_vm2, %v3491_v7 }
 0x2c9   : > { %14690 = vmatprep.mubr.msk.f32.mxu0 %vm759_vm2, %v3492_v23  ;;  %16108 = vmatpush3.bf16.msra.mxu0 %v16105_v22 }
 0x2ca   : > { %16110 = vmatprep.subr.bf16.mxu0 %v16109_v29 }
 0x2cc   : > { %14691 = vmatmul.mubr.msk.f32.gmra.mrb[6].mxu0 %vm759_vm2, %v3493_v30 }
 0x2cd   : > { %14693 = vmatprep.mubr.msk.f32.mxu0 %vm759_vm2, %v3494_v31  ;;  %16112 = vmatpush3.bf16.msra.mxu0 %v16109_v29 }
 0x2d0   : > { %14694 = vmatmul.mubr.msk.f32.gmra.mrb[8].mxu0 %vm759_vm2, %v3495_v3 }
 0x2d1   : > { %14696 = vmatprep.mubr.msk.f32.mxu0 %vm759_vm2, %v3496_v9 }
 0x2d4   : > { %14697 = vmatmul.mubr.msk.f32.gmra.mrb[10].mxu0 %vm759_vm2, %v3497_v12 }
 0x2d5   : > { %14699 = vmatprep.mubr.msk.f32.mxu0 %vm759_vm2, %v3498_v44 }
 0x2d8   : > { %14700 = vmatmul.mubr.msk.f32.gmra.mrb[12].mxu0 %vm759_vm2, %v3499_v58 }
 0x2d9   : > { %14702 = vmatprep.mubr.msk.f32.mxu0 %vm759_vm2, %v3500_v62 }
 0x2dc   : > { %14703 = vmatmul.mubr.msk.f32.gmra.mrb[14].mxu0 %vm759_vm2, %v3501_v19 }
 0x2dd   : > { %14705 = vmatprep.mubr.msk.f32.mxu0 %vm759_vm2, %v3502_v18 }
 0x2e0   : > { %14706 = vmatmul.mubr.msk.f32.gmra.mrb[16].mxu0 %vm759_vm2, %v3503_v20 }
 0x2e1   : > { %14708 = vmatprep.mubr.msk.f32.mxu0 %vm759_vm2, %v3504_v15 }
 0x2e4   : > { %14709 = vmatmul.mubr.msk.f32.gmra.mrb[18].mxu0 %vm759_vm2, %v3505_v4 }
 0x2e5   : > { %14711 = vmatprep.mubr.msk.f32.mxu0 %vm759_vm2, %v3506_v25 }
 0x2e8   : > { %14712 = vmatmul.mubr.msk.f32.gmra.mrb[20].mxu0 %vm759_vm2, %v3507_v26 }
 0x2e9   : > { %14714 = vmatprep.mubr.msk.f32.mxu0 %vm759_vm2, %v3508_v53 }
 0x2ec   : > { %14715 = vmatmul.mubr.msk.f32.gmra.mrb[22].mxu0 %vm759_vm2, %v3509_v51 }
 0x2ed   : > { %14717 = vmatprep.mubr.msk.f32.mxu0 %vm759_vm2, %v3510_v47 }
 0x2f0   : > { %14718 = vmatmul.mubr.msk.f32.gmra.mrb[24].mxu0 %vm759_vm2, %v3511_v52 }
 0x2f1   : > { %14720 = vmatprep.mubr.msk.f32.mxu0 %vm759_vm2, %v3512_v54 }
 0x2f4   : > { %14721 = vmatmul.mubr.msk.f32.gmra.mrb[26].mxu0 %vm759_vm2, %v3513_v45 }
 0x2f5   : > { %14723 = vmatprep.mubr.msk.f32.mxu0 %vm759_vm2, %v18815_v38  ;;  %v21730_v38 = vld [vmem:[#allocation92_spill] sm:$0xff] }
 0x2f8   : > { %14724 = vmatmul.mubr.msk.f32.gmra.mrb[28].mxu0 %vm759_vm2, %v18821_v40  ;;  %v21731_v40 = vld [vmem:[#allocation93_spill] sm:$0xff] }
 0x2f9   : > { %14726 = vmatprep.mubr.msk.f32.mxu0 %vm759_vm2, %v3516_v49 }
 0x2fc   : > { %14727 = vmatmul.mubr.msk.f32.gmra.mrb[30].mxu0 %vm759_vm2, %v3517_v55 }
 0x2fd   : > { %14745 = vmatprep.mubr.msk.f32.mxu0 %vm759_vm2, %v21702_v63  ;;  %v21732_v63 = vld [vmem:[#allocation94_spill] sm:$0xff] }
 0x300   : > { %14746 = vmatmul.mubr.msk.f32.vlgmr.msra.gmra.mrb[0].mxu0 %vm759_vm2, %v18563_v43  ;;  %v21728_v43 = vld [vmem:[#allocation90_spill] sm:$0xff] }
 0x301   : > { %14748 = vmatprep.mubr.msk.f32.mxu0 %vm759_vm2, %v18565_v48  ;;  %v21729_v48 = vld [vmem:[#allocation91_spill] sm:$0xff] }
 0x304   : > { %14749 = vmatmul.mubr.msk.f32.gmra.mrb[2].mxu0 %vm759_vm2, %v21703_v11  ;;  %v21733_v11 = vld [vmem:[#allocation95_spill] sm:$0xff] }
 0x305   : > { %14751 = vmatprep.mubr.msk.f32.mxu0 %vm759_vm2, %v21704_v5  ;;  %v21734_v5 = vld [vmem:[#allocation58_spill] sm:$0xff] }
 0x308   : > { %14752 = vmatmul.mubr.msk.f32.gmra.mrb[4].mxu0 %vm759_vm2, %v21705_v10  ;;  %v3910_v10 = vld [vmem:[#allocation3 + $0x19a] sm:$0xff] }
 0x309   : > { %14754 = vmatprep.mubr.msk.f32.mxu0 %vm759_vm2, %v21706_v13  ;;  %v3911_v13 = vld [vmem:[#allocation3 + $0x1a2] sm:$0xff] }
 0x30c   : > { %14755 = vmatmul.mubr.msk.f32.gmra.mrb[6].mxu0 %vm759_vm2, %v21707_v6  ;;  %v12475_v6 = vld [vmem:[%s17982_s8 + $0x60] sm:$0xff] }
 0x30d   : > { %14757 = vmatprep.mubr.msk.f32.mxu0 %vm759_vm2, %v21708_v16  ;;  %v12476_v16 = vld [vmem:[%s17982_s8 + $0x68] sm:$0xff] }
 0x310   : > { %14758 = vmatmul.mubr.msk.f32.gmra.mrb[8].mxu0 %vm759_vm2, %v21709_v17  ;;  %v16121_v17 = vpack.c.bf16 %v12476_v16, %v12475_v6 }
 0x311   : > { %14760 = vmatprep.mubr.msk.f32.mxu0 %vm759_vm2, %v21710_v27  ;;  %v12477_v27 = vld [vmem:[%s17982_s8 + $0x70] sm:$0xff] }
 0x312   : > { %16122 = vmatprep.subr.bf16.mxu1 %v16121_v17 }
 0x313   : > { %16124 = vmatpush3.bf16.msra.mxu1 %v16121_v17 }
 0x314   : > { %14761 = vmatmul.mubr.msk.f32.gmra.mrb[10].mxu0 %vm759_vm2, %v21711_v28  ;;  %v12478_v28 = vld [vmem:[%s17982_s8 + $0x78] sm:$0xff] }
 0x315   : > { %14763 = vmatprep.mubr.msk.f32.mxu0 %vm759_vm2, %v21712_v32  ;;  %v16125_v32 = vpack.c.bf16 %v12478_v28, %v12477_v27 }
 0x317   : > { %16126 = vmatprep.subr.bf16.mxu1 %v16125_v32 }
 0x318   : > { %14764 = vmatmul.mubr.msk.f32.gmra.mrb[12].mxu0 %vm759_vm2, %v21713_v33  ;;  %16128 = vmatpush3.bf16.msra.mxu1 %v16125_v32  ;;  %v4417_v33 = vld [vmem:[#allocation3 + $0x1] sm:$0xff] }
 0x319   : > { %14766 = vmatprep.mubr.msk.f32.mxu0 %vm759_vm2, %v21714_v35  ;;  %14809 = vmatprep.mubr.msk.f32.mxu1 %vm759_vm2, %v4417_v33  ;;  %v4418_v35 = vld [vmem:[#allocation3 + $0x9] sm:$0xff] }
 0x31b   : > { %14810 = vmatmul.mubr.msk.f32.vlgmr.msra.gmra.mrb[0].mxu1 %vm759_vm2, %v4418_v35 }
 0x31c   : > { %14767 = vmatmul.mubr.msk.f32.gmra.mrb[14].mxu0 %vm759_vm2, %v21715_v36  ;;  %v4409_v36 = vld [vmem:[%s17982_s8] sm:$0xff] }
 0x31d   : > { %14769 = vmatprep.mubr.msk.f32.mxu0 %vm759_vm2, %v21716_v37  ;;  %v4410_v37 = vld [vmem:[%s17982_s8 + $0x8] sm:$0xff] }
 0x320   : > { %14770 = vmatmul.mubr.msk.f32.gmra.mrb[16].mxu0 %vm759_vm2, %v21717_v39  ;;  %v16129_v39 = vpack.c.bf16 %v4410_v37, %v4409_v36 }
 0x321   : > { %14772 = vmatprep.mubr.msk.f32.mxu0 %vm759_vm2, %v21718_v41  ;;  %v4411_v41 = vld [vmem:[%s17982_s8 + $0x10] sm:$0xff] }
 0x322   : > { %16130 = vmatprep.subr.bf16.mxu1 %v16129_v39 }
 0x323   : > { %16132 = vmatpush3.bf16.msra.mxu1 %v16129_v39 }
 0x324   : > { %14773 = vmatmul.mubr.msk.f32.gmra.mrb[18].mxu0 %vm759_vm2, %v21719_v42  ;;  %v4412_v42 = vld [vmem:[%s17982_s8 + $0x18] sm:$0xff] }
 0x325   : > { %14775 = vmatprep.mubr.msk.f32.mxu0 %vm759_vm2, %v21720_v46  ;;  %v16133_v46 = vpack.c.bf16 %v4412_v42, %v4411_v41 }
 0x327   : > { %16134 = vmatprep.subr.bf16.mxu1 %v16133_v46 }
 0x328   : > { %14776 = vmatmul.mubr.msk.f32.gmra.mrb[20].mxu0 %vm759_vm2, %v21721_v50  ;;  %16136 = vmatpush3.bf16.msra.mxu1 %v16133_v46  ;;  %v4413_v50 = vld [vmem:[%s17982_s8 + $0x20] sm:$0xff] }
 0x329   : > { %14778 = vmatprep.mubr.msk.f32.mxu0 %vm759_vm2, %v21728_v43 }
 0x32c   : > { %14779 = vmatmul.mubr.msk.f32.gmra.mrb[22].mxu0 %vm759_vm2, %v21729_v48 }
 0x32d   : > { %14781 = vmatprep.mubr.msk.f32.mxu0 %vm759_vm2, %v21730_v38 }
 0x330   : > { %14782 = vmatmul.mubr.msk.f32.gmra.mrb[24].mxu0 %vm759_vm2, %v21731_v40 }
 0x331   : > { %14784 = vmatprep.mubr.msk.f32.mxu0 %vm759_vm2, %v21732_v63 }
 0x334   : > { %14785 = vmatmul.mubr.msk.f32.gmra.mrb[26].mxu0 %vm759_vm2, %v21733_v11 }
 0x335   : > { %14787 = vmatprep.mubr.msk.f32.mxu0 %vm759_vm2, %v21734_v5 }
 0x338   : > { %14788 = vmatmul.mubr.msk.f32.gmra.mrb[28].mxu0 %vm759_vm2, %v18897_v24  ;;  %v4414_v24 = vld [vmem:[%s17982_s8 + $0x28] sm:$0xff] }
 0x339   : > { %14790 = vmatprep.mubr.msk.f32.mxu0 %vm759_vm2, %v3910_v10  ;;  %v16137_v56 = vpack.c.bf16 %v4414_v24, %v4413_v50 }
 0x33b   : > { %16138 = vmatprep.subr.bf16.mxu1 %v16137_v56 }
 0x33c   : > { %14791 = vmatmul.mubr.msk.f32.gmra.mrb[30].mxu0 %vm759_vm2, %v3911_v13  ;;  %16140 = vmatpush3.bf16.msra.mxu1 %v16137_v56 }
 0x33d   : > { %16142 = vmatprep.subr.bf16.mxu1 %v16141_v60 }
 0x340   : > { %16144 = vmatpush3.bf16.msra.mxu1 %v16141_v60 }
 0x341   : > { %16146 = vmatprep.subr.bf16.mxu1 %v19093_v1 }
 0x3d3   : > { %v14747_v34 = vpop.f32.mrb[0].mxu0 }
 0x3d4   : > { %v4282_v21 = vadd.f32 %v14747_v34, %v19101_v2  ;;  %v4083_v22 = vpop.f32.mrb[1].mxu0 }
 0x3d5   : > { %v4281_v8 = vadd.f32 %v19101_v2, %v4083_v22 }
 0x3d6   : > { %v4314_v14 = vmax.f32 %v4282_v21, 0.0 }
 0x3d7   : > { %v4313_v7 = vmax.f32 %v4281_v8, 0.0  ;;  %v14750_v23 = vpop.f32.mrb[2].mxu0 }
 0x3d8   : > { %4346 = vst.msk [vmem:[#allocation3 + $0x21] sm:$0xff] %vm759_vm2, %v4314_v14  ;;  %v4284_v29 = vadd.f32 %v14750_v23, %v19101_v2  ;;  %v4093_v30 = vpop.f32.mrb[3].mxu0 }
 0x3d9   : > { %4345 = vst.msk [vmem:[#allocation3 + $0x19] sm:$0xff] %vm759_vm2, %v4313_v7  ;;  %v4283_v31 = vadd.f32 %v19101_v2, %v4093_v30 }
 0x3da   : > { %v4316_v3 = vmax.f32 %v4284_v29, 0.0 }
 0x3db   : > { %v4315_v9 = vmax.f32 %v4283_v31, 0.0  ;;  %v14753_v12 = vpop.f32.mrb[4].mxu0 }
 0x3dc   : > { %4348 = vst.msk [vmem:[#allocation3 + $0x39] sm:$0xff] %vm759_vm2, %v4316_v3  ;;  %v4286_v44 = vadd.f32 %v14753_v12, %v19101_v2  ;;  %v4103_v58 = vpop.f32.mrb[5].mxu0 }
 0x3dd   : > { %4347 = vst.msk [vmem:[#allocation3 + $0x31] sm:$0xff] %vm759_vm2, %v4315_v9  ;;  %v4285_v62 = vadd.f32 %v19101_v2, %v4103_v58 }
 0x3de   : > { %v4318_v19 = vmax.f32 %v4286_v44, 0.0 }
 0x3df   : > { %v4317_v18 = vmax.f32 %v4285_v62, 0.0  ;;  %v14756_v20 = vpop.f32.mrb[6].mxu0  ;;  %v19121_v53 = vld [vmem:[#allocation3 + $0x21] sm:$0xff] }
 0x3e0   : > { %4350 = vst.msk [vmem:[#allocation3 + $0x51] sm:$0xff] %vm759_vm2, %v4318_v19  ;;  %v4288_v15 = vadd.f32 %v14756_v20, %v19101_v2  ;;  %v4113_v4 = vpop.f32.mrb[7].mxu0  ;;  %v19115_v25 = vld [vmem:[#allocation3 + $0x19] sm:$0xff] }
 0x3e1   : > { %4349 = vst.msk [vmem:[#allocation3 + $0x49] sm:$0xff] %vm759_vm2, %v4317_v18  ;;  %v4287_v26 = vadd.f32 %v19101_v2, %v4113_v4  ;;  %14812 = vmatprep.mubr.msk.f32.mxu1 %vm759_vm2, %v19115_v25 }
 0x3e2   : > { %v4320_v51 = vmax.f32 %v4288_v15, 0.0  ;;  %14813 = vmatmul.mubr.msk.f32.gmra.mrb[2].mxu1 %vm759_vm2, %v19121_v53 }
 0x3e3   : > { %v4319_v47 = vmax.f32 %v4287_v26, 0.0  ;;  %v14759_v52 = vpop.f32.mrb[8].mxu0  ;;  %v19133_v43 = vld [vmem:[#allocation3 + $0x39] sm:$0xff] }
 0x3e4   : > { %4352 = vst.msk [vmem:[#allocation3 + $0x69] sm:$0xff] %vm759_vm2, %v4320_v51  ;;  %v4290_v54 = vadd.f32 %v14759_v52, %v19101_v2  ;;  %v4123_v45 = vpop.f32.mrb[9].mxu0  ;;  %v19127_v49 = vld [vmem:[#allocation3 + $0x31] sm:$0xff] }
 0x3e5   : > { %4351 = vst.msk [vmem:[#allocation3 + $0x61] sm:$0xff] %vm759_vm2, %v4319_v47  ;;  %v4289_v55 = vadd.f32 %v19101_v2, %v4123_v45  ;;  %14815 = vmatprep.mubr.msk.f32.mxu1 %vm759_vm2, %v19127_v49 }
 0x3e6   : > { %v4322_v48 = vmax.f32 %v4290_v54, 0.0  ;;  %14816 = vmatmul.mubr.msk.f32.gmra.mrb[4].mxu1 %vm759_vm2, %v19133_v43 }
 0x3e7   : > { %v4321_v38 = vmax.f32 %v4289_v55, 0.0  ;;  %v14762_v40 = vpop.f32.mrb[10].mxu0  ;;  %v19145_v13 = vld [vmem:[#allocation3 + $0x51] sm:$0xff] }
 0x3e8   : > { %4354 = vst.msk [vmem:[#allocation3 + $0x81] sm:$0xff] %vm759_vm2, %v4322_v48  ;;  %v4292_v63 = vadd.f32 %v14762_v40, %v19101_v2  ;;  %v4133_v11 = vpop.f32.mrb[11].mxu0  ;;  %v19139_v5 = vld [vmem:[#allocation3 + $0x49] sm:$0xff] }
 0x3e9   : > { %4353 = vst.msk [vmem:[#allocation3 + $0x79] sm:$0xff] %vm759_vm2, %v4321_v38  ;;  %v4291_v10 = vadd.f32 %v19101_v2, %v4133_v11  ;;  %14818 = vmatprep.mubr.msk.f32.mxu1 %vm759_vm2, %v19139_v5 }
 0x3ea   : > { %v4324_v6 = vmax.f32 %v4292_v63, 0.0  ;;  %14819 = vmatmul.mubr.msk.f32.gmra.mrb[6].mxu1 %vm759_vm2, %v19145_v13 }
 0x3eb   : > { %v4323_v16 = vmax.f32 %v4291_v10, 0.0  ;;  %v14765_v17 = vpop.f32.mrb[12].mxu0  ;;  %v19157_v35 = vld [vmem:[#allocation3 + $0x69] sm:$0xff] }
 0x3ec   : > { %4356 = vst.msk [vmem:[#allocation3 + $0x99] sm:$0xff] %vm759_vm2, %v4324_v6  ;;  %v4294_v27 = vadd.f32 %v14765_v17, %v19101_v2  ;;  %v4143_v28 = vpop.f32.mrb[13].mxu0  ;;  %v19151_v32 = vld [vmem:[#allocation3 + $0x61] sm:$0xff] }
 0x3ed   : > { %4355 = vst.msk [vmem:[#allocation3 + $0x91] sm:$0xff] %vm759_vm2, %v4323_v16  ;;  %v4293_v33 = vadd.f32 %v19101_v2, %v4143_v28  ;;  %14821 = vmatprep.mubr.msk.f32.mxu1 %vm759_vm2, %v19151_v32 }
 0x3ee   : > { %v4326_v36 = vmax.f32 %v4294_v27, 0.0  ;;  %14822 = vmatmul.mubr.msk.f32.gmra.mrb[8].mxu1 %vm759_vm2, %v19157_v35 }
 0x3ef   : > { %v4325_v37 = vmax.f32 %v4293_v33, 0.0  ;;  %v14768_v39 = vpop.f32.mrb[14].mxu0  ;;  %v19169_v24 = vld [vmem:[#allocation3 + $0x81] sm:$0xff] }
 0x3f0   : > { %4358 = vst.msk [vmem:[#allocation3 + $0xb1] sm:$0xff] %vm759_vm2, %v4326_v36  ;;  %v4296_v41 = vadd.f32 %v14768_v39, %v19101_v2  ;;  %v4153_v42 = vpop.f32.mrb[15].mxu0  ;;  %v19163_v46 = vld [vmem:[#allocation3 + $0x79] sm:$0xff] }
 0x3f1   : > { %4357 = vst.msk [vmem:[#allocation3 + $0xa9] sm:$0xff] %vm759_vm2, %v4325_v37  ;;  %v4295_v50 = vadd.f32 %v19101_v2, %v4153_v42  ;;  %14824 = vmatprep.mubr.msk.f32.mxu1 %vm759_vm2, %v19163_v46 }
 0x3f2   : > { %v4328_v56 = vmax.f32 %v4296_v41, 0.0  ;;  %14825 = vmatmul.mubr.msk.f32.gmra.mrb[10].mxu1 %vm759_vm2, %v19169_v24 }
 0x3f3   : > { %v4327_v57 = vmax.f32 %v4295_v50, 0.0  ;;  %v14771_v59 = vpop.f32.mrb[16].mxu0  ;;  %v19181_v21 = vld [vmem:[#allocation3 + $0x99] sm:$0xff] }
 0x3f4   : > { %4360 = vst.msk [vmem:[#allocation3 + $0xc9] sm:$0xff] %vm759_vm2, %v4328_v56  ;;  %v4298_v60 = vadd.f32 %v14771_v59, %v19101_v2  ;;  %v4163_v61 = vpop.f32.mrb[17].mxu0  ;;  %v19175_v0 = vld [vmem:[#allocation3 + $0x91] sm:$0xff] }
 0x3f5   : > { %4359 = vst.msk [vmem:[#allocation3 + $0xc1] sm:$0xff] %vm759_vm2, %v4327_v57  ;;  %v4297_v34 = vadd.f32 %v19101_v2, %v4163_v61  ;;  %14827 = vmatprep.mubr.msk.f32.mxu1 %vm759_vm2, %v19175_v0 }
 0x3f6   : > { %v4330_v22 = vmax.f32 %v4298_v60, 0.0  ;;  %14828 = vmatmul.mubr.msk.f32.gmra.mrb[12].mxu1 %vm759_vm2, %v19181_v21 }
 0x3f7   : > { %v4329_v8 = vmax.f32 %v4297_v34, 0.0  ;;  %v14774_v14 = vpop.f32.mrb[18].mxu0  ;;  %v19193_v31 = vld [vmem:[#allocation3 + $0xb1] sm:$0xff] }
 0x3f8   : > { %4362 = vst.msk [vmem:[#allocation3 + $0xe1] sm:$0xff] %vm759_vm2, %v4330_v22  ;;  %v4300_v7 = vadd.f32 %v14774_v14, %v19101_v2  ;;  %v4173_v23 = vpop.f32.mrb[19].mxu0  ;;  %v19187_v29 = vld [vmem:[#allocation3 + $0xa9] sm:$0xff] }
 0x3f9   : > { %4361 = vst.msk [vmem:[#allocation3 + $0xd9] sm:$0xff] %vm759_vm2, %v4329_v8  ;;  %v4299_v30 = vadd.f32 %v19101_v2, %v4173_v23  ;;  %14830 = vmatprep.mubr.msk.f32.mxu1 %vm759_vm2, %v19187_v29 }
 0x3fa   : > { %v4332_v3 = vmax.f32 %v4300_v7, 0.0  ;;  %14831 = vmatmul.mubr.msk.f32.gmra.mrb[14].mxu1 %vm759_vm2, %v19193_v31 }
 0x3fb   : > { %v4331_v9 = vmax.f32 %v4299_v30, 0.0  ;;  %v14777_v12 = vpop.f32.mrb[20].mxu0  ;;  %v19205_v18 = vld [vmem:[#allocation3 + $0xc9] sm:$0xff] }
 0x3fc   : > { %4364 = vst.msk [vmem:[#allocation3 + $0xf9] sm:$0xff] %vm759_vm2, %v4332_v3  ;;  %v4302_v44 = vadd.f32 %v14777_v12, %v19101_v2  ;;  %v4183_v58 = vpop.f32.mrb[21].mxu0  ;;  %v19199_v62 = vld [vmem:[#allocation3 + $0xc1] sm:$0xff] }
 0x3fd   : > { %4363 = vst.msk [vmem:[#allocation3 + $0xf1] sm:$0xff] %vm759_vm2, %v4331_v9  ;;  %v4301_v19 = vadd.f32 %v19101_v2, %v4183_v58  ;;  %14833 = vmatprep.mubr.msk.f32.mxu1 %vm759_vm2, %v19199_v62  ;;  %v4377_v58 = vld [vmem:[#allocation3] sm:$0xff] }
 0x3fe   : > { %v4334_v20 = vmax.f32 %v4302_v44, 0.0  ;;  %14834 = vmatmul.mubr.msk.f32.gmra.mrb[16].mxu1 %vm759_vm2, %v19205_v18 }
 0x3ff   : > { %v4333_v15 = vmax.f32 %v4301_v19, 0.0  ;;  %v14780_v4 = vpop.f32.mrb[22].mxu0  ;;  %v19217_v54 = vld [vmem:[#allocation3 + $0xe1] sm:$0xff] }
 0x400   : > { %4366 = vst.msk [vmem:[#allocation3 + $0x111] sm:$0xff] %vm759_vm2, %v4334_v20  ;;  %v4304_v26 = vadd.f32 %v14780_v4, %v19101_v2  ;;  %v4193_v51 = vpop.f32.mrb[23].mxu0  ;;  %v19211_v47 = vld [vmem:[#allocation3 + $0xd9] sm:$0xff]  ;;  %v4378_v4 = vld [vmem:[#allocation3 + $0x8] sm:$0xff] }
 0x401   : > { %4365 = vst.msk [vmem:[#allocation3 + $0x109] sm:$0xff] %vm759_vm2, %v4333_v15  ;;  %v4303_v52 = vadd.f32 %v19101_v2, %v4193_v51  ;;  %14836 = vmatprep.mubr.msk.f32.mxu1 %vm759_vm2, %v19211_v47  ;;  %v12545_v20 = vld [vmem:[%s17982_s8 + $0x90] sm:$0xff]  ;;  %v12546_v15 = vld [vmem:[%s17982_s8 + $0x98] sm:$0xff]  ;;  %v12547_v51 = vld [vmem:[%s17982_s8 + $0xa0] sm:$0xff] }
 0x402   : > { %v4336_v45 = vmax.f32 %v4304_v26, 0.0  ;;  %14837 = vmatmul.mubr.msk.f32.gmra.mrb[18].mxu1 %vm759_vm2, %v19217_v54  ;;  %v16149_v26 = vpack.c.bf16 %v12546_v15, %v12545_v20 }
 0x403   : > { %v4335_v55 = vmax.f32 %v4303_v52, 0.0  ;;  %v14783_v48 = vpop.f32.mrb[24].mxu0  ;;  %v19229_v10 = vld [vmem:[#allocation3 + $0xf9] sm:$0xff] }
 0x404   : > { %4368 = vst.msk [vmem:[#allocation3 + $0x129] sm:$0xff] %vm759_vm2, %v4336_v45  ;;  %v4306_v38 = vadd.f32 %v14783_v48, %v19101_v2  ;;  %v4203_v40 = vpop.f32.mrb[25].mxu0  ;;  %v19223_v63 = vld [vmem:[#allocation3 + $0xf1] sm:$0xff]  ;;  %v19298_v48 = vld [vmem:[#allocation3 + $0x20] sm:$0xff] }
 0x405   : > { %4367 = vst.msk [vmem:[#allocation3 + $0x121] sm:$0xff] %vm759_vm2, %v4335_v55  ;;  %v4305_v11 = vadd.f32 %v19101_v2, %v4203_v40  ;;  %14839 = vmatprep.mubr.msk.f32.mxu1 %vm759_vm2, %v19223_v63  ;;  %v12548_v52 = vld [vmem:[%s17982_s8 + $0xa8] sm:$0xff]  ;;  %v12550_v40 = vld [vmem:[%s17982_s8 + $0xb8] sm:$0xff] }
 0x406   : > { %v4338_v6 = vmax.f32 %v4306_v38, 0.0  ;;  %14840 = vmatmul.mubr.msk.f32.gmra.mrb[20].mxu1 %vm759_vm2, %v19229_v10  ;;  %v19293_v45 = vld [vmem:[#allocation3 + $0x18] sm:$0xff]  ;;  %v16153_v55 = vpack.c.bf16 %v12548_v52, %v12547_v51  ;;  %v12549_v38 = vld [vmem:[%s17982_s8 + $0xb0] sm:$0xff] }
 0x407   : > { %v4337_v16 = vmax.f32 %v4305_v11, 0.0  ;;  %v14786_v17 = vpop.f32.mrb[26].mxu0  ;;  %v19241_v37 = vld [vmem:[#allocation3 + $0x111] sm:$0xff] }
 0x408   : > { %4370 = vst.msk [vmem:[#allocation3 + $0x141] sm:$0xff] %vm759_vm2, %v4338_v6  ;;  %v4308_v27 = vadd.f32 %v14786_v17, %v19101_v2  ;;  %v4213_v28 = vpop.f32.mrb[27].mxu0  ;;  %v19235_v33 = vld [vmem:[#allocation3 + $0x109] sm:$0xff]  ;;  %v16157_v6 = vpack.c.bf16 %v12550_v40, %v12549_v38  ;;  %v12584_v17 = vld [vmem:[%s17982_s8 + $0xc8] sm:$0xff] }
 0x409   : > { %4369 = vst.msk [vmem:[#allocation3 + $0x139] sm:$0xff] %vm759_vm2, %v4337_v16  ;;  %v4307_v36 = vadd.f32 %v19101_v2, %v4213_v28  ;;  %14842 = vmatprep.mubr.msk.f32.mxu1 %vm759_vm2, %v19235_v33  ;;  %v19304_v11 = vld [vmem:[#allocation3 + $0x30] sm:$0xff]  ;;  %v19308_v16 = vld [vmem:[#allocation3 + $0x38] sm:$0xff]  ;;  %v5100_v40 = vld [vmem:[#allocation3 + $0x2] sm:$0xff] }
 0x40a   : > { %v4340_v39 = vmax.f32 %v4308_v27, 0.0  ;;  %14843 = vmatmul.mubr.msk.f32.gmra.mrb[22].mxu1 %vm759_vm2, %v19241_v37  ;;  %v19314_v27 = vld [vmem:[#allocation3 + $0x48] sm:$0xff]  ;;  %v19385_v20 = vld [vmem:[#allocation3 + $0x110] sm:$0xff] }
 0x40b   : > { %v4339_v41 = vmax.f32 %v4307_v36, 0.0  ;;  %v14789_v42 = vpop.f32.mrb[28].mxu0  ;;  %v19253_v60 = vld [vmem:[#allocation3 + $0x129] sm:$0xff] }
 0x40c   : > { %4372 = vst.msk [vmem:[#allocation3 + $0x159] sm:$0xff] %vm759_vm2, %v4340_v39  ;;  %v4310_v50 = vadd.f32 %v14789_v42, %v19101_v2  ;;  %v4223_v56 = vpop.f32.mrb[29].mxu0  ;;  %v19247_v57 = vld [vmem:[#allocation3 + $0x121] sm:$0xff]  ;;  %21738 = vst [vmem:[#allocation60_spill] sm:$0xff] %v19253_v60  ;;  %v19320_v36 = vld [vmem:[#allocation3 + $0x50] sm:$0xff] }
 0x40d   : > { %21737 = vst [vmem:[#allocation59_spill] sm:$0xff] %v19247_v57  ;;  %4371 = vst.msk [vmem:[#allocation3 + $0x151] sm:$0xff] %vm759_vm2, %v4339_v41  ;;  %v4309_v59 = vadd.f32 %v19101_v2, %v4223_v56  ;;  %14845 = vmatprep.mubr.msk.f32.mxu1 %vm759_vm2, %v19247_v57  ;;  %v19324_v39 = vld [vmem:[#allocation3 + $0x60] sm:$0xff]  ;;  %v19329_v41 = vld [vmem:[#allocation3 + $0x68] sm:$0xff] }
 0x40e   : > { %v4342_v61 = vmax.f32 %v4310_v50, 0.0  ;;  %14846 = vmatmul.mubr.msk.f32.gmra.mrb[24].mxu1 %vm759_vm2, %v19253_v60  ;;  %v19333_v42 = vld [vmem:[#allocation3 + $0x78] sm:$0xff]  ;;  %v19337_v50 = vld [vmem:[#allocation3 + $0x80] sm:$0xff]  ;;  %v19341_v56 = vld [vmem:[#allocation3 + $0x90] sm:$0xff] }
 0x40f   : > { %v4341_v34 = vmax.f32 %v4309_v59, 0.0  ;;  %v14792_v22 = vpop.f32.mrb[30].mxu0  ;;  %v19265_v30 = vld [vmem:[#allocation3 + $0x141] sm:$0xff]  ;;  %v19345_v59 = vld [vmem:[#allocation3 + $0x98] sm:$0xff] }
 0x410   : > { %4374 = vst.msk [vmem:[#allocation3 + $0x171] sm:$0xff] %vm759_vm2, %v4342_v61  ;;  %v4312_v8 = vadd.f32 %v14792_v22, %v19101_v2  ;;  %v4233_v14 = vpop.f32.mrb[31].mxu0  ;;  %v19259_v7 = vld [vmem:[#allocation3 + $0x139] sm:$0xff]  ;;  %21740 = vst [vmem:[#allocation62_spill] sm:$0xff] %v19265_v30  ;;  %v19349_v61 = vld [vmem:[#allocation3 + $0xa8] sm:$0xff] }
 0x411   : > { %21739 = vst [vmem:[#allocation61_spill] sm:$0xff] %v19259_v7  ;;  %4373 = vst.msk [vmem:[#allocation3 + $0x169] sm:$0xff] %vm759_vm2, %v4341_v34  ;;  %v4311_v23 = vadd.f32 %v19101_v2, %v4233_v14  ;;  %14848 = vmatprep.mubr.msk.f32.mxu1 %vm759_vm2, %v19259_v7  ;;  %v19353_v34 = vld [vmem:[#allocation3 + $0xb0] sm:$0xff]  ;;  %v19357_v22 = vld [vmem:[#allocation3 + $0xc0] sm:$0xff] }
 0x412   : > { %v4344_v3 = vmax.f32 %v4312_v8, 0.0  ;;  %14849 = vmatmul.mubr.msk.f32.gmra.mrb[26].mxu1 %vm759_vm2, %v19265_v30  ;;  %v19361_v8 = vld [vmem:[#allocation3 + $0xc8] sm:$0xff]  ;;  %v19365_v14 = vld [vmem:[#allocation3 + $0xd8] sm:$0xff]  ;;  %v19389_v15 = vld [vmem:[#allocation3 + $0x120] sm:$0xff] }
 0x413   : > { %v4343_v9 = vmax.f32 %v4311_v23, 0.0  ;;  %v19275_v2 = vld [vmem:[#allocation3 + $0x159] sm:$0xff]  ;;  %v19432_v60 = vld [vmem:[#allocation3 + $0x22] sm:$0xff] }
 0x414   : > { %4376 = vst.msk [vmem:[#allocation3 + $0x189] sm:$0xff] %vm759_vm2, %v4344_v3  ;;  %v19270_v12 = vld [vmem:[#allocation3 + $0x151] sm:$0xff]  ;;  %21742 = vst [vmem:[#allocation64_spill] sm:$0xff] %v19275_v2  ;;  %v19369_v23 = vld [vmem:[#allocation3 + $0xe0] sm:$0xff] }
 0x415   : > { %21741 = vst [vmem:[#allocation63_spill] sm:$0xff] %v19270_v12  ;;  %4375 = vst.msk [vmem:[#allocation3 + $0x181] sm:$0xff] %vm759_vm2, %v4343_v9  ;;  %14851 = vmatprep.mubr.msk.f32.mxu1 %vm759_vm2, %v19270_v12  ;;  %v19373_v3 = vld [vmem:[#allocation3 + $0xf0] sm:$0xff]  ;;  %v19377_v9 = vld [vmem:[#allocation3 + $0xf8] sm:$0xff] }
 0x416   : > { %14852 = vmatmul.mubr.msk.f32.gmra.mrb[28].mxu1 %vm759_vm2, %v19275_v2  ;;  %v19401_v51 = vld [vmem:[#allocation3 + $0x140] sm:$0xff]  ;;  %v19405_v52 = vld [vmem:[#allocation3 + $0x150] sm:$0xff]  ;;  %v12588_v12 = vld [vmem:[%s17982_s8 + $0xe8] sm:$0xff]  ;;  %21746 = vst [vmem:[#allocation70_spill] sm:$0xff] %v19432_v60 }
 0x417   : > { %v19283_v19 = vld [vmem:[#allocation3 + $0x171] sm:$0xff]  ;;  %v19427_v30 = vld [vmem:[#allocation3 + $0x1a] sm:$0xff]  ;;  %v12590_v57 = vld [vmem:[%s17982_s8 + $0xf8] sm:$0xff] }
 0x418   : > { %v19279_v44 = vld [vmem:[#allocation3 + $0x169] sm:$0xff]  ;;  %21744 = vst [vmem:[#allocation66_spill] sm:$0xff] %v19283_v19  ;;  %21745 = vst [vmem:[#allocation69_spill] sm:$0xff] %v19427_v30 }
 0x419   : > { %21743 = vst [vmem:[#allocation65_spill] sm:$0xff] %v19279_v44  ;;  %14854 = vmatprep.mubr.msk.f32.mxu1 %vm759_vm2, %v19279_v44  ;;  %v19413_v38 = vld [vmem:[#allocation3 + $0x168] sm:$0xff]  ;;  %v12587_v2 = vld [vmem:[%s17982_s8 + $0xe0] sm:$0xff] }
 0x41a   : > { %14855 = vmatmul.mubr.msk.f32.gmra.mrb[30].mxu1 %vm759_vm2, %v19283_v19  ;;  %v5101_v19 = vld [vmem:[#allocation3 + $0xa] sm:$0xff]  ;;  %v16169_v7 = vpack.c.bf16 %v12588_v12, %v12587_v2 }
 0x41b   : > { %14873 = vmatprep.mubr.msk.f32.mxu1 %vm759_vm2, %v4377_v58  ;;  %v19381_v58 = vld [vmem:[#allocation3 + $0x108] sm:$0xff] }
 0x41c   : > { %v19448_v12 = vld [vmem:[#allocation3 + $0x4a] sm:$0xff] }
 0x41d   : > { %21747 = vst [vmem:[#allocation71_spill] sm:$0xff] %v19448_v12 }
 0x41e   : > { %14874 = vmatmul.mubr.msk.f32.vlgmr.msra.gmra.mrb[0].mxu1 %vm759_vm2, %v4378_v4  ;;  %v19393_v4 = vld [vmem:[#allocation3 + $0x128] sm:$0xff] }
 0x41f   : > { %14876 = vmatprep.mubr.msk.f32.mxu1 %vm759_vm2, %v19293_v45  ;;  %16148 = vmatpush3.bf16.msra.mxu1 %v19093_v1  ;;  %v12583_v1 = vld [vmem:[%s17982_s8 + $0xc0] sm:$0xff] }
 0x420   : > { %16150 = vmatprep.subr.bf16.mxu1 %v16149_v26  ;;  %v19318_v28 = vpack.c.bf16 %v12584_v17, %v12583_v1  ;;  %v12585_v1 = vld [vmem:[%s17982_s8 + $0xd0] sm:$0xff]  ;;  %v12586_v17 = vld [vmem:[%s17982_s8 + $0xd8] sm:$0xff] }
 0x421   : > { %v16165_v44 = vpack.c.bf16 %v12586_v17, %v12585_v1  ;;  %v19438_v1 = vld [vmem:[#allocation3 + $0x32] sm:$0xff]  ;;  %v19442_v17 = vld [vmem:[#allocation3 + $0x3a] sm:$0xff] }
 0x422   : > { %14877 = vmatmul.mubr.msk.f32.gmra.mrb[2].mxu1 %vm759_vm2, %v19298_v48 }
 0x423   : > { %14879 = vmatprep.mubr.msk.f32.mxu1 %vm759_vm2, %v19304_v11  ;;  %16152 = vmatpush3.bf16.msra.mxu1 %v16149_v26  ;;  %v19397_v26 = vld [vmem:[#allocation3 + $0x138] sm:$0xff] }
 0x424   : > { %16154 = vmatprep.subr.bf16.mxu1 %v16153_v55 }
 0x426   : > { %14880 = vmatmul.mubr.msk.f32.gmra.mrb[4].mxu1 %vm759_vm2, %v19308_v16 }
 0x427   : > { %14882 = vmatprep.mubr.msk.f32.mxu1 %vm759_vm2, %v19314_v27  ;;  %16156 = vmatpush3.bf16.msra.mxu1 %v16153_v55  ;;  %v19409_v55 = vld [vmem:[#allocation3 + $0x158] sm:$0xff] }
 0x428   : > { %16158 = vmatprep.subr.bf16.mxu1 %v16157_v6 }
 0x42a   : > { %14883 = vmatmul.mubr.msk.f32.gmra.mrb[6].mxu1 %vm759_vm2, %v19320_v36 }
 0x42b   : > { %14885 = vmatprep.mubr.msk.f32.mxu1 %vm759_vm2, %v19324_v39  ;;  %16160 = vmatpush3.bf16.msra.mxu1 %v16157_v6  ;;  %v19417_v6 = vld [vmem:[#allocation3 + $0x170] sm:$0xff] }
 0x42c   : > { %16162 = vmatprep.subr.bf16.mxu1 %v19318_v28 }
 0x42e   : > { %14886 = vmatmul.mubr.msk.f32.gmra.mrb[8].mxu1 %vm759_vm2, %v19329_v41 }
 0x42f   : > { %14888 = vmatprep.mubr.msk.f32.mxu1 %vm759_vm2, %v19333_v42 }
 0x432   : > { %14889 = vmatmul.mubr.msk.f32.gmra.mrb[10].mxu1 %vm759_vm2, %v19337_v50 }
 0x433   : > { %14891 = vmatprep.mubr.msk.f32.mxu1 %vm759_vm2, %v19341_v56 }
 0x436   : > { %14892 = vmatmul.mubr.msk.f32.gmra.mrb[12].mxu1 %vm759_vm2, %v19345_v59 }
 0x437   : > { %14894 = vmatprep.mubr.msk.f32.mxu1 %vm759_vm2, %v19349_v61 }
 0x43a   : > { %14895 = vmatmul.mubr.msk.f32.gmra.mrb[14].mxu1 %vm759_vm2, %v19353_v34 }
 0x43b   : > { %14897 = vmatprep.mubr.msk.f32.mxu1 %vm759_vm2, %v19357_v22 }
 0x43e   : > { %14898 = vmatmul.mubr.msk.f32.gmra.mrb[16].mxu1 %vm759_vm2, %v19361_v8 }
 0x43f   : > { %14900 = vmatprep.mubr.msk.f32.mxu1 %vm759_vm2, %v19365_v14 }
 0x442   : > { %14901 = vmatmul.mubr.msk.f32.gmra.mrb[18].mxu1 %vm759_vm2, %v19369_v23 }
 0x443   : > { %14903 = vmatprep.mubr.msk.f32.mxu1 %vm759_vm2, %v19373_v3 }
 0x446   : > { %14904 = vmatmul.mubr.msk.f32.gmra.mrb[20].mxu1 %vm759_vm2, %v19377_v9 }
 0x447   : > { %14906 = vmatprep.mubr.msk.f32.mxu1 %vm759_vm2, %v19381_v58 }
 0x44a   : > { %14907 = vmatmul.mubr.msk.f32.gmra.mrb[22].mxu1 %vm759_vm2, %v19385_v20 }
 0x44b   : > { %14909 = vmatprep.mubr.msk.f32.mxu1 %vm759_vm2, %v19389_v15 }
 0x44e   : > { %14910 = vmatmul.mubr.msk.f32.gmra.mrb[24].mxu1 %vm759_vm2, %v19393_v4 }
 0x44f   : > { %14912 = vmatprep.mubr.msk.f32.mxu1 %vm759_vm2, %v19397_v26 }
 0x452   : > { %14913 = vmatmul.mubr.msk.f32.gmra.mrb[26].mxu1 %vm759_vm2, %v19401_v51 }
 0x453   : > { %14915 = vmatprep.mubr.msk.f32.mxu1 %vm759_vm2, %v19405_v52 }
 0x456   : > { %14916 = vmatmul.mubr.msk.f32.gmra.mrb[28].mxu1 %vm759_vm2, %v19409_v55 }
 0x457   : > { %14918 = vmatprep.mubr.msk.f32.mxu1 %vm759_vm2, %v19413_v38 }
 0x45a   : > { %14919 = vmatmul.mubr.msk.f32.gmra.mrb[30].mxu1 %vm759_vm2, %v19417_v6 }
 0x45b   : > { %14937 = vmatprep.mubr.msk.f32.mxu1 %vm759_vm2, %v5100_v40  ;;  %v12589_v40 = vld [vmem:[%s17982_s8 + $0xf0] sm:$0xff] }
 0x45e   : > { %14938 = vmatmul.mubr.msk.f32.vlgmr.msra.gmra.mrb[0].mxu1 %vm759_vm2, %v5101_v19  ;;  %v16173_v19 = vpack.c.bf16 %v12590_v57, %v12589_v40  ;;  %v19456_v57 = vld [vmem:[#allocation3 + $0x62] sm:$0xff]  ;;  %v19472_v40 = vld [vmem:[#allocation3 + $0x92] sm:$0xff] }
 0x45f   : > { %14940 = vmatprep.mubr.msk.f32.mxu1 %vm759_vm2, %v19427_v30  ;;  %16164 = vmatpush3.bf16.msra.mxu1 %v19318_v28  ;;  %v12623_v28 = vld [vmem:[%s17982_s8 + $0x100] sm:$0xff]  ;;  %v12624_v30 = vld [vmem:[%s17982_s8 + $0x108] sm:$0xff]  ;;  %21749 = vst [vmem:[#allocation73_spill] sm:$0xff] %v19456_v57  ;;  %21753 = vst [vmem:[#allocation77_spill] sm:$0xff] %v19472_v40 }
 0x460   : > { %16166 = vmatprep.subr.bf16.mxu1 %v16165_v44  ;;  %v16177_v2 = vpack.c.bf16 %v12624_v30, %v12623_v28  ;;  %v19468_v30 = vld [vmem:[#allocation3 + $0x82] sm:$0xff]  ;;  %v19480_v28 = vld [vmem:[#allocation3 + $0xaa] sm:$0xff] }
 0x461   : > { %21752 = vst [vmem:[#allocation76_spill] sm:$0xff] %v19468_v30  ;;  %21755 = vst [vmem:[#allocation79_spill] sm:$0xff] %v19480_v28 }
 0x462   : > { %14941 = vmatmul.mubr.msk.f32.gmra.mrb[2].mxu1 %vm759_vm2, %v19432_v60  ;;  %v19452_v60 = vld [vmem:[#allocation3 + $0x52] sm:$0xff] }
 0x463   : > { %14943 = vmatprep.mubr.msk.f32.mxu1 %vm759_vm2, %v19438_v1  ;;  %16168 = vmatpush3.bf16.msra.mxu1 %v16165_v44  ;;  %21748 = vst [vmem:[#allocation72_spill] sm:$0xff] %v19452_v60  ;;  %v19460_v44 = vld [vmem:[#allocation3 + $0x6a] sm:$0xff] }
 0x464   : > { %16170 = vmatprep.subr.bf16.mxu1 %v16169_v7  ;;  %21750 = vst [vmem:[#allocation74_spill] sm:$0xff] %v19460_v44 }
 0x466   : > { %14944 = vmatmul.mubr.msk.f32.gmra.mrb[4].mxu1 %vm759_vm2, %v19442_v17 }
 0x467   : > { %14946 = vmatprep.mubr.msk.f32.mxu1 %vm759_vm2, %v19448_v12  ;;  %16172 = vmatpush3.bf16.msra.mxu1 %v16169_v7  ;;  %v19464_v7 = vld [vmem:[#allocation3 + $0x7a] sm:$0xff]  ;;  %v12630_v12 = vld [vmem:[%s17982_s8 + $0x138] sm:$0xff] }
 0x468   : > { %16174 = vmatprep.subr.bf16.mxu1 %v16173_v19  ;;  %21751 = vst [vmem:[#allocation75_spill] sm:$0xff] %v19464_v7 }
 0x46a   : > { %14947 = vmatmul.mubr.msk.f32.gmra.mrb[6].mxu1 %vm759_vm2, %v19452_v60  ;;  %v12629_v60 = vld [vmem:[%s17982_s8 + $0x130] sm:$0xff] }
 0x46b   : > { %14949 = vmatprep.mubr.msk.f32.mxu1 %vm759_vm2, %v19456_v57  ;;  %16176 = vmatpush3.bf16.msra.mxu1 %v16173_v19  ;;  %v19476_v19 = vld [vmem:[#allocation3 + $0x9a] sm:$0xff] }
 0x46c   : > { %16178 = vmatprep.subr.bf16.mxu1 %v16177_v2  ;;  %21754 = vst [vmem:[#allocation78_spill] sm:$0xff] %v19476_v19  ;;  %v12628_v57 = vld [vmem:[%s17982_s8 + $0x128] sm:$0xff] }
 0x46e   : > { %14950 = vmatmul.mubr.msk.f32.gmra.mrb[8].mxu1 %vm759_vm2, %v19460_v44  ;;  %v12626_v44 = vld [vmem:[%s17982_s8 + $0x118] sm:$0xff] }
 0x46f   : > { %14952 = vmatprep.mubr.msk.f32.mxu1 %vm759_vm2, %v19464_v7  ;;  %v19484_v7 = vld [vmem:[#allocation3 + $0xb2] sm:$0xff] }
 0x470   : > { %21756 = vst [vmem:[#allocation80_spill] sm:$0xff] %v19484_v7 }
 0x472   : > { %14953 = vmatmul.mubr.msk.f32.gmra.mrb[10].mxu1 %vm759_vm2, %v19468_v30  ;;  %v19488_v30 = vld [vmem:[#allocation3 + $0xc2] sm:$0xff] }
 0x473   : > { %14955 = vmatprep.mubr.msk.f32.mxu1 %vm759_vm2, %v19472_v40  ;;  %21757 = vst [vmem:[#allocation81_spill] sm:$0xff] %v19488_v30  ;;  %v19492_v40 = vld [vmem:[#allocation3 + $0xca] sm:$0xff] }
 0x474   : > { %21758 = vst [vmem:[#allocation82_spill] sm:$0xff] %v19492_v40 }
 0x476   : > { %14956 = vmatmul.mubr.msk.f32.gmra.mrb[12].mxu1 %vm759_vm2, %v19476_v19  ;;  %v19496_v19 = vld [vmem:[#allocation3 + $0xda] sm:$0xff] }
 0x477   : > { %14958 = vmatprep.mubr.msk.f32.mxu1 %vm759_vm2, %v19480_v28  ;;  %21759 = vst [vmem:[#allocation83_spill] sm:$0xff] %v19496_v19  ;;  %v19500_v28 = vld [vmem:[#allocation3 + $0xe2] sm:$0xff] }
 0x478   : > { %21760 = vst [vmem:[#allocation84_spill] sm:$0xff] %v19500_v28 }
 0x47a   : > { %14959 = vmatmul.mubr.msk.f32.gmra.mrb[14].mxu1 %vm759_vm2, %v19484_v7  ;;  %v19504_v7 = vld [vmem:[#allocation3 + $0xf2] sm:$0xff] }
 0x47b   : > { %14961 = vmatprep.mubr.msk.f32.mxu1 %vm759_vm2, %v19488_v30  ;;  %21761 = vst [vmem:[#allocation85_spill] sm:$0xff] %v19504_v7  ;;  %v19508_v30 = vld [vmem:[#allocation3 + $0xfa] sm:$0xff] }
 0x47c   : > { %21762 = vst [vmem:[#allocation86_spill] sm:$0xff] %v19508_v30 }
 0x47e   : > { %14962 = vmatmul.mubr.msk.f32.gmra.mrb[16].mxu1 %vm759_vm2, %v19492_v40  ;;  %v19512_v40 = vld [vmem:[#allocation3 + $0x10a] sm:$0xff] }
 0x47f   : > { %14964 = vmatprep.mubr.msk.f32.mxu1 %vm759_vm2, %v19496_v19  ;;  %21763 = vst [vmem:[#allocation87_spill] sm:$0xff] %v19512_v40  ;;  %v19516_v19 = vld [vmem:[#allocation3 + $0x112] sm:$0xff] }
 0x480   : > { %21764 = vst [vmem:[#allocation88_spill] sm:$0xff] %v19516_v19 }
 0x482   : > { %14965 = vmatmul.mubr.msk.f32.gmra.mrb[18].mxu1 %vm759_vm2, %v19500_v28  ;;  %v19520_v28 = vld [vmem:[#allocation3 + $0x122] sm:$0xff] }
 0x483   : > { %14967 = vmatprep.mubr.msk.f32.mxu1 %vm759_vm2, %v19504_v7  ;;  %21765 = vst [vmem:[#allocation89_spill] sm:$0xff] %v19520_v28  ;;  %v19524_v7 = vld [vmem:[#allocation3 + $0x12a] sm:$0xff] }
 0x484   : > { %21766 = vst [vmem:[#allocation90_spill] sm:$0xff] %v19524_v7 }
 0x486   : > { %14968 = vmatmul.mubr.msk.f32.gmra.mrb[20].mxu1 %vm759_vm2, %v19508_v30  ;;  %v19528_v30 = vld [vmem:[#allocation3 + $0x13a] sm:$0xff] }
 0x487   : > { %14970 = vmatprep.mubr.msk.f32.mxu1 %vm759_vm2, %v19512_v40  ;;  %21767 = vst [vmem:[#allocation91_spill] sm:$0xff] %v19528_v30  ;;  %v19536_v40 = vld [vmem:[#allocation3 + $0x152] sm:$0xff] }
 0x488   : > { %21769 = vst [vmem:[#allocation93_spill] sm:$0xff] %v19536_v40 }
 0x48a   : > { %14971 = vmatmul.mubr.msk.f32.gmra.mrb[22].mxu1 %vm759_vm2, %v19516_v19  ;;  %v19532_v19 = vld [vmem:[#allocation3 + $0x142] sm:$0xff] }
 0x48b   : > { %14973 = vmatprep.mubr.msk.f32.mxu1 %vm759_vm2, %v19520_v28  ;;  %21768 = vst [vmem:[#allocation92_spill] sm:$0xff] %v19532_v19  ;;  %v19540_v28 = vld [vmem:[#allocation3 + $0x15a] sm:$0xff] }
 0x48c   : > { %21770 = vst [vmem:[#allocation94_spill] sm:$0xff] %v19540_v28 }
 0x48e   : > { %14974 = vmatmul.mubr.msk.f32.gmra.mrb[24].mxu1 %vm759_vm2, %v19524_v7  ;;  %v19544_v7 = vld [vmem:[#allocation3 + $0x16a] sm:$0xff] }
 0x48f   : > { %14976 = vmatprep.mubr.msk.f32.mxu1 %vm759_vm2, %v19528_v30  ;;  %21771 = vst [vmem:[#allocation95_spill] sm:$0xff] %v19544_v7  ;;  %v19548_v30 = vld [vmem:[#allocation3 + $0x172] sm:$0xff] }
 0x490   : > { %21772 = vst [vmem:[#allocation58_spill] sm:$0xff] %v19548_v30 }
 0x492   : > { %14977 = vmatmul.mubr.msk.f32.gmra.mrb[26].mxu1 %vm759_vm2, %v19532_v19  ;;  %v12625_v19 = vld [vmem:[%s17982_s8 + $0x110] sm:$0xff] }
 0x493   : > { %14979 = vmatprep.mubr.msk.f32.mxu1 %vm759_vm2, %v19536_v40  ;;  %v16181_v40 = vpack.c.bf16 %v12626_v44, %v12625_v19  ;;  %v12663_v44 = vld [vmem:[%s17982_s8 + $0x140] sm:$0xff]  ;;  %v12664_v19 = vld [vmem:[%s17982_s8 + $0x148] sm:$0xff] }
 0x496   : > { %14980 = vmatmul.mubr.msk.f32.gmra.mrb[28].mxu1 %vm759_vm2, %v19540_v28  ;;  %v12627_v28 = vld [vmem:[%s17982_s8 + $0x120] sm:$0xff] }
 0x497   : > { %14982 = vmatprep.mubr.msk.f32.mxu1 %vm759_vm2, %v19544_v7  ;;  %v16185_v7 = vpack.c.bf16 %v12628_v57, %v12627_v28  ;;  %v12666_v57 = vld [vmem:[%s17982_s8 + $0x158] sm:$0xff]  ;;  %v12668_v28 = vld [vmem:[%s17982_s8 + $0x168] sm:$0xff] }
 0x49a   : > { %14983 = vmatmul.mubr.msk.f32.gmra.mrb[30].mxu1 %vm759_vm2, %v19548_v30 }
 0x49b   : > { %15001 = vmatprep.mubr.msk.f32.mxu1 %vm759_vm2, %v19293_v45  ;;  %v16189_v45 = vpack.c.bf16 %v12630_v12, %v12629_v60  ;;  %v19620_v60 = vld [vmem:[#allocation3 + $0x180] sm:$0xff]  ;;  %v19624_v12 = vld [vmem:[#allocation3 + $0x188] sm:$0xff] }
 0x49e   : > { %15002 = vmatmul.mubr.msk.f32.vlgmr.msra.gmra.mrb[0].mxu1 %vm759_vm2, %v19298_v48  ;;  %v16193_v48 = vpack.c.bf16 %v12664_v19, %v12663_v44  ;;  %v12669_v44 = vld [vmem:[%s17982_s8 + $0x170] sm:$0xff]  ;;  %v12670_v19 = vld [vmem:[%s17982_s8 + $0x178] sm:$0xff] }
 0x49f   : > { %15004 = vmatprep.mubr.msk.f32.mxu1 %vm759_vm2, %v19304_v11  ;;  %16180 = vmatpush3.bf16.msra.mxu1 %v16177_v2  ;;  %v12665_v2 = vld [vmem:[%s17982_s8 + $0x150] sm:$0xff] }
 0x4a0   : > { %16182 = vmatprep.subr.bf16.mxu1 %v16181_v40 }
 0x4a2   : > { %15005 = vmatmul.mubr.msk.f32.gmra.mrb[2].mxu1 %vm759_vm2, %v19308_v16 }
 0x4a3   : > { %15007 = vmatprep.mubr.msk.f32.mxu1 %vm759_vm2, %v19314_v27  ;;  %16184 = vmatpush3.bf16.msra.mxu1 %v16181_v40  ;;  %v12667_v40 = vld [vmem:[%s17982_s8 + $0x160] sm:$0xff] }
 0x4a4   : > { %16186 = vmatprep.subr.bf16.mxu1 %v16185_v7 }
 0x4a6   : > { %15008 = vmatmul.mubr.msk.f32.gmra.mrb[4].mxu1 %vm759_vm2, %v19320_v36 }
 0x4a7   : > { %15010 = vmatprep.mubr.msk.f32.mxu1 %vm759_vm2, %v19324_v39  ;;  %16188 = vmatpush3.bf16.msra.mxu1 %v16185_v7  ;;  %v16197_v7 = vpack.c.bf16 %v12666_v57, %v12665_v2  ;;  %v12703_v2 = vld [vmem:[%s17982_s8 + $0x180] sm:$0xff]  ;;  %v12704_v57 = vld [vmem:[%s17982_s8 + $0x188] sm:$0xff] }
 0x4a8   : > { %16190 = vmatprep.subr.bf16.mxu1 %v16189_v45 }
 0x4aa   : > { %15011 = vmatmul.mubr.msk.f32.gmra.mrb[6].mxu1 %vm759_vm2, %v19329_v41 }
 0x4ab   : > { %15013 = vmatprep.mubr.msk.f32.mxu1 %vm759_vm2, %v19333_v42  ;;  %16192 = vmatpush3.bf16.msra.mxu1 %v16189_v45  ;;  %v16201_v45 = vpack.c.bf16 %v12668_v28, %v12667_v40  ;;  %v12743_v40 = vld [vmem:[%s17982_s8 + $0x1c0] sm:$0xff]  ;;  %v12744_v28 = vld [vmem:[%s17982_s8 + $0x1c8] sm:$0xff] }
 0x4ac   : > { %16194 = vmatprep.subr.bf16.mxu1 %v16193_v48 }
 0x4ae   : > { %15014 = vmatmul.mubr.msk.f32.gmra.mrb[8].mxu1 %vm759_vm2, %v19337_v50 }
 0x4af   : > { %15016 = vmatprep.mubr.msk.f32.mxu1 %vm759_vm2, %v19341_v56 }
 0x4b2   : > { %15017 = vmatmul.mubr.msk.f32.gmra.mrb[10].mxu1 %vm759_vm2, %v19345_v59 }
 0x4b3   : > { %15019 = vmatprep.mubr.msk.f32.mxu1 %vm759_vm2, %v19349_v61 }
 0x4b6   : > { %15020 = vmatmul.mubr.msk.f32.gmra.mrb[12].mxu1 %vm759_vm2, %v19353_v34 }
 0x4b7   : > { %15022 = vmatprep.mubr.msk.f32.mxu1 %vm759_vm2, %v19357_v22 }
 0x4ba   : > { %15023 = vmatmul.mubr.msk.f32.gmra.mrb[14].mxu1 %vm759_vm2, %v19361_v8 }
 0x4bb   : > { %15025 = vmatprep.mubr.msk.f32.mxu1 %vm759_vm2, %v19365_v14 }
 0x4be   : > { %15026 = vmatmul.mubr.msk.f32.gmra.mrb[16].mxu1 %vm759_vm2, %v19369_v23 }
 0x4bf   : > { %15028 = vmatprep.mubr.msk.f32.mxu1 %vm759_vm2, %v19373_v3 }
 0x4c2   : > { %15029 = vmatmul.mubr.msk.f32.gmra.mrb[18].mxu1 %vm759_vm2, %v19377_v9 }
 0x4c3   : > { %15031 = vmatprep.mubr.msk.f32.mxu1 %vm759_vm2, %v19381_v58 }
 0x4c6   : > { %15032 = vmatmul.mubr.msk.f32.gmra.mrb[20].mxu1 %vm759_vm2, %v19385_v20 }
 0x4c7   : > { %15034 = vmatprep.mubr.msk.f32.mxu1 %vm759_vm2, %v19389_v15 }
 0x4ca   : > { %15035 = vmatmul.mubr.msk.f32.gmra.mrb[22].mxu1 %vm759_vm2, %v19393_v4 }
 0x4cb   : > { %15037 = vmatprep.mubr.msk.f32.mxu1 %vm759_vm2, %v19397_v26 }
 0x4ce   : > { %15038 = vmatmul.mubr.msk.f32.gmra.mrb[24].mxu1 %vm759_vm2, %v19401_v51 }
 0x4cf   : > { %15040 = vmatprep.mubr.msk.f32.mxu1 %vm759_vm2, %v19405_v52 }
 0x4d2   : > { %15041 = vmatmul.mubr.msk.f32.gmra.mrb[26].mxu1 %vm759_vm2, %v19409_v55 }
 0x4d3   : > { %15043 = vmatprep.mubr.msk.f32.mxu1 %vm759_vm2, %v19413_v38 }
 0x4d6   : > { %15044 = vmatmul.mubr.msk.f32.gmra.mrb[28].mxu1 %vm759_vm2, %v19417_v6 }
 0x4d7   : > { %15046 = vmatprep.mubr.msk.f32.mxu1 %vm759_vm2, %v19620_v60 }
 0x4da   : > { %15047 = vmatmul.mubr.msk.f32.gmra.mrb[30].mxu1 %vm759_vm2, %v19624_v12 }
 0x4db   : > { %15065 = vmatprep.mubr.msk.f32.mxu1 %vm759_vm2, %v19115_v25  ;;  %v16205_v25 = vpack.c.bf16 %v12670_v19, %v12669_v44  ;;  %v21785_v44 = vld [vmem:[#allocation73_spill] sm:$0xff]  ;;  %v16225_v19 = vpack.c.bf16 %v12744_v28, %v12743_v40  ;;  %v19776_v40 = vld [vmem:[#allocation3 + $0x18a] sm:$0xff]  ;;  %v12745_v28 = vld [vmem:[%s17982_s8 + $0x1d0] sm:$0xff] }
 0x4de   : > { %15066 = vmatmul.mubr.msk.f32.vlgmr.msra.gmra.mrb[0].mxu1 %vm759_vm2, %v19121_v53  ;;  %v16209_v53 = vpack.c.bf16 %v12704_v57, %v12703_v2  ;;  %v21787_v2 = vld [vmem:[#allocation75_spill] sm:$0xff]  ;;  %v21788_v57 = vld [vmem:[#allocation76_spill] sm:$0xff] }
 0x4df   : > { %15068 = vmatprep.mubr.msk.f32.mxu1 %vm759_vm2, %v19127_v49  ;;  %16196 = vmatpush3.bf16.msra.mxu1 %v16193_v48  ;;  %v21773_v49 = vld [vmem:[#allocation59_spill] sm:$0xff] }
 0x4e0   : > { %16198 = vmatprep.subr.bf16.mxu1 %v16197_v7  ;;  %v21783_v48 = vld [vmem:[#allocation71_spill] sm:$0xff] }
 0x4e2   : > { %15069 = vmatmul.mubr.msk.f32.gmra.mrb[2].mxu1 %vm759_vm2, %v19133_v43  ;;  %v21774_v43 = vld [vmem:[#allocation60_spill] sm:$0xff] }
 0x4e3   : > { %15071 = vmatprep.mubr.msk.f32.mxu1 %vm759_vm2, %v19139_v5  ;;  %16200 = vmatpush3.bf16.msra.mxu1 %v16197_v7  ;;  %v21775_v5 = vld [vmem:[#allocation61_spill] sm:$0xff] }
 0x4e4   : > { %16202 = vmatprep.subr.bf16.mxu1 %v16201_v45 }
 0x4e6   : > { %15072 = vmatmul.mubr.msk.f32.gmra.mrb[4].mxu1 %vm759_vm2, %v19145_v13  ;;  %v21776_v13 = vld [vmem:[#allocation62_spill] sm:$0xff] }
 0x4e7   : > { %15074 = vmatprep.mubr.msk.f32.mxu1 %vm759_vm2, %v19151_v32  ;;  %16204 = vmatpush3.bf16.msra.mxu1 %v16201_v45  ;;  %v21777_v32 = vld [vmem:[#allocation63_spill] sm:$0xff]  ;;  %v21784_v45 = vld [vmem:[#allocation72_spill] sm:$0xff] }
 0x4e8   : > { %16206 = vmatprep.subr.bf16.mxu1 %v16205_v25 }
 0x4ea   : > { %15075 = vmatmul.mubr.msk.f32.gmra.mrb[6].mxu1 %vm759_vm2, %v19157_v35  ;;  %v21778_v35 = vld [vmem:[#allocation64_spill] sm:$0xff] }
 0x4eb   : > { %15077 = vmatprep.mubr.msk.f32.mxu1 %vm759_vm2, %v19163_v46  ;;  %16208 = vmatpush3.bf16.msra.mxu1 %v16205_v25  ;;  %v21779_v46 = vld [vmem:[#allocation65_spill] sm:$0xff]  ;;  %v21786_v25 = vld [vmem:[#allocation74_spill] sm:$0xff] }
 0x4ec   : > { %16210 = vmatprep.subr.bf16.mxu1 %v16209_v53 }
 0x4ee   : > { %15078 = vmatmul.mubr.msk.f32.gmra.mrb[8].mxu1 %vm759_vm2, %v19169_v24  ;;  %v21780_v24 = vld [vmem:[#allocation66_spill] sm:$0xff] }
 0x4ef   : > { %15080 = vmatprep.mubr.msk.f32.mxu1 %vm759_vm2, %v19175_v0  ;;  %v19696_v0 = vld [vmem:[#allocation3 + $0x181] sm:$0xff] }
 0x4f2   : > { %15081 = vmatmul.mubr.msk.f32.gmra.mrb[10].mxu1 %vm759_vm2, %v19181_v21  ;;  %v19700_v21 = vld [vmem:[#allocation3 + $0x189] sm:$0xff] }
 0x4f3   : > { %15083 = vmatprep.mubr.msk.f32.mxu1 %vm759_vm2, %v19187_v29  ;;  %v12705_v29 = vld [vmem:[%s17982_s8 + $0x190] sm:$0xff] }
 0x4f6   : > { %15084 = vmatmul.mubr.msk.f32.gmra.mrb[12].mxu1 %vm759_vm2, %v19193_v31  ;;  %v12706_v31 = vld [vmem:[%s17982_s8 + $0x198] sm:$0xff] }
 0x4f7   : > { %15086 = vmatprep.mubr.msk.f32.mxu1 %vm759_vm2, %v19199_v62  ;;  %v21781_v62 = vld [vmem:[#allocation69_spill] sm:$0xff] }
 0x4fa   : > { %15087 = vmatmul.mubr.msk.f32.gmra.mrb[14].mxu1 %vm759_vm2, %v19205_v18  ;;  %v16213_v18 = vpack.c.bf16 %v12706_v31, %v12705_v29  ;;  %v21798_v29 = vld [vmem:[#allocation86_spill] sm:$0xff]  ;;  %v21799_v31 = vld [vmem:[#allocation87_spill] sm:$0xff] }
 0x4fb   : > { %15089 = vmatprep.mubr.msk.f32.mxu1 %vm759_vm2, %v19211_v47  ;;  %v12707_v47 = vld [vmem:[%s17982_s8 + $0x1a0] sm:$0xff] }
 0x4fe   : > { %15090 = vmatmul.mubr.msk.f32.gmra.mrb[16].mxu1 %vm759_vm2, %v19217_v54  ;;  %v12708_v54 = vld [vmem:[%s17982_s8 + $0x1a8] sm:$0xff] }
 0x4ff   : > { %15092 = vmatprep.mubr.msk.f32.mxu1 %vm759_vm2, %v19223_v63  ;;  %v21782_v63 = vld [vmem:[#allocation70_spill] sm:$0xff] }
 0x502   : > { %15093 = vmatmul.mubr.msk.f32.gmra.mrb[18].mxu1 %vm759_vm2, %v19229_v10  ;;  %v16217_v10 = vpack.c.bf16 %v12708_v54, %v12707_v47  ;;  %v21802_v47 = vld [vmem:[#allocation90_spill] sm:$0xff]  ;;  %v21803_v54 = vld [vmem:[#allocation91_spill] sm:$0xff] }
 0x503   : > { %15095 = vmatprep.mubr.msk.f32.mxu1 %vm759_vm2, %v19235_v33  ;;  %v12709_v33 = vld [vmem:[%s17982_s8 + $0x1b0] sm:$0xff] }
 0x506   : > { %15096 = vmatmul.mubr.msk.f32.gmra.mrb[20].mxu1 %vm759_vm2, %v19241_v37  ;;  %v12710_v37 = vld [vmem:[%s17982_s8 + $0x1b8] sm:$0xff] }
 0x507   : > { %15098 = vmatprep.mubr.msk.f32.mxu1 %vm759_vm2, %v21773_v49  ;;  %v16221_v7 = vpack.c.bf16 %v12710_v37, %v12709_v33  ;;  %v21790_v49 = vld [vmem:[#allocation78_spill] sm:$0xff]  ;;  %v21807_v37 = vld [vmem:[#allocation95_spill] sm:$0xff] }
 0x508   : > { %v21806_v33 = vld [vmem:[#allocation94_spill] sm:$0xff] }
 0x50a   : > { %15099 = vmatmul.mubr.msk.f32.gmra.mrb[22].mxu1 %vm759_vm2, %v21774_v43  ;;  %v21791_v43 = vld [vmem:[#allocation79_spill] sm:$0xff] }
 0x50b   : > { %15101 = vmatprep.mubr.msk.f32.mxu1 %vm759_vm2, %v21775_v5  ;;  %v21792_v5 = vld [vmem:[#allocation80_spill] sm:$0xff] }
 0x50e   : > { %15102 = vmatmul.mubr.msk.f32.gmra.mrb[24].mxu1 %vm759_vm2, %v21776_v13  ;;  %v21793_v13 = vld [vmem:[#allocation81_spill] sm:$0xff] }
 0x50f   : > { %15104 = vmatprep.mubr.msk.f32.mxu1 %vm759_vm2, %v21777_v32  ;;  %v21794_v32 = vld [vmem:[#allocation82_spill] sm:$0xff] }
 0x512   : > { %15105 = vmatmul.mubr.msk.f32.gmra.mrb[26].mxu1 %vm759_vm2, %v21778_v35  ;;  %v21795_v35 = vld [vmem:[#allocation83_spill] sm:$0xff] }
 0x513   : > { %15107 = vmatprep.mubr.msk.f32.mxu1 %vm759_vm2, %v21779_v46  ;;  %v21796_v46 = vld [vmem:[#allocation84_spill] sm:$0xff] }
 0x516   : > { %15108 = vmatmul.mubr.msk.f32.gmra.mrb[28].mxu1 %vm759_vm2, %v21780_v24  ;;  %v21797_v24 = vld [vmem:[#allocation85_spill] sm:$0xff] }
 0x517   : > { %15110 = vmatprep.mubr.msk.f32.mxu1 %vm759_vm2, %v19696_v0 }
 0x51a   : > { %15111 = vmatmul.mubr.msk.f32.gmra.mrb[30].mxu1 %vm759_vm2, %v19700_v21 }
 0x51b   : > { %15129 = vmatprep.mubr.msk.f32.mxu1 %vm759_vm2, %v21781_v62  ;;  %v21800_v62 = vld [vmem:[#allocation88_spill] sm:$0xff] }
 0x51e   : > { %15130 = vmatmul.mubr.msk.f32.vlgmr.msra.gmra.mrb[0].mxu1 %vm759_vm2, %v21782_v63  ;;  %v21804_v63 = vld [vmem:[#allocation92_spill] sm:$0xff] }
 0x51f   : > { %15132 = vmatprep.mubr.msk.f32.mxu1 %vm759_vm2, %v19438_v1  ;;  %16212 = vmatpush3.bf16.msra.mxu1 %v16209_v53  ;;  %v21789_v53 = vld [vmem:[#allocation77_spill] sm:$0xff] }
 0x520   : > { %16214 = vmatprep.subr.bf16.mxu1 %v16213_v18 }
 0x522   : > { %15133 = vmatmul.mubr.msk.f32.gmra.mrb[2].mxu1 %vm759_vm2, %v19442_v17 }
 0x523   : > { %15135 = vmatprep.mubr.msk.f32.mxu1 %vm759_vm2, %v21783_v48  ;;  %16216 = vmatpush3.bf16.msra.mxu1 %v16213_v18  ;;  %v21801_v18 = vld [vmem:[#allocation89_spill] sm:$0xff] }
 0x524   : > { %16218 = vmatprep.subr.bf16.mxu1 %v16217_v10 }
 0x526   : > { %15136 = vmatmul.mubr.msk.f32.gmra.mrb[4].mxu1 %vm759_vm2, %v21784_v45 }
 0x527   : > { %15138 = vmatprep.mubr.msk.f32.mxu1 %vm759_vm2, %v21785_v44  ;;  %16220 = vmatpush3.bf16.msra.mxu1 %v16217_v10  ;;  %v21805_v10 = vld [vmem:[#allocation93_spill] sm:$0xff] }
 0x528   : > { %16222 = vmatprep.subr.bf16.mxu1 %v16221_v7 }
 0x52a   : > { %15139 = vmatmul.mubr.msk.f32.gmra.mrb[6].mxu1 %vm759_vm2, %v21786_v25 }
 0x52b   : > { %15141 = vmatprep.mubr.msk.f32.mxu1 %vm759_vm2, %v21787_v2  ;;  %16224 = vmatpush3.bf16.msra.mxu1 %v16221_v7  ;;  %v19772_v7 = vld [vmem:[#allocation3 + $0x182] sm:$0xff] }
 0x52c   : > { %16226 = vmatprep.subr.bf16.mxu1 %v16225_v19  ;;  %21808 = vst [vmem:[#allocation59_spill] sm:$0xff] %v19772_v7 }
 0x52e   : > { %15142 = vmatmul.mubr.msk.f32.gmra.mrb[8].mxu1 %vm759_vm2, %v21788_v57 }
 0x52f   : > { %15144 = vmatprep.mubr.msk.f32.mxu1 %vm759_vm2, %v21789_v53 }
 0x532   : > { %15145 = vmatmul.mubr.msk.f32.gmra.mrb[10].mxu1 %vm759_vm2, %v21790_v49 }
 0x533   : > { %15147 = vmatprep.mubr.msk.f32.mxu1 %vm759_vm2, %v21791_v43 }
 0x536   : > { %15148 = vmatmul.mubr.msk.f32.gmra.mrb[12].mxu1 %vm759_vm2, %v21792_v5 }
 0x537   : > { %15150 = vmatprep.mubr.msk.f32.mxu1 %vm759_vm2, %v21793_v13 }
 0x53a   : > { %15151 = vmatmul.mubr.msk.f32.gmra.mrb[14].mxu1 %vm759_vm2, %v21794_v32 }
 0x53b   : > { %15153 = vmatprep.mubr.msk.f32.mxu1 %vm759_vm2, %v21795_v35 }
 0x53e   : > { %15154 = vmatmul.mubr.msk.f32.gmra.mrb[16].mxu1 %vm759_vm2, %v21796_v46 }
 0x53f   : > { %15156 = vmatprep.mubr.msk.f32.mxu1 %vm759_vm2, %v21797_v24 }
 0x542   : > { %15157 = vmatmul.mubr.msk.f32.gmra.mrb[18].mxu1 %vm759_vm2, %v21798_v29 }
 0x543   : > { %15159 = vmatprep.mubr.msk.f32.mxu1 %vm759_vm2, %v21799_v31 }
 0x546   : > { %15160 = vmatmul.mubr.msk.f32.gmra.mrb[20].mxu1 %vm759_vm2, %v21800_v62 }
 0x547   : > { %15162 = vmatprep.mubr.msk.f32.mxu1 %vm759_vm2, %v21801_v18 }
 0x54a   : > { %15163 = vmatmul.mubr.msk.f32.gmra.mrb[22].mxu1 %vm759_vm2, %v21802_v47 }
 0x54b   : > { %15165 = vmatprep.mubr.msk.f32.mxu1 %vm759_vm2, %v21803_v54  ;;  %v12750_v54 = vld [vmem:[%s17982_s8 + $0x1f8] sm:$0xff] }
 0x54e   : > { %15166 = vmatmul.mubr.msk.f32.gmra.mrb[24].mxu1 %vm759_vm2, %v21804_v63  ;;  %v12749_v63 = vld [vmem:[%s17982_s8 + $0x1f0] sm:$0xff] }
 0x54f   : > { %15168 = vmatprep.mubr.msk.f32.mxu1 %vm759_vm2, %v21805_v10  ;;  %v12746_v10 = vld [vmem:[%s17982_s8 + $0x1d8] sm:$0xff] }
 0x552   : > { %15169 = vmatmul.mubr.msk.f32.gmra.mrb[26].mxu1 %vm759_vm2, %v21806_v33  ;;  %v12748_v33 = vld [vmem:[%s17982_s8 + $0x1e8] sm:$0xff] }
 0x553   : > { %15171 = vmatprep.mubr.msk.f32.mxu1 %vm759_vm2, %v21807_v37  ;;  %v16229_v37 = vpack.c.bf16 %v12746_v10, %v12745_v28  ;;  %v12783_v10 = vld [vmem:[%s17982_s8 + $0x200] sm:$0xff]  ;;  %v12784_v28 = vld [vmem:[%s17982_s8 + $0x208] sm:$0xff] }
 0x556   : > { %15172 = vmatmul.mubr.msk.f32.gmra.mrb[28].mxu1 %vm759_vm2, %v19548_v30  ;;  %v12747_v30 = vld [vmem:[%s17982_s8 + $0x1e0] sm:$0xff] }
 0x557   : > { %15174 = vmatprep.mubr.msk.f32.mxu1 %vm759_vm2, %v19772_v7  ;;  %v16233_v7 = vpack.c.bf16 %v12748_v33, %v12747_v30  ;;  %v7085_v30 = vld [vmem:[#allocation3 + $0xe1] sm:$0xff]  ;;  %v7091_v33 = vld [vmem:[#allocation3 + $0x129] sm:$0xff] }
 0x55a   : > { %15175 = vmatmul.mubr.msk.f32.gmra.mrb[30].mxu1 %vm759_vm2, %v19776_v40 }
 0x55b   : > { %15193 = vmatprep.mubr.msk.f32.mxu1 %vm759_vm2, %v19304_v11  ;;  %v16237_v11 = vpack.c.bf16 %v12750_v54, %v12749_v63  ;;  %v7089_v54 = vld [vmem:[#allocation3 + $0x111] sm:$0xff]  ;;  %v7090_v63 = vld [vmem:[#allocation3 + $0x121] sm:$0xff] }
 0x55e   : > { %15194 = vmatmul.mubr.msk.f32.vlgmr.msra.gmra.mrb[0].mxu1 %vm759_vm2, %v19308_v16  ;;  %v16241_v16 = vpack.c.bf16 %v12784_v28, %v12783_v10  ;;  %v7095_v10 = vld [vmem:[#allocation3 + $0x159] sm:$0xff]  ;;  %v7096_v28 = vld [vmem:[#allocation3 + $0x169] sm:$0xff] }
 0x55f   : > { %15196 = vmatprep.mubr.msk.f32.mxu1 %vm759_vm2, %v19314_v27  ;;  %16228 = vmatpush3.bf16.msra.mxu1 %v16225_v19  ;;  %v6706_v27 = vld [vmem:[#allocation3 + $0x198] sm:$0xff]  ;;  %v7088_v19 = vld [vmem:[#allocation3 + $0x109] sm:$0xff] }
 0x560   : > { %16230 = vmatprep.subr.bf16.mxu1 %v16229_v37 }
 0x562   : > { %15197 = vmatmul.mubr.msk.f32.gmra.mrb[2].mxu1 %vm759_vm2, %v19320_v36  ;;  %v6707_v36 = vld [vmem:[#allocation3 + $0x1a0] sm:$0xff] }
 0x563   : > { %15199 = vmatprep.mubr.msk.f32.mxu1 %vm759_vm2, %v19324_v39  ;;  %16232 = vmatpush3.bf16.msra.mxu1 %v16229_v37  ;;  %v12785_v39 = vld [vmem:[%s17982_s8 + $0x210] sm:$0xff] }
 0x564   : > { %16234 = vmatprep.subr.bf16.mxu1 %v16233_v7  ;;  %v7092_v37 = vld [vmem:[#allocation3 + $0x139] sm:$0xff] }
 0x566   : > { %15200 = vmatmul.mubr.msk.f32.gmra.mrb[4].mxu1 %vm759_vm2, %v19329_v41  ;;  %v12786_v41 = vld [vmem:[%s17982_s8 + $0x218] sm:$0xff] }
 0x567   : > { %15202 = vmatprep.mubr.msk.f32.mxu1 %vm759_vm2, %v19333_v42  ;;  %16236 = vmatpush3.bf16.msra.mxu1 %v16233_v7  ;;  %v7070_v42 = vld [vmem:[#allocation3 + $0x31] sm:$0xff]  ;;  %v7093_v7 = vld [vmem:[#allocation3 + $0x141] sm:$0xff] }
 0x568   : > { %16238 = vmatprep.subr.bf16.mxu1 %v16237_v11 }
 0x56a   : > { %15203 = vmatmul.mubr.msk.f32.gmra.mrb[6].mxu1 %vm759_vm2, %v19337_v50  ;;  %v16245_v50 = vpack.c.bf16 %v12786_v41, %v12785_v39 }
 0x56b   : > { %15205 = vmatprep.mubr.msk.f32.mxu1 %vm759_vm2, %v19341_v56  ;;  %16240 = vmatpush3.bf16.msra.mxu1 %v16237_v11  ;;  %v7071_v56 = vld [vmem:[#allocation3 + $0x39] sm:$0xff]  ;;  %v7094_v11 = vld [vmem:[#allocation3 + $0x151] sm:$0xff] }
 0x56c   : > { %16242 = vmatprep.subr.bf16.mxu1 %v16241_v16 }
 0x56e   : > { %15206 = vmatmul.mubr.msk.f32.gmra.mrb[8].mxu1 %vm759_vm2, %v19345_v59  ;;  %v12787_v59 = vld [vmem:[%s17982_s8 + $0x220] sm:$0xff] }
 0x56f   : > { %15208 = vmatprep.mubr.msk.f32.mxu1 %vm759_vm2, %v19349_v61  ;;  %v12788_v61 = vld [vmem:[%s17982_s8 + $0x228] sm:$0xff] }
 0x572   : > { %15209 = vmatmul.mubr.msk.f32.gmra.mrb[10].mxu1 %vm759_vm2, %v19353_v34  ;;  %v7072_v34 = vld [vmem:[#allocation3 + $0x49] sm:$0xff] }
 0x573   : > { %15211 = vmatprep.mubr.msk.f32.mxu1 %vm759_vm2, %v19357_v22  ;;  %v16249_v22 = vpack.c.bf16 %v12788_v61, %v12787_v59 }
 0x576   : > { %15212 = vmatmul.mubr.msk.f32.gmra.mrb[12].mxu1 %vm759_vm2, %v19361_v8  ;;  %v7073_v8 = vld [vmem:[#allocation3 + $0x51] sm:$0xff] }
 0x577   : > { %15214 = vmatprep.mubr.msk.f32.mxu1 %vm759_vm2, %v19365_v14  ;;  %v12789_v14 = vld [vmem:[%s17982_s8 + $0x230] sm:$0xff] }
 0x57a   : > { %15215 = vmatmul.mubr.msk.f32.gmra.mrb[14].mxu1 %vm759_vm2, %v19369_v23  ;;  %v12790_v23 = vld [vmem:[%s17982_s8 + $0x238] sm:$0xff] }
 0x57b   : > { %15217 = vmatprep.mubr.msk.f32.mxu1 %vm759_vm2, %v19373_v3  ;;  %v7074_v3 = vld [vmem:[#allocation3 + $0x61] sm:$0xff] }
 0x57e   : > { %15218 = vmatmul.mubr.msk.f32.gmra.mrb[16].mxu1 %vm759_vm2, %v19377_v9  ;;  %v16253_v9 = vpack.c.bf16 %v12790_v23, %v12789_v14 }
 0x57f   : > { %15220 = vmatprep.mubr.msk.f32.mxu1 %vm759_vm2, %v19381_v58  ;;  %v7075_v58 = vld [vmem:[#allocation3 + $0x69] sm:$0xff] }
 0x582   : > { %15221 = vmatmul.mubr.msk.f32.gmra.mrb[18].mxu1 %vm759_vm2, %v19385_v20  ;;  %v7076_v20 = vld [vmem:[#allocation3 + $0x79] sm:$0xff] }
 0x583   : > { %15223 = vmatprep.mubr.msk.f32.mxu1 %vm759_vm2, %v19389_v15  ;;  %v7077_v15 = vld [vmem:[#allocation3 + $0x81] sm:$0xff] }
 0x586   : > { %15224 = vmatmul.mubr.msk.f32.gmra.mrb[20].mxu1 %vm759_vm2, %v19393_v4  ;;  %v7078_v4 = vld [vmem:[#allocation3 + $0x91] sm:$0xff] }
 0x587   : > { %15226 = vmatprep.mubr.msk.f32.mxu1 %vm759_vm2, %v19397_v26  ;;  %v7079_v26 = vld [vmem:[#allocation3 + $0x99] sm:$0xff] }
 0x58a   : > { %15227 = vmatmul.mubr.msk.f32.gmra.mrb[22].mxu1 %vm759_vm2, %v19401_v51  ;;  %v7080_v51 = vld [vmem:[#allocation3 + $0xa9] sm:$0xff] }
 0x58b   : > { %15229 = vmatprep.mubr.msk.f32.mxu1 %vm759_vm2, %v19405_v52  ;;  %v7081_v52 = vld [vmem:[#allocation3 + $0xb1] sm:$0xff] }
 0x58e   : > { %15230 = vmatmul.mubr.msk.f32.gmra.mrb[24].mxu1 %vm759_vm2, %v19409_v55  ;;  %v7082_v55 = vld [vmem:[#allocation3 + $0xc1] sm:$0xff] }
 0x58f   : > { %15232 = vmatprep.mubr.msk.f32.mxu1 %vm759_vm2, %v19413_v38  ;;  %v7083_v38 = vld [vmem:[#allocation3 + $0xc9] sm:$0xff] }
 0x592   : > { %15233 = vmatmul.mubr.msk.f32.gmra.mrb[26].mxu1 %vm759_vm2, %v19417_v6  ;;  %v7084_v6 = vld [vmem:[#allocation3 + $0xd9] sm:$0xff] }
 0x593   : > { %15235 = vmatprep.mubr.msk.f32.mxu1 %vm759_vm2, %v19620_v60  ;;  %v7086_v60 = vld [vmem:[#allocation3 + $0xf1] sm:$0xff] }
 0x596   : > { %15236 = vmatmul.mubr.msk.f32.gmra.mrb[28].mxu1 %vm759_vm2, %v19624_v12  ;;  %v7087_v12 = vld [vmem:[#allocation3 + $0xf9] sm:$0xff] }
 0x597   : > { %15238 = vmatprep.mubr.msk.f32.mxu1 %vm759_vm2, %v6706_v27  ;;  %v7100_v27 = vld [vmem:[#allocation3 + $0x199] sm:$0xff] }
 0x59a   : > { %15239 = vmatmul.mubr.msk.f32.gmra.mrb[30].mxu1 %vm759_vm2, %v6707_v36  ;;  %v7101_v36 = vld [vmem:[#allocation3 + $0x1a1] sm:$0xff] }
 0x59b   : > { %15257 = vmatprep.mubr.msk.f32.mxu1 %vm759_vm2, %v7070_v42 }
 0x59e   : > { %15258 = vmatmul.mubr.msk.f32.vlgmr.msra.gmra.mrb[0].mxu1 %vm759_vm2, %v7071_v56 }
 0x59f   : > { %15260 = vmatprep.mubr.msk.f32.mxu1 %vm759_vm2, %v7072_v34  ;;  %16244 = vmatpush3.bf16.msra.mxu1 %v16241_v16  ;;  %v7097_v16 = vld [vmem:[#allocation3 + $0x171] sm:$0xff] }
 0x5a0   : > { %16246 = vmatprep.subr.bf16.mxu1 %v16245_v50 }
 0x5a2   : > { %15261 = vmatmul.mubr.msk.f32.gmra.mrb[2].mxu1 %vm759_vm2, %v7073_v8 }
 0x5a3   : > { %15263 = vmatprep.mubr.msk.f32.mxu1 %vm759_vm2, %v7074_v3  ;;  %16248 = vmatpush3.bf16.msra.mxu1 %v16245_v50 }
 0x5a4   : > { %16250 = vmatprep.subr.bf16.mxu1 %v16249_v22 }
 0x5a6   : > { %15264 = vmatmul.mubr.msk.f32.gmra.mrb[4].mxu1 %vm759_vm2, %v7075_v58 }
 0x5a7   : > { %15266 = vmatprep.mubr.msk.f32.mxu1 %vm759_vm2, %v7076_v20  ;;  %16252 = vmatpush3.bf16.msra.mxu1 %v16249_v22 }
 0x5a8   : > { %16254 = vmatprep.subr.bf16.mxu1 %v16253_v9 }
 0x5aa   : > { %15267 = vmatmul.mubr.msk.f32.gmra.mrb[6].mxu1 %vm759_vm2, %v7077_v15 }
 0x5ab   : > { %15269 = vmatprep.mubr.msk.f32.mxu1 %vm759_vm2, %v7078_v4  ;;  %16256 = vmatpush3.bf16.msra.mxu1 %v16253_v9 }
 0x5ae   : > { %15270 = vmatmul.mubr.msk.f32.gmra.mrb[8].mxu1 %vm759_vm2, %v7079_v26 }
 0x5af   : > { %15272 = vmatprep.mubr.msk.f32.mxu1 %vm759_vm2, %v7080_v51 }
 0x5b2   : > { %15273 = vmatmul.mubr.msk.f32.gmra.mrb[10].mxu1 %vm759_vm2, %v7081_v52 }
 0x5b3   : > { %15275 = vmatprep.mubr.msk.f32.mxu1 %vm759_vm2, %v7082_v55 }
 0x5b6   : > { %15276 = vmatmul.mubr.msk.f32.gmra.mrb[12].mxu1 %vm759_vm2, %v7083_v38 }
 0x5b7   : > { %15278 = vmatprep.mubr.msk.f32.mxu1 %vm759_vm2, %v7084_v6 }
 0x5ba   : > { %15279 = vmatmul.mubr.msk.f32.gmra.mrb[14].mxu1 %vm759_vm2, %v7085_v30 }
 0x5bb   : > { %15281 = vmatprep.mubr.msk.f32.mxu1 %vm759_vm2, %v7086_v60 }
 0x5be   : > { %15282 = vmatmul.mubr.msk.f32.gmra.mrb[16].mxu1 %vm759_vm2, %v7087_v12 }
 0x5bf   : > { %15284 = vmatprep.mubr.msk.f32.mxu1 %vm759_vm2, %v7088_v19 }
 0x5c2   : > { %15285 = vmatmul.mubr.msk.f32.gmra.mrb[18].mxu1 %vm759_vm2, %v7089_v54 }
 0x5c3   : > { %15287 = vmatprep.mubr.msk.f32.mxu1 %vm759_vm2, %v7090_v63 }
 0x5c6   : > { %15288 = vmatmul.mubr.msk.f32.gmra.mrb[20].mxu1 %vm759_vm2, %v7091_v33 }
 0x5c7   : > { %15290 = vmatprep.mubr.msk.f32.mxu1 %vm759_vm2, %v7092_v37 }
 0x5ca   : > { %15291 = vmatmul.mubr.msk.f32.gmra.mrb[22].mxu1 %vm759_vm2, %v7093_v7 }
 0x5cb   : > { %15293 = vmatprep.mubr.msk.f32.mxu1 %vm759_vm2, %v7094_v11 }
 0x5ce   : > { %15294 = vmatmul.mubr.msk.f32.gmra.mrb[24].mxu1 %vm759_vm2, %v7095_v10 }
 0x5cf   : > { %15296 = vmatprep.mubr.msk.f32.mxu1 %vm759_vm2, %v7096_v28 }
 0x5d2   : > { %15297 = vmatmul.mubr.msk.f32.gmra.mrb[26].mxu1 %vm759_vm2, %v7097_v16 }
 0x5d3   : > { %15299 = vmatprep.mubr.msk.f32.mxu1 %vm759_vm2, %v19696_v0  ;;  %v21811_v0 = vld [vmem:[#allocation93_spill] sm:$0xff] }
 0x5d6   : > { %15300 = vmatmul.mubr.msk.f32.gmra.mrb[28].mxu1 %vm759_vm2, %v19700_v21  ;;  %v21812_v21 = vld [vmem:[#allocation94_spill] sm:$0xff] }
 0x5d7   : > { %15302 = vmatprep.mubr.msk.f32.mxu1 %vm759_vm2, %v7100_v27 }
 0x5da   : > { %15303 = vmatmul.mubr.msk.f32.gmra.mrb[30].mxu1 %vm759_vm2, %v7101_v36 }
 0x5db   : > { %15321 = vmatprep.mubr.msk.f32.mxu1 %vm759_vm2, %v19438_v1  ;;  %v21809_v1 = vld [vmem:[#allocation91_spill] sm:$0xff] }
 0x5de   : > { %15322 = vmatmul.mubr.msk.f32.vlgmr.msra.gmra.mrb[0].mxu1 %vm759_vm2, %v19442_v17  ;;  %v21810_v17 = vld [vmem:[#allocation92_spill] sm:$0xff] }
 0x5df   : > { %15324 = vmatprep.mubr.msk.f32.mxu1 %vm759_vm2, %v21783_v48  ;;  %v21813_v48 = vld [vmem:[#allocation95_spill] sm:$0xff] }
 0x5e2   : > { %15325 = vmatmul.mubr.msk.f32.gmra.mrb[2].mxu1 %vm759_vm2, %v21784_v45  ;;  %v21814_v45 = vld [vmem:[#allocation58_spill] sm:$0xff] }
 0x5e3   : > { %15327 = vmatprep.mubr.msk.f32.mxu1 %vm759_vm2, %v21785_v44  ;;  %v21815_v44 = vld [vmem:[#allocation59_spill] sm:$0xff] }
 0x5e6   : > { %15328 = vmatmul.mubr.msk.f32.gmra.mrb[4].mxu1 %vm759_vm2, %v21786_v25  ;;  %v7494_v25 = vld [vmem:[#allocation3 + $0x19a] sm:$0xff] }
 0x5e7   : > { %15330 = vmatprep.mubr.msk.f32.mxu1 %vm759_vm2, %v21787_v2  ;;  %v7495_v2 = vld [vmem:[#allocation3 + $0x1a2] sm:$0xff] }
 0x5ea   : > { %15331 = vmatmul.mubr.msk.f32.gmra.mrb[6].mxu1 %vm759_vm2, %v21788_v57  ;;  %v17586_v57 = vmov 0.0|0.0  }
 0x5eb   : > { %15333 = vmatprep.mubr.msk.f32.mxu1 %vm759_vm2, %v21789_v53  ;;  %16257 = vmatprep.subr.bf16.mxu0 %v17586_v57  ;;  %v7968_v53 = vld [vmem:[%s18008_s1] sm:$0xff] }
 0x5ee   : > { %15334 = vmatmul.mubr.msk.f32.gmra.mrb[8].mxu1 %vm759_vm2, %v21790_v49  ;;  %v7969_v49 = vld [vmem:[%s18008_s1 + $0x8] sm:$0xff] }
 0x5ef   : > { %15336 = vmatprep.mubr.msk.f32.mxu1 %vm759_vm2, %v21791_v43  ;;  %v16258_v43 = vpack.c.bf16 %v7969_v49, %v7968_v53 }
 0x5f1   : > { %16259 = vmatpush3.bf16.msra.mxu0 %v16258_v43 }
 0x5f2   : > { %15337 = vmatmul.mubr.msk.f32.gmra.mrb[10].mxu1 %vm759_vm2, %v21792_v5  ;;  %16260 = vmatprep.subr.bf16.mxu0 %v17586_v57  ;;  %v7970_v5 = vld [vmem:[%s18008_s1 + $0x10] sm:$0xff] }
 0x5f3   : > { %15339 = vmatprep.mubr.msk.f32.mxu1 %vm759_vm2, %v21793_v13  ;;  %v7971_v13 = vld [vmem:[%s18008_s1 + $0x18] sm:$0xff] }
 0x5f6   : > { %15340 = vmatmul.mubr.msk.f32.gmra.mrb[12].mxu1 %vm759_vm2, %v21794_v32  ;;  %v16261_v32 = vpack.c.bf16 %v7971_v13, %v7970_v5 }
 0x5f7   : > { %15342 = vmatprep.mubr.msk.f32.mxu1 %vm759_vm2, %v21795_v35  ;;  %v7972_v35 = vld [vmem:[%s18008_s1 + $0x20] sm:$0xff] }
 0x5f8   : > { %16262 = vmatpush3.bf16.msra.mxu0 %v16261_v32 }
 0x5f9   : > { %16263 = vmatprep.subr.bf16.mxu0 %v17586_v57 }
 0x5fa   : > { %15343 = vmatmul.mubr.msk.f32.gmra.mrb[14].mxu1 %vm759_vm2, %v21796_v46  ;;  %v7973_v46 = vld [vmem:[%s18008_s1 + $0x28] sm:$0xff] }
 0x5fb   : > { %15345 = vmatprep.mubr.msk.f32.mxu1 %vm759_vm2, %v21797_v24  ;;  %v16264_v24 = vpack.c.bf16 %v7973_v46, %v7972_v35 }
 0x5fd   : > { %16265 = vmatpush3.bf16.msra.mxu0 %v16264_v24 }
 0x5fe   : > { %15346 = vmatmul.mubr.msk.f32.gmra.mrb[16].mxu1 %vm759_vm2, %v21798_v29  ;;  %16266 = vmatprep.subr.bf16.mxu0 %v17586_v57  ;;  %v7974_v29 = vld [vmem:[%s18008_s1 + $0x30] sm:$0xff] }
 0x5ff   : > { %15348 = vmatprep.mubr.msk.f32.mxu1 %vm759_vm2, %v21799_v31  ;;  %v7975_v31 = vld [vmem:[%s18008_s1 + $0x38] sm:$0xff] }
 0x602   : > { %15349 = vmatmul.mubr.msk.f32.gmra.mrb[18].mxu1 %vm759_vm2, %v21800_v62  ;;  %v16267_v62 = vpack.c.bf16 %v7975_v31, %v7974_v29 }
 0x603   : > { %15351 = vmatprep.mubr.msk.f32.mxu1 %vm759_vm2, %v21801_v18  ;;  %v17588_v18 = vmov 0.0  }
 0x604   : > { %16268 = vmatpush3.bf16.msra.mxu0 %v16267_v62  ;;  %15385 = vmatprep.mubr.msk.f32.mxu0 %vm17587_vm3, %v17588_v18 }
 0x605   : > { %15388 = vmatprep.subr.mxu1 %v17588_v18 }
 0x606   : > { %15352 = vmatmul.mubr.msk.f32.gmra.mrb[20].mxu1 %vm759_vm2, %v21802_v47  ;;  %v8051_v47 = vld [vmem:[%s18014_s6] sm:$0xf] }
 0x607   : > { %15354 = vmatprep.mubr.msk.f32.mxu1 %vm759_vm2, %v21809_v1  ;;  %15389 = vmatpush3.msk.msra.mxu1 %vm8057_vm4, %v8051_v47 }
 0x60a   : > { %15355 = vmatmul.mubr.msk.f32.gmra.mrb[22].mxu1 %vm759_vm2, %v21810_v17 }
 0x60b   : > { %15357 = vmatprep.mubr.msk.f32.mxu1 %vm759_vm2, %v21811_v0 }
 0x60e   : > { %15358 = vmatmul.mubr.msk.f32.gmra.mrb[24].mxu1 %vm759_vm2, %v21812_v21 }
 0x60f   : > { %15360 = vmatprep.mubr.msk.f32.mxu1 %vm759_vm2, %v21813_v48 }
 0x612   : > { %15361 = vmatmul.mubr.msk.f32.gmra.mrb[26].mxu1 %vm759_vm2, %v21814_v45 }
 0x613   : > { %15363 = vmatprep.mubr.msk.f32.mxu1 %vm759_vm2, %v21815_v44 }
 0x616   : > { %15364 = vmatmul.mubr.msk.f32.gmra.mrb[28].mxu1 %vm759_vm2, %v19776_v40  ;;  %v19966_v40 = vld [vmem:[%s586_s15] ss:$0 sm:$0xff] }
 0x617   : > { %15366 = vmatprep.mubr.msk.f32.mxu1 %vm759_vm2, %v7494_v25 }
 0x61a   : > { %15367 = vmatmul.mubr.msk.f32.gmra.mrb[30].mxu1 %vm759_vm2, %v7495_v2 }
 0x61b   : > { %15390 = vmatprep.mubr.msk.f32.mxu1 %vm17587_vm3, %v17588_v18 }
 0x6b1   : > { %v15323_v39 = vpop.f32.mrb[0].mxu1 }
 0x6b2   : > { %v19969_v41 = vadd.f32 %v15323_v39, %v19966_v40  ;;  %v7667_v42 = vpop.f32.mrb[1].mxu1 }
 0x6b3   : > { %v19972_v50 = vadd.f32 %v19966_v40, %v7667_v42 }
 0x6b4   : > { %v7898_v56 = vsel %vm759_vm2, %v19969_v41, 0.0 }
 0x6b5   : > { %v7897_v59 = vsel %vm759_vm2, %v19972_v50, 0.0  ;;  %v15326_v61 = vpop.f32.mrb[2].mxu1 }
 0x6b6   : > { %v7677_v34 = vpop.f32.mrb[3].mxu1  ;;  %v19979_v22 = vadd.f32 %v15326_v61, %v19966_v40  ;;  %v7899_v14 = vadd.f32 %v7898_v56, %v7897_v59 }
 0x6b7   : > { %v19982_v8 = vadd.f32 %v19966_v40, %v7677_v34 }
 0x6b8   : > { %v7902_v20 = vsel %vm759_vm2, %v19979_v22, 0.0 }
 0x6b9   : > { %v7900_v23 = vsel %vm759_vm2, %v19982_v8, 0.0  ;;  %v15329_v3 = vpop.f32.mrb[4].mxu1 }
 0x6ba   : > { %v7901_v9 = vadd.f32 %v7900_v23, %v7899_v14  ;;  %v7687_v58 = vpop.f32.mrb[5].mxu1  ;;  %v19989_v15 = vadd.f32 %v15329_v3, %v19966_v40 }
 0x6bb   : > { %v19992_v4 = vadd.f32 %v19966_v40, %v7687_v58 }
 0x6bc   : > { %v7903_v26 = vadd.f32 %v7902_v20, %v7901_v9  ;;  %v7906_v6 = vsel %vm759_vm2, %v19989_v15, 0.0 }
 0x6bd   : > { %v7904_v51 = vsel %vm759_vm2, %v19992_v4, 0.0  ;;  %v15332_v52 = vpop.f32.mrb[6].mxu1 }
 0x6be   : > { %v7905_v55 = vadd.f32 %v7904_v51, %v7903_v26  ;;  %v7697_v38 = vpop.f32.mrb[7].mxu1  ;;  %v19999_v30 = vadd.f32 %v15332_v52, %v19966_v40 }
 0x6bf   : > { %v20002_v60 = vadd.f32 %v19966_v40, %v7697_v38 }
 0x6c0   : > { %v7907_v12 = vadd.f32 %v7906_v6, %v7905_v55  ;;  %v7910_v37 = vsel %vm759_vm2, %v19999_v30, 0.0 }
 0x6c1   : > { %v7908_v19 = vsel %vm759_vm2, %v20002_v60, 0.0  ;;  %v15335_v54 = vpop.f32.mrb[8].mxu1 }
 0x6c2   : > { %v7909_v63 = vadd.f32 %v7908_v19, %v7907_v12  ;;  %v7707_v33 = vpop.f32.mrb[9].mxu1  ;;  %v20009_v7 = vadd.f32 %v15335_v54, %v19966_v40 }
 0x6c3   : > { %v20012_v11 = vadd.f32 %v19966_v40, %v7707_v33 }
 0x6c4   : > { %v7911_v10 = vadd.f32 %v7910_v37, %v7909_v63  ;;  %v7914_v1 = vsel %vm759_vm2, %v20009_v7, 0.0 }
 0x6c5   : > { %v7912_v28 = vsel %vm759_vm2, %v20012_v11, 0.0  ;;  %v15338_v16 = vpop.f32.mrb[10].mxu1 }
 0x6c6   : > { %v7913_v27 = vadd.f32 %v7912_v28, %v7911_v10  ;;  %v7717_v36 = vpop.f32.mrb[11].mxu1  ;;  %v20019_v17 = vadd.f32 %v15338_v16, %v19966_v40 }
 0x6c7   : > { %v20022_v0 = vadd.f32 %v19966_v40, %v7717_v36 }
 0x6c8   : > { %v7915_v21 = vadd.f32 %v7914_v1, %v7913_v27  ;;  %v7918_v2 = vsel %vm759_vm2, %v20019_v17, 0.0 }
 0x6c9   : > { %v7916_v48 = vsel %vm759_vm2, %v20022_v0, 0.0  ;;  %v15341_v45 = vpop.f32.mrb[12].mxu1 }
 0x6ca   : > { %v7917_v44 = vadd.f32 %v7916_v48, %v7915_v21  ;;  %v7727_v25 = vpop.f32.mrb[13].mxu1  ;;  %v20029_v57 = vadd.f32 %v15341_v45, %v19966_v40 }
 0x6cb   : > { %v20032_v53 = vadd.f32 %v19966_v40, %v7727_v25 }
 0x6cc   : > { %v7919_v49 = vadd.f32 %v7918_v2, %v7917_v44  ;;  %v7922_v35 = vsel %vm759_vm2, %v20029_v57, 0.0 }
 0x6cd   : > { %v7920_v43 = vsel %vm759_vm2, %v20032_v53, 0.0  ;;  %v15344_v5 = vpop.f32.mrb[14].mxu1 }
 0x6ce   : > { %v7921_v13 = vadd.f32 %v7920_v43, %v7919_v49  ;;  %v7737_v32 = vpop.f32.mrb[15].mxu1  ;;  %v20039_v46 = vadd.f32 %v15344_v5, %v19966_v40 }
 0x6cf   : > { %v20042_v24 = vadd.f32 %v19966_v40, %v7737_v32 }
 0x6d0   : > { %v7923_v29 = vadd.f32 %v7922_v35, %v7921_v13  ;;  %v7926_v39 = vsel %vm759_vm2, %v20039_v46, 0.0 }
 0x6d1   : > { %v7924_v31 = vsel %vm759_vm2, %v20042_v24, 0.0  ;;  %v15347_v62 = vpop.f32.mrb[16].mxu1 }
 0x6d2   : > { %v7925_v18 = vadd.f32 %v7924_v31, %v7923_v29  ;;  %v7747_v47 = vpop.f32.mrb[17].mxu1  ;;  %v20049_v42 = vadd.f32 %v15347_v62, %v19966_v40 }
 0x6d3   : > { %v20052_v56 = vadd.f32 %v19966_v40, %v7747_v47 }
 0x6d4   : > { %v7927_v59 = vadd.f32 %v7926_v39, %v7925_v18  ;;  %v7930_v3 = vsel %vm759_vm2, %v20049_v42, 0.0 }
 0x6d5   : > { %v7928_v61 = vsel %vm759_vm2, %v20052_v56, 0.0  ;;  %v15350_v34 = vpop.f32.mrb[18].mxu1 }
 0x6d6   : > { %v7929_v14 = vadd.f32 %v7928_v61, %v7927_v59  ;;  %v7757_v23 = vpop.f32.mrb[19].mxu1  ;;  %v20059_v9 = vadd.f32 %v15350_v34, %v19966_v40 }
 0x6d7   : > { %v20062_v58 = vadd.f32 %v19966_v40, %v7757_v23 }
 0x6d8   : > { %v7931_v20 = vadd.f32 %v7930_v3, %v7929_v14  ;;  %v7934_v38 = vsel %vm759_vm2, %v20059_v9, 0.0 }
 0x6d9   : > { %v7932_v26 = vsel %vm759_vm2, %v20062_v58, 0.0  ;;  %v15353_v51 = vpop.f32.mrb[20].mxu1 }
 0x6da   : > { %v7933_v52 = vadd.f32 %v7932_v26, %v7931_v20  ;;  %v7767_v55 = vpop.f32.mrb[21].mxu1  ;;  %v20069_v6 = vadd.f32 %v15353_v51, %v19966_v40 }
 0x6db   : > { %v20072_v12 = vadd.f32 %v19966_v40, %v7767_v55 }
 0x6dc   : > { %v7935_v19 = vadd.f32 %v7934_v38, %v7933_v52  ;;  %v7938_v10 = vsel %vm759_vm2, %v20069_v6, 0.0 }
 0x6dd   : > { %v7936_v54 = vsel %vm759_vm2, %v20072_v12, 0.0  ;;  %v15356_v63 = vpop.f32.mrb[22].mxu1 }
 0x6de   : > { %v7937_v33 = vadd.f32 %v7936_v54, %v7935_v19  ;;  %v7777_v37 = vpop.f32.mrb[23].mxu1  ;;  %v20079_v28 = vadd.f32 %v15356_v63, %v19966_v40 }
 0x6df   : > { %v20082_v16 = vadd.f32 %v19966_v40, %v7777_v37 }
 0x6e0   : > { %v7939_v27 = vadd.f32 %v7938_v10, %v7937_v33  ;;  %v7942_v45 = vsel %vm759_vm2, %v20079_v28, 0.0 }
 0x6e1   : > { %v7940_v36 = vsel %vm759_vm2, %v20082_v16, 0.0  ;;  %v15359_v1 = vpop.f32.mrb[24].mxu1 }
 0x6e2   : > { %v7941_v21 = vadd.f32 %v7940_v36, %v7939_v27  ;;  %v7787_v48 = vpop.f32.mrb[25].mxu1  ;;  %v20089_v44 = vadd.f32 %v15359_v1, %v19966_v40 }
 0x6e3   : > { %v20092_v25 = vadd.f32 %v19966_v40, %v7787_v48 }
 0x6e4   : > { %v7943_v2 = vadd.f32 %v7942_v45, %v7941_v21  ;;  %v7946_v32 = vsel %vm759_vm2, %v20089_v44, 0.0 }
 0x6e5   : > { %v7944_v49 = vsel %vm759_vm2, %v20092_v25, 0.0  ;;  %v15362_v43 = vpop.f32.mrb[26].mxu1 }
 0x6e6   : > { %v7945_v5 = vadd.f32 %v7944_v49, %v7943_v2  ;;  %v7797_v13 = vpop.f32.mrb[27].mxu1  ;;  %v20099_v35 = vadd.f32 %v15362_v43, %v19966_v40 }
 0x6e7   : > { %v20102_v29 = vadd.f32 %v19966_v40, %v7797_v13 }
 0x6e8   : > { %v7947_v31 = vadd.f32 %v7946_v32, %v7945_v5  ;;  %v7950_v59 = vsel %vm759_vm2, %v20099_v35, 0.0  ;;  %v8052_v5 = vld [vmem:[%s601_s30] sm:$0x1] }
 0x6e9   : > { %v7948_v62 = vsel %vm759_vm2, %v20102_v29, 0.0  ;;  %v15365_v18 = vpop.f32.mrb[28].mxu1 }
 0x6ea   : > { %v7949_v47 = vadd.f32 %v7948_v62, %v7947_v31  ;;  %v7807_v39 = vpop.f32.mrb[29].mxu1  ;;  %v20109_v61 = vadd.f32 %v15365_v18, %v19966_v40 }
 0x6eb   : > { %v20112_v34 = vadd.f32 %v19966_v40, %v7807_v39  ;;  %v8137_v39 = vlaneseq }
 0x6ec   : > { %v7951_v14 = vadd.f32 %v7950_v59, %v7949_v47  ;;  %v7954_v51 = vsel %vm759_vm2, %v20109_v61, 0.0 }
 0x6ed   : > { %v7952_v23 = vsel %vm759_vm2, %v20112_v34, 0.0  ;;  %v15368_v3 = vpop.f32.mrb[30].mxu1  ;;  %v8138_v59 = vshrl.u32 %v8137_v39, 7 }
 0x6ee   : > { %v7953_v20 = vadd.f32 %v7952_v23, %v7951_v14  ;;  %v7817_v26 = vpop.f32.mrb[31].mxu1  ;;  %v20119_v52 = vadd.f32 %v15368_v3, %v19966_v40 }
 0x6ef   : > { %v20122_v55 = vadd.f32 %v19966_v40, %v7817_v26  ;;  %v7976_v40 = vld [vmem:[%s594_s9] sm:$0x1]  ;;  %v8139_v14 = vsub.s32 0, %v8138_v59 }
 0x6f0   : > { %v7955_v38 = vadd.f32 %v7954_v51, %v7953_v20  ;;  %v7958_v63 = vsel %vm759_vm2, %v20119_v52, 0.0  ;;  %v21833_v59 = vld [vmem:[#allocation42_spill] sm:$0xff] }
 0x6f1   : > { %v7956_v19 = vsel %vm759_vm2, %v20122_v55, 0.0 }
 0x6f2   : > { %v7957_v54 = vadd.f32 %v7956_v19, %v7955_v38 }
 0x6f4   : > { %v7959_v33 = vadd.f32 %v7958_v63, %v7957_v54 }
 0x6f6   : > { %v7960_v37 = vrot.slane %v7959_v33, 4 }
 0x6f8   : > { %v7961_v10 = vadd.f32 %v7960_v37, %v7959_v33 }
 0x6fa   : > { %v7962_v27 = vrot.slane %v7961_v10, 2 }
 0x6fc   : > { %v7963_v36 = vadd.f32 %v7962_v27, %v7961_v10  ;;  %v21819_v27 = vld [vmem:[#allocation28_spill] sm:$0xff] }
 0x6fe   : > { %v7964_v1 = vrot.slane %v7963_v36, 1 }
 0x700   : > { %v7965_v21 = vadd.f32 %v7964_v1, %v7963_v36 }
 0x702   : > { %v7967_v48 = vmul.f32 0.00390625, %v7965_v21 }
 0x704   : > { %15386 = vmatmul.mubr.msk.f32.vlgmr.msra.gmra.mrb[32].mxu0 %vm759_vm2, %v7967_v48  ;;  %v21826_v48 = vld [vmem:[#allocation35_spill] sm:$0xff] }
 0x7d7   : > { %v8046_v45 = vpop.f32.mrb[32].mxu0 }
 0x7d8   : > { %v8047_v2 = vadd.f32 %v8046_v45, %v7976_v40  ;;  %v15387_v49 = vpop.f32.mrb[33].mxu0  ;;  %v21827_v45 = vld [vmem:[#allocation36_spill] sm:$0xff] }
 0x7d9   : > { %v21828_v49 = vld [vmem:[#allocation37_spill] sm:$0xff] }
 0x7da   : > { %v8050_v43 = vmax.f32 %v8047_v2, 0.0 }
 0x7dc   : > { %15391 = vmatmul.mubr.msk.f32.vlgmr.msra.gmra.mrb[32].mxu1 %vm8053_vm5, %v8050_v43 }
 0x8af   : > { %v8127_v13 = vpop.f32.mrb[32].mxu1 }
 0x8b0   : > { %v8128_v32 = vadd.f32 %v8127_v13, %v8052_v5  ;;  %v15392_v31 = vpop.f32.mrb[33].mxu1  ;;  %v21829_v5 = vld [vmem:[#allocation38_spill] sm:$0xff] }
 0x8b2   : > { %v12827_v62 = vmul.f32 -1.442695, %v8128_v32  ;;  %v21830_v32 = vld [vmem:[#allocation39_spill] sm:$0xff] }
 0x8b4   : > { %17325 = vpow2.f32 %v12827_v62  ;;  %v21831_v62 = vld [vmem:[#allocation40_spill] sm:$0xff] }
 0x8be   : > { %v17326_v18 = vpop.eup %17325 }
 0x8bf   : > { %v8134_v47 = vadd.f32 1.0, %v17326_v18 }
 0x8c1   : > { %17327 = vrcp.f32 %v8134_v47  ;;  %v21832_v47 = vld [vmem:[#allocation41_spill] sm:$0xff] }
 0x8cb   : > { %v17328_v23 = vpop.eup %17327 }
 0x8cc   : > { %v8140_v3 = vrot.slane %v17328_v23, %v8139_v14  ;;  %v21834_v23 = vld [vmem:[#allocation43_spill] sm:$0xff] }
 0x8ce   : > { %v8141_v20 = vmul.f32 %v8140_v3, %v19972_v50  ;;  %v8142_v26 = vmul.f32 %v8140_v3, %v19969_v41  ;;  %v8143_v51 = vmul.f32 %v8140_v3, %v19982_v8  ;;  %v8144_v38 = vmul.f32 %v8140_v3, %v19979_v22 }
 0x8cf   : > { %v8145_v19 = vmul.f32 %v8140_v3, %v19992_v4  ;;  %v8146_v54 = vmul.f32 %v8140_v3, %v19989_v15  ;;  %v8147_v63 = vmul.f32 %v8140_v3, %v20002_v60  ;;  %v8148_v33 = vmul.f32 %v8140_v3, %v19999_v30 }
 0x8d0   : > { %v8149_v37 = vmul.f32 %v8140_v3, %v20012_v11  ;;  %v8150_v10 = vmul.f32 %v8140_v3, %v20009_v7  ;;  %v8151_v50 = vmul.f32 %v8140_v3, %v20022_v0  ;;  %v8152_v41 = vmul.f32 %v8140_v3, %v20019_v17 }
 0x8d1   : > { %v8153_v8 = vmul.f32 %v8140_v3, %v20032_v53  ;;  %v8154_v22 = vmul.f32 %v8140_v3, %v20029_v57  ;;  %v8155_v4 = vmul.f32 %v8140_v3, %v20042_v24  ;;  %v8156_v15 = vmul.f32 %v8140_v3, %v20039_v46 }
 0x8d2   : > { %v8157_v60 = vmul.f32 %v8140_v3, %v20052_v56  ;;  %v8158_v30 = vmul.f32 %v8140_v3, %v20049_v42  ;;  %v8159_v11 = vmul.f32 %v8140_v3, %v20062_v58  ;;  %v8160_v7 = vmul.f32 %v8140_v3, %v20059_v9 }
 0x8d3   : > { %v8161_v0 = vmul.f32 %v8140_v3, %v20072_v12  ;;  %v8162_v17 = vmul.f32 %v8140_v3, %v20069_v6  ;;  %v8163_v53 = vmul.f32 %v8140_v3, %v20082_v16  ;;  %v8164_v57 = vmul.f32 %v8140_v3, %v20079_v28  ;;  %v21820_v28 = vld [vmem:[#allocation29_spill] sm:$0xff] }
 0x8d4   : > { %v8165_v24 = vmul.f32 %v8140_v3, %v20092_v25  ;;  %v8166_v46 = vmul.f32 %v8140_v3, %v20089_v44  ;;  %v8167_v56 = vmul.f32 %v8140_v3, %v20102_v29  ;;  %v8168_v42 = vmul.f32 %v8140_v3, %v20099_v35  ;;  %v21821_v25 = vld [vmem:[#allocation30_spill] sm:$0xff]  ;;  %v21822_v29 = vld [vmem:[#allocation31_spill] sm:$0xff]  ;;  %v21823_v35 = vld [vmem:[#allocation32_spill] sm:$0xff] }
 0x8d5   : > { %v8169_v58 = vmul.f32 %v8140_v3, %v20112_v34  ;;  %v8170_v9 = vmul.f32 %v8140_v3, %v20109_v61  ;;  %v8171_v12 = vmul.f32 %v8140_v3, %v20122_v55  ;;  %v8172_v6 = vmul.f32 %v8140_v3, %v20119_v52  ;;  %v21824_v61 = vld [vmem:[#allocation33_spill] sm:$0xff]  ;;  %v21825_v55 = vld [vmem:[#allocation34_spill] sm:$0xff] }
 0x8d6   : > { %v20172_v16 = vadd.f32 %v8141_v20, %v21819_v27  ;;  %v20175_v36 = vadd.f32 %v8142_v26, %v21820_v28  ;;  %v20178_v44 = vadd.f32 %v8143_v51, %v21821_v25  ;;  %v20181_v1 = vadd.f32 %v8144_v38, %v21822_v29  ;;  %v21835_v20 = vld [vmem:[#allocation44_spill] sm:$0xff]  ;;  %v21836_v51 = vld [vmem:[#allocation45_spill] sm:$0xff] }
 0x8d7   : > { %v20184_v34 = vadd.f32 %v8145_v19, %v21823_v35  ;;  %v20187_v21 = vadd.f32 %v8146_v54, %v21824_v61  ;;  %v20190_v52 = vadd.f32 %v8147_v63, %v21825_v55  ;;  %v20193_v40 = vadd.f32 %v8148_v33, %v21826_v48  ;;  %v21837_v19 = vld [vmem:[#allocation46_spill] sm:$0xff]  ;;  %v21838_v63 = vld [vmem:[#allocation47_spill] sm:$0xff]  ;;  %v21847_v27 = vld [vmem:[#allocation56_spill] sm:$0xff] }
 0x8d8   : > { %v20196_v2 = vadd.f32 %v8149_v37, %v21827_v45  ;;  %v20199_v43 = vadd.f32 %v8150_v10, %v21828_v49  ;;  %v20202_v13 = vadd.f32 %v8151_v50, %v21829_v5  ;;  %v20205_v31 = vadd.f32 %v8152_v41, %v21830_v32  ;;  %8205 = vst.msk [vmem:[#allocation2] sm:$0xff] %vm759_vm2, %v20172_v16  ;;  %v21839_v37 = vld [vmem:[#allocation48_spill] sm:$0xff]  ;;  %v21840_v50 = vld [vmem:[#allocation49_spill] sm:$0xff]  ;;  %v21849_v35 = vld [vmem:[#allocation67_spill] sm:$0xff] }
 0x8d9   : > { %8206 = vst.msk [vmem:[#allocation2 + $0x8] sm:$0xff] %vm759_vm2, %v20175_v36  ;;  %8207 = vst.msk [vmem:[#allocation2 + $0x10] sm:$0xff] %vm759_vm2, %v20178_v44  ;;  %v20216_v18 = vadd.f32 %v8153_v8, %v21831_v62  ;;  %v20219_v39 = vadd.f32 %v8154_v22, %v21832_v47  ;;  %v20222_v14 = vadd.f32 %v8155_v4, %v21833_v59  ;;  %v21841_v8 = vld [vmem:[#allocation50_spill] sm:$0xff]  ;;  %v21842_v4 = vld [vmem:[#allocation51_spill] sm:$0xff] }
 0x8da   : > { %8208 = vst.msk [vmem:[#allocation2 + $0x18] sm:$0xff] %vm759_vm2, %v20181_v1  ;;  %v20225_v3 = vadd.f32 %v8156_v15, %v21834_v23  ;;  %8209 = vst.msk [vmem:[#allocation2 + $0x20] sm:$0xff] %vm759_vm2, %v20184_v34  ;;  %v8189_v26 = vadd.f32 %v8157_v60, %v21835_v20  ;;  %v8190_v38 = vadd.f32 %v8158_v30, %v21836_v51  ;;  %v21843_v60 = vld [vmem:[#allocation52_spill] sm:$0xff]  ;;  %v21848_v25 = vld [vmem:[#allocation57_spill] sm:$0xff] }
 0x8db   : > { %8210 = vst.msk [vmem:[#allocation2 + $0x28] sm:$0xff] %vm759_vm2, %v20187_v21  ;;  %8211 = vst.msk [vmem:[#allocation2 + $0x30] sm:$0xff] %vm759_vm2, %v20190_v52  ;;  %v8191_v54 = vadd.f32 %v8159_v11, %v21837_v19  ;;  %v8192_v33 = vadd.f32 %v8160_v7, %v21838_v63  ;;  %v8193_v10 = vadd.f32 %v8161_v0, %v21839_v37  ;;  %v21844_v11 = vld [vmem:[#allocation53_spill] sm:$0xff]  ;;  %v21845_v0 = vld [vmem:[#allocation54_spill] sm:$0xff] }
 0x8dc   : > { %8212 = vst.msk [vmem:[#allocation2 + $0x38] sm:$0xff] %vm759_vm2, %v20193_v40  ;;  %8213 = vst.msk [vmem:[#allocation2 + $0x40] sm:$0xff] %vm759_vm2, %v20196_v2  ;;  %v8194_v41 = vadd.f32 %v8162_v17, %v21840_v50  ;;  %v8195_v22 = vadd.f32 %v8163_v53, %v21841_v8  ;;  %v8196_v15 = vadd.f32 %v8164_v57, %v21842_v4  ;;  %v21846_v53 = vld [vmem:[#allocation55_spill] sm:$0xff]  ;;  %v21850_v61 = vld [vmem:[#allocation68_spill] sm:$0xff] }
 0x8dd   : > { %8214 = vst.msk [vmem:[#allocation2 + $0x48] sm:$0xff] %vm759_vm2, %v20199_v43  ;;  %8215 = vst.msk [vmem:[#allocation2 + $0x50] sm:$0xff] %vm759_vm2, %v20202_v13  ;;  %v8197_v30 = vadd.f32 %v8165_v24, %v21843_v60  ;;  %v8198_v7 = vadd.f32 %v8166_v46, %v21844_v11  ;;  %v8199_v17 = vadd.f32 %v8167_v56, %v21845_v0 }
 0x8de   : > { %8216 = vst.msk [vmem:[#allocation2 + $0x58] sm:$0xff] %vm759_vm2, %v20205_v31  ;;  %8217 = vst.msk [vmem:[#allocation2 + $0x60] sm:$0xff] %vm759_vm2, %v20216_v18  ;;  %v8200_v57 = vadd.f32 %v8168_v42, %v21846_v53  ;;  %v8201_v28 = vadd.f32 %v8169_v58, %v21847_v27  ;;  %v8202_v29 = vadd.f32 %v8170_v9, %v21848_v25 }
 0x8df   : > { %8218 = vst.msk [vmem:[#allocation2 + $0x68] sm:$0xff] %vm759_vm2, %v20219_v39  ;;  %8219 = vst.msk [vmem:[#allocation2 + $0x70] sm:$0xff] %vm759_vm2, %v20222_v14  ;;  %v8203_v24 = vadd.f32 %v8171_v12, %v21849_v35  ;;  %v8204_v46 = vadd.f32 %v8172_v6, %v21850_v61 }
 0x8e0   : > { %8220 = vst.msk [vmem:[#allocation2 + $0x78] sm:$0xff] %vm759_vm2, %v20225_v3  ;;  %8221 = vst.msk [vmem:[#allocation2 + $0x80] sm:$0xff] %vm759_vm2, %v8189_v26 }
 0x8e1   : > { %8222 = vst.msk [vmem:[#allocation2 + $0x88] sm:$0xff] %vm759_vm2, %v8190_v38  ;;  %8223 = vst.msk [vmem:[#allocation2 + $0x90] sm:$0xff] %vm759_vm2, %v8191_v54 }
 0x8e2   : > { %8224 = vst.msk [vmem:[#allocation2 + $0x98] sm:$0xff] %vm759_vm2, %v8192_v33  ;;  %8225 = vst.msk [vmem:[#allocation2 + $0xa0] sm:$0xff] %vm759_vm2, %v8193_v10  ;;  %8240 = sbr.rel (%p12828_p12) target bundleno = 2805 (0xaf5), region = 88 }
 0x8e3   : > { %8226 = vst.msk [vmem:[#allocation2 + $0xa8] sm:$0xff] %vm759_vm2, %v8194_v41  ;;  %8227 = vst.msk [vmem:[#allocation2 + $0xb0] sm:$0xff] %vm759_vm2, %v8195_v22 }
 0x8e4   : > { %8228 = vst.msk [vmem:[#allocation2 + $0xb8] sm:$0xff] %vm759_vm2, %v8196_v15  ;;  %8229 = vst.msk [vmem:[#allocation2 + $0xc0] sm:$0xff] %vm759_vm2, %v8197_v30 }
 0x8e5   : > { %8230 = vst.msk [vmem:[#allocation2 + $0xc8] sm:$0xff] %vm759_vm2, %v8198_v7  ;;  %8231 = vst.msk [vmem:[#allocation2 + $0xd0] sm:$0xff] %vm759_vm2, %v8199_v17 }
 0x8e6   : > { %8232 = vst.msk [vmem:[#allocation2 + $0xd8] sm:$0xff] %vm759_vm2, %v8200_v57  ;;  %8233 = vst.msk [vmem:[#allocation2 + $0xe0] sm:$0xff] %vm759_vm2, %v8201_v28 }
 0x8e7   : > { %8234 = vst.msk [vmem:[#allocation2 + $0xe8] sm:$0xff] %vm759_vm2, %v8202_v29  ;;  %8235 = vst.msk [vmem:[#allocation2 + $0xf0] sm:$0xff] %vm759_vm2, %v8203_v24 }
 0x8e8   : > { %8236 = vst.msk [vmem:[#allocation2 + $0xf8] sm:$0xff] %vm759_vm2, %v8204_v46 }
 0x8e9   : > { %v8346_v56 = vld [vmem:[#allocation10 + $0x40] sm:$0xff]  ;;  %v8347_v42 = vld [vmem:[#allocation10 + $0x48] sm:$0xff]  ;;  %8241 = vst.msk [vmem:[#allocation3 + $0x19] sm:$0xff] %vm759_vm2, %v20172_v16  ;;  %8242 = vst.msk [vmem:[#allocation3 + $0x21] sm:$0xff] %vm759_vm2, %v20175_v36  ;;  %s21929_s9 = sld [smem:[#allocation145_spill]] }
 0x8ea   : > { %v9817_v58 = vld [vmem:[#allocation10 + $0x100] sm:$0xff]  ;;  %8243 = vst.msk [vmem:[#allocation3 + $0x31] sm:$0xff] %vm759_vm2, %v20178_v44  ;;  %8244 = vst.msk [vmem:[#allocation3 + $0x39] sm:$0xff] %vm759_vm2, %v20181_v1  ;;  %v16269_v9 = vpack.c.bf16 %v8347_v42, %v8346_v56  ;;  %v9818_v12 = vld [vmem:[#allocation10 + $0x108] sm:$0xff] }
 0x8eb   : > { %8245 = vst.msk [vmem:[#allocation3 + $0x49] sm:$0xff] %vm759_vm2, %v20184_v34  ;;  %8246 = vst.msk [vmem:[#allocation3 + $0x51] sm:$0xff] %vm759_vm2, %v20187_v21  ;;  %v8348_v6 = vld [vmem:[#allocation10 + $0x50] sm:$0xff]  ;;  %v8349_v16 = vld [vmem:[#allocation10 + $0x58] sm:$0xff]  ;;  %v20332_v36 = vpack.c.bf16 %v9818_v12, %v9817_v58 }
 0x8ec   : > { %8247 = vst.msk [vmem:[#allocation3 + $0x61] sm:$0xff] %vm759_vm2, %v20190_v52  ;;  %8248 = vst.msk [vmem:[#allocation3 + $0x69] sm:$0xff] %vm759_vm2, %v20193_v40  ;;  %v16273_v44 = vpack.c.bf16 %v8349_v16, %v8348_v6  ;;  %v9819_v1 = vld [vmem:[#allocation10 + $0x110] sm:$0xff]  ;;  %v9820_v34 = vld [vmem:[#allocation10 + $0x118] sm:$0xff]  ;;  %16270 = vmatprep.subr.bf16.mxu1 %v16269_v9 }
 0x8ed   : > { %8249 = vst.msk [vmem:[#allocation3 + $0x79] sm:$0xff] %vm759_vm2, %v20196_v2  ;;  %8250 = vst.msk [vmem:[#allocation3 + $0x81] sm:$0xff] %vm759_vm2, %v20199_v43  ;;  %v8350_v21 = vld [vmem:[#allocation10 + $0x60] sm:$0xff]  ;;  %v20334_v55 = vpack.c.bf16 %v9820_v34, %v9819_v1  ;;  %v8351_v52 = vld [vmem:[#allocation10 + $0x68] sm:$0xff]  ;;  %16334 = vmatprep.subr.bf16.mxu0 %v20332_v36  ;;  %16272 = vmatpush3.bf16.msra.mxu1 %v16269_v9 }
 0x8ee   : > { %8251 = vst.msk [vmem:[#allocation3 + $0x91] sm:$0xff] %vm759_vm2, %v20202_v13  ;;  %8252 = vst.msk [vmem:[#allocation3 + $0x99] sm:$0xff] %vm759_vm2, %v20205_v31  ;;  %v9821_v48 = vld [vmem:[#allocation10 + $0x120] sm:$0xff]  ;;  %v9822_v40 = vld [vmem:[#allocation10 + $0x128] sm:$0xff]  ;;  %16336 = vmatpush3.bf16.msra.mxu0 %v20332_v36  ;;  %16274 = vmatprep.subr.bf16.mxu1 %v16273_v44  ;;  %v16277_v45 = vpack.c.bf16 %v8351_v52, %v8350_v21 }
 0x8ef   : > { %8253 = vst.msk [vmem:[#allocation3 + $0xa9] sm:$0xff] %vm759_vm2, %v20216_v18  ;;  %8254 = vst.msk [vmem:[#allocation3 + $0xb1] sm:$0xff] %vm759_vm2, %v20219_v39  ;;  %v8313_v2 = vld [vmem:[#allocation3 + $0x1] sm:$0xff]  ;;  %16338 = vmatprep.subr.bf16.mxu0 %v20334_v55  ;;  %v20339_v49 = vpack.c.bf16 %v9822_v40, %v9821_v48  ;;  %v8305_v47 = vld [vmem:[#allocation10] sm:$0xff] }
 0x8f0   : > { %8255 = vst.msk [vmem:[#allocation3 + $0xc1] sm:$0xff] %vm759_vm2, %v20222_v14  ;;  %8256 = vst.msk [vmem:[#allocation3 + $0xc9] sm:$0xff] %vm759_vm2, %v20225_v3  ;;  %v8352_v43 = vld [vmem:[#allocation10 + $0x70] sm:$0xff]  ;;  %v8353_v5 = vld [vmem:[#allocation10 + $0x78] sm:$0xff]  ;;  %15409 = vmatprep.mubr.msk.f32.mxu1 %vm759_vm2, %v8313_v2 }
 0x8f1   : > { %8257 = vst.msk [vmem:[#allocation3 + $0xd9] sm:$0xff] %vm759_vm2, %v8189_v26  ;;  %8258 = vst.msk [vmem:[#allocation3 + $0xe1] sm:$0xff] %vm759_vm2, %v8190_v38  ;;  %v9823_v13 = vld [vmem:[#allocation10 + $0x130] sm:$0xff]  ;;  %v9824_v32 = vld [vmem:[#allocation10 + $0x138] sm:$0xff]  ;;  %16276 = vmatpush3.bf16.msra.mxu1 %v16273_v44  ;;  %v16281_v62 = vpack.c.bf16 %v8353_v5, %v8352_v43 }
 0x8f2   : > { %8259 = vst.msk [vmem:[#allocation3 + $0xf1] sm:$0xff] %vm759_vm2, %v8191_v54  ;;  %8260 = vst.msk [vmem:[#allocation3 + $0xf9] sm:$0xff] %vm759_vm2, %v8192_v33  ;;  %v9784_v31 = vld [vmem:[#allocation3 + $0x19] sm:$0xff]  ;;  %16340 = vmatpush3.bf16.msra.mxu0 %v20334_v55  ;;  %16278 = vmatprep.subr.bf16.mxu1 %v16277_v45  ;;  %v20345_v18 = vpack.c.bf16 %v9824_v32, %v9823_v13  ;;  %v10211_v59 = vld [vmem:[#allocation10 + $0x140] sm:$0xff] }
 0x8f3   : > { %8261 = vst.msk [vmem:[#allocation3 + $0x109] sm:$0xff] %vm759_vm2, %v8193_v10  ;;  %8262 = vst.msk [vmem:[#allocation3 + $0x111] sm:$0xff] %vm759_vm2, %v8194_v41  ;;  %15665 = vmatprep.mubr.msk.f32.mxu0 %vm759_vm2, %v9784_v31  ;;  %16342 = vmatprep.subr.bf16.mxu0 %v20339_v49  ;;  %v8306_v39 = vld [vmem:[#allocation10 + $0x8] sm:$0xff]  ;;  %v10213_v20 = vld [vmem:[#allocation10 + $0x150] sm:$0xff] }
 0x8f4   : > { %8263 = vst.msk [vmem:[#allocation3 + $0x121] sm:$0xff] %vm759_vm2, %v8195_v22  ;;  %8264 = vst.msk [vmem:[#allocation3 + $0x129] sm:$0xff] %vm759_vm2, %v8196_v15  ;;  %v10212_v14 = vld [vmem:[#allocation10 + $0x148] sm:$0xff]  ;;  %v16285_v23 = vpack.c.bf16 %v8306_v39, %v8305_v47  ;;  %v10214_v26 = vld [vmem:[#allocation10 + $0x158] sm:$0xff] }
 0x8f5   : > { %8265 = vst.msk [vmem:[#allocation3 + $0x139] sm:$0xff] %vm759_vm2, %v8197_v30  ;;  %8266 = vst.msk [vmem:[#allocation3 + $0x141] sm:$0xff] %vm759_vm2, %v8198_v7  ;;  %16280 = vmatpush3.bf16.msra.mxu1 %v16277_v45  ;;  %v16349_v3 = vpack.c.bf16 %v10212_v14, %v10211_v59  ;;  %v8314_v51 = vld [vmem:[#allocation3 + $0x9] sm:$0xff]  ;;  %v8307_v38 = vld [vmem:[#allocation10 + $0x10] sm:$0xff]  ;;  %v16353_v63 = vpack.c.bf16 %v10214_v26, %v10213_v20 }
 0x8f6   : > { %8267 = vst.msk [vmem:[#allocation3 + $0x151] sm:$0xff] %vm759_vm2, %v8199_v17  ;;  %8268 = vst.msk [vmem:[#allocation3 + $0x159] sm:$0xff] %vm759_vm2, %v8200_v57  ;;  %16344 = vmatpush3.bf16.msra.mxu0 %v20339_v49  ;;  %16282 = vmatprep.subr.bf16.mxu1 %v16281_v62  ;;  %v8308_v19 = vld [vmem:[#allocation10 + $0x18] sm:$0xff]  ;;  %v20351_v33 = vld [vmem:[#allocation3 + $0x31] sm:$0xff] }
 0x8f7   : > { %8269 = vst.msk [vmem:[#allocation3 + $0x169] sm:$0xff] %vm759_vm2, %v8201_v28  ;;  %8270 = vst.msk [vmem:[#allocation3 + $0x171] sm:$0xff] %vm759_vm2, %v8202_v29  ;;  %16346 = vmatprep.subr.bf16.mxu0 %v20345_v18  ;;  %v9785_v54 = vld [vmem:[#allocation3 + $0x21] sm:$0xff]  ;;  %v16289_v37 = vpack.c.bf16 %v8308_v19, %v8307_v38  ;;  %v10215_v10 = vld [vmem:[#allocation10 + $0x160] sm:$0xff] }
 0x8f8   : > { %8271 = vst.msk [vmem:[#allocation3 + $0x181] sm:$0xff] %vm759_vm2, %v8203_v24  ;;  %8272 = vst.msk [vmem:[#allocation3 + $0x189] sm:$0xff] %vm759_vm2, %v8204_v46  ;;  %v10216_v50 = vld [vmem:[#allocation10 + $0x168] sm:$0xff]  ;;  %v8309_v41 = vld [vmem:[#allocation10 + $0x20] sm:$0xff] }
 0x8f9   : > { %21851 = vst [vmem:[#allocation96_spill] sm:$0xff] %v20334_v55  ;;  %21852 = vst [vmem:[#allocation97_spill] sm:$0xff] %v20339_v49  ;;  %16284 = vmatpush3.bf16.msra.mxu1 %v16281_v62  ;;  %v8310_v8 = vld [vmem:[#allocation10 + $0x28] sm:$0xff]  ;;  %v20359_v4 = vld [vmem:[#allocation3 + $0x49] sm:$0xff]  ;;  %v16357_v15 = vpack.c.bf16 %v10216_v50, %v10215_v10 }
 0x8fa   : > { %21853 = vst [vmem:[#allocation98_spill] sm:$0xff] %v20345_v18  ;;  %16348 = vmatpush3.bf16.msra.mxu0 %v20345_v18  ;;  %16286 = vmatprep.subr.bf16.mxu1 %v16285_v23  ;;  %v20355_v22 = vld [vmem:[#allocation3 + $0x39] sm:$0xff]  ;;  %v10218_v30 = vld [vmem:[#allocation10 + $0x178] sm:$0xff]  ;;  %v16293_v11 = vpack.c.bf16 %v8310_v8, %v8309_v41  ;;  %v20368_v17 = vld [vmem:[#allocation3 + $0x51] sm:$0xff] }
 0x8fb   : > { %16350 = vmatprep.subr.bf16.mxu0 %v16349_v3  ;;  %v10217_v60 = vld [vmem:[#allocation10 + $0x170] sm:$0xff]  ;;  %v8312_v0 = vld [vmem:[#allocation10 + $0x38] sm:$0xff]  ;;  %v10605_v27 = vld [vmem:[#allocation10 + $0x180] sm:$0xff] }
 0x8fc   : > { %15410 = vmatmul.mubr.msk.f32.vlgmr.msra.gmra.mrb[0].mxu1 %vm759_vm2, %v8314_v51  ;;  %v8311_v7 = vld [vmem:[#allocation10 + $0x30] sm:$0xff]  ;;  %v16361_v57 = vpack.c.bf16 %v10218_v30, %v10217_v60  ;;  %v10606_v28 = vld [vmem:[#allocation10 + $0x188] sm:$0xff]  ;;  %v20380_v29 = vld [vmem:[#allocation3 + $0x69] sm:$0xff] }
 0x8fd   : > { %15666 = vmatmul.mubr.msk.f32.vlgmr.msra.gmra.mrb[0].mxu0 %vm759_vm2, %v9785_v54  ;;  %16288 = vmatpush3.bf16.msra.mxu1 %v16285_v23  ;;  %v20370_v53 = vld [vmem:[#allocation3 + $0x61] sm:$0xff]  ;;  %v16297_v25 = vpack.c.bf16 %v8312_v0, %v8311_v7  ;;  %v9029_v35 = vld [vmem:[#allocation10 + $0x80] sm:$0xff]  ;;  %v9030_v24 = vld [vmem:[#allocation10 + $0x88] sm:$0xff]  ;;  %v16365_v46 = vpack.c.bf16 %v10606_v28, %v10605_v27 }
 0x8fe   : > { %16352 = vmatpush3.bf16.msra.mxu0 %v16349_v3  ;;  %15412 = vmatprep.mubr.msk.f32.mxu1 %vm759_vm2, %v9784_v31  ;;  %v20382_v61 = vld [vmem:[#allocation3 + $0x79] sm:$0xff]  ;;  %v20386_v56 = vpack.c.bf16 %v9030_v24, %v9029_v35  ;;  %v20394_v42 = vld [vmem:[#allocation3 + $0x81] sm:$0xff]  ;;  %v20396_v58 = vld [vmem:[#allocation3 + $0x91] sm:$0xff] }
 0x8ff   : > { %15668 = vmatprep.mubr.msk.f32.mxu0 %vm759_vm2, %v20351_v33  ;;  %16354 = vmatprep.subr.bf16.mxu0 %v16353_v63  ;;  %v20407_v9 = vld [vmem:[#allocation3 + $0x99] sm:$0xff]  ;;  %v20409_v12 = vld [vmem:[#allocation3 + $0xa9] sm:$0xff]  ;;  %v20419_v6 = vld [vmem:[#allocation3 + $0xb1] sm:$0xff] }
 0x900   : > { %15413 = vmatmul.mubr.msk.f32.gmra.mrb[2].mxu1 %vm759_vm2, %v9785_v54  ;;  %16290 = vmatprep.subr.bf16.mxu1 %v16289_v37  ;;  %v20421_v16 = vld [vmem:[#allocation3 + $0xc1] sm:$0xff]  ;;  %v20431_v44 = vld [vmem:[#allocation3 + $0xc9] sm:$0xff]  ;;  %v20445_v48 = vld [vmem:[#allocation3 + $0xd9] sm:$0xff] }
 0x901   : > { %15669 = vmatmul.mubr.msk.f32.gmra.mrb[2].mxu0 %vm759_vm2, %v20355_v22  ;;  %15415 = vmatprep.mubr.msk.f32.mxu1 %vm759_vm2, %v20351_v33  ;;  %21854 = vst [vmem:[#allocation99_spill] sm:$0xff] %v20421_v16  ;;  %21855 = vst [vmem:[#allocation100_spill] sm:$0xff] %v20431_v44  ;;  %v20433_v1 = vld [vmem:[#allocation3 + $0x1a] sm:$0xff]  ;;  %v10608_v21 = vld [vmem:[#allocation10 + $0x198] sm:$0xff] }
 0x902   : > { %15671 = vmatprep.mubr.msk.f32.mxu0 %vm759_vm2, %v20359_v4  ;;  %16356 = vmatpush3.bf16.msra.mxu0 %v16353_v63  ;;  %v10607_v34 = vld [vmem:[#allocation10 + $0x190] sm:$0xff]  ;;  %21856 = vst [vmem:[#allocation101_spill] sm:$0xff] %v20445_v48  ;;  %v20447_v40 = vld [vmem:[#allocation3 + $0x32] sm:$0xff]  ;;  %v20463_v31 = vld [vmem:[#allocation3 + $0x4a] sm:$0xff] }
 0x903   : > { %16358 = vmatprep.subr.bf16.mxu0 %v16357_v15  ;;  %16292 = vmatpush3.bf16.msra.mxu1 %v16289_v37  ;;  %v20443_v52 = vld [vmem:[#allocation3 + $0x22] sm:$0xff]  ;;  %v16369_v45 = vpack.c.bf16 %v10608_v21, %v10607_v34  ;;  %v10609_v2 = vld [vmem:[#allocation10 + $0x1a0] sm:$0xff]  ;;  %v10610_v43 = vld [vmem:[#allocation10 + $0x1a8] sm:$0xff] }
 0x904   : > { %15416 = vmatmul.mubr.msk.f32.gmra.mrb[4].mxu1 %vm759_vm2, %v20355_v22  ;;  %16294 = vmatprep.subr.bf16.mxu1 %v16293_v11  ;;  %v20455_v5 = vld [vmem:[#allocation3 + $0xe1] sm:$0xff]  ;;  %v20461_v32 = vld [vmem:[#allocation3 + $0xf1] sm:$0xff]  ;;  %v16373_v62 = vpack.c.bf16 %v10610_v43, %v10609_v2  ;;  %v20471_v59 = vld [vmem:[#allocation3 + $0xf9] sm:$0xff] }
 0x905   : > { %15672 = vmatmul.mubr.msk.f32.gmra.mrb[4].mxu0 %vm759_vm2, %v20368_v17  ;;  %15418 = vmatprep.mubr.msk.f32.mxu1 %vm759_vm2, %v20359_v4  ;;  %21857 = vst [vmem:[#allocation102_spill] sm:$0xff] %v20455_v5  ;;  %v20459_v13 = vld [vmem:[#allocation3 + $0x3a] sm:$0xff]  ;;  %21858 = vst [vmem:[#allocation103_spill] sm:$0xff] %v20461_v32  ;;  %v10612_v39 = vld [vmem:[#allocation10 + $0x1b8] sm:$0xff] }
 0x906   : > { %15674 = vmatprep.mubr.msk.f32.mxu0 %vm759_vm2, %v20370_v53  ;;  %16360 = vmatpush3.bf16.msra.mxu0 %v16357_v15  ;;  %v10611_v47 = vld [vmem:[#allocation10 + $0x1b0] sm:$0xff]  ;;  %21859 = vst [vmem:[#allocation104_spill] sm:$0xff] %v20471_v59  ;;  %v20475_v14 = vld [vmem:[#allocation3 + $0x52] sm:$0xff]  ;;  %v20477_v23 = vld [vmem:[#allocation3 + $0x109] sm:$0xff] }
 0x907   : > { %16362 = vmatprep.subr.bf16.mxu0 %v16361_v57  ;;  %16296 = vmatpush3.bf16.msra.mxu1 %v16293_v11  ;;  %21860 = vst [vmem:[#allocation105_spill] sm:$0xff] %v20477_v23  ;;  %v20479_v3 = vld [vmem:[#allocation3 + $0x62] sm:$0xff]  ;;  %v16377_v20 = vpack.c.bf16 %v10612_v39, %v10611_v47  ;;  %v10999_v26 = vld [vmem:[#allocation10 + $0x1c0] sm:$0xff]  ;;  %v11000_v51 = vld [vmem:[#allocation10 + $0x1c8] sm:$0xff] }
 0x908   : > { %15419 = vmatmul.mubr.msk.f32.gmra.mrb[6].mxu1 %vm759_vm2, %v20368_v17  ;;  %16298 = vmatprep.subr.bf16.mxu1 %v16297_v25  ;;  %v20487_v38 = vld [vmem:[#allocation3 + $0x111] sm:$0xff]  ;;  %v20493_v54 = vld [vmem:[#allocation3 + $0x121] sm:$0xff]  ;;  %v20497_v37 = vpack.c.bf16 %v11000_v51, %v10999_v26  ;;  %v20505_v10 = vld [vmem:[#allocation3 + $0x129] sm:$0xff] }
 0x909   : > { %15675 = vmatmul.mubr.msk.f32.gmra.mrb[6].mxu0 %vm759_vm2, %v20380_v29  ;;  %15421 = vmatprep.mubr.msk.f32.mxu1 %vm759_vm2, %v20370_v53  ;;  %21861 = vst [vmem:[#allocation106_spill] sm:$0xff] %v20487_v38  ;;  %v20491_v19 = vld [vmem:[#allocation3 + $0x6a] sm:$0xff]  ;;  %21862 = vst [vmem:[#allocation107_spill] sm:$0xff] %v20493_v54  ;;  %v20495_v63 = vld [vmem:[#allocation3 + $0x7a] sm:$0xff] }
 0x90a   : > { %15677 = vmatprep.mubr.msk.f32.mxu0 %vm759_vm2, %v20382_v61  ;;  %16364 = vmatpush3.bf16.msra.mxu0 %v16361_v57  ;;  %21863 = vst [vmem:[#allocation108_spill] sm:$0xff] %v20505_v10  ;;  %v20509_v50 = vld [vmem:[#allocation3 + $0x82] sm:$0xff]  ;;  %v20511_v41 = vld [vmem:[#allocation3 + $0x139] sm:$0xff]  ;;  %v20528_v30 = vld [vmem:[#allocation3 + $0x151] sm:$0xff] }
 0x90b   : > { %16366 = vmatprep.subr.bf16.mxu0 %v16365_v46  ;;  %16300 = vmatpush3.bf16.msra.mxu1 %v16297_v25  ;;  %21864 = vst [vmem:[#allocation109_spill] sm:$0xff] %v20511_v41  ;;  %v20513_v8 = vld [vmem:[#allocation3 + $0x92] sm:$0xff]  ;;  %v20522_v15 = vld [vmem:[#allocation3 + $0x141] sm:$0xff]  ;;  %21866 = vst [vmem:[#allocation111_spill] sm:$0xff] %v20528_v30 }
 0x90c   : > { %15422 = vmatmul.mubr.msk.f32.gmra.mrb[8].mxu1 %vm759_vm2, %v20380_v29  ;;  %16302 = vmatprep.subr.bf16.mxu1 %v20386_v56  ;;  %21865 = vst [vmem:[#allocation110_spill] sm:$0xff] %v20522_v15  ;;  %v20526_v60 = vld [vmem:[#allocation3 + $0x9a] sm:$0xff]  ;;  %v20530_v11 = vld [vmem:[#allocation3 + $0xaa] sm:$0xff]  ;;  %v20542_v0 = vld [vmem:[#allocation3 + $0xb2] sm:$0xff] }
 0x90d   : > { %15678 = vmatmul.mubr.msk.f32.gmra.mrb[8].mxu0 %vm759_vm2, %v20394_v42  ;;  %15424 = vmatprep.mubr.msk.f32.mxu1 %vm759_vm2, %v20382_v61  ;;  %v20538_v7 = vld [vmem:[#allocation3 + $0x159] sm:$0xff]  ;;  %v20544_v57 = vld [vmem:[#allocation3 + $0x169] sm:$0xff]  ;;  %v20554_v28 = vld [vmem:[#allocation3 + $0x171] sm:$0xff] }
 0x90e   : > { %15680 = vmatprep.mubr.msk.f32.mxu0 %vm759_vm2, %v20396_v58  ;;  %21867 = vst [vmem:[#allocation112_spill] sm:$0xff] %v20538_v7  ;;  %21868 = vst [vmem:[#allocation113_spill] sm:$0xff] %v20544_v57  ;;  %v20546_v27 = vld [vmem:[#allocation3 + $0xc2] sm:$0xff]  ;;  %v20558_v25 = vld [vmem:[#allocation3 + $0xca] sm:$0xff] }
 0x90f   : > { %21869 = vst [vmem:[#allocation114_spill] sm:$0xff] %v20554_v28  ;;  %v8273_v35 = vld [vmem:[#allocation3] sm:$0xff]  ;;  %v9032_v34 = vld [vmem:[#allocation10 + $0x98] sm:$0xff]  ;;  %v20571_v2 = vld [vmem:[#allocation3 + $0x18] sm:$0xff] }
 0x910   : > { %15425 = vmatmul.mubr.msk.f32.gmra.mrb[10].mxu1 %vm759_vm2, %v20394_v42  ;;  %v20560_v24 = vld [vmem:[#allocation3 + $0xda] sm:$0xff]  ;;  %v8274_v21 = vld [vmem:[#allocation3 + $0x8] sm:$0xff]  ;;  %21870 = vst [vmem:[#allocation115_spill] sm:$0xff] %v20571_v2  ;;  %v20573_v43 = vld [vmem:[#allocation3 + $0xf2] sm:$0xff] }
 0x911   : > { %15681 = vmatmul.mubr.msk.f32.gmra.mrb[10].mxu0 %vm759_vm2, %v20407_v9  ;;  %15427 = vmatprep.mubr.msk.f32.mxu1 %vm759_vm2, %v20396_v58  ;;  %v9033_v47 = vld [vmem:[#allocation10 + $0xa0] sm:$0xff]  ;;  %v9034_v39 = vld [vmem:[#allocation10 + $0xa8] sm:$0xff]  ;;  %v20619_v18 = vld [vmem:[#allocation3 + $0x60] sm:$0xff] }
 0x912   : > { %15683 = vmatprep.mubr.msk.f32.mxu0 %vm759_vm2, %v20409_v12  ;;  %v20585_v26 = vld [vmem:[#allocation3 + $0xfa] sm:$0xff]  ;;  %v20587_v51 = vld [vmem:[#allocation3 + $0x30] sm:$0xff]  ;;  %21876 = vst [vmem:[#allocation121_spill] sm:$0xff] %v20619_v18 }
 0x913   : > { %21872 = vst [vmem:[#allocation117_spill] sm:$0xff] %v20587_v51  ;;  %v20652_v49 = vld [vmem:[#allocation3 + $0x15a] sm:$0xff]  ;;  %v20668_v55 = vld [vmem:[#allocation3 + $0x172] sm:$0xff] }
 0x914   : > { %15428 = vmatmul.mubr.msk.f32.gmra.mrb[12].mxu1 %vm759_vm2, %v20407_v9  ;;  %21878 = vst [vmem:[#allocation123_spill] sm:$0xff] %v20652_v49  ;;  %21882 = vst [vmem:[#allocation127_spill] sm:$0xff] %v20668_v55 }
 0x915   : > { %15684 = vmatmul.mubr.msk.f32.gmra.mrb[12].mxu0 %vm759_vm2, %v20419_v6  ;;  %15430 = vmatprep.mubr.msk.f32.mxu1 %vm759_vm2, %v20409_v12 }
 0x916   : > { %15686 = vmatprep.mubr.msk.f32.mxu0 %vm759_vm2, %v20421_v16 }
 0x918   : > { %15431 = vmatmul.mubr.msk.f32.gmra.mrb[14].mxu1 %vm759_vm2, %v20419_v6 }
 0x919   : > { %15687 = vmatmul.mubr.msk.f32.gmra.mrb[14].mxu0 %vm759_vm2, %v20431_v44  ;;  %15433 = vmatprep.mubr.msk.f32.mxu1 %vm759_vm2, %v20421_v16  ;;  %v11006_v16 = vld [vmem:[#allocation10 + $0x1f8] sm:$0xff] }
 0x91a   : > { %15729 = vmatprep.mubr.msk.f32.mxu0 %vm759_vm2, %v20433_v1 }
 0x91c   : > { %15434 = vmatmul.mubr.msk.f32.gmra.mrb[16].mxu1 %vm759_vm2, %v20431_v44  ;;  %v11003_v44 = vld [vmem:[#allocation10 + $0x1e0] sm:$0xff] }
 0x91d   : > { %15730 = vmatmul.mubr.msk.f32.vlgmr.msra.gmra.mrb[0].mxu0 %vm759_vm2, %v20443_v52  ;;  %15436 = vmatprep.mubr.msk.f32.mxu1 %vm759_vm2, %v20445_v48  ;;  %v11002_v48 = vld [vmem:[#allocation10 + $0x1d8] sm:$0xff] }
 0x91e   : > { %16368 = vmatpush3.bf16.msra.mxu0 %v16365_v46  ;;  %15732 = vmatprep.mubr.msk.f32.mxu0 %vm759_vm2, %v20447_v40  ;;  %v9031_v46 = vld [vmem:[#allocation10 + $0x90] sm:$0xff] }
 0x91f   : > { %16370 = vmatprep.subr.bf16.mxu0 %v16369_v45 }
 0x920   : > { %15437 = vmatmul.mubr.msk.f32.gmra.mrb[18].mxu1 %vm759_vm2, %v20455_v5  ;;  %v11001_v5 = vld [vmem:[#allocation10 + $0x1d0] sm:$0xff] }
 0x921   : > { %15733 = vmatmul.mubr.msk.f32.gmra.mrb[2].mxu0 %vm759_vm2, %v20459_v13  ;;  %15439 = vmatprep.mubr.msk.f32.mxu1 %vm759_vm2, %v20461_v32  ;;  %v20684_v32 = vld [vmem:[#allocation3 + $0x18a] sm:$0xff] }
 0x922   : > { %15735 = vmatprep.mubr.msk.f32.mxu0 %vm759_vm2, %v20463_v31  ;;  %16372 = vmatpush3.bf16.msra.mxu0 %v16369_v45  ;;  %v20569_v45 = vld [vmem:[#allocation3 + $0xe2] sm:$0xff]  ;;  %21886 = vst [vmem:[#allocation131_spill] sm:$0xff] %v20684_v32 }
 0x923   : > { %16374 = vmatprep.subr.bf16.mxu0 %v16373_v62 }
 0x924   : > { %15440 = vmatmul.mubr.msk.f32.gmra.mrb[20].mxu1 %vm759_vm2, %v20471_v59  ;;  %v20672_v59 = vld [vmem:[#allocation3 + $0x182] sm:$0xff] }
 0x925   : > { %15736 = vmatmul.mubr.msk.f32.gmra.mrb[4].mxu0 %vm759_vm2, %v20475_v14  ;;  %15442 = vmatprep.mubr.msk.f32.mxu1 %vm759_vm2, %v20477_v23  ;;  %v20670_v23 = vld [vmem:[#allocation3 + $0xa8] sm:$0xff]  ;;  %21884 = vst [vmem:[#allocation129_spill] sm:$0xff] %v20672_v59 }
 0x926   : > { %15738 = vmatprep.mubr.msk.f32.mxu0 %vm759_vm2, %v20479_v3  ;;  %16376 = vmatpush3.bf16.msra.mxu0 %v16373_v62  ;;  %v16305_v62 = vpack.c.bf16 %v9032_v34, %v9031_v46  ;;  %v16309_v46 = vpack.c.bf16 %v9034_v39, %v9033_v47  ;;  %v9036_v34 = vld [vmem:[#allocation10 + $0xb8] sm:$0xff]  ;;  %21883 = vst [vmem:[#allocation128_spill] sm:$0xff] %v20670_v23 }
 0x927   : > { %16378 = vmatprep.subr.bf16.mxu0 %v16377_v20  ;;  %v20605_v47 = vld [vmem:[#allocation3 + $0x122] sm:$0xff] }
 0x928   : > { %15443 = vmatmul.mubr.msk.f32.gmra.mrb[22].mxu1 %vm759_vm2, %v20487_v38  ;;  %v20664_v38 = vld [vmem:[#allocation3 + $0x98] sm:$0xff] }
 0x929   : > { %15739 = vmatmul.mubr.msk.f32.gmra.mrb[6].mxu0 %vm759_vm2, %v20491_v19  ;;  %15445 = vmatprep.mubr.msk.f32.mxu1 %vm759_vm2, %v20493_v54  ;;  %v20656_v54 = vld [vmem:[#allocation3 + $0x16a] sm:$0xff]  ;;  %21881 = vst [vmem:[#allocation126_spill] sm:$0xff] %v20664_v38 }
 0x92a   : > { %15741 = vmatprep.mubr.msk.f32.mxu0 %vm759_vm2, %v20495_v63  ;;  %16380 = vmatpush3.bf16.msra.mxu0 %v16377_v20  ;;  %v20579_v20 = vld [vmem:[#allocation3 + $0x20] sm:$0xff]  ;;  %21880 = vst [vmem:[#allocation125_spill] sm:$0xff] %v20656_v54 }
 0x92b   : > { %16382 = vmatprep.subr.bf16.mxu0 %v20497_v37  ;;  %21871 = vst [vmem:[#allocation116_spill] sm:$0xff] %v20579_v20 }
 0x92c   : > { %15446 = vmatmul.mubr.msk.f32.gmra.mrb[24].mxu1 %vm759_vm2, %v20505_v10  ;;  %v20637_v10 = vld [vmem:[#allocation3 + $0x78] sm:$0xff] }
 0x92d   : > { %15742 = vmatmul.mubr.msk.f32.gmra.mrb[8].mxu0 %vm759_vm2, %v20509_v50  ;;  %15448 = vmatprep.mubr.msk.f32.mxu1 %vm759_vm2, %v20511_v41  ;;  %v20631_v41 = vld [vmem:[#allocation3 + $0x68] sm:$0xff] }
 0x92e   : > { %15744 = vmatprep.mubr.msk.f32.mxu0 %vm759_vm2, %v20513_v8 }
 0x930   : > { %15449 = vmatmul.mubr.msk.f32.gmra.mrb[26].mxu1 %vm759_vm2, %v20522_v15  ;;  %v20613_v15 = vld [vmem:[#allocation3 + $0x50] sm:$0xff] }
 0x931   : > { %15745 = vmatmul.mubr.msk.f32.gmra.mrb[10].mxu0 %vm759_vm2, %v20526_v60  ;;  %15451 = vmatprep.mubr.msk.f32.mxu1 %vm759_vm2, %v20528_v30  ;;  %v9424_v30 = vld [vmem:[#allocation10 + $0xc8] sm:$0xff]  ;;  %21875 = vst [vmem:[#allocation120_spill] sm:$0xff] %v20613_v15 }
 0x932   : > { %15747 = vmatprep.mubr.msk.f32.mxu0 %vm759_vm2, %v20530_v11 }
 0x934   : > { %15452 = vmatmul.mubr.msk.f32.gmra.mrb[28].mxu1 %vm759_vm2, %v20538_v7  ;;  %v9423_v7 = vld [vmem:[#allocation10 + $0xc0] sm:$0xff] }
 0x935   : > { %15748 = vmatmul.mubr.msk.f32.gmra.mrb[12].mxu0 %vm759_vm2, %v20542_v0  ;;  %15454 = vmatprep.mubr.msk.f32.mxu1 %vm759_vm2, %v20544_v57  ;;  %v20603_v57 = vld [vmem:[#allocation3 + $0x48] sm:$0xff] }
 0x936   : > { %15750 = vmatprep.mubr.msk.f32.mxu0 %vm759_vm2, %v20546_v27  ;;  %21874 = vst [vmem:[#allocation119_spill] sm:$0xff] %v20603_v57 }
 0x938   : > { %15455 = vmatmul.mubr.msk.f32.gmra.mrb[30].mxu1 %vm759_vm2, %v20554_v28  ;;  %v20601_v28 = vld [vmem:[#allocation3 + $0x112] sm:$0xff] }
 0x939   : > { %15751 = vmatmul.mubr.msk.f32.gmra.mrb[14].mxu0 %vm759_vm2, %v20558_v25  ;;  %15473 = vmatprep.mubr.msk.f32.mxu1 %vm759_vm2, %v8273_v35  ;;  %v20589_v35 = vld [vmem:[#allocation3 + $0x10a] sm:$0xff] }
 0x93a   : > { %15753 = vmatprep.mubr.msk.f32.mxu0 %vm759_vm2, %v20560_v24 }
 0x93c   : > { %15474 = vmatmul.mubr.msk.f32.vlgmr.msra.gmra.mrb[0].mxu1 %vm759_vm2, %v8274_v21  ;;  %v20597_v21 = vld [vmem:[#allocation3 + $0x38] sm:$0xff] }
 0x93d   : > { %15754 = vmatmul.mubr.msk.f32.gmra.mrb[16].mxu0 %vm759_vm2, %v20569_v45  ;;  %16304 = vmatpush3.bf16.msra.mxu1 %v20386_v56  ;;  %v9035_v56 = vld [vmem:[#allocation10 + $0xb0] sm:$0xff]  ;;  %21873 = vst [vmem:[#allocation118_spill] sm:$0xff] %v20597_v21 }
 0x93e   : > { %15476 = vmatprep.mubr.msk.f32.mxu1 %vm759_vm2, %v20571_v2  ;;  %15756 = vmatprep.mubr.msk.f32.mxu0 %vm759_vm2, %v20573_v43  ;;  %v16313_v39 = vpack.c.bf16 %v9036_v34, %v9035_v56  ;;  %v20621_v56 = vld [vmem:[#allocation3 + $0x13a] sm:$0xff]  ;;  %v20623_v34 = vpack.c.bf16 %v9424_v30, %v9423_v7  ;;  %v20639_v30 = vld [vmem:[#allocation3 + $0x152] sm:$0xff] }
 0x93f   : > { %16306 = vmatprep.subr.bf16.mxu1 %v16305_v62  ;;  %v20648_v7 = vld [vmem:[#allocation3 + $0x80] sm:$0xff] }
 0x940   : > { %15477 = vmatmul.mubr.msk.f32.gmra.mrb[2].mxu1 %vm759_vm2, %v20579_v20  ;;  %21877 = vst [vmem:[#allocation122_spill] sm:$0xff] %v20648_v7  ;;  %v20680_v20 = vld [vmem:[#allocation3 + $0xb0] sm:$0xff]  ;;  %v20686_v2 = vld [vmem:[#allocation3 + $0xc0] sm:$0xff] }
 0x941   : > { %15757 = vmatmul.mubr.msk.f32.gmra.mrb[18].mxu0 %vm759_vm2, %v20585_v26  ;;  %15479 = vmatprep.mubr.msk.f32.mxu1 %vm759_vm2, %v20587_v51  ;;  %21885 = vst [vmem:[#allocation130_spill] sm:$0xff] %v20680_v20  ;;  %21887 = vst [vmem:[#allocation132_spill] sm:$0xff] %v20686_v2 }
 0x942   : > { %15759 = vmatprep.mubr.msk.f32.mxu0 %vm759_vm2, %v20589_v35  ;;  %16308 = vmatpush3.bf16.msra.mxu1 %v16305_v62  ;;  %v20617_v62 = vld [vmem:[#allocation3 + $0x12a] sm:$0xff] }
 0x943   : > { %16310 = vmatprep.subr.bf16.mxu1 %v16309_v46 }
 0x944   : > { %15480 = vmatmul.mubr.msk.f32.gmra.mrb[4].mxu1 %vm759_vm2, %v20597_v21 }
 0x945   : > { %15760 = vmatmul.mubr.msk.f32.gmra.mrb[20].mxu0 %vm759_vm2, %v20601_v28  ;;  %15482 = vmatprep.mubr.msk.f32.mxu1 %vm759_vm2, %v20603_v57 }
 0x946   : > { %15762 = vmatprep.mubr.msk.f32.mxu0 %vm759_vm2, %v20605_v47  ;;  %16312 = vmatpush3.bf16.msra.mxu1 %v16309_v46  ;;  %v20635_v46 = vld [vmem:[#allocation3 + $0x142] sm:$0xff] }
 0x947   : > { %16314 = vmatprep.subr.bf16.mxu1 %v16313_v39 }
 0x948   : > { %15483 = vmatmul.mubr.msk.f32.gmra.mrb[6].mxu1 %vm759_vm2, %v20613_v15 }
 0x949   : > { %15763 = vmatmul.mubr.msk.f32.gmra.mrb[22].mxu0 %vm759_vm2, %v20617_v62  ;;  %15485 = vmatprep.mubr.msk.f32.mxu1 %vm759_vm2, %v20619_v18 }
 0x94a   : > { %15765 = vmatprep.mubr.msk.f32.mxu0 %vm759_vm2, %v20621_v56  ;;  %16316 = vmatpush3.bf16.msra.mxu1 %v16313_v39  ;;  %v20654_v39 = vld [vmem:[#allocation3 + $0x90] sm:$0xff] }
 0x94b   : > { %16318 = vmatprep.subr.bf16.mxu1 %v20623_v34  ;;  %21879 = vst [vmem:[#allocation124_spill] sm:$0xff] %v20654_v39 }
 0x94c   : > { %15486 = vmatmul.mubr.msk.f32.gmra.mrb[8].mxu1 %vm759_vm2, %v20631_v41 }
 0x94d   : > { %15766 = vmatmul.mubr.msk.f32.gmra.mrb[24].mxu0 %vm759_vm2, %v20635_v46  ;;  %15488 = vmatprep.mubr.msk.f32.mxu1 %vm759_vm2, %v20637_v10 }
 0x94e   : > { %15768 = vmatprep.mubr.msk.f32.mxu0 %vm759_vm2, %v20639_v30 }
 0x950   : > { %15489 = vmatmul.mubr.msk.f32.gmra.mrb[10].mxu1 %vm759_vm2, %v20648_v7 }
 0x951   : > { %15769 = vmatmul.mubr.msk.f32.gmra.mrb[26].mxu0 %vm759_vm2, %v20652_v49  ;;  %15491 = vmatprep.mubr.msk.f32.mxu1 %vm759_vm2, %v20654_v39  ;;  %v11004_v49 = vld [vmem:[#allocation10 + $0x1e8] sm:$0xff] }
 0x952   : > { %15771 = vmatprep.mubr.msk.f32.mxu0 %vm759_vm2, %v20656_v54  ;;  %v16385_v54 = vpack.c.bf16 %v11002_v48, %v11001_v5  ;;  %v16389_v48 = vpack.c.bf16 %v11004_v49, %v11003_v44  ;;  %v11005_v5 = vld [vmem:[#allocation10 + $0x1f0] sm:$0xff]  ;;  %v11393_v44 = vld [vmem:[#allocation10 + $0x200] sm:$0xff] }
 0x953   : > { %v16393_v49 = vpack.c.bf16 %v11006_v16, %v11005_v5  ;;  %v20749_v5 = vld [vmem:[#allocation3 + $0x138] sm:$0xff] }
 0x954   : > { %15492 = vmatmul.mubr.msk.f32.gmra.mrb[12].mxu1 %vm759_vm2, %v20664_v38 }
 0x955   : > { %15772 = vmatmul.mubr.msk.f32.gmra.mrb[28].mxu0 %vm759_vm2, %v20668_v55  ;;  %15494 = vmatprep.mubr.msk.f32.mxu1 %vm759_vm2, %v20670_v23  ;;  %v20694_v55 = vld [vmem:[#allocation3 + $0xc8] sm:$0xff] }
 0x956   : > { %15774 = vmatprep.mubr.msk.f32.mxu0 %vm759_vm2, %v20672_v59  ;;  %21888 = vst [vmem:[#allocation133_spill] sm:$0xff] %v20694_v55  ;;  %v20698_v59 = vld [vmem:[#allocation3 + $0xd8] sm:$0xff] }
 0x957   : > { %21889 = vst [vmem:[#allocation134_spill] sm:$0xff] %v20698_v59 }
 0x958   : > { %15495 = vmatmul.mubr.msk.f32.gmra.mrb[14].mxu1 %vm759_vm2, %v20680_v20 }
 0x959   : > { %15775 = vmatmul.mubr.msk.f32.gmra.mrb[30].mxu0 %vm759_vm2, %v20684_v32  ;;  %15497 = vmatprep.mubr.msk.f32.mxu1 %vm759_vm2, %v20686_v2  ;;  %v20706_v32 = vld [vmem:[#allocation3 + $0xe0] sm:$0xff] }
 0x95a   : > { %15793 = vmatprep.mubr.msk.f32.mxu0 %vm759_vm2, %v20587_v51  ;;  %v20711_v51 = vld [vmem:[#allocation3 + $0xf0] sm:$0xff] }
 0x95c   : > { %15498 = vmatmul.mubr.msk.f32.gmra.mrb[16].mxu1 %vm759_vm2, %v20694_v55 }
 0x95d   : > { %15794 = vmatmul.mubr.msk.f32.vlgmr.msra.gmra.mrb[0].mxu0 %vm759_vm2, %v20597_v21  ;;  %15500 = vmatprep.mubr.msk.f32.mxu1 %vm759_vm2, %v20698_v59  ;;  %v20719_v21 = vld [vmem:[#allocation3 + $0xf8] sm:$0xff] }
 0x95e   : > { %16384 = vmatpush3.bf16.msra.mxu0 %v20497_v37  ;;  %15796 = vmatprep.mubr.msk.f32.mxu0 %vm759_vm2, %v20603_v57  ;;  %v20723_v37 = vld [vmem:[#allocation3 + $0x108] sm:$0xff]  ;;  %v11394_v57 = vld [vmem:[#allocation10 + $0x208] sm:$0xff] }
 0x95f   : > { %16386 = vmatprep.subr.bf16.mxu0 %v16385_v54  ;;  %v20737_v16 = vpack.c.bf16 %v11394_v57, %v11393_v44  ;;  %v20758_v57 = vld [vmem:[#allocation3 + $0x140] sm:$0xff]  ;;  %v20774_v44 = vld [vmem:[#allocation3 + $0x168] sm:$0xff] }
 0x960   : > { %15501 = vmatmul.mubr.msk.f32.gmra.mrb[18].mxu1 %vm759_vm2, %v20706_v32 }
 0x961   : > { %15797 = vmatmul.mubr.msk.f32.gmra.mrb[2].mxu0 %vm759_vm2, %v20613_v15  ;;  %15503 = vmatprep.mubr.msk.f32.mxu1 %vm759_vm2, %v20711_v51  ;;  %v20731_v15 = vld [vmem:[#allocation3 + $0x110] sm:$0xff] }
 0x962   : > { %15799 = vmatprep.mubr.msk.f32.mxu0 %vm759_vm2, %v20619_v18  ;;  %16388 = vmatpush3.bf16.msra.mxu0 %v16385_v54  ;;  %v20735_v18 = vld [vmem:[#allocation3 + $0x120] sm:$0xff]  ;;  %v20745_v54 = vld [vmem:[#allocation3 + $0x128] sm:$0xff] }
 0x963   : > { %16390 = vmatprep.subr.bf16.mxu0 %v16389_v48 }
 0x964   : > { %15504 = vmatmul.mubr.msk.f32.gmra.mrb[20].mxu1 %vm759_vm2, %v20719_v21 }
 0x965   : > { %15800 = vmatmul.mubr.msk.f32.gmra.mrb[4].mxu0 %vm759_vm2, %v20631_v41  ;;  %15506 = vmatprep.mubr.msk.f32.mxu1 %vm759_vm2, %v20723_v37 }
 0x966   : > { %15802 = vmatprep.mubr.msk.f32.mxu0 %vm759_vm2, %v20637_v10  ;;  %16392 = vmatpush3.bf16.msra.mxu0 %v16389_v48  ;;  %v20762_v48 = vld [vmem:[#allocation3 + $0x150] sm:$0xff] }
 0x967   : > { %16394 = vmatprep.subr.bf16.mxu0 %v16393_v49 }
 0x968   : > { %15507 = vmatmul.mubr.msk.f32.gmra.mrb[22].mxu1 %vm759_vm2, %v20731_v15 }
 0x969   : > { %15803 = vmatmul.mubr.msk.f32.gmra.mrb[6].mxu0 %vm759_vm2, %v20648_v7  ;;  %15509 = vmatprep.mubr.msk.f32.mxu1 %vm759_vm2, %v20735_v18  ;;  %v9427_v7 = vld [vmem:[#allocation10 + $0xe0] sm:$0xff] }
 0x96a   : > { %15805 = vmatprep.mubr.msk.f32.mxu0 %vm759_vm2, %v20654_v39  ;;  %16396 = vmatpush3.bf16.msra.mxu0 %v16393_v49  ;;  %v20770_v49 = vld [vmem:[#allocation3 + $0x158] sm:$0xff] }
 0x96b   : > { %16398 = vmatprep.subr.bf16.mxu0 %v20737_v16 }
 0x96c   : > { %15510 = vmatmul.mubr.msk.f32.gmra.mrb[24].mxu1 %vm759_vm2, %v20745_v54 }
 0x96d   : > { %15806 = vmatmul.mubr.msk.f32.gmra.mrb[8].mxu0 %vm759_vm2, %v20664_v38  ;;  %15512 = vmatprep.mubr.msk.f32.mxu1 %vm759_vm2, %v20749_v5  ;;  %v9426_v38 = vld [vmem:[#allocation10 + $0xd8] sm:$0xff] }
 0x96e   : > { %15808 = vmatprep.mubr.msk.f32.mxu0 %vm759_vm2, %v20670_v23  ;;  %v8996_v23 = vld [vmem:[#allocation3 + $0x2] sm:$0xff] }
 0x970   : > { %15513 = vmatmul.mubr.msk.f32.gmra.mrb[26].mxu1 %vm759_vm2, %v20758_v57 }
 0x971   : > { %15809 = vmatmul.mubr.msk.f32.gmra.mrb[10].mxu0 %vm759_vm2, %v20680_v20  ;;  %15515 = vmatprep.mubr.msk.f32.mxu1 %vm759_vm2, %v20762_v48  ;;  %v20782_v20 = vld [vmem:[#allocation3 + $0x170] sm:$0xff] }
 0x972   : > { %15811 = vmatprep.mubr.msk.f32.mxu0 %vm759_vm2, %v20686_v2  ;;  %v9425_v2 = vld [vmem:[#allocation10 + $0xd0] sm:$0xff] }
 0x973   : > { %v16321_v39 = vpack.c.bf16 %v9426_v38, %v9425_v2  ;;  %v9429_v38 = vld [vmem:[#allocation10 + $0xf0] sm:$0xff]  ;;  %v10602_v2 = vld [vmem:[#allocation3 + $0x198] sm:$0xff] }
 0x974   : > { %15516 = vmatmul.mubr.msk.f32.gmra.mrb[28].mxu1 %vm759_vm2, %v20770_v49 }
 0x975   : > { %15812 = vmatmul.mubr.msk.f32.gmra.mrb[12].mxu0 %vm759_vm2, %v20694_v55  ;;  %15518 = vmatprep.mubr.msk.f32.mxu1 %vm759_vm2, %v20774_v44  ;;  %v8997_v55 = vld [vmem:[#allocation3 + $0xa] sm:$0xff] }
 0x976   : > { %15814 = vmatprep.mubr.msk.f32.mxu0 %vm759_vm2, %v20698_v59  ;;  %v9428_v59 = vld [vmem:[#allocation10 + $0xe8] sm:$0xff] }
 0x978   : > { %15519 = vmatmul.mubr.msk.f32.gmra.mrb[30].mxu1 %vm759_vm2, %v20782_v20 }
 0x979   : > { %15815 = vmatmul.mubr.msk.f32.gmra.mrb[14].mxu0 %vm759_vm2, %v20706_v32  ;;  %15537 = vmatprep.mubr.msk.f32.mxu1 %vm759_vm2, %v8996_v23  ;;  %v16325_v23 = vpack.c.bf16 %v9428_v59, %v9427_v7  ;;  %v20844_v59 = vld [vmem:[#allocation3 + $0x188] sm:$0xff]  ;;  %v11395_v7 = vld [vmem:[#allocation10 + $0x210] sm:$0xff] }
 0x97a   : > { %15817 = vmatprep.mubr.msk.f32.mxu0 %vm759_vm2, %v20711_v51 }
 0x97c   : > { %15538 = vmatmul.mubr.msk.f32.vlgmr.msra.gmra.mrb[0].mxu1 %vm759_vm2, %v8997_v55  ;;  %v9430_v55 = vld [vmem:[#allocation10 + $0xf8] sm:$0xff] }
 0x97d   : > { %15818 = vmatmul.mubr.msk.f32.gmra.mrb[16].mxu0 %vm759_vm2, %v20719_v21  ;;  %16320 = vmatpush3.bf16.msra.mxu1 %v20623_v34  ;;  %v10603_v34 = vld [vmem:[#allocation3 + $0x1a0] sm:$0xff] }
 0x97e   : > { %15540 = vmatprep.mubr.msk.f32.mxu1 %vm759_vm2, %v20433_v1  ;;  %15820 = vmatprep.mubr.msk.f32.mxu0 %vm759_vm2, %v20723_v37  ;;  %v16329_v1 = vpack.c.bf16 %v9430_v55, %v9429_v38  ;;  %v11397_v38 = vld [vmem:[#allocation10 + $0x220] sm:$0xff]  ;;  %v11398_v55 = vld [vmem:[#allocation10 + $0x228] sm:$0xff] }
 0x97f   : > { %16322 = vmatprep.subr.bf16.mxu1 %v16321_v39 }
 0x980   : > { %15541 = vmatmul.mubr.msk.f32.gmra.mrb[2].mxu1 %vm759_vm2, %v20443_v52  ;;  %v20834_v52 = vld [vmem:[#allocation3 + $0x180] sm:$0xff] }
 0x981   : > { %15821 = vmatmul.mubr.msk.f32.gmra.mrb[18].mxu0 %vm759_vm2, %v20731_v15  ;;  %15543 = vmatprep.mubr.msk.f32.mxu1 %vm759_vm2, %v20447_v40 }
 0x982   : > { %15823 = vmatprep.mubr.msk.f32.mxu0 %vm759_vm2, %v20735_v18  ;;  %16324 = vmatpush3.bf16.msra.mxu1 %v16321_v39  ;;  %v11396_v39 = vld [vmem:[#allocation10 + $0x218] sm:$0xff] }
 0x983   : > { %16326 = vmatprep.subr.bf16.mxu1 %v16325_v23 }
 0x984   : > { %15544 = vmatmul.mubr.msk.f32.gmra.mrb[4].mxu1 %vm759_vm2, %v20459_v13 }
 0x985   : > { %15824 = vmatmul.mubr.msk.f32.gmra.mrb[20].mxu0 %vm759_vm2, %v20745_v54  ;;  %15546 = vmatprep.mubr.msk.f32.mxu1 %vm759_vm2, %v20463_v31 }
 0x986   : > { %15826 = vmatprep.mubr.msk.f32.mxu0 %vm759_vm2, %v20749_v5  ;;  %16328 = vmatpush3.bf16.msra.mxu1 %v16325_v23  ;;  %v16401_v23 = vpack.c.bf16 %v11396_v39, %v11395_v7  ;;  %v21902_v7 = vld [vmem:[#allocation105_spill] sm:$0xff]  ;;  %v21903_v39 = vld [vmem:[#allocation96_spill] sm:$0xff] }
 0x987   : > { %16330 = vmatprep.subr.bf16.mxu1 %v16329_v1 }
 0x988   : > { %15547 = vmatmul.mubr.msk.f32.gmra.mrb[6].mxu1 %vm759_vm2, %v20475_v14 }
 0x989   : > { %15827 = vmatmul.mubr.msk.f32.gmra.mrb[22].mxu0 %vm759_vm2, %v20758_v57  ;;  %15549 = vmatprep.mubr.msk.f32.mxu1 %vm759_vm2, %v20479_v3 }
 0x98a   : > { %15829 = vmatprep.mubr.msk.f32.mxu0 %vm759_vm2, %v20762_v48  ;;  %16332 = vmatpush3.bf16.msra.mxu1 %v16329_v1  ;;  %v16405_v1 = vpack.c.bf16 %v11398_v55, %v11397_v38  ;;  %v21905_v38 = vld [vmem:[#allocation106_spill] sm:$0xff]  ;;  %v21906_v55 = vld [vmem:[#allocation119_spill] sm:$0xff] }
 0x98b   : > { %16925 = vmatprep.subr.bf16.mxu1 %v20332_v36 }
 0x98c   : > { %15550 = vmatmul.mubr.msk.f32.gmra.mrb[8].mxu1 %vm759_vm2, %v20491_v19 }
 0x98d   : > { %15830 = vmatmul.mubr.msk.f32.gmra.mrb[24].mxu0 %vm759_vm2, %v20770_v49  ;;  %15552 = vmatprep.mubr.msk.f32.mxu1 %vm759_vm2, %v20495_v63 }
 0x98e   : > { %15832 = vmatprep.mubr.msk.f32.mxu0 %vm759_vm2, %v20774_v44 }
 0x990   : > { %15553 = vmatmul.mubr.msk.f32.gmra.mrb[10].mxu1 %vm759_vm2, %v20509_v50 }
 0x991   : > { %15833 = vmatmul.mubr.msk.f32.gmra.mrb[26].mxu0 %vm759_vm2, %v20782_v20  ;;  %15555 = vmatprep.mubr.msk.f32.mxu1 %vm759_vm2, %v20513_v8 }
 0x992   : > { %15835 = vmatprep.mubr.msk.f32.mxu0 %vm759_vm2, %v20834_v52 }
 0x994   : > { %15556 = vmatmul.mubr.msk.f32.gmra.mrb[12].mxu1 %vm759_vm2, %v20526_v60 }
 0x995   : > { %15836 = vmatmul.mubr.msk.f32.gmra.mrb[28].mxu0 %vm759_vm2, %v20844_v59  ;;  %15558 = vmatprep.mubr.msk.f32.mxu1 %vm759_vm2, %v20530_v11 }
 0x996   : > { %15838 = vmatprep.mubr.msk.f32.mxu0 %vm759_vm2, %v10602_v2  ;;  %v11400_v2 = vld [vmem:[#allocation10 + $0x238] sm:$0xff] }
 0x998   : > { %15559 = vmatmul.mubr.msk.f32.gmra.mrb[14].mxu1 %vm759_vm2, %v20542_v0 }
 0x999   : > { %15839 = vmatmul.mubr.msk.f32.gmra.mrb[30].mxu0 %vm759_vm2, %v10603_v34  ;;  %15561 = vmatprep.mubr.msk.f32.mxu1 %vm759_vm2, %v20546_v27  ;;  %v21901_v34 = vld [vmem:[#allocation117_spill] sm:$0xff] }
 0x99a   : > { %15857 = vmatprep.mubr.msk.f32.mxu0 %vm759_vm2, %v20351_v33  ;;  %v11399_v33 = vld [vmem:[#allocation10 + $0x230] sm:$0xff] }
 0x99c   : > { %15562 = vmatmul.mubr.msk.f32.gmra.mrb[16].mxu1 %vm759_vm2, %v20558_v25 }
 0x99d   : > { %15858 = vmatmul.mubr.msk.f32.vlgmr.msra.gmra.mrb[0].mxu0 %vm759_vm2, %v20355_v22  ;;  %15564 = vmatprep.mubr.msk.f32.mxu1 %vm759_vm2, %v20560_v24  ;;  %v16409_v22 = vpack.c.bf16 %v11400_v2, %v11399_v33  ;;  %v21909_v33 = vld [vmem:[#allocation120_spill] sm:$0xff] }
 0x99e   : > { %16400 = vmatpush3.bf16.msra.mxu0 %v20737_v16  ;;  %15860 = vmatprep.mubr.msk.f32.mxu0 %vm759_vm2, %v20359_v4  ;;  %v21890_v4 = vld [vmem:[#allocation99_spill] sm:$0xff]  ;;  %v21900_v16 = vld [vmem:[#allocation104_spill] sm:$0xff] }
 0x99f   : > { %16402 = vmatprep.subr.bf16.mxu0 %v16401_v23  ;;  %v21910_v2 = vld [vmem:[#allocation108_spill] sm:$0xff] }
 0x9a0   : > { %15565 = vmatmul.mubr.msk.f32.gmra.mrb[18].mxu1 %vm759_vm2, %v20569_v45 }
 0x9a1   : > { %15861 = vmatmul.mubr.msk.f32.gmra.mrb[2].mxu0 %vm759_vm2, %v20368_v17  ;;  %15567 = vmatprep.mubr.msk.f32.mxu1 %vm759_vm2, %v20573_v43  ;;  %v21891_v17 = vld [vmem:[#allocation123_spill] sm:$0xff] }
 0x9a2   : > { %15863 = vmatprep.mubr.msk.f32.mxu0 %vm759_vm2, %v20370_v53  ;;  %16404 = vmatpush3.bf16.msra.mxu0 %v16401_v23  ;;  %v21892_v53 = vld [vmem:[#allocation100_spill] sm:$0xff]  ;;  %v21904_v23 = vld [vmem:[#allocation118_spill] sm:$0xff] }
 0x9a3   : > { %16406 = vmatprep.subr.bf16.mxu0 %v16405_v1 }
 0x9a4   : > { %15568 = vmatmul.mubr.msk.f32.gmra.mrb[20].mxu1 %vm759_vm2, %v20585_v26 }
 0x9a5   : > { %15864 = vmatmul.mubr.msk.f32.gmra.mrb[4].mxu0 %vm759_vm2, %v20380_v29  ;;  %15570 = vmatprep.mubr.msk.f32.mxu1 %vm759_vm2, %v20589_v35  ;;  %v21893_v29 = vld [vmem:[#allocation125_spill] sm:$0xff] }
 0x9a6   : > { %15866 = vmatprep.mubr.msk.f32.mxu0 %vm759_vm2, %v20382_v61  ;;  %16408 = vmatpush3.bf16.msra.mxu0 %v16405_v1  ;;  %v21894_v61 = vld [vmem:[#allocation101_spill] sm:$0xff]  ;;  %v21907_v1 = vld [vmem:[#allocation107_spill] sm:$0xff] }
 0x9a7   : > { %16410 = vmatprep.subr.bf16.mxu0 %v16409_v22 }
 0x9a8   : > { %15571 = vmatmul.mubr.msk.f32.gmra.mrb[22].mxu1 %vm759_vm2, %v20601_v28 }
 0x9a9   : > { %15867 = vmatmul.mubr.msk.f32.gmra.mrb[6].mxu0 %vm759_vm2, %v20394_v42  ;;  %15573 = vmatprep.mubr.msk.f32.mxu1 %vm759_vm2, %v20605_v47  ;;  %v21895_v42 = vld [vmem:[#allocation127_spill] sm:$0xff] }
 0x9aa   : > { %15869 = vmatprep.mubr.msk.f32.mxu0 %vm759_vm2, %v20396_v58  ;;  %16412 = vmatpush3.bf16.msra.mxu0 %v16409_v22  ;;  %v21896_v58 = vld [vmem:[#allocation102_spill] sm:$0xff]  ;;  %v21911_v22 = vld [vmem:[#allocation121_spill] sm:$0xff] }
 0x9ac   : > { %15574 = vmatmul.mubr.msk.f32.gmra.mrb[24].mxu1 %vm759_vm2, %v20617_v62 }
 0x9ad   : > { %15870 = vmatmul.mubr.msk.f32.gmra.mrb[8].mxu0 %vm759_vm2, %v20407_v9  ;;  %15576 = vmatprep.mubr.msk.f32.mxu1 %vm759_vm2, %v20621_v56  ;;  %v21897_v9 = vld [vmem:[#allocation115_spill] sm:$0xff] }
 0x9ae   : > { %15872 = vmatprep.mubr.msk.f32.mxu0 %vm759_vm2, %v20409_v12  ;;  %v21898_v12 = vld [vmem:[#allocation103_spill] sm:$0xff] }
 0x9b0   : > { %15577 = vmatmul.mubr.msk.f32.gmra.mrb[26].mxu1 %vm759_vm2, %v20635_v46 }
 0x9b1   : > { %15873 = vmatmul.mubr.msk.f32.gmra.mrb[10].mxu0 %vm759_vm2, %v20419_v6  ;;  %15579 = vmatprep.mubr.msk.f32.mxu1 %vm759_vm2, %v20639_v30  ;;  %v21899_v6 = vld [vmem:[#allocation116_spill] sm:$0xff] }
 0x9b2   : > { %15875 = vmatprep.mubr.msk.f32.mxu0 %vm759_vm2, %v21890_v4  ;;  %v21912_v4 = vld [vmem:[#allocation109_spill] sm:$0xff] }
 0x9b4   : > { %15580 = vmatmul.mubr.msk.f32.gmra.mrb[28].mxu1 %vm759_vm2, %v21891_v17 }
 0x9b5   : > { %15876 = vmatmul.mubr.msk.f32.gmra.mrb[12].mxu0 %vm759_vm2, %v21892_v53  ;;  %15582 = vmatprep.mubr.msk.f32.mxu1 %vm759_vm2, %v21893_v29  ;;  %v21913_v53 = vld [vmem:[#allocation98_spill] sm:$0xff] }
 0x9b6   : > { %15878 = vmatprep.mubr.msk.f32.mxu0 %vm759_vm2, %v21894_v61  ;;  %v21914_v61 = vld [vmem:[#allocation110_spill] sm:$0xff] }
 0x9b8   : > { %15583 = vmatmul.mubr.msk.f32.gmra.mrb[30].mxu1 %vm759_vm2, %v21895_v42 }
 0x9b9   : > { %15879 = vmatmul.mubr.msk.f32.gmra.mrb[14].mxu0 %vm759_vm2, %v21896_v58  ;;  %15601 = vmatprep.mubr.msk.f32.mxu1 %vm759_vm2, %v21897_v9  ;;  %v21915_v58 = vld [vmem:[#allocation111_spill] sm:$0xff]  ;;  %v21916_v9 = vld [vmem:[#allocation122_spill] sm:$0xff] }
 0x9ba   : > { %15881 = vmatprep.mubr.msk.f32.mxu0 %vm759_vm2, %v21898_v12  ;;  %v21917_v12 = vld [vmem:[#allocation112_spill] sm:$0xff] }
 0x9bc   : > { %15602 = vmatmul.mubr.msk.f32.vlgmr.msra.gmra.mrb[0].mxu1 %vm759_vm2, %v21899_v6  ;;  %v21918_v6 = vld [vmem:[#allocation124_spill] sm:$0xff] }
 0x9bd   : > { %15882 = vmatmul.mubr.msk.f32.gmra.mrb[16].mxu0 %vm759_vm2, %v21900_v16  ;;  %16929 = vmatpush3.bf16.msra.mxu1 %v20332_v36  ;;  %v21908_v36 = vld [vmem:[#allocation97_spill] sm:$0xff]  ;;  %v20972_v16 = vld [vmem:[#allocation3 + $0x181] sm:$0xff] }
 0x9be   : > { %15604 = vmatprep.mubr.msk.f32.mxu1 %vm759_vm2, %v21901_v34  ;;  %15884 = vmatprep.mubr.msk.f32.mxu0 %vm759_vm2, %v21902_v7  ;;  %v21921_v34 = vld [vmem:[#allocation114_spill] sm:$0xff]  ;;  %v21922_v7 = vld [vmem:[#allocation128_spill] sm:$0xff] }
 0x9bf   : > { %16926 = vmatprep.subr.bf16.mxu1 %v21903_v39 }
 0x9c0   : > { %15605 = vmatmul.mubr.msk.f32.gmra.mrb[2].mxu1 %vm759_vm2, %v21904_v23  ;;  %v10996_v23 = vld [vmem:[#allocation3 + $0x199] sm:$0xff] }
 0x9c1   : > { %15885 = vmatmul.mubr.msk.f32.gmra.mrb[18].mxu0 %vm759_vm2, %v21905_v38  ;;  %15607 = vmatprep.mubr.msk.f32.mxu1 %vm759_vm2, %v21906_v55  ;;  %v21923_v38 = vld [vmem:[#allocation130_spill] sm:$0xff]  ;;  %v21924_v55 = vld [vmem:[#allocation132_spill] sm:$0xff] }
 0x9c2   : > { %15887 = vmatprep.mubr.msk.f32.mxu0 %vm759_vm2, %v21907_v1  ;;  %16930 = vmatpush3.bf16.msra.mxu1 %v21903_v39  ;;  %v20982_v39 = vld [vmem:[#allocation3 + $0x189] sm:$0xff]  ;;  %v10997_v1 = vld [vmem:[#allocation3 + $0x1a1] sm:$0xff] }
 0x9c3   : > { %16927 = vmatprep.subr.bf16.mxu1 %v21908_v36 }
 0x9c4   : > { %15608 = vmatmul.mubr.msk.f32.gmra.mrb[4].mxu1 %vm759_vm2, %v21909_v33  ;;  %v21926_v33 = vld [vmem:[#allocation134_spill] sm:$0xff] }
 0x9c5   : > { %15888 = vmatmul.mubr.msk.f32.gmra.mrb[20].mxu0 %vm759_vm2, %v21910_v2  ;;  %15610 = vmatprep.mubr.msk.f32.mxu1 %vm759_vm2, %v21911_v22 }
 0x9c6   : > { %15890 = vmatprep.mubr.msk.f32.mxu0 %vm759_vm2, %v21912_v4  ;;  %16931 = vmatpush3.bf16.msra.mxu1 %v21908_v36  ;;  %v21925_v36 = vld [vmem:[#allocation133_spill] sm:$0xff] }
 0x9c7   : > { %16928 = vmatprep.subr.bf16.mxu1 %v21913_v53 }
 0x9c8   : > { %15611 = vmatmul.mubr.msk.f32.gmra.mrb[6].mxu1 %vm759_vm2, %v20631_v41  ;;  %v21919_v41 = vld [vmem:[#allocation113_spill] sm:$0xff] }
 0x9c9   : > { %15891 = vmatmul.mubr.msk.f32.gmra.mrb[22].mxu0 %vm759_vm2, %v21914_v61  ;;  %15613 = vmatprep.mubr.msk.f32.mxu1 %vm759_vm2, %v20637_v10  ;;  %v21920_v10 = vld [vmem:[#allocation126_spill] sm:$0xff] }
 0x9ca   : > { %15893 = vmatprep.mubr.msk.f32.mxu0 %vm759_vm2, %v21915_v58  ;;  %16932 = vmatpush3.bf16.msra.mxu1 %v21913_v53  ;;  %v11796_v58 = vld [vmem:[%s17968_s26 + $0x18] sm:$0xff] }
 0x9cc   : > { %15614 = vmatmul.mubr.msk.f32.gmra.mrb[8].mxu1 %vm759_vm2, %v21916_v9 }
 0x9cd   : > { %15894 = vmatmul.mubr.msk.f32.gmra.mrb[24].mxu0 %vm759_vm2, %v21917_v12  ;;  %15616 = vmatprep.mubr.msk.f32.mxu1 %vm759_vm2, %v21918_v6  ;;  %v11795_v6 = vld [vmem:[%s17968_s26 + $0x10] sm:$0xff] }
 0x9ce   : > { %15896 = vmatprep.mubr.msk.f32.mxu0 %vm759_vm2, %v21919_v41 }
 0x9d0   : > { %15617 = vmatmul.mubr.msk.f32.gmra.mrb[10].mxu1 %vm759_vm2, %v21920_v10 }
 0x9d1   : > { %15897 = vmatmul.mubr.msk.f32.gmra.mrb[26].mxu0 %vm759_vm2, %v21921_v34  ;;  %15619 = vmatprep.mubr.msk.f32.mxu1 %vm759_vm2, %v21922_v7 }
 0x9d2   : > { %15899 = vmatprep.mubr.msk.f32.mxu0 %vm759_vm2, %v20972_v16 }
 0x9d4   : > { %15620 = vmatmul.mubr.msk.f32.gmra.mrb[12].mxu1 %vm759_vm2, %v21923_v38 }
 0x9d5   : > { %15900 = vmatmul.mubr.msk.f32.gmra.mrb[28].mxu0 %vm759_vm2, %v20982_v39  ;;  %15622 = vmatprep.mubr.msk.f32.mxu1 %vm759_vm2, %v21924_v55 }
 0x9d6   : > { %15902 = vmatprep.mubr.msk.f32.mxu0 %vm759_vm2, %v10996_v23  ;;  %v11798_v23 = vld [vmem:[%s17968_s26 + $0x28] sm:$0xff] }
 0x9d8   : > { %15623 = vmatmul.mubr.msk.f32.gmra.mrb[14].mxu1 %vm759_vm2, %v21925_v36 }
 0x9d9   : > { %15903 = vmatmul.mubr.msk.f32.gmra.mrb[30].mxu0 %vm759_vm2, %v10997_v1  ;;  %15625 = vmatprep.mubr.msk.f32.mxu1 %vm759_vm2, %v21926_v33  ;;  %v11797_v1 = vld [vmem:[%s17968_s26 + $0x20] sm:$0xff] }
 0x9da   : > { %15921 = vmatprep.mubr.msk.f32.mxu0 %vm759_vm2, %v20447_v40  ;;  %v9801_v40 = vld [vmem:[#allocation3 + $0xe1] sm:$0xff] }
 0x9dc   : > { %15626 = vmatmul.mubr.msk.f32.gmra.mrb[16].mxu1 %vm759_vm2, %v20706_v32  ;;  %v9803_v32 = vld [vmem:[#allocation3 + $0xf9] sm:$0xff] }
 0x9dd   : > { %15922 = vmatmul.mubr.msk.f32.vlgmr.msra.gmra.mrb[0].mxu0 %vm759_vm2, %v20459_v13  ;;  %15628 = vmatprep.mubr.msk.f32.mxu1 %vm759_vm2, %v20711_v51  ;;  %v9802_v13 = vld [vmem:[#allocation3 + $0xf1] sm:$0xff] }
 0x9de   : > { %15924 = vmatprep.mubr.msk.f32.mxu0 %vm759_vm2, %v20463_v31  ;;  %v9804_v31 = vld [vmem:[#allocation3 + $0x109] sm:$0xff] }
 0x9e0   : > { %15629 = vmatmul.mubr.msk.f32.gmra.mrb[18].mxu1 %vm759_vm2, %v20719_v21 }
 0x9e1   : > { %15925 = vmatmul.mubr.msk.f32.gmra.mrb[2].mxu0 %vm759_vm2, %v20475_v14  ;;  %15631 = vmatprep.mubr.msk.f32.mxu1 %vm759_vm2, %v20723_v37  ;;  %v9805_v14 = vld [vmem:[#allocation3 + $0x111] sm:$0xff] }
 0x9e2   : > { %15927 = vmatprep.mubr.msk.f32.mxu0 %vm759_vm2, %v20479_v3  ;;  %v9806_v3 = vld [vmem:[#allocation3 + $0x121] sm:$0xff] }
 0x9e4   : > { %15632 = vmatmul.mubr.msk.f32.gmra.mrb[20].mxu1 %vm759_vm2, %v20731_v15  ;;  %v9811_v15 = vld [vmem:[#allocation3 + $0x159] sm:$0xff] }
 0x9e5   : > { %15928 = vmatmul.mubr.msk.f32.gmra.mrb[4].mxu0 %vm759_vm2, %v20491_v19  ;;  %15634 = vmatprep.mubr.msk.f32.mxu1 %vm759_vm2, %v20735_v18  ;;  %v9800_v18 = vld [vmem:[#allocation3 + $0xd9] sm:$0xff]  ;;  %v9807_v19 = vld [vmem:[#allocation3 + $0x129] sm:$0xff] }
 0x9e6   : > { %15930 = vmatprep.mubr.msk.f32.mxu0 %vm759_vm2, %v20495_v63  ;;  %v9808_v63 = vld [vmem:[#allocation3 + $0x139] sm:$0xff] }
 0x9e8   : > { %15635 = vmatmul.mubr.msk.f32.gmra.mrb[22].mxu1 %vm759_vm2, %v20745_v54 }
 0x9e9   : > { %15931 = vmatmul.mubr.msk.f32.gmra.mrb[6].mxu0 %vm759_vm2, %v20509_v50  ;;  %15637 = vmatprep.mubr.msk.f32.mxu1 %vm759_vm2, %v20749_v5  ;;  %v9809_v50 = vld [vmem:[#allocation3 + $0x141] sm:$0xff] }
 0x9ea   : > { %15933 = vmatprep.mubr.msk.f32.mxu0 %vm759_vm2, %v20513_v8  ;;  %v9810_v8 = vld [vmem:[#allocation3 + $0x151] sm:$0xff] }
 0x9ec   : > { %15638 = vmatmul.mubr.msk.f32.gmra.mrb[24].mxu1 %vm759_vm2, %v20758_v57 }
 0x9ed   : > { %15934 = vmatmul.mubr.msk.f32.gmra.mrb[8].mxu0 %vm759_vm2, %v20526_v60  ;;  %15640 = vmatprep.mubr.msk.f32.mxu1 %vm759_vm2, %v20762_v48  ;;  %v9812_v60 = vld [vmem:[#allocation3 + $0x169] sm:$0xff]  ;;  %v21121_v48 = vld [vmem:[%s21929_s9] ss:$0 sm:$0xff] }
 0x9ee   : > { %15936 = vmatprep.mubr.msk.f32.mxu0 %vm759_vm2, %v20530_v11  ;;  %v9813_v11 = vld [vmem:[#allocation3 + $0x171] sm:$0xff] }
 0x9f0   : > { %15641 = vmatmul.mubr.msk.f32.gmra.mrb[26].mxu1 %vm759_vm2, %v20770_v49 }
 0x9f1   : > { %15937 = vmatmul.mubr.msk.f32.gmra.mrb[10].mxu0 %vm759_vm2, %v20542_v0  ;;  %15643 = vmatprep.mubr.msk.f32.mxu1 %vm759_vm2, %v20774_v44  ;;  %v21927_v0 = vld [vmem:[#allocation129_spill] sm:$0xff] }
 0x9f2   : > { %15939 = vmatprep.mubr.msk.f32.mxu0 %vm759_vm2, %v20546_v27  ;;  %v11390_v27 = vld [vmem:[#allocation3 + $0x19a] sm:$0xff] }
 0x9f4   : > { %15644 = vmatmul.mubr.msk.f32.gmra.mrb[28].mxu1 %vm759_vm2, %v20782_v20 }
 0x9f5   : > { %15940 = vmatmul.mubr.msk.f32.gmra.mrb[12].mxu0 %vm759_vm2, %v20558_v25  ;;  %15646 = vmatprep.mubr.msk.f32.mxu1 %vm759_vm2, %v20834_v52  ;;  %v11391_v25 = vld [vmem:[#allocation3 + $0x1a2] sm:$0xff]  ;;  %v11794_v52 = vld [vmem:[%s17968_s26 + $0x8] sm:$0xff] }
 0x9f6   : > { %15942 = vmatprep.mubr.msk.f32.mxu0 %vm759_vm2, %v20560_v24 }
 0x9f8   : > { %15647 = vmatmul.mubr.msk.f32.gmra.mrb[30].mxu1 %vm759_vm2, %v20844_v59 }
 0x9f9   : > { %15943 = vmatmul.mubr.msk.f32.gmra.mrb[14].mxu0 %vm759_vm2, %v20569_v45  ;;  %15689 = vmatprep.mubr.msk.f32.mxu1 %vm759_vm2, %v9800_v18 }
 0x9fa   : > { %15945 = vmatprep.mubr.msk.f32.mxu0 %vm759_vm2, %v20573_v43 }
 0x9fc   : > { %15690 = vmatmul.mubr.msk.f32.vlgmr.msra.gmra.mrb[16].mxu1 %vm759_vm2, %v9801_v40 }
 0x9fd   : > { %15946 = vmatmul.mubr.msk.f32.gmra.mrb[16].mxu0 %vm759_vm2, %v20585_v26  ;;  %15692 = vmatprep.mubr.msk.f32.mxu1 %vm759_vm2, %v9802_v13 }
 0x9fe   : > { %15948 = vmatprep.mubr.msk.f32.mxu0 %vm759_vm2, %v20589_v35 }
 0xa00   : > { %15693 = vmatmul.mubr.msk.f32.gmra.mrb[18].mxu1 %vm759_vm2, %v9803_v32 }
 0xa01   : > { %15949 = vmatmul.mubr.msk.f32.gmra.mrb[18].mxu0 %vm759_vm2, %v20601_v28  ;;  %15695 = vmatprep.mubr.msk.f32.mxu1 %vm759_vm2, %v9804_v31  ;;  %v21928_v28 = vld [vmem:[#allocation131_spill] sm:$0xff] }
 0xa02   : > { %15951 = vmatprep.mubr.msk.f32.mxu0 %vm759_vm2, %v20605_v47  ;;  %v11800_v31 = vld [vmem:[%s17968_s26 + $0x38] sm:$0xff] }
 0xa04   : > { %15696 = vmatmul.mubr.msk.f32.gmra.mrb[20].mxu1 %vm759_vm2, %v9805_v14 }
 0xa05   : > { %15952 = vmatmul.mubr.msk.f32.gmra.mrb[20].mxu0 %vm759_vm2, %v20617_v62  ;;  %15698 = vmatprep.mubr.msk.f32.mxu1 %vm759_vm2, %v9806_v3 }
 0xa06   : > { %15954 = vmatprep.mubr.msk.f32.mxu0 %vm759_vm2, %v20621_v56 }
 0xa08   : > { %15699 = vmatmul.mubr.msk.f32.gmra.mrb[22].mxu1 %vm759_vm2, %v9807_v19  ;;  %v11799_v19 = vld [vmem:[%s17968_s26 + $0x30] sm:$0xff] }
 0xa09   : > { %15955 = vmatmul.mubr.msk.f32.gmra.mrb[22].mxu0 %vm759_vm2, %v20635_v46  ;;  %15701 = vmatprep.mubr.msk.f32.mxu1 %vm759_vm2, %v9808_v63 }
 0xa0a   : > { %15957 = vmatprep.mubr.msk.f32.mxu0 %vm759_vm2, %v20639_v30 }
 0xa0c   : > { %15702 = vmatmul.mubr.msk.f32.gmra.mrb[24].mxu1 %vm759_vm2, %v9809_v50 }
 0xa0d   : > { %15958 = vmatmul.mubr.msk.f32.gmra.mrb[24].mxu0 %vm759_vm2, %v21891_v17  ;;  %15704 = vmatprep.mubr.msk.f32.mxu1 %vm759_vm2, %v9810_v8 }
 0xa0e   : > { %15960 = vmatprep.mubr.msk.f32.mxu0 %vm759_vm2, %v21893_v29  ;;  %v11793_v29 = vld [vmem:[%s17968_s26] sm:$0xff] }
 0xa10   : > { %15705 = vmatmul.mubr.msk.f32.gmra.mrb[26].mxu1 %vm759_vm2, %v9811_v15 }
 0xa11   : > { %15961 = vmatmul.mubr.msk.f32.gmra.mrb[26].mxu0 %vm759_vm2, %v21895_v42  ;;  %15707 = vmatprep.mubr.msk.f32.mxu1 %vm759_vm2, %v9812_v60 }
 0xa12   : > { %15963 = vmatprep.mubr.msk.f32.mxu0 %vm759_vm2, %v21927_v0  ;;  %v11802_v0 = vld [vmem:[%s17968_s26 + $0x48] sm:$0xff] }
 0xa14   : > { %15708 = vmatmul.mubr.msk.f32.gmra.mrb[28].mxu1 %vm759_vm2, %v9813_v11 }
 0xa15   : > { %15964 = vmatmul.mubr.msk.f32.gmra.mrb[28].mxu0 %vm759_vm2, %v21928_v28  ;;  %15710 = vmatprep.mubr.msk.f32.mxu1 %vm759_vm2, %v20972_v16 }
 0xa16   : > { %15966 = vmatprep.mubr.msk.f32.mxu0 %vm759_vm2, %v11390_v27 }
 0xa18   : > { %15711 = vmatmul.mubr.msk.f32.gmra.mrb[30].mxu1 %vm759_vm2, %v20982_v39 }
 0xa19   : > { %15967 = vmatmul.mubr.msk.f32.gmra.mrb[30].mxu0 %vm759_vm2, %v11391_v25  ;;  %v11801_v25 = vld [vmem:[%s17968_s26 + $0x40] sm:$0xff] }
 0xa8f   : > { %v15603_v24 = vpop.f32.mrb[0].mxu1 }
 0xa90   : > { %v9593_v45 = vpop.f32.mrb[1].mxu1 }
 0xa93   : > { %v15606_v43 = vpop.f32.mrb[2].mxu1 }
 0xa94   : > { %v9603_v20 = vpop.f32.mrb[3].mxu1 }
 0xa97   : > { %v15609_v26 = vpop.f32.mrb[4].mxu1 }
 0xa98   : > { %v9613_v51 = vpop.f32.mrb[5].mxu1 }
 0xa9b   : > { %v15612_v35 = vpop.f32.mrb[6].mxu1 }
 0xa9c   : > { %v9623_v21 = vpop.f32.mrb[7].mxu1 }
 0xa9f   : > { %v15615_v47 = vpop.f32.mrb[8].mxu1 }
 0xaa0   : > { %v9633_v62 = vpop.f32.mrb[9].mxu1 }
 0xaa3   : > { %v21106_v56 = vpop.f32.mrb[10].mxu1 }
 0xaa4   : > { %v21108_v46 = vpop.f32.mrb[11].mxu1 }
 0xaa7   : > { %v21110_v30 = vpop.f32.mrb[12].mxu1 }
 0xaa8   : > { %v21112_v37 = vpop.f32.mrb[13].mxu1 }
 0xaab   : > { %v21114_v54 = vpop.f32.mrb[14].mxu1 }
 0xaac   : > { %v21116_v5 = vpop.f32.mrb[15].mxu1 }
 0xab0   : > { %v15923_v57 = vpop.f32.mrb[0].mxu0 }
 0xab1   : > { %v16933_v49 = vadd.f32 %v15923_v57, %v15603_v24  ;;  %v11563_v44 = vpop.f32.mrb[1].mxu0 }
 0xab2   : > { %v16934_v59 = vadd.f32 %v11563_v44, %v9593_v45 }
 0xab3   : > { %v11762_v17 = vadd.f32 %v16933_v49, %v21121_v48 }
 0xab4   : > { %v11761_v42 = vadd.f32 %v16934_v59, %v21121_v48  ;;  %v15926_v2 = vpop.f32.mrb[2].mxu0 }
 0xab5   : > { %v11826_v22 = vadd.f32 %v11794_v52, %v11762_v17  ;;  %v16935_v4 = vadd.f32 %v15926_v2, %v15606_v43  ;;  %v11573_v53 = vpop.f32.mrb[3].mxu0  ;;  %v11806_v17 = vld [vmem:[%s17968_s26 + $0x68] sm:$0xff] }
 0xab6   : > { %v11825_v61 = vadd.f32 %v11793_v29, %v11761_v42  ;;  %v16936_v9 = vadd.f32 %v11573_v53, %v9603_v20  ;;  %v11805_v42 = vld [vmem:[%s17968_s26 + $0x60] sm:$0xff] }
 0xab7   : > { %11858 = vst.msk [vmem:[%s18020_s19 + $0x8] sm:$0xff] %vm759_vm2, %v11826_v22  ;;  %v11764_v12 = vadd.f32 %v16935_v4, %v21121_v48 }
 0xab8   : > { %11857 = vst.msk [vmem:[%s18020_s19] sm:$0xff] %vm759_vm2, %v11825_v61  ;;  %v11763_v41 = vadd.f32 %v16936_v9, %v21121_v48  ;;  %v15929_v16 = vpop.f32.mrb[4].mxu0 }
 0xab9   : > { %v11828_v10 = vadd.f32 %v11796_v58, %v11764_v12  ;;  %v16937_v34 = vadd.f32 %v15929_v16, %v15609_v26  ;;  %v11583_v7 = vpop.f32.mrb[5].mxu0  ;;  %v11808_v58 = vld [vmem:[%s17968_s26 + $0x78] sm:$0xff]  ;;  %v11807_v12 = vld [vmem:[%s17968_s26 + $0x70] sm:$0xff] }
 0xaba   : > { %v11827_v39 = vadd.f32 %v11795_v6, %v11763_v41  ;;  %v16938_v38 = vadd.f32 %v11583_v7, %v9613_v51 }
 0xabb   : > { %11860 = vst.msk [vmem:[%s18020_s19 + $0x18] sm:$0xff] %vm759_vm2, %v11828_v10  ;;  %v11766_v55 = vadd.f32 %v16937_v34, %v21121_v48 }
 0xabc   : > { %11859 = vst.msk [vmem:[%s18020_s19 + $0x10] sm:$0xff] %vm759_vm2, %v11827_v39  ;;  %v11765_v36 = vadd.f32 %v16938_v38, %v21121_v48  ;;  %v15932_v33 = vpop.f32.mrb[6].mxu0 }
 0xabd   : > { %v11830_v18 = vadd.f32 %v11798_v23, %v11766_v55  ;;  %v16939_v40 = vadd.f32 %v15932_v33, %v15612_v35  ;;  %v11593_v13 = vpop.f32.mrb[7].mxu0  ;;  %v11804_v35 = vld [vmem:[%s17968_s26 + $0x58] sm:$0xff]  ;;  %v11809_v55 = vld [vmem:[%s17968_s26 + $0x80] sm:$0xff] }
 0xabe   : > { %v11829_v32 = vadd.f32 %v11797_v1, %v11765_v36  ;;  %v16940_v14 = vadd.f32 %v11593_v13, %v9623_v21 }
 0xabf   : > { %11862 = vst.msk [vmem:[%s18020_s19 + $0x28] sm:$0xff] %vm759_vm2, %v11830_v18  ;;  %v11768_v3 = vadd.f32 %v16939_v40, %v21121_v48 }
 0xac0   : > { %11861 = vst.msk [vmem:[%s18020_s19 + $0x20] sm:$0xff] %vm759_vm2, %v11829_v32  ;;  %v11767_v63 = vadd.f32 %v16940_v14, %v21121_v48  ;;  %v15935_v50 = vpop.f32.mrb[8].mxu0  ;;  %v11812_v14 = vld [vmem:[%s17968_s26 + $0x98] sm:$0xff] }
 0xac1   : > { %v11832_v8 = vadd.f32 %v11800_v31, %v11768_v3  ;;  %v16941_v15 = vadd.f32 %v15935_v50, %v15615_v47  ;;  %v11603_v60 = vpop.f32.mrb[9].mxu0 }
 0xac2   : > { %v11831_v11 = vadd.f32 %v11799_v19, %v11767_v63  ;;  %v16942_v27 = vadd.f32 %v11603_v60, %v9633_v62  ;;  %v11803_v62 = vld [vmem:[%s17968_s26 + $0x50] sm:$0xff] }
 0xac3   : > { %11864 = vst.msk [vmem:[%s18020_s19 + $0x38] sm:$0xff] %vm759_vm2, %v11832_v8  ;;  %v11770_v28 = vadd.f32 %v16941_v15, %v21121_v48  ;;  %v11811_v63 = vld [vmem:[%s17968_s26 + $0x90] sm:$0xff] }
 0xac4   : > { %11863 = vst.msk [vmem:[%s18020_s19 + $0x30] sm:$0xff] %vm759_vm2, %v11831_v11  ;;  %v11769_v24 = vadd.f32 %v16942_v27, %v21121_v48  ;;  %v15938_v45 = vpop.f32.mrb[10].mxu0 }
 0xac5   : > { %v11834_v43 = vadd.f32 %v11802_v0, %v11770_v28  ;;  %v16943_v20 = vadd.f32 %v15938_v45, %v21106_v56  ;;  %v11613_v26 = vpop.f32.mrb[11].mxu0 }
 0xac6   : > { %v11833_v51 = vadd.f32 %v11801_v25, %v11769_v24  ;;  %v16944_v21 = vadd.f32 %v11613_v26, %v21108_v46  ;;  %v11814_v25 = vld [vmem:[%s17968_s26 + $0xa8] sm:$0xff] }
 0xac7   : > { %11866 = vst.msk [vmem:[%s18020_s19 + $0x48] sm:$0xff] %vm759_vm2, %v11834_v43  ;;  %v11772_v47 = vadd.f32 %v16943_v20, %v21121_v48  ;;  %v11813_v43 = vld [vmem:[%s17968_s26 + $0xa0] sm:$0xff] }
 0xac8   : > { %11865 = vst.msk [vmem:[%s18020_s19 + $0x40] sm:$0xff] %vm759_vm2, %v11833_v51  ;;  %v11771_v57 = vadd.f32 %v16944_v21, %v21121_v48  ;;  %v15941_v49 = vpop.f32.mrb[12].mxu0 }
 0xac9   : > { %v11836_v44 = vadd.f32 %v11804_v35, %v11772_v47  ;;  %v16945_v56 = vadd.f32 %v15941_v49, %v21110_v30  ;;  %v11623_v52 = vpop.f32.mrb[13].mxu0  ;;  %v11816_v49 = vld [vmem:[%s17968_s26 + $0xb8] sm:$0xff] }
 0xaca   : > { %v11835_v59 = vadd.f32 %v11803_v62, %v11771_v57  ;;  %v16946_v46 = vadd.f32 %v11623_v52, %v21112_v37  ;;  %v11815_v52 = vld [vmem:[%s17968_s26 + $0xb0] sm:$0xff] }
 0xacb   : > { %11868 = vst.msk [vmem:[%s18020_s19 + $0x58] sm:$0xff] %vm759_vm2, %v11836_v44  ;;  %v11774_v29 = vadd.f32 %v16945_v56, %v21121_v48 }
 0xacc   : > { %11867 = vst.msk [vmem:[%s18020_s19 + $0x50] sm:$0xff] %vm759_vm2, %v11835_v59  ;;  %v11773_v2 = vadd.f32 %v16946_v46, %v21121_v48  ;;  %v15944_v22 = vpop.f32.mrb[14].mxu0 }
 0xacd   : > { %v11838_v4 = vadd.f32 %v11806_v17, %v11774_v29  ;;  %v16947_v30 = vadd.f32 %v15944_v22, %v21114_v54  ;;  %v11633_v53 = vpop.f32.mrb[15].mxu0 }
 0xace   : > { %v11837_v61 = vadd.f32 %v11805_v42, %v11773_v2  ;;  %v16948_v37 = vadd.f32 %v11633_v53, %v21116_v5  ;;  %v11810_v5 = vld [vmem:[%s17968_s26 + $0x88] sm:$0xff] }
 0xacf   : > { %11870 = vst.msk [vmem:[%s18020_s19 + $0x68] sm:$0xff] %vm759_vm2, %v11838_v4  ;;  %v11776_v9 = vadd.f32 %v16947_v30, %v21121_v48  ;;  %v15691_v6 = vpop.f32.mrb[16].mxu1  ;;  %v11818_v30 = vld [vmem:[%s17968_s26 + $0xc8] sm:$0xff] }
 0xad0   : > { %11869 = vst.msk [vmem:[%s18020_s19 + $0x60] sm:$0xff] %vm759_vm2, %v11837_v61  ;;  %v11775_v41 = vadd.f32 %v16948_v37, %v21121_v48  ;;  %v15947_v54 = vpop.f32.mrb[16].mxu0  ;;  %v10067_v16 = vpop.f32.mrb[17].mxu1 }
 0xad1   : > { %v11840_v10 = vadd.f32 %v11808_v58, %v11776_v9  ;;  %v16949_v34 = vadd.f32 %v15947_v54, %v15691_v6  ;;  %v11643_v7 = vpop.f32.mrb[17].mxu0  ;;  %v11817_v58 = vld [vmem:[%s17968_s26 + $0xc0] sm:$0xff] }
 0xad2   : > { %v11839_v39 = vadd.f32 %v11807_v12, %v11775_v41  ;;  %v16950_v23 = vadd.f32 %v11643_v7, %v10067_v16 }
 0xad3   : > { %11872 = vst.msk [vmem:[%s18020_s19 + $0x78] sm:$0xff] %vm759_vm2, %v11840_v10  ;;  %v11778_v38 = vadd.f32 %v16949_v34, %v21121_v48  ;;  %v15694_v1 = vpop.f32.mrb[18].mxu1  ;;  %v11820_v34 = vld [vmem:[%s17968_s26 + $0xd8] sm:$0xff] }
 0xad4   : > { %11871 = vst.msk [vmem:[%s18020_s19 + $0x70] sm:$0xff] %vm759_vm2, %v11839_v39  ;;  %v11777_v36 = vadd.f32 %v16950_v23, %v21121_v48  ;;  %v15950_v33 = vpop.f32.mrb[18].mxu0  ;;  %v10077_v18 = vpop.f32.mrb[19].mxu1 }
 0xad5   : > { %v11842_v40 = vadd.f32 %v11810_v5, %v11778_v38  ;;  %v16951_v13 = vadd.f32 %v15950_v33, %v15694_v1  ;;  %v11653_v32 = vpop.f32.mrb[19].mxu0  ;;  %v11819_v5 = vld [vmem:[%s17968_s26 + $0xd0] sm:$0xff] }
 0xad6   : > { %v11841_v31 = vadd.f32 %v11809_v55, %v11777_v36  ;;  %v16952_v3 = vadd.f32 %v11653_v32, %v10077_v18 }
 0xad7   : > { %11874 = vst.msk [vmem:[%s18020_s19 + $0x88] sm:$0xff] %vm759_vm2, %v11842_v40  ;;  %v11780_v19 = vadd.f32 %v16951_v13, %v21121_v48  ;;  %v15697_v50 = vpop.f32.mrb[20].mxu1  ;;  %v11822_v13 = vld [vmem:[%s17968_s26 + $0xe8] sm:$0xff] }
 0xad8   : > { %11873 = vst.msk [vmem:[%s18020_s19 + $0x80] sm:$0xff] %vm759_vm2, %v11841_v31  ;;  %v11779_v8 = vadd.f32 %v16952_v3, %v21121_v48  ;;  %v15953_v15 = vpop.f32.mrb[20].mxu0  ;;  %v10087_v60 = vpop.f32.mrb[21].mxu1 }
 0xad9   : > { %v11844_v11 = vadd.f32 %v11812_v14, %v11780_v19  ;;  %v16953_v0 = vadd.f32 %v15953_v15, %v15697_v50  ;;  %v11663_v27 = vpop.f32.mrb[21].mxu0  ;;  %v11821_v14 = vld [vmem:[%s17968_s26 + $0xe0] sm:$0xff] }
 0xada   : > { %v11843_v28 = vadd.f32 %v11811_v63, %v11779_v8  ;;  %v16954_v24 = vadd.f32 %v11663_v27, %v10087_v60 }
 0xadb   : > { %11876 = vst.msk [vmem:[%s18020_s19 + $0x98] sm:$0xff] %vm759_vm2, %v11844_v11  ;;  %v11782_v45 = vadd.f32 %v16953_v0, %v21121_v48  ;;  %v15700_v20 = vpop.f32.mrb[22].mxu1  ;;  %v11824_v0 = vld [vmem:[%s17968_s26 + $0xf8] sm:$0xff] }
 0xadc   : > { %11875 = vst.msk [vmem:[%s18020_s19 + $0x90] sm:$0xff] %vm759_vm2, %v11843_v28  ;;  %v11781_v26 = vadd.f32 %v16954_v24, %v21121_v48  ;;  %v15956_v51 = vpop.f32.mrb[22].mxu0  ;;  %v10097_v35 = vpop.f32.mrb[23].mxu1 }
 0xadd   : > { %v11846_v21 = vadd.f32 %v11814_v25, %v11782_v45  ;;  %v16955_v47 = vadd.f32 %v15956_v51, %v15700_v20  ;;  %v11673_v62 = vpop.f32.mrb[23].mxu0  ;;  %v11823_v25 = vld [vmem:[%s17968_s26 + $0xf0] sm:$0xff] }
 0xade   : > { %v11845_v57 = vadd.f32 %v11813_v43, %v11781_v26  ;;  %v16956_v44 = vadd.f32 %v11673_v62, %v10097_v35 }
 0xadf   : > { %11878 = vst.msk [vmem:[%s18020_s19 + $0xa8] sm:$0xff] %vm759_vm2, %v11846_v21  ;;  %v11784_v56 = vadd.f32 %v16955_v47, %v21121_v48  ;;  %v15703_v59 = vpop.f32.mrb[24].mxu1 }
 0xae0   : > { %11877 = vst.msk [vmem:[%s18020_s19 + $0xa0] sm:$0xff] %vm759_vm2, %v11845_v57  ;;  %v11783_v17 = vadd.f32 %v16956_v44, %v21121_v48  ;;  %v15959_v46 = vpop.f32.mrb[24].mxu0  ;;  %v10107_v29 = vpop.f32.mrb[25].mxu1 }
 0xae1   : > { %v11848_v42 = vadd.f32 %v11816_v49, %v11784_v56  ;;  %v16957_v2 = vadd.f32 %v15959_v46, %v15703_v59  ;;  %v11683_v22 = vpop.f32.mrb[25].mxu0 }
 0xae2   : > { %v11847_v4 = vadd.f32 %v11815_v52, %v11783_v17  ;;  %v16958_v53 = vadd.f32 %v11683_v22, %v10107_v29 }
 0xae3   : > { %11880 = vst.msk [vmem:[%s18020_s19 + $0xb8] sm:$0xff] %vm759_vm2, %v11848_v42  ;;  %v11786_v61 = vadd.f32 %v16957_v2, %v21121_v48  ;;  %v15706_v37 = vpop.f32.mrb[26].mxu1 }
 0xae4   : > { %11879 = vst.msk [vmem:[%s18020_s19 + $0xb0] sm:$0xff] %vm759_vm2, %v11847_v4  ;;  %v11785_v9 = vadd.f32 %v16958_v53, %v21121_v48  ;;  %v15962_v12 = vpop.f32.mrb[26].mxu0  ;;  %v10117_v6 = vpop.f32.mrb[27].mxu1 }
 0xae5   : > { %v11850_v41 = vadd.f32 %v11818_v30, %v11786_v61  ;;  %v16959_v54 = vadd.f32 %v15962_v12, %v15706_v37  ;;  %v11693_v16 = vpop.f32.mrb[27].mxu0 }
 0xae6   : > { %v11849_v10 = vadd.f32 %v11817_v58, %v11785_v9  ;;  %v16960_v7 = vadd.f32 %v11693_v16, %v10117_v6 }
 0xae7   : > { %11882 = vst.msk [vmem:[%s18020_s19 + $0xc8] sm:$0xff] %vm759_vm2, %v11850_v41  ;;  %v11788_v39 = vadd.f32 %v16959_v54, %v21121_v48  ;;  %v15709_v23 = vpop.f32.mrb[28].mxu1 }
 0xae8   : > { %11881 = vst.msk [vmem:[%s18020_s19 + $0xc0] sm:$0xff] %vm759_vm2, %v11849_v10  ;;  %v11787_v38 = vadd.f32 %v16960_v7, %v21121_v48  ;;  %v15965_v55 = vpop.f32.mrb[28].mxu0  ;;  %v10127_v1 = vpop.f32.mrb[29].mxu1 }
 0xae9   : > { %v11852_v36 = vadd.f32 %v11820_v34, %v11788_v39  ;;  %v16961_v33 = vadd.f32 %v15965_v55, %v15709_v23  ;;  %v11703_v18 = vpop.f32.mrb[29].mxu0 }
 0xaea   : > { %v11851_v40 = vadd.f32 %v11819_v5, %v11787_v38  ;;  %v16962_v32 = vadd.f32 %v11703_v18, %v10127_v1 }
 0xaeb   : > { %11884 = vst.msk [vmem:[%s18020_s19 + $0xd8] sm:$0xff] %vm759_vm2, %v11852_v36  ;;  %v11790_v31 = vadd.f32 %v16961_v33, %v21121_v48  ;;  %v15712_v3 = vpop.f32.mrb[30].mxu1 }
 0xaec   : > { %11883 = vst.msk [vmem:[%s18020_s19 + $0xd0] sm:$0xff] %vm759_vm2, %v11851_v40  ;;  %v11789_v19 = vadd.f32 %v16962_v32, %v21121_v48  ;;  %v15968_v63 = vpop.f32.mrb[30].mxu0  ;;  %v10137_v50 = vpop.f32.mrb[31].mxu1 }
 0xaed   : > { %v11854_v8 = vadd.f32 %v11822_v13, %v11790_v31  ;;  %v16963_v15 = vadd.f32 %v15968_v63, %v15712_v3  ;;  %v11713_v60 = vpop.f32.mrb[31].mxu0 }
 0xaee   : > { %v11853_v11 = vadd.f32 %v11821_v14, %v11789_v19  ;;  %v16964_v27 = vadd.f32 %v11713_v60, %v10137_v50 }
 0xaef   : > { %11886 = vst.msk [vmem:[%s18020_s19 + $0xe8] sm:$0xff] %vm759_vm2, %v11854_v8  ;;  %v11792_v28 = vadd.f32 %v16963_v15, %v21121_v48 }
 0xaf0   : > { %11885 = vst.msk [vmem:[%s18020_s19 + $0xe0] sm:$0xff] %vm759_vm2, %v11853_v11  ;;  %v11791_v24 = vadd.f32 %v16964_v27, %v21121_v48 }
 0xaf1   : > { %v11856_v45 = vadd.f32 %v11824_v0, %v11792_v28 }
 0xaf2   : > { %v11855_v43 = vadd.f32 %v11823_v25, %v11791_v24 }
 0xaf3   : > { %11888 = vst.msk [vmem:[%s18020_s19 + $0xf8] sm:$0xff] %vm759_vm2, %v11856_v45 }
 0xaf4   : > { %11887 = vst.msk [vmem:[%s18020_s19 + $0xf0] sm:$0xff] %vm759_vm2, %v11855_v43 }
 0xaf5 PF: > { %s21930_s28 = sld [smem:[#allocation19_spill]]  ;;  %s21932_s5 = sld [smem:[#allocation146_spill]] }
 0xaf6   : > { %s11903_s29 = sshll.u32 %s18020_s19, 4  ;;  %s11890_s30 = scalar_lea.sflag [#allocation6], %s17964_s25  ;;  %s21264_s29 = int_to_ptr.vmem [resolvable:$true] %s11903_s29 }
 0xaf7   : > { %s17447_s0 = scalar_lea.vmem %s21264_s29, 4096  ;;  %s17589_s3 = smov [#allocation12]  }
 0xaf8   : > { %p17448_p4 = scmp.ne.s32.totalorder %s21264_s29, %s17447_s0  ;;  %s17451_s13 = sshll.u32 %s17589_s3, 4  ;;  %s17452_s13 = int_to_ptr.vmem [resolvable:$false] %s17451_s13 }
 0xaf9   : > { %s17453_s20 = scalar_lea.vmem %s17452_s13, 8192  ;;  %p17454_p0 = scmp.lt.s32.totalorder %s21264_s29, %s17452_s13 }
 0xafa   : > { %p17449_p7 = pnand %p17448_p4, %p17860_p13  ;;  %p17455_p11 = scmp.lt.s32.totalorder %s17453_s20, %s17447_s0 }
 0xafb   : > { %s13125_s1 = sshll.u32 %s21930_s28, 12 }
 0xafc   : > { %s21261_s26 = scalar_lea.hbm %s21932_s5, %s13125_s1  ;;  %p17450_p10 = pneg %p17449_p7 }
 0xafd   : > { %p17456_p9 = por %p17455_p11, %p17454_p0 }
 0xaff   : > { %p17457_p8 = pnand %p17456_p9, %p17450_p10 }
 0xb01   : > { %17460 = shalt.err (!%p17457_p8)
}
 0xb02   : > { %s17461_s19 = scalar_lea.hbm %s21261_s26, 4096  ;;  %s17465_s4 = scalar_lea.hbm %s21932_s5, 8192 }
 0xb03   : > { %p17462_p1 = scmp.ne.s32.totalorder %s21261_s26, %s17461_s19  ;;  %p17466_p5 = scmp.lt.u32.totalorder %s21261_s26, %s21932_s5 }
 0xb04   : > { %p17467_p2 = scmp.lt.u32.totalorder %s17465_s4, %s17461_s19  ;;  %p17469_p4 = scmp.lt.u32.totalorder %s17461_s19, %s21261_s26 }
 0xb05   : > { %p17463_p3 = pnand %p17462_p1, %p17860_p13 }
 0xb06   : > { %p17468_p12 = por %p17467_p2, %p17466_p5 }
 0xb07   : > { %p17464_p6 = pneg %p17463_p3 }
 0xb08   : > { %p17470_p7 = por %p17469_p4, %p17468_p12 }
 0xb0a   : > { %p17471_p10 = pnand %p17470_p7, %p17464_p6 }
 0xb0c   : > { %17474 = shalt.err (!%p17471_p10)
}
 0xb0d   : > { %s17590_s11 = smov 128   ;;  %s17591_s7 = smov 8  }
 0xb0e   : > { %17204 = dma.vmem_to_hbm [thread:$0]  (%p17860_p13), %s21264_s29, 4096, %s21261_s26, %s11890_s30, %s17590_s11, %s17590_s11, %s17591_s7  }
 0xb0f PF: > { %s21933_s16 = sld [smem:[#allocation18_spill]]  ;;  %s21934_s24 = sld [smem:[#allocation24_spill]] }
 0xb10   : > { %p17227_p0 = scmp.ge.s32.totalorder %s17577_s27, 2 }
 0xb15   : > { %s11918_s23 = sand.u32 1, %s21933_s16   ;;  %p21935_p11 = scmp.ne.s32.totalorder %s21934_s24, 0 }
 0xb16   : > { %s11919_s12 = scalar_lea.sflag [#allocation6], %s11918_s23 }
 0xb17   : > { %p17221_p9 = pnand %p17227_p0, %p21935_p11 }
 0xb19   : > { %17532 = dma.done.wait (!%p17221_p9), %s11919_s12, 4096  }
 0xb1a   : > { %17534 = vsyncadd (!%p17221_p9), %s11919_s12, 4294963200  ;;  %s31_s27 = sadd.s32 1, %s17577_s27   ;;  %s21936_s9 = sld [smem:[#allocation17_spill]] }
 0xb1b   : > { %p28_p8 = scmp.ge.s32.totalorder %s31_s27, 6   ;;  %s21937_s19 = sld [smem:[#allocation23_spill]] }
 0xb1c   : > { %s21938_s25 = sld [smem:[#allocation27_spill]]  ;;  %s21939_s23 = sld [smem:[#allocation20_spill]] }
 0xb1d   : > { %s21940_s24 = sld [smem:[#allocation21_spill]]  ;;  %s21941_s28 = sld [smem:[#allocation22_spill]] }
 0xb1e   : > { %s21942_s26 = sld [smem:[#allocation26_spill]]  ;;  %s21943_s17 = smov %s17541_s18 }
 0xb1f   : > { %s21945_s20 = smov %s17553_s21  ;;  %s21946_s21 = smov %s17557_s22 }
 0xb20   : > { %s21944_s18 = smov %s21936_s9  ;;  %30 = sbr.rel (!%p28_p8) target bundleno = 25 (0x19), region = 189 }
 0xb22   : > { %s21947_s22 = smov %s21938_s25 }
 0xb23   : > { %s21948_s25 = smov %s21941_s28 }
 0xb27   :  { %11924 = vsyncpa [#allocation5], 1 }
 0xb28   :  { %11926 = vsyncpa [#allocation5 + $0x1], 1 }
 0xb29   :  { %11927 = vsyncpa [#allocation8], 1 }
 0xb2a   :  { %11929 = vsyncpa [#allocation8 + $0x1], 1 }
 0xb2b   :  { %11930 = vsyncpa [#allocation11], 1 }
 0xb2c   :  { %11931 = vsyncpa [#allocation6], 1 }
 0xb2d   :  { %11933 = vsyncpa [#allocation6 + $0x1], 1 }

</bundles_post_ra>
